<compile_context>
chip_gen: v7x
topology: tpu7x:2x2x1
jax: 0.10.0
libtpu: 0.0.40
codegen_flags: <defaults>
</compile_context>

<pallas_src>
import math
import functools

import jax
import jax.numpy as jnp
from jax.experimental import pallas as pl
from jax.experimental.pallas import tpu as pltpu


def _group_attention_kernel(xpe_ref, w_ref, b_ref, o_ref, *,
                            num_heads: int, head_dim: int,
                            group_size: int, groups_per_block: int):
    C = num_heads * head_dim
    G = group_size
    GPB = groups_per_block
    T = GPB * G                                       # tokens per grid step

    # Token-row view of the (lane-dense) fused [x | pe] slab.
    xpe = xpe_ref[...].reshape(T, 2 * C)              # (T, 2C) bf16

    # Fused Q/K/V projection: one MXU matmul with K = 2C.  The attention scale
    # is folded into the q columns/bias; v ignores the pe half via zero rows.
    w_qkv = w_ref[:, :3 * C]                          # (2C, 3C) bf16
    qkv = jnp.dot(xpe, w_qkv,
                  preferred_element_type=jnp.float32) + b_ref[:, :3 * C]  # (T,3C)

    q = qkv[:, :C].astype(jnp.bfloat16)
    k = qkv[:, C:2 * C].astype(jnp.bfloat16)
    v = qkv[:, 2 * C:].astype(jnp.bfloat16)

    # Per-head attention, batched over the GPB groups of this slab.
    # TODO(synk): merge heads into the batch dim (or do this 8x8 contraction on
    #             the VPU) once the bundle dump confirms MXU push/drain binds.
    head_outs = []
    for h in range(num_heads):                        # static unroll (H small)
        lo = h * head_dim
        qh = q[:, lo:lo + head_dim].reshape(GPB, G, head_dim)
        kh = k[:, lo:lo + head_dim].reshape(GPB, G, head_dim)
        vh = v[:, lo:lo + head_dim].reshape(GPB, G, head_dim)

        s = jnp.einsum('bqd,bkd->bqk', qh, kh,
                       preferred_element_type=jnp.float32)        # (GPB, G, G)
        s = s - jnp.max(s, axis=-1, keepdims=True)
        p = jnp.exp(s)
        p = p * pl.reciprocal(jnp.sum(p, axis=-1, keepdims=True), approx=True)

        oh = jnp.einsum('bqk,bkd->bqd', p.astype(jnp.bfloat16), vh,
                        preferred_element_type=jnp.float32)       # (GPB, G, Dh)
        head_outs.append(oh.reshape(T, head_dim))

    attn = jnp.concatenate(head_outs, axis=-1).astype(jnp.bfloat16)   # (T, C)

    # Output projection (packed into the last C columns of the weight slab).
    out = jnp.dot(attn, w_ref[:C, 3 * C:],
                  preferred_element_type=jnp.float32) + b_ref[:, 3 * C:]  # (T,C)
    o_ref[...] = out.astype(o_ref.dtype).reshape(o_ref.shape)


def group_attention(x, pe, params, *, num_heads: int, group_size: int,
                    groups_per_block: int = 256, lane_dense_io: bool = True):
    """x, pe: (N, C); returns (N, C) in x.dtype (GroupAttention.forward)."""
    N, C = x.shape
    assert N % group_size == 0, "N must be a multiple of group_size"
    G = group_size
    B = N // G
    head_dim = C // num_heads
    assert head_dim * num_heads == C

    # ---- packed weights / biases (prepared once, outside the kernel) -------
    w_in = params["in_proj_weight"].astype(jnp.float32)     # (3C, C)
    b_in = params["in_proj_bias"].astype(jnp.float32)       # (3C,)
    w_out = params["out_proj_weight"].astype(jnp.float32)   # (C, C)
    b_out = params["out_proj_bias"].astype(jnp.float32)     # (C,)

    scale = 1.0 / math.sqrt(head_dim)
    wq, wk, wv = w_in[:C], w_in[C:2 * C], w_in[2 * C:]
    bq, bk, bv = b_in[:C], b_in[C:2 * C], b_in[2 * C:]

    # Fused [x | pe] -> qkv weights: q,k get x+pe, v gets only x.
    w_row_x = jnp.concatenate([(wq * scale).T, wk.T, wv.T], axis=1)          # (C, 3C)
    w_row_pe = jnp.concatenate([(wq * scale).T, wk.T, jnp.zeros_like(wv.T)],
                               axis=1)                                       # (C, 3C)
    w_qkv = jnp.concatenate([w_row_x, w_row_pe], axis=0)                     # (2C, 3C)
    w_o = jnp.concatenate([w_out.T, jnp.zeros((C, C), jnp.float32)], axis=0) # (2C, C)
    w_all = jnp.concatenate([w_qkv, w_o], axis=1).astype(jnp.bfloat16)       # (2C, 4C)
    b_all = jnp.concatenate([bq * scale, bk, bv, b_out]).reshape(1, 4 * C)   # f32

    out_dtype = x.dtype

    def run(gpb_req, in_cols, out_cols):
        # Groups per grid step: aim for a grid of >= 2 (two v7x TensorCores)
        # and round so every block's sublane count is a multiple of 8.
        gpb = max(1, min(gpb_req, -(-B // 2)))
        a_in = (8 * in_cols) // math.gcd(8 * in_cols, G * 2 * C)
        a_out = (8 * out_cols) // math.gcd(8 * out_cols, G * C)
        align = a_in * a_out // math.gcd(a_in, a_out)
        gpb = -(-gpb // align) * align
        B_pad = -(-B // gpb) * gpb
        N_pad = B_pad * G
        T = gpb * G

        xpe = jnp.concatenate([x, pe], axis=-1).astype(jnp.bfloat16)   # (N, 2C)
        if N_pad != N:
            xpe = jnp.pad(xpe, ((0, N_pad - N), (0, 0)))
        # Lane-dense (rows, 128) view; identity when in_cols == 2C.
        xpe = xpe.reshape(N_pad * 2 * C // in_cols, in_cols)

        kernel = functools.partial(_group_attention_kernel,
                                   num_heads=num_heads, head_dim=head_dim,
                                   group_size=G, groups_per_block=gpb)

        out = pl.pallas_call(
            kernel,
            out_shape=jax.ShapeDtypeStruct(
                (N_pad * C // out_cols, out_cols), out_dtype),
            grid_spec=pltpu.PrefetchScalarGridSpec(
                num_scalar_prefetch=0,
                grid=(B_pad // gpb,),
                in_specs=[
                    pl.BlockSpec((T * 2 * C // in_cols, in_cols),
                                 lambda i: (i, 0)),                  # [x | pe]
                    pl.BlockSpec((2 * C, 4 * C), lambda i: (0, 0)),  # weights
                    pl.BlockSpec((1, 4 * C), lambda i: (0, 0)),      # biases
                ],
                out_specs=pl.BlockSpec((T * C // out_cols, out_cols),
                                       lambda i: (i, 0)),
            ),
            compiler_params=pltpu.CompilerParams(
                dimension_semantics=("parallel",)),
        )(xpe, w_all, b_all)

        out = out.reshape(N_pad, C)
        return out[:N] if N_pad != N else out

    if lane_dense_io:
        dense_in = 128 if 2 * C < 128 else 2 * C
        dense_out = 128 if C < 128 else C
        try:
            return run(groups_per_block, dense_in, dense_out)
        except Exception:
            # The in-kernel lane<->sublane relayout (reshape to/from 128-lane
            # rows) is not supported by this Mosaic build; fall back to the
            # validated native-width block layout (same kernel body).
            pass
    return run(groups_per_block, 2 * C, C)


def init_params(key, in_channels: int):
    """Deterministic parameter init matching nn.MultiheadAttention shapes."""
    C = in_channels
    k1, k2 = jax.random.split(key)
    lim_in = math.sqrt(6.0 / (C + 3 * C))
    lim_out = 1.0 / math.sqrt(C)
    return {
        "in_proj_weight": jax.random.uniform(k1, (3 * C, C), jnp.float32,
                                             -lim_in, lim_in),
        "in_proj_bias": jnp.zeros((3 * C,), jnp.float32),
        "out_proj_weight": jax.random.uniform(k2, (C, C), jnp.float32,
                                              -lim_out, lim_out),
        "out_proj_bias": jnp.zeros((C,), jnp.float32),
    }


def _reference(x, pe, params, *, num_heads, group_size):
    """Pure-JAX f32 reference of GroupAttention.forward."""
    N, C = x.shape
    B = N // group_size
    Dh = C // num_heads
    xg = x.reshape(B, group_size, C)
    peg = pe.reshape(B, group_size, C)
    qk_in = xg + peg
    w_in, b_in = params["in_proj_weight"], params["in_proj_bias"]
    w_out, b_out = params["out_proj_weight"], params["out_proj_bias"]
    q = qk_in @ w_in[:C].T + b_in[:C]
    k = qk_in @ w_in[C:2 * C].T + b_in[C:2 * C]
    v = xg @ w_in[2 * C:].T + b_in[2 * C:]

    def split(t):  # (B, G, C) -> (B, H, G, Dh)
        return t.reshape(B, group_size, num_heads, Dh).transpose(0, 2, 1, 3)

    qh, kh, vh = split(q), split(k), split(v)
    s = jnp.einsum('bhqd,bhkd->bhqk', qh, kh) / math.sqrt(Dh)
    p = jax.nn.softmax(s, axis=-1)
    o = jnp.einsum('bhqk,bhkd->bhqd', p, vh)
    o = o.transpose(0, 2, 1, 3).reshape(B, group_size, C)
    o = o @ w_out.T + b_out
    return o.reshape(N, C)


if __name__ == "__main__":
    in_channels = 32
    num_heads = 4
    group_size = 8
    n_groups = 41                      # -> grid of 2 slabs, exercises padding
    N = n_groups * group_size          # 328 tokens

    key = jax.random.PRNGKey(0)
    kx, kpe, kp = jax.random.split(key, 3)
    x = jax.random.normal(kx, (N, in_channels), jnp.float32)
    pe = jax.random.normal(kpe, (N, in_channels), jnp.float32)
    params = init_params(kp, in_channels)

    out = group_attention(x, pe, params,
                          num_heads=num_heads, group_size=group_size)
    out = jax.block_until_ready(out)
    assert out.shape == (N, in_channels)

    # Loose check vs. f32 reference (kernel streams/multiplies in bf16).
    ref = _reference(x, pe, params, num_heads=num_heads, group_size=group_size)
    max_err = float(jnp.max(jnp.abs(out - ref)))
    assert jnp.isfinite(out).all()
    assert max_err < 0.25, f"max abs error too large: {max_err}"

    print("KERNEL_OK")
</pallas_src>

<mosaic_0001>
module attributes {stable_mosaic.version = 11 : i64} {
  func.func @_group_attention_kernel(%arg0: i32, %arg1: memref<96x128xbf16, #tpu.memory_space<vmem>>, %arg2: memref<64x128xbf16, #tpu.memory_space<vmem>>, %arg3: memref<1x128xf32, #tpu.memory_space<vmem>>, %arg4: memref<48x128xf32, #tpu.memory_space<vmem>>) attributes {dimension_semantics = [#tpu.dimension_semantics<parallel>], iteration_bounds = array<i64: 2>, scalar_prefetch = 0 : i64, scratch_operands = 0 : i64, tpu.core_type = #tpu.core_type<tc>, window_params = [{transform_indices = @transform_0, window_bounds = array<i64: 96, 128>}, {pipeline_mode = #tpu.pipeline_mode<synchronous>, transform_indices = @transform_1, window_bounds = array<i64: 64, 128>}, {pipeline_mode = #tpu.pipeline_mode<synchronous>, transform_indices = @transform_2, window_bounds = array<i64: 1, 128>}, {transform_indices = @transform_3, window_bounds = array<i64: 48, 128>}]} {
    %c0 = arith.constant 0 : index
    %c0_0 = arith.constant 0 : index
    %0 = vector.load %arg1[%c0, %c0_0] : memref<96x128xbf16, #tpu.memory_space<vmem>>, vector<96x128xbf16>
    %1 = vector.shape_cast %0 : vector<96x128xbf16> to vector<192x64xbf16>
    %c0_1 = arith.constant 0 : index
    %c0_2 = arith.constant 0 : index
    %2 = vector.load %arg2[%c0_1, %c0_2] : memref<64x128xbf16, #tpu.memory_space<vmem>>, vector<64x96xbf16>
    %cst = arith.constant dense<0.000000e+00> : vector<192x96xf32>
    %3 = tpu.matmul %1, %2, %cst {dimension_numbers = #tpu.dot_dimension_numbers<[1], [0], [0], [1], [0, 0, 1, 1], [], []>} : vector<192x64xbf16>, vector<64x96xbf16>, vector<192x96xf32> -> vector<192x96xf32>
    %c0_3 = arith.constant 0 : index
    %c0_4 = arith.constant 0 : index
    %4 = vector.load %arg3[%c0_3, %c0_4] : memref<1x128xf32, #tpu.memory_space<vmem>>, vector<1x96xf32>
    %5 = vector.broadcast %4 : vector<1x96xf32> to vector<192x96xf32>
    %6 = arith.addf %3, %5 : vector<192x96xf32>
    %7 = vector.extract_strided_slice %6 {offsets = [0, 0], sizes = [192, 32], strides = [1, 1]} : vector<192x96xf32> to vector<192x32xf32>
    %8 = arith.truncf %7 : vector<192x32xf32> to vector<192x32xbf16>
    %9 = vector.extract_strided_slice %6 {offsets = [0, 32], sizes = [192, 32], strides = [1, 1]} : vector<192x96xf32> to vector<192x32xf32>
    %10 = arith.truncf %9 : vector<192x32xf32> to vector<192x32xbf16>
    %11 = vector.extract_strided_slice %6 {offsets = [0, 64], sizes = [192, 32], strides = [1, 1]} : vector<192x96xf32> to vector<192x32xf32>
    %12 = arith.truncf %11 : vector<192x32xf32> to vector<192x32xbf16>
    %13 = vector.extract_strided_slice %8 {offsets = [0, 0], sizes = [192, 8], strides = [1, 1]} : vector<192x32xbf16> to vector<192x8xbf16>
    %14 = vector.shape_cast %13 : vector<192x8xbf16> to vector<24x8x8xbf16>
    %15 = vector.extract_strided_slice %10 {offsets = [0, 0], sizes = [192, 8], strides = [1, 1]} : vector<192x32xbf16> to vector<192x8xbf16>
    %16 = vector.shape_cast %15 : vector<192x8xbf16> to vector<24x8x8xbf16>
    %17 = vector.extract_strided_slice %12 {offsets = [0, 0], sizes = [192, 8], strides = [1, 1]} : vector<192x32xbf16> to vector<192x8xbf16>
    %18 = vector.shape_cast %17 : vector<192x8xbf16> to vector<24x8x8xbf16>
    "tpu.trace_start"() <{level = 10 : i32, message = "bqd,bkd->bqk"}> : () -> ()
    %cst_5 = arith.constant dense<0.000000e+00> : vector<24x8x8xf32>
    %19 = tpu.matmul %14, %16, %cst_5 {dimension_numbers = #tpu.dot_dimension_numbers<[2], [2], [1], [1], [0, 0, 0, 1, 1, 1], [0], [0]>} : vector<24x8x8xbf16>, vector<24x8x8xbf16>, vector<24x8x8xf32> -> vector<24x8x8xf32>
    "tpu.trace_stop"() : () -> ()
    %cst_6 = arith.constant dense<0xFF800000> : vector<24x8xf32>
    %20 = vector.multi_reduction <maximumf>, %19, %cst_6 [2] : vector<24x8x8xf32> to vector<24x8xf32>
    %21 = vector.shape_cast %20 : vector<24x8xf32> to vector<24x8x1xf32>
    %22 = vector.broadcast %21 : vector<24x8x1xf32> to vector<24x8x8xf32>
    %23 = arith.subf %19, %22 : vector<24x8x8xf32>
    %24 = math.exp %23 : vector<24x8x8xf32>
    %cst_7 = arith.constant dense<0.000000e+00> : vector<24x8xf32>
    %25 = vector.multi_reduction <add>, %24, %cst_7 [2] : vector<24x8x8xf32> to vector<24x8xf32>
    %26 = vector.shape_cast %25 : vector<24x8xf32> to vector<24x8x1xf32>
    %27 = tpu.reciprocal %26 {approx = true} : vector<24x8x1xf32> -> vector<24x8x1xf32>
    %28 = vector.broadcast %27 : vector<24x8x1xf32> to vector<24x8x8xf32>
    %29 = arith.mulf %24, %28 : vector<24x8x8xf32>
    %30 = arith.truncf %29 : vector<24x8x8xf32> to vector<24x8x8xbf16>
    "tpu.trace_start"() <{level = 10 : i32, message = "bqk,bkd->bqd"}> : () -> ()
    %cst_8 = arith.constant dense<0.000000e+00> : vector<24x8x8xf32>
    %31 = tpu.matmul %30, %18, %cst_8 {dimension_numbers = #tpu.dot_dimension_numbers<[2], [1], [1], [2], [0, 0, 0, 1, 1, 2], [0], [0]>} : vector<24x8x8xbf16>, vector<24x8x8xbf16>, vector<24x8x8xf32> -> vector<24x8x8xf32>
    "tpu.trace_stop"() : () -> ()
    %32 = vector.shape_cast %31 : vector<24x8x8xf32> to vector<192x8xf32>
    %33 = vector.extract_strided_slice %8 {offsets = [0, 8], sizes = [192, 8], strides = [1, 1]} : vector<192x32xbf16> to vector<192x8xbf16>
    %34 = vector.shape_cast %33 : vector<192x8xbf16> to vector<24x8x8xbf16>
    %35 = vector.extract_strided_slice %10 {offsets = [0, 8], sizes = [192, 8], strides = [1, 1]} : vector<192x32xbf16> to vector<192x8xbf16>
    %36 = vector.shape_cast %35 : vector<192x8xbf16> to vector<24x8x8xbf16>
    %37 = vector.extract_strided_slice %12 {offsets = [0, 8], sizes = [192, 8], strides = [1, 1]} : vector<192x32xbf16> to vector<192x8xbf16>
    %38 = vector.shape_cast %37 : vector<192x8xbf16> to vector<24x8x8xbf16>
    "tpu.trace_start"() <{level = 10 : i32, message = "bqd,bkd->bqk"}> : () -> ()
    %cst_9 = arith.constant dense<0.000000e+00> : vector<24x8x8xf32>
    %39 = tpu.matmul %34, %36, %cst_9 {dimension_numbers = #tpu.dot_dimension_numbers<[2], [2], [1], [1], [0, 0, 0, 1, 1, 1], [0], [0]>} : vector<24x8x8xbf16>, vector<24x8x8xbf16>, vector<24x8x8xf32> -> vector<24x8x8xf32>
    "tpu.trace_stop"() : () -> ()
    %cst_10 = arith.constant dense<0xFF800000> : vector<24x8xf32>
    %40 = vector.multi_reduction <maximumf>, %39, %cst_10 [2] : vector<24x8x8xf32> to vector<24x8xf32>
    %41 = vector.shape_cast %40 : vector<24x8xf32> to vector<24x8x1xf32>
    %42 = vector.broadcast %41 : vector<24x8x1xf32> to vector<24x8x8xf32>
    %43 = arith.subf %39, %42 : vector<24x8x8xf32>
    %44 = math.exp %43 : vector<24x8x8xf32>
    %cst_11 = arith.constant dense<0.000000e+00> : vector<24x8xf32>
    %45 = vector.multi_reduction <add>, %44, %cst_11 [2] : vector<24x8x8xf32> to vector<24x8xf32>
    %46 = vector.shape_cast %45 : vector<24x8xf32> to vector<24x8x1xf32>
    %47 = tpu.reciprocal %46 {approx = true} : vector<24x8x1xf32> -> vector<24x8x1xf32>
    %48 = vector.broadcast %47 : vector<24x8x1xf32> to vector<24x8x8xf32>
    %49 = arith.mulf %44, %48 : vector<24x8x8xf32>
    %50 = arith.truncf %49 : vector<24x8x8xf32> to vector<24x8x8xbf16>
    "tpu.trace_start"() <{level = 10 : i32, message = "bqk,bkd->bqd"}> : () -> ()
    %cst_12 = arith.constant dense<0.000000e+00> : vector<24x8x8xf32>
    %51 = tpu.matmul %50, %38, %cst_12 {dimension_numbers = #tpu.dot_dimension_numbers<[2], [1], [1], [2], [0, 0, 0, 1, 1, 2], [0], [0]>} : vector<24x8x8xbf16>, vector<24x8x8xbf16>, vector<24x8x8xf32> -> vector<24x8x8xf32>
    "tpu.trace_stop"() : () -> ()
    %52 = vector.shape_cast %51 : vector<24x8x8xf32> to vector<192x8xf32>
    %53 = vector.extract_strided_slice %8 {offsets = [0, 16], sizes = [192, 8], strides = [1, 1]} : vector<192x32xbf16> to vector<192x8xbf16>
    %54 = vector.shape_cast %53 : vector<192x8xbf16> to vector<24x8x8xbf16>
    %55 = vector.extract_strided_slice %10 {offsets = [0, 16], sizes = [192, 8], strides = [1, 1]} : vector<192x32xbf16> to vector<192x8xbf16>
    %56 = vector.shape_cast %55 : vector<192x8xbf16> to vector<24x8x8xbf16>
    %57 = vector.extract_strided_slice %12 {offsets = [0, 16], sizes = [192, 8], strides = [1, 1]} : vector<192x32xbf16> to vector<192x8xbf16>
    %58 = vector.shape_cast %57 : vector<192x8xbf16> to vector<24x8x8xbf16>
    "tpu.trace_start"() <{level = 10 : i32, message = "bqd,bkd->bqk"}> : () -> ()
    %cst_13 = arith.constant dense<0.000000e+00> : vector<24x8x8xf32>
    %59 = tpu.matmul %54, %56, %cst_13 {dimension_numbers = #tpu.dot_dimension_numbers<[2], [2], [1], [1], [0, 0, 0, 1, 1, 1], [0], [0]>} : vector<24x8x8xbf16>, vector<24x8x8xbf16>, vector<24x8x8xf32> -> vector<24x8x8xf32>
    "tpu.trace_stop"() : () -> ()
    %cst_14 = arith.constant dense<0xFF800000> : vector<24x8xf32>
    %60 = vector.multi_reduction <maximumf>, %59, %cst_14 [2] : vector<24x8x8xf32> to vector<24x8xf32>
    %61 = vector.shape_cast %60 : vector<24x8xf32> to vector<24x8x1xf32>
    %62 = vector.broadcast %61 : vector<24x8x1xf32> to vector<24x8x8xf32>
    %63 = arith.subf %59, %62 : vector<24x8x8xf32>
    %64 = math.exp %63 : vector<24x8x8xf32>
    %cst_15 = arith.constant dense<0.000000e+00> : vector<24x8xf32>
    %65 = vector.multi_reduction <add>, %64, %cst_15 [2] : vector<24x8x8xf32> to vector<24x8xf32>
    %66 = vector.shape_cast %65 : vector<24x8xf32> to vector<24x8x1xf32>
    %67 = tpu.reciprocal %66 {approx = true} : vector<24x8x1xf32> -> vector<24x8x1xf32>
    %68 = vector.broadcast %67 : vector<24x8x1xf32> to vector<24x8x8xf32>
    %69 = arith.mulf %64, %68 : vector<24x8x8xf32>
    %70 = arith.truncf %69 : vector<24x8x8xf32> to vector<24x8x8xbf16>
    "tpu.trace_start"() <{level = 10 : i32, message = "bqk,bkd->bqd"}> : () -> ()
    %cst_16 = arith.constant dense<0.000000e+00> : vector<24x8x8xf32>
    %71 = tpu.matmul %70, %58, %cst_16 {dimension_numbers = #tpu.dot_dimension_numbers<[2], [1], [1], [2], [0, 0, 0, 1, 1, 2], [0], [0]>} : vector<24x8x8xbf16>, vector<24x8x8xbf16>, vector<24x8x8xf32> -> vector<24x8x8xf32>
    "tpu.trace_stop"() : () -> ()
    %72 = vector.shape_cast %71 : vector<24x8x8xf32> to vector<192x8xf32>
    %73 = vector.extract_strided_slice %8 {offsets = [0, 24], sizes = [192, 8], strides = [1, 1]} : vector<192x32xbf16> to vector<192x8xbf16>
    %74 = vector.shape_cast %73 : vector<192x8xbf16> to vector<24x8x8xbf16>
    %75 = vector.extract_strided_slice %10 {offsets = [0, 24], sizes = [192, 8], strides = [1, 1]} : vector<192x32xbf16> to vector<192x8xbf16>
    %76 = vector.shape_cast %75 : vector<192x8xbf16> to vector<24x8x8xbf16>
    %77 = vector.extract_strided_slice %12 {offsets = [0, 24], sizes = [192, 8], strides = [1, 1]} : vector<192x32xbf16> to vector<192x8xbf16>
    %78 = vector.shape_cast %77 : vector<192x8xbf16> to vector<24x8x8xbf16>
    "tpu.trace_start"() <{level = 10 : i32, message = "bqd,bkd->bqk"}> : () -> ()
    %cst_17 = arith.constant dense<0.000000e+00> : vector<24x8x8xf32>
    %79 = tpu.matmul %74, %76, %cst_17 {dimension_numbers = #tpu.dot_dimension_numbers<[2], [2], [1], [1], [0, 0, 0, 1, 1, 1], [0], [0]>} : vector<24x8x8xbf16>, vector<24x8x8xbf16>, vector<24x8x8xf32> -> vector<24x8x8xf32>
    "tpu.trace_stop"() : () -> ()
    %cst_18 = arith.constant dense<0xFF800000> : vector<24x8xf32>
    %80 = vector.multi_reduction <maximumf>, %79, %cst_18 [2] : vector<24x8x8xf32> to vector<24x8xf32>
    %81 = vector.shape_cast %80 : vector<24x8xf32> to vector<24x8x1xf32>
    %82 = vector.broadcast %81 : vector<24x8x1xf32> to vector<24x8x8xf32>
    %83 = arith.subf %79, %82 : vector<24x8x8xf32>
    %84 = math.exp %83 : vector<24x8x8xf32>
    %cst_19 = arith.constant dense<0.000000e+00> : vector<24x8xf32>
    %85 = vector.multi_reduction <add>, %84, %cst_19 [2] : vector<24x8x8xf32> to vector<24x8xf32>
    %86 = vector.shape_cast %85 : vector<24x8xf32> to vector<24x8x1xf32>
    %87 = tpu.reciprocal %86 {approx = true} : vector<24x8x1xf32> -> vector<24x8x1xf32>
    %88 = vector.broadcast %87 : vector<24x8x1xf32> to vector<24x8x8xf32>
    %89 = arith.mulf %84, %88 : vector<24x8x8xf32>
    %90 = arith.truncf %89 : vector<24x8x8xf32> to vector<24x8x8xbf16>
    "tpu.trace_start"() <{level = 10 : i32, message = "bqk,bkd->bqd"}> : () -> ()
    %cst_20 = arith.constant dense<0.000000e+00> : vector<24x8x8xf32>
    %91 = tpu.matmul %90, %78, %cst_20 {dimension_numbers = #tpu.dot_dimension_numbers<[2], [1], [1], [2], [0, 0, 0, 1, 1, 2], [0], [0]>} : vector<24x8x8xbf16>, vector<24x8x8xbf16>, vector<24x8x8xf32> -> vector<24x8x8xf32>
    "tpu.trace_stop"() : () -> ()
    %92 = vector.shape_cast %91 : vector<24x8x8xf32> to vector<192x8xf32>
    %93 = tpu.concatenate %32, %52, %72, %92 in 1 : vector<192x8xf32>, vector<192x8xf32>, vector<192x8xf32>, vector<192x8xf32> -> vector<192x32xf32>
    %94 = arith.truncf %93 : vector<192x32xf32> to vector<192x32xbf16>
    %c0_21 = arith.constant 0 : index
    %c96 = arith.constant 96 : index
    %95 = vector.load %arg2[%c0_21, %c96] : memref<64x128xbf16, #tpu.memory_space<vmem>>, vector<32x32xbf16>
    %cst_22 = arith.constant dense<0.000000e+00> : vector<192x32xf32>
    %96 = tpu.matmul %94, %95, %cst_22 {dimension_numbers = #tpu.dot_dimension_numbers<[1], [0], [0], [1], [0, 0, 1, 1], [], []>} : vector<192x32xbf16>, vector<32x32xbf16>, vector<192x32xf32> -> vector<192x32xf32>
    %c0_23 = arith.constant 0 : index
    %c96_24 = arith.constant 96 : index
    %97 = vector.load %arg3[%c0_23, %c96_24] : memref<1x128xf32, #tpu.memory_space<vmem>>, vector<1x32xf32>
    %98 = vector.broadcast %97 : vector<1x32xf32> to vector<192x32xf32>
    %99 = arith.addf %96, %98 : vector<192x32xf32>
    %100 = vector.shape_cast %99 : vector<192x32xf32> to vector<48x128xf32>
    %c0_25 = arith.constant 0 : index
    %c0_26 = arith.constant 0 : index
    %101 = vector.load %arg4[%c0_25, %c0_26] : memref<48x128xf32, #tpu.memory_space<vmem>>, vector<48x128xf32>
    tpu.vector_store %arg4[%c0_25, %c0_26], %100 {strides = array<i32>} : memref<48x128xf32, #tpu.memory_space<vmem>>, vector<48x128xf32>,
    return
  }
  func.func @transform_0(%arg0: i32) -> (i32, i32) {
    %c0_i32 = arith.constant 0 : i32
    %c0_i32_0 = arith.constant 0 : i32
    return %arg0, %c0_i32 : i32, i32
  }
  func.func @transform_1(%arg0: i32) -> (i32, i32) {
    %c0_i32 = arith.constant 0 : i32
    %c0_i32_0 = arith.constant 0 : i32
    %c0_i32_1 = arith.constant 0 : i32
    return %c0_i32, %c0_i32_0 : i32, i32
  }
  func.func @transform_2(%arg0: i32) -> (i32, i32) {
    %c0_i32 = arith.constant 0 : i32
    %c0_i32_0 = arith.constant 0 : i32
    %c0_i32_1 = arith.constant 0 : i32
    return %c0_i32, %c0_i32_0 : i32, i32
  }
  func.func @transform_3(%arg0: i32) -> (i32, i32) {
    %c0_i32 = arith.constant 0 : i32
    %c0_i32_0 = arith.constant 0 : i32
    return %arg0, %c0_i32 : i32, i32
  }
}

module attributes {stable_mosaic.version = 11 : i64} {
  func.func @_group_attention_kernel(%arg0: i32, %arg1: memref<168x64xbf16, #tpu.memory_space<vmem>>, %arg2: memref<64x128xbf16, #tpu.memory_space<vmem>>, %arg3: memref<1x128xf32, #tpu.memory_space<vmem>>, %arg4: memref<168x32xf32, #tpu.memory_space<vmem>>) attributes {dimension_semantics = [#tpu.dimension_semantics<parallel>], iteration_bounds = array<i64: 2>, scalar_prefetch = 0 : i64, scratch_operands = 0 : i64, tpu.core_type = #tpu.core_type<tc>, window_params = [{transform_indices = @transform_0, window_bounds = array<i64: 168, 64>}, {pipeline_mode = #tpu.pipeline_mode<synchronous>, transform_indices = @transform_1, window_bounds = array<i64: 64, 128>}, {pipeline_mode = #tpu.pipeline_mode<synchronous>, transform_indices = @transform_2, window_bounds = array<i64: 1, 128>}, {transform_indices = @transform_3, window_bounds = array<i64: 168, 32>}]} {
    %c0 = arith.constant 0 : index
    %c0_0 = arith.constant 0 : index
    %0 = vector.load %arg1[%c0, %c0_0] : memref<168x64xbf16, #tpu.memory_space<vmem>>, vector<168x64xbf16>
    %c0_1 = arith.constant 0 : index
    %c0_2 = arith.constant 0 : index
    %1 = vector.load %arg2[%c0_1, %c0_2] : memref<64x128xbf16, #tpu.memory_space<vmem>>, vector<64x96xbf16>
    %cst = arith.constant dense<0.000000e+00> : vector<168x96xf32>
    %2 = tpu.matmul %0, %1, %cst {dimension_numbers = #tpu.dot_dimension_numbers<[1], [0], [0], [1], [0, 0, 1, 1], [], []>} : vector<168x64xbf16>, vector<64x96xbf16>, vector<168x96xf32> -> vector<168x96xf32>
    %c0_3 = arith.constant 0 : index
    %c0_4 = arith.constant 0 : index
    %3 = vector.load %arg3[%c0_3, %c0_4] : memref<1x128xf32, #tpu.memory_space<vmem>>, vector<1x96xf32>
    %4 = vector.broadcast %3 : vector<1x96xf32> to vector<168x96xf32>
    %5 = arith.addf %2, %4 : vector<168x96xf32>
    %6 = vector.extract_strided_slice %5 {offsets = [0, 0], sizes = [168, 32], strides = [1, 1]} : vector<168x96xf32> to vector<168x32xf32>
    %7 = arith.truncf %6 : vector<168x32xf32> to vector<168x32xbf16>
    %8 = vector.extract_strided_slice %5 {offsets = [0, 32], sizes = [168, 32], strides = [1, 1]} : vector<168x96xf32> to vector<168x32xf32>
    %9 = arith.truncf %8 : vector<168x32xf32> to vector<168x32xbf16>
    %10 = vector.extract_strided_slice %5 {offsets = [0, 64], sizes = [168, 32], strides = [1, 1]} : vector<168x96xf32> to vector<168x32xf32>
    %11 = arith.truncf %10 : vector<168x32xf32> to vector<168x32xbf16>
    %12 = vector.extract_strided_slice %7 {offsets = [0, 0], sizes = [168, 8], strides = [1, 1]} : vector<168x32xbf16> to vector<168x8xbf16>
    %13 = vector.shape_cast %12 : vector<168x8xbf16> to vector<21x8x8xbf16>
    %14 = vector.extract_strided_slice %9 {offsets = [0, 0], sizes = [168, 8], strides = [1, 1]} : vector<168x32xbf16> to vector<168x8xbf16>
    %15 = vector.shape_cast %14 : vector<168x8xbf16> to vector<21x8x8xbf16>
    %16 = vector.extract_strided_slice %11 {offsets = [0, 0], sizes = [168, 8], strides = [1, 1]} : vector<168x32xbf16> to vector<168x8xbf16>
    %17 = vector.shape_cast %16 : vector<168x8xbf16> to vector<21x8x8xbf16>
    "tpu.trace_start"() <{level = 10 : i32, message = "bqd,bkd->bqk"}> : () -> ()
    %cst_5 = arith.constant dense<0.000000e+00> : vector<21x8x8xf32>
    %18 = tpu.matmul %13, %15, %cst_5 {dimension_numbers = #tpu.dot_dimension_numbers<[2], [2], [1], [1], [0, 0, 0, 1, 1, 1], [0], [0]>} : vector<21x8x8xbf16>, vector<21x8x8xbf16>, vector<21x8x8xf32> -> vector<21x8x8xf32>
    "tpu.trace_stop"() : () -> ()
    %cst_6 = arith.constant dense<0xFF800000> : vector<21x8xf32>
    %19 = vector.multi_reduction <maximumf>, %18, %cst_6 [2] : vector<21x8x8xf32> to vector<21x8xf32>
    %20 = vector.shape_cast %19 : vector<21x8xf32> to vector<21x8x1xf32>
    %21 = vector.broadcast %20 : vector<21x8x1xf32> to vector<21x8x8xf32>
    %22 = arith.subf %18, %21 : vector<21x8x8xf32>
    %23 = math.exp %22 : vector<21x8x8xf32>
    %cst_7 = arith.constant dense<0.000000e+00> : vector<21x8xf32>
    %24 = vector.multi_reduction <add>, %23, %cst_7 [2] : vector<21x8x8xf32> to vector<21x8xf32>
    %25 = vector.shape_cast %24 : vector<21x8xf32> to vector<21x8x1xf32>
    %26 = tpu.reciprocal %25 {approx = true} : vector<21x8x1xf32> -> vector<21x8x1xf32>
    %27 = vector.broadcast %26 : vector<21x8x1xf32> to vector<21x8x8xf32>
    %28 = arith.mulf %23, %27 : vector<21x8x8xf32>
    %29 = arith.truncf %28 : vector<21x8x8xf32> to vector<21x8x8xbf16>
    "tpu.trace_start"() <{level = 10 : i32, message = "bqk,bkd->bqd"}> : () -> ()
    %cst_8 = arith.constant dense<0.000000e+00> : vector<21x8x8xf32>
    %30 = tpu.matmul %29, %17, %cst_8 {dimension_numbers = #tpu.dot_dimension_numbers<[2], [1], [1], [2], [0, 0, 0, 1, 1, 2], [0], [0]>} : vector<21x8x8xbf16>, vector<21x8x8xbf16>, vector<21x8x8xf32> -> vector<21x8x8xf32>
    "tpu.trace_stop"() : () -> ()
    %31 = vector.shape_cast %30 : vector<21x8x8xf32> to vector<168x8xf32>
    %32 = vector.extract_strided_slice %7 {offsets = [0, 8], sizes = [168, 8], strides = [1, 1]} : vector<168x32xbf16> to vector<168x8xbf16>
    %33 = vector.shape_cast %32 : vector<168x8xbf16> to vector<21x8x8xbf16>
    %34 = vector.extract_strided_slice %9 {offsets = [0, 8], sizes = [168, 8], strides = [1, 1]} : vector<168x32xbf16> to vector<168x8xbf16>
    %35 = vector.shape_cast %34 : vector<168x8xbf16> to vector<21x8x8xbf16>
    %36 = vector.extract_strided_slice %11 {offsets = [0, 8], sizes = [168, 8], strides = [1, 1]} : vector<168x32xbf16> to vector<168x8xbf16>
    %37 = vector.shape_cast %36 : vector<168x8xbf16> to vector<21x8x8xbf16>
    "tpu.trace_start"() <{level = 10 : i32, message = "bqd,bkd->bqk"}> : () -> ()
    %cst_9 = arith.constant dense<0.000000e+00> : vector<21x8x8xf32>
    %38 = tpu.matmul %33, %35, %cst_9 {dimension_numbers = #tpu.dot_dimension_numbers<[2], [2], [1], [1], [0, 0, 0, 1, 1, 1], [0], [0]>} : vector<21x8x8xbf16>, vector<21x8x8xbf16>, vector<21x8x8xf32> -> vector<21x8x8xf32>
    "tpu.trace_stop"() : () -> ()
    %cst_10 = arith.constant dense<0xFF800000> : vector<21x8xf32>
    %39 = vector.multi_reduction <maximumf>, %38, %cst_10 [2] : vector<21x8x8xf32> to vector<21x8xf32>
    %40 = vector.shape_cast %39 : vector<21x8xf32> to vector<21x8x1xf32>
    %41 = vector.broadcast %40 : vector<21x8x1xf32> to vector<21x8x8xf32>
    %42 = arith.subf %38, %41 : vector<21x8x8xf32>
    %43 = math.exp %42 : vector<21x8x8xf32>
    %cst_11 = arith.constant dense<0.000000e+00> : vector<21x8xf32>
    %44 = vector.multi_reduction <add>, %43, %cst_11 [2] : vector<21x8x8xf32> to vector<21x8xf32>
    %45 = vector.shape_cast %44 : vector<21x8xf32> to vector<21x8x1xf32>
    %46 = tpu.reciprocal %45 {approx = true} : vector<21x8x1xf32> -> vector<21x8x1xf32>
    %47 = vector.broadcast %46 : vector<21x8x1xf32> to vector<21x8x8xf32>
    %48 = arith.mulf %43, %47 : vector<21x8x8xf32>
    %49 = arith.truncf %48 : vector<21x8x8xf32> to vector<21x8x8xbf16>
    "tpu.trace_start"() <{level = 10 : i32, message = "bqk,bkd->bqd"}> : () -> ()
    %cst_12 = arith.constant dense<0.000000e+00> : vector<21x8x8xf32>
    %50 = tpu.matmul %49, %37, %cst_12 {dimension_numbers = #tpu.dot_dimension_numbers<[2], [1], [1], [2], [0, 0, 0, 1, 1, 2], [0], [0]>} : vector<21x8x8xbf16>, vector<21x8x8xbf16>, vector<21x8x8xf32> -> vector<21x8x8xf32>
    "tpu.trace_stop"() : () -> ()
    %51 = vector.shape_cast %50 : vector<21x8x8xf32> to vector<168x8xf32>
    %52 = vector.extract_strided_slice %7 {offsets = [0, 16], sizes = [168, 8], strides = [1, 1]} : vector<168x32xbf16> to vector<168x8xbf16>
    %53 = vector.shape_cast %52 : vector<168x8xbf16> to vector<21x8x8xbf16>
    %54 = vector.extract_strided_slice %9 {offsets = [0, 16], sizes = [168, 8], strides = [1, 1]} : vector<168x32xbf16> to vector<168x8xbf16>
    %55 = vector.shape_cast %54 : vector<168x8xbf16> to vector<21x8x8xbf16>
    %56 = vector.extract_strided_slice %11 {offsets = [0, 16], sizes = [168, 8], strides = [1, 1]} : vector<168x32xbf16> to vector<168x8xbf16>
    %57 = vector.shape_cast %56 : vector<168x8xbf16> to vector<21x8x8xbf16>
    "tpu.trace_start"() <{level = 10 : i32, message = "bqd,bkd->bqk"}> : () -> ()
    %cst_13 = arith.constant dense<0.000000e+00> : vector<21x8x8xf32>
    %58 = tpu.matmul %53, %55, %cst_13 {dimension_numbers = #tpu.dot_dimension_numbers<[2], [2], [1], [1], [0, 0, 0, 1, 1, 1], [0], [0]>} : vector<21x8x8xbf16>, vector<21x8x8xbf16>, vector<21x8x8xf32> -> vector<21x8x8xf32>
    "tpu.trace_stop"() : () -> ()
    %cst_14 = arith.constant dense<0xFF800000> : vector<21x8xf32>
    %59 = vector.multi_reduction <maximumf>, %58, %cst_14 [2] : vector<21x8x8xf32> to vector<21x8xf32>
    %60 = vector.shape_cast %59 : vector<21x8xf32> to vector<21x8x1xf32>
    %61 = vector.broadcast %60 : vector<21x8x1xf32> to vector<21x8x8xf32>
    %62 = arith.subf %58, %61 : vector<21x8x8xf32>
    %63 = math.exp %62 : vector<21x8x8xf32>
    %cst_15 = arith.constant dense<0.000000e+00> : vector<21x8xf32>
    %64 = vector.multi_reduction <add>, %63, %cst_15 [2] : vector<21x8x8xf32> to vector<21x8xf32>
    %65 = vector.shape_cast %64 : vector<21x8xf32> to vector<21x8x1xf32>
    %66 = tpu.reciprocal %65 {approx = true} : vector<21x8x1xf32> -> vector<21x8x1xf32>
    %67 = vector.broadcast %66 : vector<21x8x1xf32> to vector<21x8x8xf32>
    %68 = arith.mulf %63, %67 : vector<21x8x8xf32>
    %69 = arith.truncf %68 : vector<21x8x8xf32> to vector<21x8x8xbf16>
    "tpu.trace_start"() <{level = 10 : i32, message = "bqk,bkd->bqd"}> : () -> ()
    %cst_16 = arith.constant dense<0.000000e+00> : vector<21x8x8xf32>
    %70 = tpu.matmul %69, %57, %cst_16 {dimension_numbers = #tpu.dot_dimension_numbers<[2], [1], [1], [2], [0, 0, 0, 1, 1, 2], [0], [0]>} : vector<21x8x8xbf16>, vector<21x8x8xbf16>, vector<21x8x8xf32> -> vector<21x8x8xf32>
    "tpu.trace_stop"() : () -> ()
    %71 = vector.shape_cast %70 : vector<21x8x8xf32> to vector<168x8xf32>
    %72 = vector.extract_strided_slice %7 {offsets = [0, 24], sizes = [168, 8], strides = [1, 1]} : vector<168x32xbf16> to vector<168x8xbf16>
    %73 = vector.shape_cast %72 : vector<168x8xbf16> to vector<21x8x8xbf16>
    %74 = vector.extract_strided_slice %9 {offsets = [0, 24], sizes = [168, 8], strides = [1, 1]} : vector<168x32xbf16> to vector<168x8xbf16>
    %75 = vector.shape_cast %74 : vector<168x8xbf16> to vector<21x8x8xbf16>
    %76 = vector.extract_strided_slice %11 {offsets = [0, 24], sizes = [168, 8], strides = [1, 1]} : vector<168x32xbf16> to vector<168x8xbf16>
    %77 = vector.shape_cast %76 : vector<168x8xbf16> to vector<21x8x8xbf16>
    "tpu.trace_start"() <{level = 10 : i32, message = "bqd,bkd->bqk"}> : () -> ()
    %cst_17 = arith.constant dense<0.000000e+00> : vector<21x8x8xf32>
    %78 = tpu.matmul %73, %75, %cst_17 {dimension_numbers = #tpu.dot_dimension_numbers<[2], [2], [1], [1], [0, 0, 0, 1, 1, 1], [0], [0]>} : vector<21x8x8xbf16>, vector<21x8x8xbf16>, vector<21x8x8xf32> -> vector<21x8x8xf32>
    "tpu.trace_stop"() : () -> ()
    %cst_18 = arith.constant dense<0xFF800000> : vector<21x8xf32>
    %79 = vector.multi_reduction <maximumf>, %78, %cst_18 [2] : vector<21x8x8xf32> to vector<21x8xf32>
    %80 = vector.shape_cast %79 : vector<21x8xf32> to vector<21x8x1xf32>
    %81 = vector.broadcast %80 : vector<21x8x1xf32> to vector<21x8x8xf32>
    %82 = arith.subf %78, %81 : vector<21x8x8xf32>
    %83 = math.exp %82 : vector<21x8x8xf32>
    %cst_19 = arith.constant dense<0.000000e+00> : vector<21x8xf32>
    %84 = vector.multi_reduction <add>, %83, %cst_19 [2] : vector<21x8x8xf32> to vector<21x8xf32>
    %85 = vector.shape_cast %84 : vector<21x8xf32> to vector<21x8x1xf32>
    %86 = tpu.reciprocal %85 {approx = true} : vector<21x8x1xf32> -> vector<21x8x1xf32>
    %87 = vector.broadcast %86 : vector<21x8x1xf32> to vector<21x8x8xf32>
    %88 = arith.mulf %83, %87 : vector<21x8x8xf32>
    %89 = arith.truncf %88 : vector<21x8x8xf32> to vector<21x8x8xbf16>
    "tpu.trace_start"() <{level = 10 : i32, message = "bqk,bkd->bqd"}> : () -> ()
    %cst_20 = arith.constant dense<0.000000e+00> : vector<21x8x8xf32>
    %90 = tpu.matmul %89, %77, %cst_20 {dimension_numbers = #tpu.dot_dimension_numbers<[2], [1], [1], [2], [0, 0, 0, 1, 1, 2], [0], [0]>} : vector<21x8x8xbf16>, vector<21x8x8xbf16>, vector<21x8x8xf32> -> vector<21x8x8xf32>
    "tpu.trace_stop"() : () -> ()
    %91 = vector.shape_cast %90 : vector<21x8x8xf32> to vector<168x8xf32>
    %92 = tpu.concatenate %31, %51, %71, %91 in 1 : vector<168x8xf32>, vector<168x8xf32>, vector<168x8xf32>, vector<168x8xf32> -> vector<168x32xf32>
    %93 = arith.truncf %92 : vector<168x32xf32> to vector<168x32xbf16>
    %c0_21 = arith.constant 0 : index
    %c96 = arith.constant 96 : index
    %94 = vector.load %arg2[%c0_21, %c96] : memref<64x128xbf16, #tpu.memory_space<vmem>>, vector<32x32xbf16>
    %cst_22 = arith.constant dense<0.000000e+00> : vector<168x32xf32>
    %95 = tpu.matmul %93, %94, %cst_22 {dimension_numbers = #tpu.dot_dimension_numbers<[1], [0], [0], [1], [0, 0, 1, 1], [], []>} : vector<168x32xbf16>, vector<32x32xbf16>, vector<168x32xf32> -> vector<168x32xf32>
    %c0_23 = arith.constant 0 : index
    %c96_24 = arith.constant 96 : index
    %96 = vector.load %arg3[%c0_23, %c96_24] : memref<1x128xf32, #tpu.memory_space<vmem>>, vector<1x32xf32>
    %97 = vector.broadcast %96 : vector<1x32xf32> to vector<168x32xf32>
    %98 = arith.addf %95, %97 : vector<168x32xf32>
    %c0_25 = arith.constant 0 : index
    %c0_26 = arith.constant 0 : index
    %99 = vector.load %arg4[%c0_25, %c0_26] : memref<168x32xf32, #tpu.memory_space<vmem>>, vector<168x32xf32>
    tpu.vector_store %arg4[%c0_25, %c0_26], %98 {strides = array<i32>} : memref<168x32xf32, #tpu.memory_space<vmem>>, vector<168x32xf32>,
    return
  }
  func.func @transform_0(%arg0: i32) -> (i32, i32) {
    %c0_i32 = arith.constant 0 : i32
    %c0_i32_0 = arith.constant 0 : i32
    return %arg0, %c0_i32 : i32, i32
  }
  func.func @transform_1(%arg0: i32) -> (i32, i32) {
    %c0_i32 = arith.constant 0 : i32
    %c0_i32_0 = arith.constant 0 : i32
    %c0_i32_1 = arith.constant 0 : i32
    return %c0_i32, %c0_i32_0 : i32, i32
  }
  func.func @transform_2(%arg0: i32) -> (i32, i32) {
    %c0_i32 = arith.constant 0 : i32
    %c0_i32_0 = arith.constant 0 : i32
    %c0_i32_1 = arith.constant 0 : i32
    return %c0_i32, %c0_i32_0 : i32, i32
  }
  func.func @transform_3(%arg0: i32) -> (i32, i32) {
    %c0_i32 = arith.constant 0 : i32
    %c0_i32_0 = arith.constant 0 : i32
    return %arg0, %c0_i32 : i32, i32
  }
}

</mosaic_0001>

<bundles_post_ra>
// kernel: tpu_custom_call.1
= control target key start
LH: loop header
LB: loop body
LE: loop exit
PB: predicated region body
PF: predicated region fallthrough
CT: control target
= control target key end

     0   :  { %s12607_s12 = smov 0   ;;  %s15601_s0 = inlined_call_operand.vmem [shape: bf16[336,64], index: 0, kind: input, shape index: {}]   ;;  %s15602_s1 = inlined_call_operand.vmem [shape: bf16[64,128], index: 1, kind: input, shape index: {}]   ;;  %s15603_s2 = inlined_call_operand.vmem [shape: f32[1,128], index: 2, kind: input, shape index: {}]   ;;  %s15604_s3 = inlined_call_operand.vmem [shape: f32[336,32], index: 3, kind: output, shape index: {}]  }
   0x1 LB: > { %s10294_s13 = sadd.s32 4294967295, %s12568_s12   ;;  %p10298_p0 = scmp.ge.s32.totalorder %s12568_s12, 1  ;;  %s12568_s12 = sphi %s12607_s12, %s13_s12  }
   0x2   : > { %p138_p1 = scmp.lt.s32.totalorder %s12568_s12, 3 }
   0x4   : > { %p139_p2 = pnand %p10298_p0, %p138_p1 }
   0x6   : > { %142 = sbr.rel (%p139_p2) target bundleno = 3743 (0xe9f), region = 32 }
   0xd   : > { %v12209_v0 = vld [vmem:[%s15602_s1] sm:$0xff]   ;;  %v15605_v1 = vmov 0.0   ;;  %v12210_v2 = vld [vmem:[%s15602_s1 + $0x8] sm:$0xff]   ;;  %vm12571_vm0 = vmmov 0   ;;  %s162_s18 = smul.u32 21, %s10294_s13  ;;  %v12211_v3 = vld [vmem:[%s15602_s1 + $0x10] sm:$0xff]  }
   0xe   : > { %10918 = vmatprep.subr.bf16.mxu0 %v15605_v1  ;;  %12026 = vmatprep.subr.bf16.mxu1 %v15605_v1  ;;  %v12212_v4 = vld [vmem:[%s15602_s1 + $0x18] sm:$0xff]   ;;  %vm288_vm1 = vcmask 523264   ;;  %v12696_v16 = vld [vmem:[%s15603_s2] ss:$0 sm:$0xff]  ;;  %s12572_s29 = smov 96   ;;  %s12573_s30 = smov 64  }
   0xf   : > { %10919 = vmatpush3.bf16.msra.mxu0 %v12209_v0  ;;  %10926 = vmatprep.mubr.msk.bf16.mxu0 %vm12571_vm0, %v15605_v1  ;;  %p163_p3 = scmp.lt.s32.totalorder %s162_s18, 41  ;;  %vm508_vm2 = vcmask 64512   ;;  %vm1772_vm3 = vcmask 1043456   ;;  %s12574_s4 = smov 88   ;;  %vm9979_vm4 = vcmask 130048   ;;  %vm10001_vm5 = vcmask 195584  }
  0x10   : > { %10920 = vmatprep.subr.bf16.mxu0 %v15605_v1  ;;  %12030 = vmatpush3.bf16.msra.mxu1 %v12209_v0  ;;  %s12575_s5 = smov 120   ;;  %s12576_s6 = smov 56   ;;  %vm10063_vm6 = vcmask 261120  }
  0x11   : > { %12027 = vmatprep.subr.bf16.mxu1 %v15605_v1  ;;  %10950 = vmatprep.mubr.msk.bf16.mxu1 %vm12571_vm0, %v15605_v1  ;;  %s15804_s18 = smov (!%p163_p3, %s162_s18), 41  ;;  %s12577_s7 = smov 80  }
  0x12   : > { %s10299_s21 = sshll.u32 %s15804_s18, 2  ;;  %s12578_s8 = smov 112  }
  0x13   : > { %10921 = vmatpush3.bf16.msra.mxu0 %v12210_v2  ;;  %s12640_s24 = scalar_lea.vmem %s15601_s0, %s10299_s21  ;;  %s12579_s9 = smov 48  }
  0x14   : > { %10922 = vmatprep.subr.bf16.mxu0 %v15605_v1  ;;  %12031 = vmatpush3.bf16.msra.mxu1 %v12210_v2  ;;  %v12213_v5 = vld [vmem:[%s12640_s24] sm:$0xff]   ;;  %v12217_v6 = vld [vmem:[%s12640_s24 + $0x30] sm:$0xff]   ;;  %v12214_v7 = vld [vmem:[%s12640_s24 + $0x8] sm:$0xff]   ;;  %s12580_s10 = smov 72   ;;  %s12581_s11 = smov 104  }
  0x15   : > { %12028 = vmatprep.subr.bf16.mxu1 %v15605_v1  ;;  %v12219_v8 = vld [vmem:[%s12640_s24 + $0x38] sm:$0xff]   ;;  %v12215_v9 = vld [vmem:[%s12640_s24 + $0x10] sm:$0xff]   ;;  %v12221_v10 = vld [vmem:[%s12640_s24 + $0x40] sm:$0xff]   ;;  %s12582_s13 = smov 40   ;;  %s12583_s16 = smov 32  }
  0x16   : > { %v12216_v11 = vld [vmem:[%s12640_s24 + $0x18] sm:$0xff]   ;;  %v12222_v12 = vld [vmem:[%s12640_s24 + $0x48] sm:$0xff]   ;;  %v12218_v13 = vld [vmem:[%s12640_s24 + $0x20] sm:$0xff]   ;;  %s12584_s17 = smov 16   ;;  %s12585_s19 = smov 8  }
  0x17   : > { %10923 = vmatpush3.bf16.msra.mxu0 %v12211_v3  ;;  %v12223_v14 = vld [vmem:[%s12640_s24 + $0x50] ss:$0 sps:$4 sm:$0xff]   ;;  %v12220_v15 = vld [vmem:[%s12640_s24 + $0x28] sm:$0xff]   ;;  %s12586_s22 = smov 24   ;;  %s10300_s25 = sshll.u32 %s15804_s18, 3 }
  0x18   : > { %10924 = vmatprep.subr.bf16.mxu0 %v15605_v1  ;;  %12032 = vmatpush3.bf16.msra.mxu1 %v12211_v3  ;;  %s15533_s28 = scalar_lea.vmem %s15604_s3, %s10300_s25 }
  0x19   : > { %12029 = vmatprep.subr.bf16.mxu1 %v15605_v1 }
  0x1b   : > { %10925 = vmatpush3.bf16.msra.mxu0 %v12212_v4 }
  0x1c   : > { %12033 = vmatpush3.bf16.msra.mxu1 %v12212_v4  ;;  %11042 = vmatprep.subr.bf16.mxu0 %v15605_v1 }
  0x1d   : > { %10970 = vmatprep.subr.bf16.mxu1 %v15605_v1 }
  0x1e   : > { %10927 = vmatmul.mubr.msk.bf16.vlgmr.msra.gmra.mrb[0].mxu0 %vm288_vm1, %v12213_v5 }
  0x1f   : > { %10930 = vmatprep.mubr.msk.bf16.mxu0 %vm12571_vm0, %v15605_v1  ;;  %10951 = vmatmul.mubr.msk.bf16.vlgmr.msra.gmra.mrb[0].mxu1 %vm288_vm1, %v12217_v6 }
  0x20   : > { %10954 = vmatprep.mubr.msk.bf16.mxu1 %vm12571_vm0, %v15605_v1 }
  0x26   : > { %10931 = vmatmul.mubr.msk.bf16.gmra.mrb[4].mxu0 %vm288_vm1, %v12214_v7 }
  0x27   : > { %10934 = vmatprep.mubr.msk.bf16.mxu0 %vm12571_vm0, %v15605_v1  ;;  %10955 = vmatmul.mubr.msk.bf16.gmra.mrb[4].mxu1 %vm288_vm1, %v12219_v8 }
  0x28   : > { %10958 = vmatprep.mubr.msk.bf16.mxu1 %vm12571_vm0, %v15605_v1 }
  0x2e   : > { %10935 = vmatmul.mubr.msk.bf16.gmra.mrb[8].mxu0 %vm288_vm1, %v12215_v9 }
  0x2f   : > { %10938 = vmatprep.mubr.msk.bf16.mxu0 %vm12571_vm0, %v15605_v1  ;;  %10959 = vmatmul.mubr.msk.bf16.gmra.mrb[8].mxu1 %vm288_vm1, %v12221_v10 }
  0x30   : > { %10962 = vmatprep.mubr.msk.bf16.mxu1 %vm12571_vm0, %v15605_v1 }
  0x36   : > { %10939 = vmatmul.mubr.msk.bf16.gmra.mrb[12].mxu0 %vm288_vm1, %v12216_v11 }
  0x37   : > { %10942 = vmatprep.mubr.msk.bf16.mxu0 %vm12571_vm0, %v15605_v1  ;;  %10963 = vmatmul.mubr.msk.bf16.gmra.mrb[12].mxu1 %vm288_vm1, %v12222_v12 }
  0x38   : > { %10966 = vmatprep.mubr.msk.bf16.mxu1 %vm12571_vm0, %v15605_v1 }
  0x3e   : > { %10943 = vmatmul.mubr.msk.bf16.gmra.mrb[16].mxu0 %vm288_vm1, %v12218_v13 }
  0x3f   : > { %10946 = vmatprep.mubr.msk.bf16.mxu0 %vm12571_vm0, %v15605_v1  ;;  %10967 = vmatmul.mubr.msk.bf16.gmra.mrb[16].mxu1 %vm288_vm1, %v12223_v14 }
  0x40   : > { %10972 = vmatprep.mubr.msk.bf16.mxu1 %vm12571_vm0, %v15605_v1 }
  0x46   : > { %10947 = vmatmul.mubr.msk.bf16.gmra.mrb[20].mxu0 %vm288_vm1, %v12220_v15 }
  0x47   : > { %11044 = vmatprep.mubr.msk.bf16.mxu0 %vm12571_vm0, %v15605_v1 }
  0xf1   : > { %v356_v17 = vpop.f32.mrb[0].mxu0 }
  0xf2   : > { %v357_v18 = vadd.f32 %v12696_v16, %v356_v17  ;;  %v10928_v19 = vpop.f32.mrb[1].mxu0  ;;  %v12699_v20 = vpop.f32.mrb[0].mxu1 }
  0xf3   : > { %v359_v21 = vpop.f32.mrb[2].mxu0  ;;  %v10952_v22 = vpop.f32.mrb[1].mxu1 }
  0xf4   : > { %v12701_v23 = vpack.c.bf16 %v357_v18, %v357_v18  ;;  %v360_v24 = vadd.f32 %v12696_v16, %v359_v21  ;;  %v10929_v25 = vpop.f32.mrb[3].mxu0  ;;  %v12704_v26 = vpop.f32.mrb[2].mxu1  ;;  %v405_v18 = vadd.f32 %v12696_v16, %v12699_v20 }
  0xf5   : > { %v10953_v27 = vpop.f32.mrb[3].mxu1  ;;  %v408_v25 = vadd.f32 %v12696_v16, %v12704_v26 }
  0xf6   : > { %506 = vrot.lane.b32.xlu0 %v12701_v23, %s12572_s29  ;;  %v12708_v28 = vpack.c.bf16 %v360_v24, %v360_v24 }
  0xf7   : > { %v12770_v20 = vpack.c.bf16 %v408_v25, %v408_v25 }
  0xf9   : > { %v364_v29 = vpop.f32.mrb[4].mxu0 }
  0xfa   : > { %v365_v30 = vadd.f32 %v12696_v16, %v364_v29  ;;  %555 = vrot.lane.b32.xlu0 %v12708_v28, %s12572_s29  ;;  %v10932_v31 = vpop.f32.mrb[5].mxu0  ;;  %v12713_v32 = vpop.f32.mrb[4].mxu1  ;;  %v12764_v29 = vpack.c.bf16 %v405_v18, %v405_v18 }
  0xfb   : > { %v367_v33 = vpop.f32.mrb[6].mxu0  ;;  %v10956_v34 = vpop.f32.mrb[5].mxu1 }
  0xfc   : > { %v12715_v35 = vpack.c.bf16 %v365_v30, %v365_v30  ;;  %v368_v36 = vadd.f32 %v12696_v16, %v367_v33  ;;  %v10933_v37 = vpop.f32.mrb[7].mxu0  ;;  %v415_v38 = vpop.f32.mrb[6].mxu1  ;;  %15658 = vst [vmem:[#allocation6_spill] sm:$0xff] %v12764_v29  ;;  %v413_v30 = vadd.f32 %v12696_v16, %v12713_v32 }
  0xfd   : > { %v10957_v39 = vpop.f32.mrb[7].mxu1  ;;  %v416_v31 = vadd.f32 %v12696_v16, %v415_v38 }
  0xfe   : > { %v12718_v40 = vpack.c.bf16 %v368_v36, %v368_v36  ;;  %603 = vrot.lane.b32.xlu1 %v12715_v35, %s12572_s29  ;;  %v12775_v33 = vpack.c.bf16 %v413_v30, %v413_v30 }
  0xff   : > { %v12780_v34 = vpack.c.bf16 %v416_v31, %v416_v31 }
 0x100   : > { %15659 = vst [vmem:[#allocation7_spill] sm:$0xff] %v12775_v33 }
 0x101   : > { %v372_v41 = vpop.f32.mrb[8].mxu0 }
 0x102   : > { %651 = vrot.lane.b32.xlu1 %v12718_v40, %s12572_s29  ;;  %v373_v42 = vadd.f32 %v12696_v16, %v372_v41  ;;  %v10936_v43 = vpop.f32.mrb[9].mxu0  ;;  %v420_v44 = vpop.f32.mrb[8].mxu1 }
 0x103   : > { %v375_v45 = vpop.f32.mrb[10].mxu0  ;;  %v10960_v46 = vpop.f32.mrb[9].mxu1  ;;  %v421_v26 = vadd.f32 %v12696_v16, %v420_v44 }
 0x104   : > { %v12725_v47 = vpack.c.bf16 %v373_v42, %v373_v42  ;;  %v376_v48 = vadd.f32 %v12696_v16, %v375_v45  ;;  %v10937_v49 = vpop.f32.mrb[11].mxu0  ;;  %v423_v50 = vpop.f32.mrb[10].mxu1 }
 0x105   : > { %v10961_v51 = vpop.f32.mrb[11].mxu1  ;;  %v424_v32 = vadd.f32 %v12696_v16, %v423_v50  ;;  %v12785_v36 = vpack.c.bf16 %v421_v26, %v421_v26 }
 0x106   : > { %v12728_v52 = vpack.c.bf16 %v376_v48, %v376_v48  ;;  %699 = vrot.lane.b32.xlu0 %v12725_v47, %s12572_s29 }
 0x107   : > { %15660 = vst [vmem:[#allocation8_spill] sm:$0xff] %v12785_v36  ;;  %v12790_v38 = vpack.c.bf16 %v424_v32, %v424_v32 }
 0x108   : > { %747 = vrot.lane.b32.xlu1 %v12728_v52, %s12572_s29 }
 0x109   : > { %v380_v53 = vpop.f32.mrb[12].mxu0 }
 0x10a   : > { %v381_v54 = vadd.f32 %v12696_v16, %v380_v53  ;;  %v10940_v55 = vpop.f32.mrb[13].mxu0  ;;  %v428_v56 = vpop.f32.mrb[12].mxu1 }
 0x10b   : > { %v383_v57 = vpop.f32.mrb[14].mxu0  ;;  %v10964_v58 = vpop.f32.mrb[13].mxu1  ;;  %v429_v37 = vadd.f32 %v12696_v16, %v428_v56 }
 0x10c   : > { %v12735_v59 = vpack.c.bf16 %v381_v54, %v381_v54  ;;  %v384_v60 = vadd.f32 %v12696_v16, %v383_v57  ;;  %v10941_v61 = vpop.f32.mrb[15].mxu0  ;;  %v431_v62 = vpop.f32.mrb[14].mxu1 }
 0x10d   : > { %v10965_v63 = vpop.f32.mrb[15].mxu1  ;;  %v432_v39 = vadd.f32 %v12696_v16, %v431_v62  ;;  %v12795_v41 = vpack.c.bf16 %v429_v37, %v429_v37 }
 0x10e   : > { %v12738_v0 = vpack.c.bf16 %v384_v60, %v384_v60  ;;  %795 = vrot.lane.b32.xlu0 %v12735_v59, %s12572_s29 }
 0x10f   : > { %15661 = vst [vmem:[#allocation9_spill] sm:$0xff] %v12795_v41  ;;  %v12800_v43 = vpack.c.bf16 %v432_v39, %v432_v39 }
 0x110   : > { %843 = vrot.lane.b32.xlu1 %v12738_v0, %s12572_s29 }
 0x111   : > { %v388_v2 = vpop.f32.mrb[16].mxu0  ;;  %15662 = vst [vmem:[#allocation10_spill] sm:$0xff] %v12800_v43 }
 0x112   : > { %v389_v3 = vadd.f32 %v12696_v16, %v388_v2  ;;  %v10944_v4 = vpop.f32.mrb[17].mxu0  ;;  %v436_v5 = vpop.f32.mrb[16].mxu1 }
 0x113   : > { %v391_v6 = vpop.f32.mrb[18].mxu0  ;;  %v10968_v7 = vpop.f32.mrb[17].mxu1  ;;  %v437_v42 = vadd.f32 %v12696_v16, %v436_v5 }
 0x114   : > { %v12745_v8 = vpack.c.bf16 %v389_v3, %v389_v3  ;;  %v392_v9 = vadd.f32 %v12696_v16, %v391_v6  ;;  %v10945_v10 = vpop.f32.mrb[19].mxu0  ;;  %v439_v11 = vpop.f32.mrb[18].mxu1 }
 0x115   : > { %v10969_v12 = vpop.f32.mrb[19].mxu1  ;;  %v12804_v44 = vpack.c.bf16 %v437_v42, %v437_v42 }
 0x116   : > { %15654 = vst [vmem:[#allocation2_spill] sm:$0xff] %v12745_v8  ;;  %v12748_v13 = vpack.c.bf16 %v392_v9, %v392_v9  ;;  %891 = vrot.lane.b32.xlu0 %v12745_v8, %s12572_s29 }
 0x118   : > { %15655 = vst [vmem:[#allocation3_spill] sm:$0xff] %v12748_v13  ;;  %939 = vrot.lane.b32.xlu1 %v12748_v13, %s12572_s29 }
 0x119   : > { %v396_v14 = vpop.f32.mrb[20].mxu0 }
 0x11a   : > { %v397_v15 = vadd.f32 %v12696_v16, %v396_v14  ;;  %v10948_v17 = vpop.f32.mrb[21].mxu0 }
 0x11b   : > { %v399_v19 = vpop.f32.mrb[22].mxu0 }
 0x11c   : > { %v12757_v21 = vpack.c.bf16 %v397_v15, %v397_v15  ;;  %v400_v22 = vadd.f32 %v12696_v16, %v399_v19  ;;  %v10949_v24 = vpop.f32.mrb[23].mxu0 }
 0x11e   : > { %15656 = vst [vmem:[#allocation4_spill] sm:$0xff] %v12757_v21  ;;  %v12762_v27 = vpack.c.bf16 %v400_v22, %v400_v22  ;;  %987 = vrot.lane.b32.xlu0 %v12757_v21, %s12572_s29 }
 0x120   : > { %15657 = vst [vmem:[#allocation5_spill] sm:$0xff] %v12762_v27  ;;  %1035 = vrot.lane.b32.xlu1 %v12762_v27, %s12572_s29 }
 0x122   : > { %1083 = vrot.lane.b32.xlu0 %v12764_v29, %s12572_s29 }
 0x124   : > { %1131 = vrot.lane.b32.xlu1 %v12770_v20, %s12572_s29 }
 0x126   : > { %1179 = vrot.lane.b32.xlu0 %v12775_v33, %s12572_s29 }
 0x128   : > { %1227 = vrot.lane.b32.xlu1 %v12780_v34, %s12572_s29 }
 0x12a   : > { %1275 = vrot.lane.b32.xlu0 %v12785_v36, %s12572_s29 }
 0x12c   : > { %1323 = vrot.lane.b32.xlu1 %v12790_v38, %s12572_s29 }
 0x12e   : > { %1371 = vrot.lane.b32.xlu0 %v12795_v41, %s12572_s29 }
 0x130   : > { %1419 = vrot.lane.b32.xlu1 %v12800_v43, %s12572_s29 }
 0x132   : > { %1467 = vrot.lane.b32.xlu0 %v12804_v44, %s12572_s29 }
 0x134   : > { %1816 = vrot.lane.b32.xlu1 %v12708_v28, %s12573_s30 }
 0x136   : > { %1767 = vrot.lane.b32.xlu0 %v12701_v23, %s12573_s30 }
 0x138   : > { %1960 = vrot.lane.b32.xlu1 %v12725_v47, %s12573_s30 }
 0x13a   : > { %1864 = vrot.lane.b32.xlu0 %v12715_v35, %s12573_s30 }
 0x13c   : > { %2056 = vrot.lane.b32.xlu1 %v12735_v59, %s12573_s30 }
 0x13e   : > { %1912 = vrot.lane.b32.xlu0 %v12718_v40, %s12573_s30 }
 0x140   : > { %2152 = vrot.lane.b32.xlu1 %v12745_v8, %s12573_s30 }
 0x142   : > { %2008 = vrot.lane.b32.xlu0 %v12728_v52, %s12573_s30 }
 0x144   : > { %2248 = vrot.lane.b32.xlu1 %v12757_v21, %s12573_s30 }
 0x146   : > { %2104 = vrot.lane.b32.xlu0 %v12738_v0, %s12573_s30 }
 0x14a   : > { %2200 = vrot.lane.b32.xlu0 %v12748_v13, %s12573_s30 }
 0x14e   : > { %2296 = vrot.lane.b32.xlu0 %v12762_v27, %s12573_s30 }
 0x168   : > { %v507_v16 = vpop.permute.xlu0 %506 }
 0x169   : > { %v513_v45 = vsel %vm508_vm2, %v507_v16, 0 }
 0x16a   : > { %10971 = vmatpush3.bf16.xpose.msra.mxu1 %v513_v45 }
 0x16b   : > { %10976 = vmatprep.subr.bf16.mxu1 %v15605_v1 }
 0x16c   : > { %v556_v46 = vpop.permute.xlu0 %555 }
 0x16d   : > { %v561_v48 = vsel %vm508_vm2, %v556_v46, 0 }
 0x170   : > { %v604_v49 = vpop.permute.xlu1 %603 }
 0x171   : > { %10973 = vmatmul.mubr.msk.bf16.vlgmr.msra.gmra.mrb[20].mxu1 %vm508_vm2, %v12701_v23  ;;  %v609_v50 = vsel %vm508_vm2, %v604_v49, 0 }
 0x172   : > { %10977 = vmatpush3.bf16.xpose.msra.mxu1 %v561_v48  ;;  %10978 = vmatprep.mubr.msk.bf16.mxu1 %vm12571_vm0, %v15605_v1 }
 0x173   : > { %10982 = vmatprep.subr.bf16.mxu1 %v15605_v1 }
 0x174   : > { %v652_v51 = vpop.permute.xlu1 %651 }
 0x175   : > { %v657_v54 = vsel %vm508_vm2, %v652_v51, 0 }
 0x178   : > { %v700_v53 = vpop.permute.xlu0 %699 }
 0x179   : > { %10979 = vmatmul.mubr.msk.bf16.vlgmr.msra.gmra.mrb[24].mxu1 %vm508_vm2, %v12708_v28  ;;  %v705_v56 = vsel %vm508_vm2, %v700_v53, 0 }
 0x17a   : > { %10983 = vmatpush3.bf16.xpose.msra.mxu1 %v609_v50  ;;  %10984 = vmatprep.mubr.msk.bf16.mxu1 %vm12571_vm0, %v15605_v1  ;;  %v748_v58 = vpop.permute.xlu1 %747 }
 0x17b   : > { %10988 = vmatprep.subr.bf16.mxu1 %v15605_v1  ;;  %v753_v62 = vsel %vm508_vm2, %v748_v58, 0 }
 0x180   : > { %v796_v55 = vpop.permute.xlu0 %795 }
 0x181   : > { %10985 = vmatmul.mubr.msk.bf16.vlgmr.msra.gmra.mrb[28].mxu1 %vm508_vm2, %v12715_v35  ;;  %v801_v4 = vsel %vm508_vm2, %v796_v55, 0 }
 0x182   : > { %10989 = vmatpush3.bf16.xpose.msra.mxu1 %v657_v54  ;;  %10990 = vmatprep.mubr.msk.bf16.mxu1 %vm12571_vm0, %v15605_v1  ;;  %v844_v60 = vpop.permute.xlu1 %843 }
 0x183   : > { %10994 = vmatprep.subr.bf16.mxu1 %v15605_v1  ;;  %v849_v9 = vsel %vm508_vm2, %v844_v60, 0 }
 0x188   : > { %v892_v57 = vpop.permute.xlu0 %891 }
 0x189   : > { %10991 = vmatmul.mubr.msk.bf16.vlgmr.msra.gmra.mrb[32].mxu1 %vm508_vm2, %v12718_v40  ;;  %v897_v15 = vsel %vm508_vm2, %v892_v57, 0 }
 0x18a   : > { %10995 = vmatpush3.bf16.xpose.msra.mxu1 %v705_v56  ;;  %10996 = vmatprep.mubr.msk.bf16.mxu1 %vm12571_vm0, %v15605_v1  ;;  %v940_v3 = vpop.permute.xlu1 %939 }
 0x18b   : > { %11000 = vmatprep.subr.bf16.mxu1 %v15605_v1  ;;  %v945_v22 = vsel %vm508_vm2, %v940_v3, 0 }
 0x190   : > { %v988_v61 = vpop.permute.xlu0 %987 }
 0x191   : > { %10997 = vmatmul.mubr.msk.bf16.vlgmr.msra.gmra.mrb[36].mxu1 %vm508_vm2, %v12725_v47  ;;  %v993_v31 = vsel %vm508_vm2, %v988_v61, 0 }
 0x192   : > { %11001 = vmatpush3.bf16.xpose.msra.mxu1 %v753_v62  ;;  %11002 = vmatprep.mubr.msk.bf16.mxu1 %vm12571_vm0, %v15605_v1  ;;  %v1036_v7 = vpop.permute.xlu1 %1035 }
 0x193   : > { %11006 = vmatprep.subr.bf16.mxu1 %v15605_v1  ;;  %v1041_v37 = vsel %vm508_vm2, %v1036_v7, 0 }
 0x194   : > { %v1084_v63 = vpop.permute.xlu0 %1083 }
 0x195   : > { %v1089_v2 = vsel %vm508_vm2, %v1084_v63, 0 }
 0x196   : > { %11043 = vmatpush3.bf16.xpose.msra.mxu0 %v1089_v2  ;;  %v1132_v10 = vpop.permute.xlu1 %1131 }
 0x197   : > { %11054 = vmatprep.subr.bf16.mxu0 %v15605_v1  ;;  %v1137_v39 = vsel %vm508_vm2, %v1132_v10, 0 }
 0x198   : > { %v1180_v5 = vpop.permute.xlu0 %1179 }
 0x199   : > { %11003 = vmatmul.mubr.msk.bf16.vlgmr.msra.gmra.mrb[40].mxu1 %vm508_vm2, %v12728_v52  ;;  %v1185_v6 = vsel %vm508_vm2, %v1180_v5, 0 }
 0x19a   : > { %11007 = vmatpush3.bf16.xpose.msra.mxu1 %v801_v4  ;;  %11008 = vmatprep.mubr.msk.bf16.mxu1 %vm12571_vm0, %v15605_v1  ;;  %v1228_v14 = vpop.permute.xlu1 %1227 }
 0x19b   : > { %11012 = vmatprep.subr.bf16.mxu1 %v15605_v1  ;;  %v1233_v42 = vsel %vm508_vm2, %v1228_v14, 0 }
 0x19c   : > { %v1276_v11 = vpop.permute.xlu0 %1275 }
 0x19d   : > { %11045 = vmatmul.mubr.msk.bf16.vlgmr.msra.gmra.mrb[24].mxu0 %vm508_vm2, %v12764_v29  ;;  %v1281_v12 = vsel %vm508_vm2, %v1276_v11, 0 }
 0x19e   : > { %11055 = vmatpush3.bf16.xpose.msra.mxu0 %v1185_v6  ;;  %11056 = vmatprep.mubr.msk.bf16.mxu0 %vm12571_vm0, %v15605_v1  ;;  %v1324_v19 = vpop.permute.xlu1 %1323 }
 0x19f   : > { %11066 = vmatprep.subr.bf16.mxu0 %v15605_v1  ;;  %v1329_v16 = vsel %vm508_vm2, %v1324_v19, 0 }
 0x1a0   : > { %v1372_v17 = vpop.permute.xlu0 %1371 }
 0x1a1   : > { %11009 = vmatmul.mubr.msk.bf16.vlgmr.msra.gmra.mrb[44].mxu1 %vm508_vm2, %v12735_v59  ;;  %v1377_v18 = vsel %vm508_vm2, %v1372_v17, 0 }
 0x1a2   : > { %11013 = vmatpush3.bf16.xpose.msra.mxu1 %v849_v9  ;;  %11014 = vmatprep.mubr.msk.bf16.mxu1 %vm12571_vm0, %v15605_v1  ;;  %v1420_v30 = vpop.permute.xlu1 %1419 }
 0x1a3   : > { %11018 = vmatprep.subr.bf16.mxu1 %v15605_v1  ;;  %v1425_v45 = vsel %vm508_vm2, %v1420_v30, 0 }
 0x1a4   : > { %v1468_v24 = vpop.permute.xlu0 %1467 }
 0x1a5   : > { %11057 = vmatmul.mubr.msk.bf16.vlgmr.msra.gmra.mrb[28].mxu0 %vm508_vm2, %v12775_v33  ;;  %v1473_v25 = vsel %vm508_vm2, %v1468_v24, 0 }
 0x1a6   : > { %11067 = vmatpush3.bf16.xpose.msra.mxu0 %v1281_v12  ;;  %11068 = vmatprep.mubr.msk.bf16.mxu0 %vm12571_vm0, %v15605_v1  ;;  %v1817_v26 = vpop.permute.xlu1 %1816 }
 0x1a7   : > { %11078 = vmatprep.subr.bf16.mxu0 %v15605_v1  ;;  %v1822_v32 = vsel %vm1772_vm3, %v1817_v26, 0 }
 0x1a8   : > { %v1768_v46 = vpop.permute.xlu0 %1767 }
 0x1a9   : > { %11015 = vmatmul.mubr.msk.bf16.vlgmr.msra.gmra.mrb[48].mxu1 %vm508_vm2, %v12738_v0  ;;  %v1774_v48 = vsel %vm1772_vm3, %v1768_v46, 0 }
 0x1aa   : > { %11019 = vmatpush3.bf16.xpose.msra.mxu1 %v897_v15  ;;  %11020 = vmatprep.mubr.msk.bf16.mxu1 %vm12571_vm0, %v15605_v1 }
 0x1ab   : > { %11024 = vmatprep.subr.bf16.mxu1 %v15605_v1 }
 0x1ad   : > { %11069 = vmatmul.mubr.msk.bf16.vlgmr.msra.gmra.mrb[32].mxu0 %vm508_vm2, %v12785_v36 }
 0x1ae   : > { %11079 = vmatpush3.bf16.xpose.msra.mxu0 %v1377_v18  ;;  %11080 = vmatprep.mubr.msk.bf16.mxu0 %vm12571_vm0, %v15605_v1 }
 0x1af   : > { %11090 = vmatprep.subr.bf16.mxu0 %v15605_v1 }
 0x1b1   : > { %11021 = vmatmul.mubr.msk.bf16.vlgmr.msra.gmra.mrb[52].mxu1 %vm508_vm2, %v12745_v8 }
 0x1b2   : > { %11025 = vmatpush3.bf16.xpose.msra.mxu1 %v945_v22  ;;  %11026 = vmatprep.mubr.msk.bf16.mxu1 %vm12571_vm0, %v15605_v1 }
 0x1b3   : > { %11030 = vmatprep.subr.bf16.mxu1 %v15605_v1 }
 0x1b5   : > { %11081 = vmatmul.mubr.msk.bf16.vlgmr.msra.gmra.mrb[36].mxu0 %vm508_vm2, %v12795_v41 }
 0x1b6   : > { %11091 = vmatpush3.bf16.xpose.msra.mxu0 %v1473_v25  ;;  %11092 = vmatprep.mubr.msk.bf16.mxu0 %vm12571_vm0, %v15605_v1 }
 0x1b7   : > { %11102 = vmatprep.subr.bf16.mxu0 %v15605_v1 }
 0x1b9   : > { %11027 = vmatmul.mubr.msk.bf16.vlgmr.msra.gmra.mrb[56].mxu1 %vm508_vm2, %v12748_v13 }
 0x1ba   : > { %11031 = vmatpush3.bf16.xpose.msra.mxu1 %v993_v31  ;;  %11032 = vmatprep.mubr.msk.bf16.mxu1 %vm12571_vm0, %v15605_v1 }
 0x1bb   : > { %11036 = vmatprep.subr.bf16.mxu1 %v15605_v1 }
 0x1bd   : > { %11093 = vmatmul.mubr.msk.bf16.vlgmr.msra.gmra.mrb[40].mxu0 %vm508_vm2, %v12804_v44 }
 0x1be   : > { %11103 = vmatpush3.bf16.msra.mxu0 %v1822_v32  ;;  %11104 = vmatprep.mubr.msk.bf16.mxu0 %vm12571_vm0, %v15605_v1 }
 0x1bf   : > { %11114 = vmatprep.subr.bf16.mxu0 %v15605_v1 }
 0x1c1   : > { %11033 = vmatmul.mubr.msk.bf16.vlgmr.msra.gmra.mrb[60].mxu1 %vm508_vm2, %v12757_v21 }
 0x1c2   : > { %11037 = vmatpush3.bf16.xpose.msra.mxu1 %v1041_v37  ;;  %11038 = vmatprep.mubr.msk.bf16.mxu1 %vm12571_vm0, %v15605_v1 }
 0x1c3   : > { %11048 = vmatprep.subr.bf16.mxu1 %v15605_v1 }
 0x1c9   : > { %11039 = vmatmul.mubr.msk.bf16.vlgmr.msra.gmra.mrb[64].mxu1 %vm508_vm2, %v12762_v27 }
 0x1ca   : > { %11049 = vmatpush3.bf16.xpose.msra.mxu1 %v1137_v39  ;;  %11050 = vmatprep.mubr.msk.bf16.mxu1 %vm12571_vm0, %v15605_v1 }
 0x1cb   : > { %11060 = vmatprep.subr.bf16.mxu1 %v15605_v1 }
 0x1d1   : > { %11051 = vmatmul.mubr.msk.bf16.vlgmr.msra.gmra.mrb[68].mxu1 %vm508_vm2, %v12770_v20 }
 0x1d2   : > { %11061 = vmatpush3.bf16.xpose.msra.mxu1 %v1233_v42  ;;  %11062 = vmatprep.mubr.msk.bf16.mxu1 %vm12571_vm0, %v15605_v1 }
 0x1d3   : > { %11072 = vmatprep.subr.bf16.mxu1 %v15605_v1 }
 0x1d9   : > { %11063 = vmatmul.mubr.msk.bf16.vlgmr.msra.gmra.mrb[72].mxu1 %vm508_vm2, %v12780_v34 }
 0x1da   : > { %11073 = vmatpush3.bf16.xpose.msra.mxu1 %v1329_v16  ;;  %11074 = vmatprep.mubr.msk.bf16.mxu1 %vm12571_vm0, %v15605_v1 }
 0x1db   : > { %11084 = vmatprep.subr.bf16.mxu1 %v15605_v1 }
 0x1e1   : > { %11075 = vmatmul.mubr.msk.bf16.vlgmr.msra.gmra.mrb[76].mxu1 %vm508_vm2, %v12790_v38 }
 0x1e2   : > { %11085 = vmatpush3.bf16.xpose.msra.mxu1 %v1425_v45  ;;  %11086 = vmatprep.mubr.msk.bf16.mxu1 %vm12571_vm0, %v15605_v1 }
 0x1e3   : > { %11096 = vmatprep.subr.bf16.mxu1 %v15605_v1 }
 0x1e9   : > { %11087 = vmatmul.mubr.msk.bf16.vlgmr.msra.gmra.mrb[80].mxu1 %vm508_vm2, %v12800_v43 }
 0x1ea   : > { %11097 = vmatpush3.bf16.msra.mxu1 %v1774_v48  ;;  %11098 = vmatprep.mubr.msk.bf16.mxu1 %vm12571_vm0, %v15605_v1 }
 0x1eb   : > { %11108 = vmatprep.subr.bf16.mxu1 %v15605_v1 }
 0x244   : > { %v12966_v49 = vpop.f32.mrb[20].mxu1 }
 0x245   : > { %v10974_v50 = vpop.f32.mrb[21].mxu1  ;;  %v1515_v51 = vsel %vm508_vm2, %v12966_v49, -inf }
 0x246   : > { %v552_v53 = vpop.f32.mrb[22].mxu1  ;;  %1516 = vmax.xlane.f32.xlu1 %v1515_v51 }
 0x247   : > { %v10975_v54 = vpop.f32.mrb[23].mxu1 }
 0x24c   : > { %v12970_v55 = vpop.f32.mrb[24].mxu1 }
 0x24d   : > { %v10980_v56 = vpop.f32.mrb[25].mxu1  ;;  %v1518_v32 = vsel %vm508_vm2, %v12970_v55, -inf }
 0x24e   : > { %v600_v57 = vpop.f32.mrb[26].mxu1 }
 0x24f   : > { %v10981_v58 = vpop.f32.mrb[27].mxu1 }
 0x254   : > { %v12972_v60 = vpop.f32.mrb[28].mxu1 }
 0x255   : > { %v10986_v61 = vpop.f32.mrb[29].mxu1  ;;  %v1521_v54 = vsel %vm508_vm2, %v12972_v60, -inf }
 0x256   : > { %v648_v62 = vpop.f32.mrb[30].mxu1 }
 0x257   : > { %v10987_v63 = vpop.f32.mrb[31].mxu1 }
 0x25c   : > { %v12974_v2 = vpop.f32.mrb[32].mxu1 }
 0x25d   : > { %v10992_v3 = vpop.f32.mrb[33].mxu1  ;;  %v1524_v4 = vsel %vm508_vm2, %v12974_v2, -inf }
 0x25e   : > { %v696_v5 = vpop.f32.mrb[34].mxu1  ;;  %1525 = vmax.xlane.f32.xlu1 %v1524_v4 }
 0x25f   : > { %v10993_v6 = vpop.f32.mrb[35].mxu1 }
 0x264   : > { %v12978_v7 = vpop.f32.mrb[36].mxu1 }
 0x265   : > { %v10998_v9 = vpop.f32.mrb[37].mxu1 }
 0x266   : > { %v744_v10 = vpop.f32.mrb[38].mxu1 }
 0x267   : > { %v10999_v11 = vpop.f32.mrb[39].mxu1 }
 0x26c   : > { %v12980_v12 = vpop.f32.mrb[40].mxu1 }
 0x26d   : > { %v11004_v14 = vpop.f32.mrb[41].mxu1  ;;  %v1530_v15 = vsel %vm508_vm2, %v12980_v12, -inf }
 0x26e   : > { %v792_v17 = vpop.f32.mrb[42].mxu1  ;;  %1531 = vmax.xlane.f32.xlu1 %v1530_v15 }
 0x26f   : > { %v11005_v18 = vpop.f32.mrb[43].mxu1 }
 0x270   : > { %v12984_v19 = vpop.f32.mrb[24].mxu0 }
 0x271   : > { %v11046_v22 = vpop.f32.mrb[25].mxu0  ;;  %v1551_v24 = vsel %vm508_vm2, %v12984_v19, -inf }
 0x272   : > { %1552 = vmax.xlane.f32.xlu0 %v1551_v24  ;;  %v1128_v25 = vpop.f32.mrb[26].mxu0 }
 0x273   : > { %v11047_v30 = vpop.f32.mrb[27].mxu0  ;;  %v1527_v25 = vsel %vm508_vm2, %v12978_v7, -inf }
 0x274   : > { %v12988_v31 = vpop.f32.mrb[44].mxu1 }
 0x275   : > { %v11010_v26 = vpop.f32.mrb[45].mxu1 }
 0x276   : > { %v840_v37 = vpop.f32.mrb[46].mxu1  ;;  %1519 = vmax.xlane.f32.xlu0 %v1518_v32 }
 0x277   : > { %v11011_v39 = vpop.f32.mrb[47].mxu1 }
 0x278   : > { %v12992_v42 = vpop.f32.mrb[28].mxu0 }
 0x279   : > { %v11058_v16 = vpop.f32.mrb[29].mxu0  ;;  %v1557_v45 = vsel %vm508_vm2, %v12992_v42, -inf }
 0x27a   : > { %1558 = vmax.xlane.f32.xlu0 %v1557_v45  ;;  %v1224_v46 = vpop.f32.mrb[30].mxu0 }
 0x27b   : > { %v11059_v48 = vpop.f32.mrb[31].mxu0 }
 0x27c   : > { %v12996_v50 = vpop.f32.mrb[48].mxu1 }
 0x27d   : > { %v11016_v51 = vpop.f32.mrb[49].mxu1  ;;  %v1536_v53 = vsel %vm508_vm2, %v12996_v50, -inf }
 0x27e   : > { %v888_v56 = vpop.f32.mrb[50].mxu1  ;;  %1537 = vmax.xlane.f32.xlu1 %v1536_v53  ;;  %1522 = vmax.xlane.f32.xlu0 %v1521_v54  ;;  %v1533_v51 = vsel %vm508_vm2, %v12988_v31, -inf }
 0x27f   : > { %v11017_v57 = vpop.f32.mrb[51].mxu1 }
 0x280   : > { %v13002_v58 = vpop.f32.mrb[32].mxu0 }
 0x281   : > { %v11070_v61 = vpop.f32.mrb[33].mxu0  ;;  %v1563_v62 = vsel %vm508_vm2, %v13002_v58, -inf }
 0x282   : > { %1564 = vmax.xlane.f32.xlu0 %v1563_v62  ;;  %v1320_v63 = vpop.f32.mrb[34].mxu0 }
 0x283   : > { %v11071_v3 = vpop.f32.mrb[35].mxu0 }
 0x284   : > { %v13006_v4 = vpop.f32.mrb[52].mxu1 }
 0x285   : > { %v11022_v5 = vpop.f32.mrb[53].mxu1  ;;  %v1539_v56 = vsel %vm508_vm2, %v13006_v4, -inf }
 0x286   : > { %v936_v6 = vpop.f32.mrb[54].mxu1 }
 0x287   : > { %v11023_v9 = vpop.f32.mrb[55].mxu1 }
 0x288   : > { %v13008_v10 = vpop.f32.mrb[36].mxu0 }
 0x289   : > { %v11082_v11 = vpop.f32.mrb[37].mxu0  ;;  %v1569_v14 = vsel %vm508_vm2, %v13008_v10, -inf }
 0x28a   : > { %1570 = vmax.xlane.f32.xlu0 %v1569_v14  ;;  %v1416_v15 = vpop.f32.mrb[38].mxu0 }
 0x28b   : > { %v11083_v17 = vpop.f32.mrb[39].mxu0 }
 0x28c   : > { %v13012_v18 = vpop.f32.mrb[56].mxu1 }
 0x28d   : > { %v11028_v22 = vpop.f32.mrb[57].mxu1  ;;  %v1542_v24 = vsel %vm508_vm2, %v13012_v18, -inf }
 0x28e   : > { %v984_v30 = vpop.f32.mrb[58].mxu1  ;;  %1543 = vmax.xlane.f32.xlu1 %v1542_v24  ;;  %1528 = vmax.xlane.f32.xlu0 %v1527_v25 }
 0x28f   : > { %v11029_v26 = vpop.f32.mrb[59].mxu1 }
 0x290   : > { %v13018_v32 = vpop.f32.mrb[40].mxu0 }
 0x291   : > { %v11094_v37 = vpop.f32.mrb[41].mxu0  ;;  %v1575_v39 = vsel %vm508_vm2, %v13018_v32, -inf }
 0x292   : > { %1576 = vmax.xlane.f32.xlu0 %v1575_v39  ;;  %v1512_v16 = vpop.f32.mrb[42].mxu0 }
 0x293   : > { %v11095_v45 = vpop.f32.mrb[43].mxu0 }
 0x294   : > { %v13022_v46 = vpop.f32.mrb[60].mxu1 }
 0x295   : > { %v11034_v48 = vpop.f32.mrb[61].mxu1  ;;  %v1545_v63 = vsel %vm508_vm2, %v13022_v46, -inf }
 0x296   : > { %v1032_v53 = vpop.f32.mrb[62].mxu1  ;;  %1534 = vmax.xlane.f32.xlu0 %v1533_v51  ;;  %v13048_v51 = vpop.permute.xlu1 %1960 }
 0x297   : > { %v11035_v54 = vpop.f32.mrb[63].mxu1 }
 0x29a   : > { %1540 = vmax.xlane.f32.xlu0 %v1539_v56 }
 0x29c   : > { %v13028_v57 = vpop.f32.mrb[64].mxu1 }
 0x29d   : > { %v11040_v61 = vpop.f32.mrb[65].mxu1  ;;  %v1548_v62 = vsel %vm508_vm2, %v13028_v57, -inf }
 0x29e   : > { %1549 = vmax.xlane.f32.xlu1 %v1548_v62  ;;  %v1080_v3 = vpop.f32.mrb[66].mxu1  ;;  %1546 = vmax.xlane.f32.xlu0 %v1545_v63  ;;  %v13052_v62 = vpop.permute.xlu1 %2056 }
 0x29f   : > { %v11041_v5 = vpop.f32.mrb[67].mxu1 }
 0x2a2   : > { %v13054_v63 = vpop.permute.xlu1 %2152 }
 0x2a4   : > { %v13034_v6 = vpop.f32.mrb[68].mxu1 }
 0x2a5   : > { %v11052_v9 = vpop.f32.mrb[69].mxu1  ;;  %v1554_v11 = vsel %vm508_vm2, %v13034_v6, -inf }
 0x2a6   : > { %1555 = vmax.xlane.f32.xlu1 %v1554_v11  ;;  %v1176_v14 = vpop.f32.mrb[70].mxu1  ;;  %v13056_v3 = vpop.permute.xlu1 %2248 }
 0x2a7   : > { %v11053_v15 = vpop.f32.mrb[71].mxu1  ;;  %v13059_v14 = vpop.permute.xlu0 %1864 }
 0x2ac   : > { %v13038_v17 = vpop.f32.mrb[72].mxu1 }
 0x2ad   : > { %v11064_v22 = vpop.f32.mrb[73].mxu1  ;;  %v1560_v24 = vsel %vm508_vm2, %v13038_v17, -inf }
 0x2ae   : > { %1561 = vmax.xlane.f32.xlu1 %v1560_v24  ;;  %v1272_v25 = vpop.f32.mrb[74].mxu1  ;;  %v13063_v22 = vpop.permute.xlu0 %1912 }
 0x2af   : > { %v11065_v30 = vpop.f32.mrb[75].mxu1 }
 0x2b2   : > { %v13067_v25 = vpop.permute.xlu0 %2008 }
 0x2b4   : > { %v13042_v26 = vpop.f32.mrb[76].mxu1 }
 0x2b5   : > { %v11076_v37 = vpop.f32.mrb[77].mxu1  ;;  %v1566_v39 = vsel %vm508_vm2, %v13042_v26, -inf }
 0x2b6   : > { %1567 = vmax.xlane.f32.xlu1 %v1566_v39  ;;  %v1368_v16 = vpop.f32.mrb[78].mxu1  ;;  %v13069_v30 = vpop.permute.xlu0 %2104 }
 0x2b7   : > { %v11077_v45 = vpop.f32.mrb[79].mxu1 }
 0x2ba   : > { %v13071_v37 = vpop.permute.xlu0 %2200 }
 0x2bc   : > { %v13046_v48 = vpop.f32.mrb[80].mxu1 }
 0x2bd   : > { %v11088_v53 = vpop.f32.mrb[81].mxu1  ;;  %v1572_v54 = vsel %vm508_vm2, %v13046_v48, -inf }
 0x2be   : > { %1573 = vmax.xlane.f32.xlu1 %v1572_v54  ;;  %v1464_v56 = vpop.f32.mrb[82].mxu1  ;;  %v13073_v39 = vpop.permute.xlu0 %2296 }
 0x2bf   : > { %v11089_v61 = vpop.f32.mrb[83].mxu1  ;;  %15663 = vst [vmem:[#allocation11_spill] sm:$0xff] %v13073_v39 }
 0x2d3   : > { %v1517_v5 = vpop.xlane.xlu1 %1516 }
 0x2d4   : > { %v1578_v9 = vsub.f32 %v12966_v49, %v1517_v5 }
 0x2d6   : > { %v1599_v11 = vmul.f32 1.442695, %v1578_v9 }
 0x2d8   : > { %12226 = vpow2.f32 %v1599_v11 }
 0x2e2   : > { %v13061_v15 = vpop.eup %12226 }
 0x2e3   : > { %v1641_v24 = vsel %vm508_vm2, %v13061_v15, 0.0 }
 0x2e4   : > { %1642 = vadd.xlane.f32.xlu1 %v1641_v24 }
 0x2eb   : > { %v1526_v49 = vpop.xlane.xlu1 %1525 }
 0x2ec   : > { %v1581_v53 = vsub.f32 %v12974_v2, %v1526_v49 }
 0x2ee   : > { %v1605_v9 = vmul.f32 1.442695, %v1581_v53 }
 0x2fb   : > { %v1532_v56 = vpop.xlane.xlu1 %1531 }
 0x2fc   : > { %v1583_v11 = vsub.f32 %v12980_v12, %v1532_v56 }
 0x2fe   : > { %v1609_v8 = vmul.f32 1.442695, %v1583_v11 }
 0x2ff   : > { %v1553_v16 = vpop.xlane.xlu0 %1552 }
 0x300   : > { %v1590_v45 = vsub.f32 %v12984_v19, %v1553_v16 }
 0x302   : > { %v1623_v54 = vmul.f32 1.442695, %v1590_v45 }
 0x303   : > { %v1520_v61 = vpop.xlane.xlu0 %1519 }
 0x304   : > { %12228 = vpow2.f32 %v1623_v54  ;;  %v1579_v5 = vsub.f32 %v12970_v55, %v1520_v61 }
 0x306   : > { %v1601_v24 = vmul.f32 1.442695, %v1579_v5 }
 0x307   : > { %v1559_v1 = vpop.xlane.xlu0 %1558 }
 0x308   : > { %12230 = vpow2.f32 %v1601_v24  ;;  %v1592_v21 = vsub.f32 %v12992_v42, %v1559_v1 }
 0x309   : > { %12232 = vpow2.f32 %v1605_v9 }
 0x30a   : > { %v1627_v39 = vmul.f32 1.442695, %v1592_v21 }
 0x30b   : > { %v1523_v19 = vpop.xlane.xlu0 %1522 }
 0x30c   : > { %12234 = vpow2.f32 %v1627_v39  ;;  %v1580_v2 = vsub.f32 %v12972_v60, %v1523_v19  ;;  %v1538_v60 = vpop.xlane.xlu1 %1537 }
 0x30d   : > { %12236 = vpow2.f32 %v1609_v8 }
 0x30e   : > { %v13081_v49 = vpop.eup %12228  ;;  %v1603_v16 = vmul.f32 1.442695, %v1580_v2 }
 0x30f   : > { %v1565_v55 = vpop.xlane.xlu0 %1564  ;;  %v1677_v12 = vsel %vm508_vm2, %v13081_v49, 0.0 }
 0x310   : > { %v1594_v45 = vsub.f32 %v13002_v58, %v1565_v55  ;;  %1678 = vadd.xlane.f32.xlu1 %v1677_v12  ;;  %12238 = vpow2.f32 %v1603_v16 }
 0x312   : > { %v13086_v1 = vpop.eup %12230  ;;  %v1631_v42 = vmul.f32 1.442695, %v1594_v45 }
 0x313   : > { %v1644_v21 = vsel %vm508_vm2, %v13086_v1, 0.0  ;;  %v13090_v39 = vpop.eup %12232 }
 0x314   : > { %12240 = vpow2.f32 %v1631_v42  ;;  %1645 = vadd.xlane.f32.xlu0 %v1644_v21  ;;  %v1650_v58 = vsel %vm508_vm2, %v13090_v39, 0.0 }
 0x316   : > { %v13092_v8 = vpop.eup %12234 }
 0x317   : > { %v1571_v53 = vpop.xlane.xlu0 %1570  ;;  %v1683_v54 = vsel %vm508_vm2, %v13092_v8, 0.0  ;;  %v13098_v56 = vpop.eup %12236 }
 0x318   : > { %v1596_v61 = vsub.f32 %v13008_v10, %v1571_v53  ;;  %1684 = vadd.xlane.f32.xlu1 %v1683_v54  ;;  %1651 = vadd.xlane.f32.xlu0 %v1650_v58  ;;  %v1656_v19 = vsel %vm508_vm2, %v13098_v56, 0.0 }
 0x31a   : > { %v1635_v5 = vmul.f32 1.442695, %v1596_v61  ;;  %v13101_v9 = vpop.eup %12238 }
 0x31b   : > { %v1544_v11 = vpop.xlane.xlu1 %1543  ;;  %v1529_v24 = vpop.xlane.xlu0 %1528  ;;  %v1647_v55 = vsel %vm508_vm2, %v13101_v9, 0.0 }
 0x31c   : > { %12242 = vpow2.f32 %v1635_v5  ;;  %v1587_v2 = vsub.f32 %v13012_v18, %v1544_v11  ;;  %v1582_v16 = vsub.f32 %v12978_v7, %v1529_v24  ;;  %1657 = vadd.xlane.f32.xlu0 %v1656_v19  ;;  %1648 = vadd.xlane.f32.xlu1 %v1647_v55  ;;  %v1585_v18 = vsub.f32 %v12996_v50, %v1538_v60 }
 0x31e   : > { %v13109_v10 = vpop.eup %12240  ;;  %v1617_v12 = vmul.f32 1.442695, %v1587_v2  ;;  %v1607_v45 = vmul.f32 1.442695, %v1582_v16  ;;  %v1613_v58 = vmul.f32 1.442695, %v1585_v18 }
 0x31f   : > { %v1577_v42 = vpop.xlane.xlu0 %1576  ;;  %v1689_v21 = vsel %vm508_vm2, %v13109_v10, 0.0 }
 0x320   : > { %12244 = vpow2.f32 %v1617_v12  ;;  %1690 = vadd.xlane.f32.xlu1 %v1689_v21 }
 0x321   : > { %12246 = vpow2.f32 %v1607_v45 }
 0x323   : > { %v1535_v53 = vpop.xlane.xlu0 %1534 }
 0x324   : > { %v1584_v7 = vsub.f32 %v12988_v31, %v1535_v53 }
 0x326   : > { %v13115_v54 = vpop.eup %12242  ;;  %v1611_v61 = vmul.f32 1.442695, %v1584_v7 }
 0x327   : > { %v1541_v5 = vpop.xlane.xlu0 %1540  ;;  %v1695_v11 = vsel %vm508_vm2, %v13115_v54, 0.0 }
 0x328   : > { %12248 = vpow2.f32 %v1611_v61  ;;  %v1586_v24 = vsub.f32 %v13006_v4, %v1541_v5  ;;  %1696 = vadd.xlane.f32.xlu1 %v1695_v11 }
 0x329   : > { %12250 = vpow2.f32 %v1613_v58 }
 0x32a   : > { %v13120_v19 = vpop.eup %12244  ;;  %v1615_v2 = vmul.f32 1.442695, %v1586_v24 }
 0x32b   : > { %v13122_v50 = vpop.eup %12246  ;;  %v1547_v60 = vpop.xlane.xlu0 %1546  ;;  %v1668_v31 = vsel %vm508_vm2, %v13120_v19, 0.0 }
 0x32c   : > { %v1588_v16 = vsub.f32 %v13022_v46, %v1547_v60  ;;  %v1653_v55 = vsel %vm508_vm2, %v13122_v50, 0.0  ;;  %1669 = vadd.xlane.f32.xlu0 %v1668_v31  ;;  %12252 = vpow2.f32 %v1615_v2  ;;  %v1550_v61 = vpop.xlane.xlu1 %1549 }
 0x32d   : > { %1654 = vadd.xlane.f32.xlu1 %v1653_v55  ;;  %v1589_v5 = vsub.f32 %v13028_v57, %v1550_v61 }
 0x32e   : > { %v1619_v4 = vmul.f32 1.442695, %v1588_v16 }
 0x32f   : > { %v1621_v24 = vmul.f32 1.442695, %v1589_v5 }
 0x330   : > { %12254 = vpow2.f32 %v1619_v4  ;;  %v1598_v4 = vsub.f32 %v13018_v32, %v1577_v42 }
 0x331   : > { %12256 = vpow2.f32 %v1621_v24 }
 0x332   : > { %v13129_v12 = vpop.eup %12248 }
 0x333   : > { %v1659_v45 = vsel %vm508_vm2, %v13129_v12, 0.0  ;;  %v13133_v21 = vpop.eup %12250  ;;  %v1556_v11 = vpop.xlane.xlu1 %1555 }
 0x334   : > { %1660 = vadd.xlane.f32.xlu1 %v1659_v45  ;;  %v1662_v18 = vsel %vm508_vm2, %v13133_v21, 0.0  ;;  %v1591_v2 = vsub.f32 %v13034_v6, %v1556_v11 }
 0x336   : > { %v13137_v46 = vpop.eup %12252  ;;  %v1625_v31 = vmul.f32 1.442695, %v1591_v2 }
 0x337   : > { %v1665_v53 = vsel %vm508_vm2, %v13137_v46, 0.0 }
 0x338   : > { %1663 = vadd.xlane.f32.xlu1 %v1662_v18  ;;  %12258 = vpow2.f32 %v1625_v31 }
 0x33a   : > { %v13141_v7 = vpop.eup %12254 }
 0x33b   : > { %v1671_v58 = vsel %vm508_vm2, %v13141_v7, 0.0  ;;  %v1562_v60 = vpop.xlane.xlu1 %1561  ;;  %v13158_v57 = vpop.eup %12256 }
 0x33c   : > { %1666 = vadd.xlane.f32.xlu1 %v1665_v53  ;;  %v1593_v16 = vsub.f32 %v13038_v17, %v1562_v60  ;;  %v1639_v53 = vmul.f32 1.442695, %v1598_v4  ;;  %v1674_v6 = vsel %vm508_vm2, %v13158_v57, 0.0  ;;  %v1870_v4 = vsel %vm1772_vm3, %v13059_v14, 0 }
 0x33e   : > { %v1629_v45 = vmul.f32 1.442695, %v1593_v16 }
 0x340   : > { %1672 = vadd.xlane.f32.xlu1 %v1671_v58  ;;  %12260 = vpow2.f32 %v1629_v45  ;;  %v15664_v45 = vmov 0.0  }
 0x341   : > { %12262 = vpow2.f32 %v1639_v53 }
 0x342   : > { %2392 = vrot.lane.b32.xlu0 %v12770_v20, %s12573_s30  ;;  %v13162_v61 = vpop.eup %12258 }
 0x343   : > { %v1568_v55 = vpop.xlane.xlu1 %1567  ;;  %v1680_v32 = vsel %vm508_vm2, %v13162_v61, 0.0 }
 0x344   : > { %v1595_v18 = vsub.f32 %v13042_v26, %v1568_v55 }
 0x346   : > { %2488 = vrot.lane.b32.xlu0 %v12780_v34, %s12573_s30  ;;  %v1633_v58 = vmul.f32 1.442695, %v1595_v18 }
 0x348   : > { %12264 = vpow2.f32 %v1633_v58 }
 0x34a   : > { %2584 = vrot.lane.b32.xlu0 %v12790_v38, %s12573_s30  ;;  %v13166_v17 = vpop.eup %12260 }
 0x34b   : > { %v1574_v42 = vpop.xlane.xlu1 %1573  ;;  %v13168_v26 = vpop.eup %12262  ;;  %v1686_v5 = vsel %vm508_vm2, %v13166_v17, 0.0 }
 0x34c   : > { %v1701_v60 = vsel %vm508_vm2, %v13168_v26, 0.0  ;;  %v1597_v14 = vsub.f32 %v13046_v48, %v1574_v42 }
 0x351   : > { %2344 = vrot.lane.b32.xlu1 %v12764_v29, %s12573_s30 }
 0x352   : > { %v13172_v11 = vpop.eup %12264 }
 0x353   : > { %v1692_v2 = vsel %vm508_vm2, %v13172_v11, 0.0 }
 0x369   : > { %1675 = vadd.xlane.f32.xlu0 %v1674_v6 }
 0x36d   : > { %1681 = vadd.xlane.f32.xlu0 %v1680_v32 }
 0x371   : > { %v1643_v24 = vpop.xlane.xlu1 %1642  ;;  %1687 = vadd.xlane.f32.xlu0 %v1686_v5 }
 0x372   : > { %12266 = vrcp.f32 %v1643_v24 }
 0x375   : > { %1693 = vadd.xlane.f32.xlu0 %v1692_v2  ;;  %1702 = vadd.xlane.f32.xlu1 %v1701_v60 }
 0x37c   : > { %v12267_v31 = vpop.eup %12266 }
 0x37d   : > { %v1725_v16 = vmul.f32 %v12267_v31, %v13061_v15  ;;  %v1637_v15 = vmul.f32 1.442695, %v1597_v14 }
 0x37f   : > { %v1746_v55 = vpack.c.bf16 %v1725_v16, %v1725_v16  ;;  %12268 = vpow2.f32 %v1637_v15  ;;  %v1918_v16 = vsel %vm1772_vm3, %v13063_v22, 0 }
 0x381   : > { %11099 = vmatmul.mubr.msk.bf16.vlgmr.msra.gmra.mrb[84].mxu1 %vm508_vm2, %v1746_v55 }
 0x382   : > { %11109 = vmatpush3.bf16.msra.mxu1 %v1870_v4  ;;  %11110 = vmatprep.mubr.msk.bf16.mxu1 %vm12571_vm0, %v15664_v45 }
 0x383   : > { %11120 = vmatprep.subr.bf16.mxu1 %v15664_v45 }
 0x386   : > { %2440 = vrot.lane.b32.xlu1 %v12775_v33, %s12573_s30 }
 0x389   : > { %v13208_v6 = vpop.eup %12268 }
 0x38a   : > { %2536 = vrot.lane.b32.xlu1 %v12785_v36, %s12573_s30  ;;  %v1698_v32 = vsel %vm508_vm2, %v13208_v6, 0.0 }
 0x38b   : > { %2680 = vrot.lane.b32.xlu0 %v12800_v43, %s12573_s30 }
 0x38e   : > { %2632 = vrot.lane.b32.xlu1 %v12795_v41, %s12573_s30 }
 0x392   : > { %2728 = vrot.lane.b32.xlu1 %v12804_v44, %s12573_s30 }
 0x396   : > { %2828 = vrot.lane.b32.xlu1 %v12708_v28, %s12574_s4 }
 0x39a   : > { %2826 = vrot.lane.b32.xlu1 %v12708_v28, %s12575_s5 }
 0x39d   : > { %v13202_v18 = vpop.xlane.xlu1 %1678 }
 0x39e   : > { %2928 = vrot.lane.b32.xlu1 %v12718_v40, %s12574_s4 }
 0x3a1   : > { %v1646_v53 = vpop.xlane.xlu0 %1645 }
 0x3a2   : > { %12270 = vrcp.f32 %v1646_v53  ;;  %2926 = vrot.lane.b32.xlu1 %v12718_v40, %s12575_s5 }
 0x3a5   : > { %v13206_v48 = vpop.xlane.xlu1 %1684  ;;  %v1652_v58 = vpop.xlane.xlu0 %1651 }
 0x3a6   : > { %3028 = vrot.lane.b32.xlu1 %v12728_v52, %s12574_s4  ;;  %12272 = vrcp.f32 %v1652_v58 }
 0x3a9   : > { %v1649_v42 = vpop.xlane.xlu1 %1648  ;;  %v1658_v5 = vpop.xlane.xlu0 %1657 }
 0x3aa   : > { %1699 = vadd.xlane.f32.xlu0 %v1698_v32  ;;  %3026 = vrot.lane.b32.xlu1 %v12728_v52, %s12575_s5  ;;  %12274 = vrcp.f32 %v1649_v42  ;;  %v2014_v32 = vsel %vm1772_vm3, %v13067_v25, 0  ;;  %v1966_v42 = vsel %vm1772_vm3, %v13048_v51, 0  ;;  %v2110_v25 = vsel %vm1772_vm3, %v13069_v30, 0 }
 0x3ab   : > { %12276 = vrcp.f32 %v1658_v5 }
 0x3ac   : > { %v12271_v24 = vpop.eup %12270 }
 0x3ad   : > { %v1726_v2 = vmul.f32 %v12271_v24, %v13086_v1  ;;  %v13221_v55 = vpop.xlane.xlu1 %1690 }
 0x3ae   : > { %3128 = vrot.lane.b32.xlu1 %v12738_v0, %s12574_s4 }
 0x3af   : > { %v1747_v60 = vpack.c.bf16 %v1726_v2, %v1726_v2 }
 0x3b0   : > { %v12273_v31 = vpop.eup %12272 }
 0x3b1   : > { %11105 = vmatmul.mubr.msk.bf16.vlgmr.msra.gmra.mrb[44].mxu0 %vm508_vm2, %v1747_v60  ;;  %v1728_v1 = vmul.f32 %v12273_v31, %v13090_v39 }
 0x3b2   : > { %11115 = vmatpush3.bf16.msra.mxu0 %v1918_v16  ;;  %3126 = vrot.lane.b32.xlu1 %v12738_v0, %s12575_s5  ;;  %v2062_v16 = vsel %vm1772_vm3, %v13052_v62, 0 }
 0x3b3   : > { %11116 = vmatprep.mubr.msk.bf16.mxu0 %vm12571_vm0, %v15664_v45  ;;  %11126 = vmatprep.subr.bf16.mxu0 %v15664_v45  ;;  %v1749_v15 = vpack.c.bf16 %v1728_v1, %v1728_v1 }
 0x3b4   : > { %v12275_v4 = vpop.eup %12274 }
 0x3b5   : > { %v13230_v14 = vpop.xlane.xlu1 %1696  ;;  %v1727_v22 = vmul.f32 %v12275_v4, %v13101_v9  ;;  %v12277_v53 = vpop.eup %12276 }
 0x3b6   : > { %3228 = vrot.lane.b32.xlu1 %v12748_v13, %s12574_s4  ;;  %v1730_v9 = vmul.f32 %v12277_v53, %v13098_v56  ;;  %v2158_v53 = vsel %vm1772_vm3, %v13054_v63, 0 }
 0x3b7   : > { %v1748_v58 = vpack.c.bf16 %v1727_v22, %v1727_v22 }
 0x3b8   : > { %v1751_v51 = vpack.c.bf16 %v1730_v9, %v1730_v9  ;;  %v15665_v9 = vld [vmem:[#allocation11_spill] sm:$0xff] }
 0x3b9   : > { %11117 = vmatmul.mubr.msk.bf16.vlgmr.msra.gmra.mrb[48].mxu0 %vm508_vm2, %v1749_v15  ;;  %11111 = vmatmul.mubr.msk.bf16.vlgmr.msra.gmra.mrb[88].mxu1 %vm508_vm2, %v1748_v58  ;;  %v1670_v2 = vpop.xlane.xlu0 %1669 }
 0x3ba   : > { %v1655_v39 = vpop.xlane.xlu1 %1654  ;;  %11127 = vmatpush3.bf16.msra.mxu0 %v2014_v32  ;;  %11121 = vmatpush3.bf16.msra.mxu1 %v1966_v42 }
 0x3bb   : > { %12278 = vrcp.f32 %v1655_v39  ;;  %3226 = vrot.lane.b32.xlu1 %v12748_v13, %s12575_s5  ;;  %11128 = vmatprep.mubr.msk.bf16.mxu0 %vm12571_vm0, %v15664_v45 }
 0x3bc   : > { %11138 = vmatprep.subr.bf16.mxu0 %v15664_v45  ;;  %11122 = vmatprep.mubr.msk.bf16.mxu1 %vm12571_vm0, %v15664_v45 }
 0x3bd   : > { %11132 = vmatprep.subr.bf16.mxu1 %v15664_v45 }
 0x3bf   : > { %3328 = vrot.lane.b32.xlu1 %v12762_v27, %s12574_s4 }
 0x3c0   : > { %2778 = vrot.lane.b32.xlu0 %v12701_v23, %s12574_s4 }
 0x3c1   : > { %v1661_v56 = vpop.xlane.xlu1 %1660  ;;  %11129 = vmatmul.mubr.msk.bf16.vlgmr.msra.gmra.mrb[52].mxu0 %vm508_vm2, %v1751_v51  ;;  %v2302_v51 = vsel %vm1772_vm3, %v15665_v9, 0 }
 0x3c2   : > { %12280 = vrcp.f32 %v1661_v56  ;;  %11139 = vmatpush3.bf16.msra.mxu0 %v2110_v25  ;;  %11140 = vmatprep.mubr.msk.bf16.mxu0 %vm12571_vm0, %v15664_v45  ;;  %v15666_v25 = vld [vmem:[#allocation2_spill] sm:$0xff] }
 0x3c3   : > { %3326 = vrot.lane.b32.xlu1 %v12762_v27, %s12575_s5  ;;  %11150 = vmatprep.subr.bf16.mxu0 %v15664_v45 }
 0x3c4   : > { %2776 = vrot.lane.b32.xlu0 %v12701_v23, %s12575_s5 }
 0x3c5   : > { %v12279_v5 = vpop.eup %12278  ;;  %v1664_v24 = vpop.xlane.xlu1 %1663 }
 0x3c6   : > { %12282 = vrcp.f32 %v1664_v24  ;;  %v1729_v30 = vmul.f32 %v12279_v5, %v13122_v50 }
 0x3c7   : > { %3428 = vrot.lane.b32.xlu1 %v12770_v20, %s12574_s4  ;;  %12284 = vrcp.f32 %v1670_v2  ;;  %v2393_v2 = vpop.permute.xlu0 %2392 }
 0x3c8   : > { %2878 = vrot.lane.b32.xlu0 %v12715_v35, %s12574_s4  ;;  %v1750_v60 = vpack.c.bf16 %v1729_v30, %v1729_v30  ;;  %v15667_v30 = vld [vmem:[#allocation4_spill] sm:$0xff] }
 0x3c9   : > { %v1667_v31 = vpop.xlane.xlu1 %1666 }
 0x3ca   : > { %11123 = vmatmul.mubr.msk.bf16.vlgmr.msra.gmra.mrb[92].mxu1 %vm508_vm2, %v1750_v60  ;;  %12286 = vrcp.f32 %v1667_v31 }
 0x3cb   : > { %11133 = vmatpush3.bf16.msra.mxu1 %v2062_v16  ;;  %3426 = vrot.lane.b32.xlu1 %v12770_v20, %s12575_s5 }
 0x3cc   : > { %v12281_v50 = vpop.eup %12280  ;;  %2876 = vrot.lane.b32.xlu0 %v12715_v35, %s12575_s5  ;;  %11134 = vmatprep.mubr.msk.bf16.mxu1 %vm12571_vm0, %v15664_v45 }
 0x3cd   : > { %v1673_v1 = vpop.xlane.xlu1 %1672  ;;  %11144 = vmatprep.subr.bf16.mxu1 %v15664_v45  ;;  %v1731_v4 = vmul.f32 %v12281_v50, %v13129_v12 }
 0x3ce   : > { %12288 = vrcp.f32 %v1673_v1 }
 0x3cf   : > { %3528 = vrot.lane.b32.xlu1 %v12780_v34, %s12574_s4  ;;  %v1752_v62 = vpack.c.bf16 %v1731_v4, %v1731_v4  ;;  %12290 = vrcp.f32 %v13202_v18 }
 0x3d0   : > { %v12283_v22 = vpop.eup %12282  ;;  %2978 = vrot.lane.b32.xlu0 %v12725_v47, %s12574_s4 }
 0x3d1   : > { %v1732_v15 = vmul.f32 %v12283_v22, %v13133_v21  ;;  %v12285_v58 = vpop.eup %12284  ;;  %v2206_v21 = vsel %vm1772_vm3, %v13071_v37, 0 }
 0x3d2   : > { %11135 = vmatmul.mubr.msk.bf16.vlgmr.msra.gmra.mrb[96].mxu1 %vm508_vm2, %v1752_v62  ;;  %v1734_v37 = vmul.f32 %v12285_v58, %v13120_v19 }
 0x3d3   : > { %11145 = vmatpush3.bf16.msra.mxu1 %v2158_v53  ;;  %3526 = vrot.lane.b32.xlu1 %v12780_v34, %s12575_s5  ;;  %v1753_v12 = vpack.c.bf16 %v1732_v15, %v1732_v15 }
 0x3d4   : > { %v12287_v32 = vpop.eup %12286  ;;  %2976 = vrot.lane.b32.xlu0 %v12725_v47, %s12575_s5  ;;  %11146 = vmatprep.mubr.msk.bf16.mxu1 %vm12571_vm0, %v15664_v45  ;;  %v1755_v18 = vpack.c.bf16 %v1734_v37, %v1734_v37 }
 0x3d5   : > { %11141 = vmatmul.mubr.msk.bf16.vlgmr.msra.gmra.mrb[56].mxu0 %vm508_vm2, %v1753_v12  ;;  %11156 = vmatprep.subr.bf16.mxu1 %v15664_v45  ;;  %v1733_v63 = vmul.f32 %v12287_v32, %v13137_v46  ;;  %v2254_v46 = vsel %vm1772_vm3, %v13056_v3, 0  ;;  %v2345_v3 = vpop.permute.xlu1 %2344  ;;  %v2398_v12 = vsel %vm1772_vm3, %v2393_v2, 0 }
 0x3d6   : > { %11151 = vmatpush3.bf16.msra.mxu0 %v2206_v21  ;;  %11152 = vmatprep.mubr.msk.bf16.mxu0 %vm12571_vm0, %v15664_v45  ;;  %v2350_v5 = vsel %vm1772_vm3, %v2345_v3, 0 }
 0x3d7   : > { %3628 = vrot.lane.b32.xlu1 %v12790_v38, %s12574_s4  ;;  %v1754_v42 = vpack.c.bf16 %v1733_v63, %v1733_v63  ;;  %11162 = vmatprep.subr.bf16.mxu0 %v15664_v45 }
 0x3d8   : > { %3078 = vrot.lane.b32.xlu0 %v12735_v59, %s12574_s4  ;;  %v12289_v39 = vpop.eup %12288 }
 0x3d9   : > { %v1735_v19 = vmul.f32 %v12289_v39, %v13141_v7  ;;  %v12291_v56 = vpop.eup %12290 }
 0x3da   : > { %11147 = vmatmul.mubr.msk.bf16.vlgmr.msra.gmra.mrb[100].mxu1 %vm508_vm2, %v1754_v42  ;;  %v1737_v24 = vmul.f32 %v12291_v56, %v13081_v49  ;;  %v2489_v49 = vpop.permute.xlu0 %2488 }
 0x3db   : > { %11157 = vmatpush3.bf16.msra.mxu1 %v2254_v46  ;;  %3626 = vrot.lane.b32.xlu1 %v12790_v38, %s12575_s5  ;;  %v1756_v7 = vpack.c.bf16 %v1735_v19, %v1735_v19  ;;  %v2494_v46 = vsel %vm1772_vm3, %v2489_v49, 0 }
 0x3dc   : > { %3076 = vrot.lane.b32.xlu0 %v12735_v59, %s12575_s5  ;;  %11158 = vmatprep.mubr.msk.bf16.mxu1 %vm12571_vm0, %v15664_v45  ;;  %v1758_v60 = vpack.c.bf16 %v1737_v24, %v1737_v24 }
 0x3dd   : > { %11153 = vmatmul.mubr.msk.bf16.vlgmr.msra.gmra.mrb[60].mxu0 %vm508_vm2, %v1755_v18  ;;  %11168 = vmatprep.subr.bf16.mxu1 %v15664_v45 }
 0x3de   : > { %11163 = vmatpush3.bf16.msra.mxu0 %v2302_v51  ;;  %11164 = vmatprep.mubr.msk.bf16.mxu0 %vm12571_vm0, %v15664_v45  ;;  %v13354_v31 = vpop.permute.xlu0 %2584 }
 0x3df   : > { %3728 = vrot.lane.b32.xlu1 %v12800_v43, %s12574_s4  ;;  %11174 = vmatprep.subr.bf16.mxu0 %v15664_v45 }
 0x3e0   : > { %3178 = vrot.lane.b32.xlu0 %v15666_v25, %s12574_s4 }
 0x3e2   : > { %11159 = vmatmul.mubr.msk.bf16.vlgmr.msra.gmra.mrb[104].mxu1 %vm508_vm2, %v1756_v7 }
 0x3e3   : > { %11169 = vmatpush3.bf16.msra.mxu1 %v2350_v5  ;;  %3726 = vrot.lane.b32.xlu1 %v12800_v43, %s12575_s5  ;;  %v2590_v5 = vsel %vm1772_vm3, %v13354_v31, 0 }
 0x3e4   : > { %3176 = vrot.lane.b32.xlu0 %v15666_v25, %s12575_s5  ;;  %11170 = vmatprep.mubr.msk.bf16.mxu1 %vm12571_vm0, %v15664_v45 }
 0x3e5   : > { %11180 = vmatprep.subr.bf16.mxu1 %v15664_v45 }
 0x3e7   : > { %3776 = vrot.lane.b32.xlu1 %v12804_v44, %s12575_s5 }
 0x3e8   : > { %3278 = vrot.lane.b32.xlu0 %v15667_v30, %s12574_s4 }
 0x3ea   : > { %11171 = vmatmul.mubr.msk.bf16.vlgmr.msra.gmra.mrb[108].mxu1 %vm508_vm2, %v1758_v60 }
 0x3eb   : > { %4126 = vrot.lane.b32.xlu1 %v12708_v28, %s12576_s6  ;;  %11182 = vmatprep.mubr.msk.bf16.mxu1 %vm12571_vm0, %v15664_v45 }
 0x3ec   : > { %3276 = vrot.lane.b32.xlu0 %v15667_v30, %s12575_s5 }
 0x3ef   : > { %4222 = vrot.lane.b32.xlu1 %v12718_v40, %s12576_s6 }
 0x3f0   : > { %3378 = vrot.lane.b32.xlu0 %v12764_v29, %s12574_s4 }
 0x3f3   : > { %4318 = vrot.lane.b32.xlu1 %v12728_v52, %s12576_s6 }
 0x3f4   : > { %3376 = vrot.lane.b32.xlu0 %v12764_v29, %s12575_s5 }
 0x3f6   : > { %v1676_v16 = vpop.xlane.xlu0 %1675 }
 0x3f7   : > { %4414 = vrot.lane.b32.xlu1 %v12738_v0, %s12576_s6  ;;  %12292 = vrcp.f32 %v1676_v16 }
 0x3f8   : > { %12294 = vrcp.f32 %v13206_v48  ;;  %3478 = vrot.lane.b32.xlu0 %v12775_v33, %s12574_s4 }
 0x3fa   : > { %v1682_v50 = vpop.xlane.xlu0 %1681 }
 0x3fb   : > { %4510 = vrot.lane.b32.xlu1 %v12748_v13, %s12576_s6  ;;  %12296 = vrcp.f32 %v1682_v50 }
 0x3fc   : > { %3476 = vrot.lane.b32.xlu0 %v12775_v33, %s12575_s5  ;;  %12298 = vrcp.f32 %v13221_v55 }
 0x3fe   : > { %v1688_v1 = vpop.xlane.xlu0 %1687 }
 0x3ff   : > { %12300 = vrcp.f32 %v1688_v1 }
 0x400   : > { %3578 = vrot.lane.b32.xlu0 %v12785_v36, %s12574_s4  ;;  %12302 = vrcp.f32 %v13230_v14 }
 0x401   : > { %v12293_v4 = vpop.eup %12292 }
 0x402   : > { %v12295_v62 = vpop.eup %12294  ;;  %v1703_v48 = vpop.xlane.xlu1 %1702  ;;  %v1736_v22 = vmul.f32 %v12293_v4, %v13158_v57 }
 0x403   : > { %v1739_v58 = vmul.f32 %v12295_v62, %v13092_v8  ;;  %v1694_v57 = vpop.xlane.xlu0 %1693 }
 0x404   : > { %3576 = vrot.lane.b32.xlu0 %v12785_v36, %s12575_s5  ;;  %v1757_v15 = vpack.c.bf16 %v1736_v22, %v1736_v22  ;;  %12304 = vrcp.f32 %v1694_v57 }
 0x405   : > { %v12297_v53 = vpop.eup %12296  ;;  %v1760_v21 = vpack.c.bf16 %v1739_v58, %v1739_v58  ;;  %12306 = vrcp.f32 %v1703_v48 }
 0x406   : > { %v2441_v55 = vpop.permute.xlu1 %2440  ;;  %11165 = vmatmul.mubr.msk.bf16.vlgmr.msra.gmra.mrb[64].mxu0 %vm508_vm2, %v1757_v15  ;;  %v1738_v8 = vmul.f32 %v12297_v53, %v13162_v61  ;;  %v12299_v63 = vpop.eup %12298 }
 0x407   : > { %v2446_v32 = vsel %vm1772_vm3, %v2441_v55, 0  ;;  %11175 = vmatpush3.bf16.msra.mxu0 %v2398_v12  ;;  %11176 = vmatprep.mubr.msk.bf16.mxu0 %vm12571_vm0, %v15664_v45  ;;  %v1741_v61 = vmul.f32 %v12299_v63, %v13109_v10  ;;  %v2681_v16 = vpop.permute.xlu0 %2680 }
 0x408   : > { %3678 = vrot.lane.b32.xlu0 %v12795_v41, %s12574_s4  ;;  %11181 = vmatpush3.bf16.msra.mxu1 %v2446_v32  ;;  %v1759_v14 = vpack.c.bf16 %v1738_v8, %v1738_v8 }
 0x409   : > { %11192 = vmatprep.subr.bf16.mxu1 %v15664_v45  ;;  %11186 = vmatprep.subr.bf16.mxu0 %v15664_v45  ;;  %v12301_v39 = vpop.eup %12300  ;;  %v1762_v9 = vpack.c.bf16 %v1741_v61, %v1741_v61 }
 0x40a   : > { %v2537_v42 = vpop.permute.xlu1 %2536  ;;  %v1740_v19 = vmul.f32 %v12301_v39, %v13166_v17  ;;  %v12303_v51 = vpop.eup %12302 }
 0x40b   : > { %v2542_v37 = vsel %vm1772_vm3, %v2537_v42, 0  ;;  %11183 = vmatmul.mubr.msk.bf16.vlgmr.msra.gmra.mrb[112].mxu1 %vm508_vm2, %v1760_v21  ;;  %v1743_v17 = vmul.f32 %v12303_v51, %v13115_v54 }
 0x40c   : > { %3676 = vrot.lane.b32.xlu0 %v12795_v41, %s12575_s5  ;;  %11193 = vmatpush3.bf16.msra.mxu1 %v2542_v37  ;;  %v1761_v7 = vpack.c.bf16 %v1740_v19, %v1740_v19 }
 0x40d   : > { %11194 = vmatprep.mubr.msk.bf16.mxu1 %vm12571_vm0, %v15664_v45  ;;  %11204 = vmatprep.subr.bf16.mxu1 %v15664_v45  ;;  %v1764_v60 = vpack.c.bf16 %v1743_v17, %v1743_v17 }
 0x40e   : > { %v2633_v18 = vpop.permute.xlu1 %2632  ;;  %11177 = vmatmul.mubr.msk.bf16.vlgmr.msra.gmra.mrb[68].mxu0 %vm508_vm2, %v1759_v14  ;;  %v12305_v56 = vpop.eup %12304 }
 0x40f   : > { %11187 = vmatpush3.bf16.msra.mxu0 %v2494_v46  ;;  %11188 = vmatprep.mubr.msk.bf16.mxu0 %vm12571_vm0, %v15664_v45  ;;  %v2638_v3 = vsel %vm1772_vm3, %v2633_v18, 0  ;;  %v1742_v2 = vmul.f32 %v12305_v56, %v13172_v11  ;;  %v12307_v49 = vpop.eup %12306  ;;  %v2686_v11 = vsel %vm1772_vm3, %v2681_v16, 0 }
 0x410   : > { %3778 = vrot.lane.b32.xlu0 %v12804_v44, %s12574_s4  ;;  %11198 = vmatprep.subr.bf16.mxu0 %v15664_v45  ;;  %v1745_v1 = vmul.f32 %v12307_v49, %v13168_v26 }
 0x411   : > { %v1763_v50 = vpack.c.bf16 %v1742_v2, %v1742_v2 }
 0x412   : > { %v2729_v10 = vpop.permute.xlu1 %2728  ;;  %v1766_v62 = vpack.c.bf16 %v1745_v1, %v1745_v1 }
 0x413   : > { %11195 = vmatmul.mubr.msk.bf16.vlgmr.msra.gmra.mrb[116].mxu1 %vm508_vm2, %v1762_v9  ;;  %v2734_v31 = vsel %vm1772_vm3, %v2729_v10, 0 }
 0x414   : > { %11205 = vmatpush3.bf16.msra.mxu1 %v2638_v3  ;;  %4078 = vrot.lane.b32.xlu0 %v12701_v23, %s12576_s6 }
 0x415   : > { %11206 = vmatprep.mubr.msk.bf16.mxu1 %vm12571_vm0, %v15664_v45  ;;  %11216 = vmatprep.subr.bf16.mxu1 %v15664_v45 }
 0x416   : > { %v2829_v24 = vpop.permute.xlu1 %2828  ;;  %11189 = vmatmul.mubr.msk.bf16.vlgmr.msra.gmra.mrb[72].mxu0 %vm508_vm2, %v1761_v7 }
 0x417   : > { %11199 = vmatpush3.bf16.msra.mxu0 %v2590_v5  ;;  %11200 = vmatprep.mubr.msk.bf16.mxu0 %vm12571_vm0, %v15664_v45  ;;  %v2834_v26 = vsel %vm508_vm2, %v2829_v24, 0 }
 0x418   : > { %4174 = vrot.lane.b32.xlu0 %v12715_v35, %s12576_s6  ;;  %11210 = vmatprep.subr.bf16.mxu0 %v15664_v45 }
 0x41a   : > { %v2827_v54 = vpop.permute.xlu1 %2826 }
 0x41b   : > { %11207 = vmatmul.mubr.msk.bf16.vlgmr.msra.gmra.mrb[120].mxu1 %vm508_vm2, %v1764_v60 }
 0x41c   : > { %11217 = vmatpush3.bf16.msra.mxu1 %v2734_v31  ;;  %4270 = vrot.lane.b32.xlu0 %v12725_v47, %s12576_s6 }
 0x41d   : > { %11218 = vmatprep.mubr.msk.bf16.mxu1 %vm12571_vm0, %v15664_v45  ;;  %11228 = vmatprep.subr.bf16.mxu1 %v15664_v45 }
 0x41e   : > { %v2929_v4 = vpop.permute.xlu1 %2928  ;;  %11201 = vmatmul.mubr.msk.bf16.vlgmr.msra.gmra.mrb[76].mxu0 %vm508_vm2, %v1763_v50 }
 0x41f   : > { %11211 = vmatpush3.bf16.msra.mxu0 %v2686_v11  ;;  %11212 = vmatprep.mubr.msk.bf16.mxu0 %vm12571_vm0, %v15664_v45  ;;  %v2934_v53 = vsel %vm508_vm2, %v2929_v4, 0 }
 0x420   : > { %4366 = vrot.lane.b32.xlu0 %v12735_v59, %s12576_s6  ;;  %11222 = vmatprep.subr.bf16.mxu0 %v15664_v45 }
 0x422   : > { %v2927_v48 = vpop.permute.xlu1 %2926 }
 0x423   : > { %11219 = vmatmul.mubr.msk.bf16.vlgmr.msra.gmra.mrb[124].mxu1 %vm508_vm2, %v1766_v62 }
 0x424   : > { %4462 = vrot.lane.b32.xlu0 %v15666_v25, %s12576_s6  ;;  %11230 = vmatprep.mubr.msk.bf16.mxu1 %vm12571_vm0, %v15664_v45 }
 0x425   : > { %11229 = vmatpush3.bf16.xpose.msra.mxu1 %v2834_v26 }
 0x426   : > { %v3029_v22 = vpop.permute.xlu1 %3028  ;;  %11240 = vmatprep.subr.bf16.mxu1 %v15664_v45 }
 0x427   : > { %v3034_v55 = vsel %vm508_vm2, %v3029_v22, 0 }
 0x428   : > { %4558 = vrot.lane.b32.xlu0 %v15667_v30, %s12576_s6 }
 0x42a   : > { %v3027_v15 = vpop.permute.xlu1 %3026 }
 0x42c   : > { %11231 = vmatmul.mubr.msk.bf16.vlgmr.msra.gmra.mrb[128].mxu1 %vm508_vm2, %v2827_v54 }
 0x42d   : > { %11241 = vmatpush3.bf16.xpose.msra.mxu1 %v2934_v53  ;;  %11242 = vmatprep.mubr.msk.bf16.mxu1 %vm12571_vm0, %v15664_v45 }
 0x42e   : > { %v3129_v58 = vpop.permute.xlu1 %3128  ;;  %11252 = vmatprep.subr.bf16.mxu1 %v15664_v45 }
 0x42f   : > { %v3134_v63 = vsel %vm508_vm2, %v3129_v58, 0 }
 0x432   : > { %v3127_v12 = vpop.permute.xlu1 %3126 }
 0x434   : > { %11243 = vmatmul.mubr.msk.bf16.vlgmr.msra.gmra.mrb[132].mxu1 %vm508_vm2, %v2927_v48 }
 0x435   : > { %11253 = vmatpush3.bf16.xpose.msra.mxu1 %v3034_v55  ;;  %11254 = vmatprep.mubr.msk.bf16.mxu1 %vm12571_vm0, %v15664_v45 }
 0x436   : > { %v3229_v32 = vpop.permute.xlu1 %3228  ;;  %11264 = vmatprep.subr.bf16.mxu1 %v15664_v45 }
 0x437   : > { %v1700_v57 = vpop.xlane.xlu0 %1699  ;;  %v3234_v18 = vsel %vm508_vm2, %v3229_v32, 0 }
 0x438   : > { %12308 = vrcp.f32 %v1700_v57 }
 0x43a   : > { %v3227_v8 = vpop.permute.xlu1 %3226 }
 0x43b   : > { %v2779_v21 = vpop.permute.xlu0 %2778 }
 0x43c   : > { %11255 = vmatmul.mubr.msk.bf16.vlgmr.msra.gmra.mrb[136].mxu1 %vm508_vm2, %v3027_v15  ;;  %v2784_v51 = vsel %vm508_vm2, %v2779_v21, 0 }
 0x43d   : > { %11265 = vmatpush3.bf16.xpose.msra.mxu1 %v3134_v63  ;;  %11266 = vmatprep.mubr.msk.bf16.mxu1 %vm12571_vm0, %v15664_v45 }
 0x43e   : > { %v3329_v42 = vpop.permute.xlu1 %3328  ;;  %11276 = vmatprep.subr.bf16.mxu1 %v15664_v45 }
 0x43f   : > { %v2777_v37 = vpop.permute.xlu0 %2776  ;;  %v3334_v7 = vsel %vm508_vm2, %v3329_v42, 0 }
 0x442   : > { %v12309_v14 = vpop.eup %12308  ;;  %v3327_v39 = vpop.permute.xlu1 %3326 }
 0x443   : > { %v2879_v61 = vpop.permute.xlu0 %2878  ;;  %v1744_v46 = vmul.f32 %v12309_v14, %v13208_v6 }
 0x444   : > { %11267 = vmatmul.mubr.msk.bf16.vlgmr.msra.gmra.mrb[140].mxu1 %vm508_vm2, %v3127_v12  ;;  %v2884_v56 = vsel %vm508_vm2, %v2879_v61, 0 }
 0x445   : > { %11277 = vmatpush3.bf16.xpose.msra.mxu1 %v3234_v18  ;;  %v1765_v19 = vpack.c.bf16 %v1744_v46, %v1744_v46  ;;  %11278 = vmatprep.mubr.msk.bf16.mxu1 %vm12571_vm0, %v15664_v45 }
 0x446   : > { %v3429_v9 = vpop.permute.xlu1 %3428  ;;  %11288 = vmatprep.subr.bf16.mxu1 %v15664_v45 }
 0x447   : > { %11213 = vmatmul.mubr.msk.bf16.vlgmr.msra.gmra.mrb[80].mxu0 %vm508_vm2, %v1765_v19  ;;  %v2877_v10 = vpop.permute.xlu0 %2876  ;;  %v3434_v2 = vsel %vm508_vm2, %v3429_v9, 0 }
 0x448   : > { %11223 = vmatpush3.bf16.xpose.msra.mxu0 %v2784_v51  ;;  %11224 = vmatprep.mubr.msk.bf16.mxu0 %vm12571_vm0, %v15664_v45 }
 0x449   : > { %11234 = vmatprep.subr.bf16.mxu0 %v15664_v45 }
 0x44a   : > { %v3427_v6 = vpop.permute.xlu1 %3426 }
 0x44b   : > { %v2979_v3 = vpop.permute.xlu0 %2978 }
 0x44c   : > { %11279 = vmatmul.mubr.msk.bf16.vlgmr.msra.gmra.mrb[144].mxu1 %vm508_vm2, %v3227_v8  ;;  %v2984_v31 = vsel %vm508_vm2, %v2979_v3, 0 }
 0x44d   : > { %11289 = vmatpush3.bf16.xpose.msra.mxu1 %v3334_v7  ;;  %11290 = vmatprep.mubr.msk.bf16.mxu1 %vm12571_vm0, %v15664_v45 }
 0x44e   : > { %11300 = vmatprep.subr.bf16.mxu1 %v15664_v45  ;;  %v3529_v5 = vpop.permute.xlu1 %3528 }
 0x44f   : > { %11225 = vmatmul.mubr.msk.bf16.vlgmr.msra.gmra.mrb[84].mxu0 %vm508_vm2, %v2777_v37  ;;  %v2977_v17 = vpop.permute.xlu0 %2976  ;;  %v3534_v4 = vsel %vm508_vm2, %v3529_v5, 0 }
 0x450   : > { %11235 = vmatpush3.bf16.xpose.msra.mxu0 %v2884_v56  ;;  %11236 = vmatprep.mubr.msk.bf16.mxu0 %vm12571_vm0, %v15664_v45 }
 0x451   : > { %11246 = vmatprep.subr.bf16.mxu0 %v15664_v45 }
 0x452   : > { %v3527_v54 = vpop.permute.xlu1 %3526 }
 0x453   : > { %v3079_v24 = vpop.permute.xlu0 %3078 }
 0x454   : > { %11291 = vmatmul.mubr.msk.bf16.vlgmr.msra.gmra.mrb[148].mxu1 %vm508_vm2, %v3327_v39  ;;  %v13482_v60 = vpop.f32.mrb[84].mxu1  ;;  %v3084_v48 = vsel %vm508_vm2, %v3079_v24, 0 }
 0x455   : > { %15668 = vst [vmem:[#allocation11_spill] sm:$0xff] %v13482_v60  ;;  %11301 = vmatpush3.bf16.xpose.msra.mxu1 %v3434_v2  ;;  %v11100_v49 = vpop.f32.mrb[85].mxu1  ;;  %11302 = vmatprep.mubr.msk.bf16.mxu1 %vm12571_vm0, %v15664_v45 }
 0x456   : > { %v1813_v16 = vpop.f32.mrb[86].mxu1  ;;  %11312 = vmatprep.subr.bf16.mxu1 %v15664_v45  ;;  %v3629_v62 = vpop.permute.xlu1 %3628 }
 0x457   : > { %v11101_v50 = vpop.f32.mrb[87].mxu1  ;;  %11237 = vmatmul.mubr.msk.bf16.vlgmr.msra.gmra.mrb[88].mxu0 %vm508_vm2, %v2877_v10  ;;  %v3077_v1 = vpop.permute.xlu0 %3076  ;;  %v3634_v53 = vsel %vm508_vm2, %v3629_v62, 0 }
 0x458   : > { %11247 = vmatpush3.bf16.xpose.msra.mxu0 %v2984_v31  ;;  %11248 = vmatprep.mubr.msk.bf16.mxu0 %vm12571_vm0, %v15664_v45 }
 0x459   : > { %11258 = vmatprep.subr.bf16.mxu0 %v15664_v45 }
 0x45a   : > { %v3627_v22 = vpop.permute.xlu1 %3626 }
 0x45b   : > { %v3179_v11 = vpop.permute.xlu0 %3178 }
 0x45c   : > { %11303 = vmatmul.mubr.msk.bf16.vlgmr.msra.gmra.mrb[152].mxu1 %vm508_vm2, %v3427_v6  ;;  %v3184_v58 = vsel %vm508_vm2, %v3179_v11, 0 }
 0x45d   : > { %11313 = vmatpush3.bf16.xpose.msra.mxu1 %v3534_v4  ;;  %11314 = vmatprep.mubr.msk.bf16.mxu1 %vm12571_vm0, %v15664_v45 }
 0x45e   : > { %11324 = vmatprep.subr.bf16.mxu1 %v15664_v45  ;;  %v3729_v55 = vpop.permute.xlu1 %3728 }
 0x45f   : > { %11249 = vmatmul.mubr.msk.bf16.vlgmr.msra.gmra.mrb[92].mxu0 %vm508_vm2, %v2977_v17  ;;  %v3177_v26 = vpop.permute.xlu0 %3176  ;;  %v3734_v57 = vsel %vm508_vm2, %v3729_v55, 0 }
 0x460   : > { %11259 = vmatpush3.bf16.xpose.msra.mxu0 %v3084_v48  ;;  %11260 = vmatprep.mubr.msk.bf16.mxu0 %vm12571_vm0, %v15664_v45 }
 0x461   : > { %11270 = vmatprep.subr.bf16.mxu0 %v15664_v45 }
 0x462   : > { %v3727_v63 = vpop.permute.xlu1 %3726 }
 0x463   : > { %v3279_v15 = vpop.permute.xlu0 %3278 }
 0x464   : > { %11315 = vmatmul.mubr.msk.bf16.vlgmr.msra.gmra.mrb[156].mxu1 %vm508_vm2, %v3527_v54  ;;  %v3284_v8 = vsel %vm508_vm2, %v3279_v15, 0 }
 0x465   : > { %11325 = vmatpush3.bf16.xpose.msra.mxu1 %v3634_v53  ;;  %11326 = vmatprep.mubr.msk.bf16.mxu1 %vm12571_vm0, %v15664_v45 }
 0x466   : > { %11336 = vmatprep.subr.bf16.mxu1 %v15664_v45  ;;  %v3777_v62 = vpop.permute.xlu1 %3776 }
 0x467   : > { %11261 = vmatmul.mubr.msk.bf16.vlgmr.msra.gmra.mrb[96].mxu0 %vm508_vm2, %v3077_v1  ;;  %v3277_v12 = vpop.permute.xlu0 %3276 }
 0x468   : > { %11271 = vmatpush3.bf16.xpose.msra.mxu0 %v3184_v58  ;;  %11272 = vmatprep.mubr.msk.bf16.mxu0 %vm12571_vm0, %v15664_v45 }
 0x469   : > { %11282 = vmatprep.subr.bf16.mxu0 %v15664_v45 }
 0x46a   : > { %v4127_v15 = vpop.permute.xlu1 %4126 }
 0x46b   : > { %v3379_v32 = vpop.permute.xlu0 %3378 }
 0x46c   : > { %11327 = vmatmul.mubr.msk.bf16.vlgmr.msra.gmra.mrb[160].mxu1 %vm508_vm2, %v3627_v22  ;;  %v3384_v37 = vsel %vm508_vm2, %v3379_v32, 0 }
 0x46d   : > { %11337 = vmatpush3.bf16.xpose.msra.mxu1 %v3734_v57  ;;  %11338 = vmatprep.mubr.msk.bf16.mxu1 %vm12571_vm0, %v15664_v45 }
 0x46e   : > { %11348 = vmatprep.subr.bf16.mxu1 %v15664_v45 }
 0x46f   : > { %11273 = vmatmul.mubr.msk.bf16.vlgmr.msra.gmra.mrb[100].mxu0 %vm508_vm2, %v3177_v26  ;;  %v3377_v21 = vpop.permute.xlu0 %3376 }
 0x470   : > { %11283 = vmatpush3.bf16.xpose.msra.mxu0 %v3284_v8  ;;  %11284 = vmatprep.mubr.msk.bf16.mxu0 %vm12571_vm0, %v15664_v45 }
 0x471   : > { %11294 = vmatprep.subr.bf16.mxu0 %v15664_v45 }
 0x473   : > { %v3479_v42 = vpop.permute.xlu0 %3478 }
 0x474   : > { %11339 = vmatmul.mubr.msk.bf16.vlgmr.msra.gmra.mrb[164].mxu1 %vm508_vm2, %v3727_v63  ;;  %v3484_v61 = vsel %vm508_vm2, %v3479_v42, 0 }
 0x475   : > { %11350 = vmatprep.mubr.msk.bf16.mxu1 %vm12571_vm0, %v15664_v45 }
 0x477   : > { %11285 = vmatmul.mubr.msk.bf16.vlgmr.msra.gmra.mrb[104].mxu0 %vm508_vm2, %v3277_v12  ;;  %v3477_v14 = vpop.permute.xlu0 %3476  ;;  %v4132_v12 = vsel %vm1772_vm3, %v4127_v15, 0 }
 0x478   : > { %11295 = vmatpush3.bf16.xpose.msra.mxu0 %v3384_v37  ;;  %11296 = vmatprep.mubr.msk.bf16.mxu0 %vm12571_vm0, %v15664_v45 }
 0x479   : > { %11306 = vmatprep.subr.bf16.mxu0 %v15664_v45 }
 0x47b   : > { %v3579_v39 = vpop.permute.xlu0 %3578 }
 0x47c   : > { %v3584_v10 = vsel %vm508_vm2, %v3579_v39, 0 }
 0x47f   : > { %11297 = vmatmul.mubr.msk.bf16.vlgmr.msra.gmra.mrb[108].mxu0 %vm508_vm2, %v3377_v21  ;;  %v3577_v46 = vpop.permute.xlu0 %3576 }
 0x480   : > { %11307 = vmatpush3.bf16.xpose.msra.mxu0 %v3484_v61  ;;  %11308 = vmatprep.mubr.msk.bf16.mxu0 %vm12571_vm0, %v15664_v45 }
 0x481   : > { %11318 = vmatprep.subr.bf16.mxu0 %v15664_v45 }
 0x483   : > { %v3679_v18 = vpop.permute.xlu0 %3678 }
 0x484   : > { %v13535_v19 = vpop.f32.mrb[44].mxu0  ;;  %v3684_v49 = vsel %vm508_vm2, %v3679_v18, 0 }
 0x485   : > { %15669 = vst [vmem:[#allocation2_spill] sm:$0xff] %v13535_v19  ;;  %v11106_v9 = vpop.f32.mrb[45].mxu0 }
 0x486   : > { %v1861_v51 = vpop.f32.mrb[46].mxu0 }
 0x487   : > { %11309 = vmatmul.mubr.msk.bf16.vlgmr.msra.gmra.mrb[112].mxu0 %vm508_vm2, %v3477_v14  ;;  %v3677_v6 = vpop.permute.xlu0 %3676  ;;  %v11107_v3 = vpop.f32.mrb[47].mxu0 }
 0x488   : > { %11319 = vmatpush3.bf16.xpose.msra.mxu0 %v3584_v10  ;;  %11320 = vmatprep.mubr.msk.bf16.mxu0 %vm12571_vm0, %v15664_v45 }
 0x489   : > { %11330 = vmatprep.subr.bf16.mxu0 %v15664_v45 }
 0x48b   : > { %v3779_v7 = vpop.permute.xlu0 %3778 }
 0x48c   : > { %v13542_v56 = vpop.f32.mrb[48].mxu0  ;;  %v13544_v17 = vpop.f32.mrb[88].mxu1  ;;  %v3784_v26 = vsel %vm508_vm2, %v3779_v7, 0 }
 0x48d   : > { %15670 = vst [vmem:[#allocation4_spill] sm:$0xff] %v13542_v56  ;;  %15671 = vst [vmem:[#allocation12_spill] sm:$0xff] %v13544_v17  ;;  %v11118_v5 = vpop.f32.mrb[49].mxu0  ;;  %v11112_v24 = vpop.f32.mrb[89].mxu1 }
 0x48e   : > { %v1957_v2 = vpop.f32.mrb[50].mxu0  ;;  %v1909_v54 = vpop.f32.mrb[90].mxu1 }
 0x48f   : > { %11321 = vmatmul.mubr.msk.bf16.vlgmr.msra.gmra.mrb[116].mxu0 %vm508_vm2, %v3577_v46  ;;  %v4079_v16 = vpop.permute.xlu0 %4078  ;;  %v11113_v31 = vpop.f32.mrb[91].mxu1 }
 0x490   : > { %11331 = vmatpush3.bf16.xpose.msra.mxu0 %v3684_v49  ;;  %v4084_v50 = vsel %vm1772_vm3, %v4079_v16, 0  ;;  %v11119_v1 = vpop.f32.mrb[51].mxu0  ;;  %11332 = vmatprep.mubr.msk.bf16.mxu0 %vm12571_vm0, %v15664_v45 }
 0x491   : > { %11349 = vmatpush3.bf16.msra.mxu1 %v4084_v50  ;;  %11342 = vmatprep.subr.bf16.mxu0 %v15664_v45 }
 0x492   : > { %11360 = vmatprep.subr.bf16.mxu1 %v15664_v45 }
 0x494   : > { %v13553_v11 = vpop.f32.mrb[52].mxu0 }
 0x495   : > { %15672 = vst [vmem:[#allocation13_spill] sm:$0xff] %v13553_v11  ;;  %v11130_v4 = vpop.f32.mrb[53].mxu0 }
 0x496   : > { %v2053_v48 = vpop.f32.mrb[54].mxu0 }
 0x497   : > { %11333 = vmatmul.mubr.msk.bf16.vlgmr.msra.gmra.mrb[120].mxu0 %vm508_vm2, %v3677_v6  ;;  %v11131_v22 = vpop.f32.mrb[55].mxu0 }
 0x498   : > { %11343 = vmatpush3.bf16.xpose.msra.mxu0 %v3784_v26  ;;  %11344 = vmatprep.mubr.msk.bf16.mxu0 %vm12571_vm0, %v15664_v45 }
 0x499   : > { %11354 = vmatprep.subr.bf16.mxu0 %v15664_v45 }
 0x49d   : > { %v13560_v53 = vpop.f32.mrb[92].mxu1 }
 0x49e   : > { %15673 = vst [vmem:[#allocation14_spill] sm:$0xff] %v13560_v53  ;;  %v11124_v58 = vpop.f32.mrb[93].mxu1 }
 0x49f   : > { %v2005_v55 = vpop.f32.mrb[94].mxu1  ;;  %11345 = vmatmul.mubr.msk.bf16.vlgmr.msra.gmra.mrb[124].mxu0 %vm508_vm2, %v3777_v62 }
 0x4a0   : > { %v11125_v32 = vpop.f32.mrb[95].mxu1  ;;  %11355 = vmatpush3.bf16.msra.mxu0 %v4132_v12  ;;  %11356 = vmatprep.mubr.msk.bf16.mxu0 %vm12571_vm0, %v15664_v45 }
 0x4a1   : > { %11366 = vmatprep.subr.bf16.mxu0 %v15664_v45 }
 0x4a5   : > { %v13567_v57 = vpop.f32.mrb[96].mxu1 }
 0x4a6   : > { %15674 = vst [vmem:[#allocation15_spill] sm:$0xff] %v13567_v57  ;;  %v11136_v8 = vpop.f32.mrb[97].mxu1 }
 0x4a7   : > { %v2101_v21 = vpop.f32.mrb[98].mxu1 }
 0x4a8   : > { %v11137_v63 = vpop.f32.mrb[99].mxu1  ;;  %v13569_v42 = vpop.f32.mrb[56].mxu0 }
 0x4a9   : > { %15675 = vst [vmem:[#allocation16_spill] sm:$0xff] %v13569_v42  ;;  %v11142_v37 = vpop.f32.mrb[57].mxu0 }
 0x4aa   : > { %v2149_v14 = vpop.f32.mrb[58].mxu0 }
 0x4ab   : > { %v11143_v39 = vpop.f32.mrb[59].mxu0 }
 0x4ad   : > { %v13571_v61 = vpop.f32.mrb[100].mxu1 }
 0x4ae   : > { %15676 = vst [vmem:[#allocation17_spill] sm:$0xff] %v13571_v61  ;;  %v11148_v46 = vpop.f32.mrb[101].mxu1  ;;  %v13694_v61 = vpop.permute.xlu0 %4174 }
 0x4af   : > { %v2197_v18 = vpop.f32.mrb[102].mxu1 }
 0x4b0   : > { %v11149_v9 = vpop.f32.mrb[103].mxu1  ;;  %v13573_v51 = vpop.f32.mrb[60].mxu0 }
 0x4b1   : > { %15677 = vst [vmem:[#allocation18_spill] sm:$0xff] %v13573_v51  ;;  %v11154_v10 = vpop.f32.mrb[61].mxu0 }
 0x4b2   : > { %v2245_v6 = vpop.f32.mrb[62].mxu0 }
 0x4b3   : > { %v11155_v3 = vpop.f32.mrb[63].mxu0 }
 0x4b5   : > { %v13575_v7 = vpop.f32.mrb[104].mxu1 }
 0x4b6   : > { %15678 = vst [vmem:[#allocation19_spill] sm:$0xff] %v13575_v7  ;;  %v11160_v5 = vpop.f32.mrb[105].mxu1 }
 0x4b7   : > { %v2293_v24 = vpop.f32.mrb[106].mxu1 }
 0x4b8   : > { %v11161_v2 = vpop.f32.mrb[107].mxu1 }
 0x4bd   : > { %v13577_v49 = vpop.f32.mrb[108].mxu1 }
 0x4be   : > { %15679 = vst [vmem:[#allocation20_spill] sm:$0xff] %v13577_v49  ;;  %v11172_v54 = vpop.f32.mrb[109].mxu1 }
 0x4bf   : > { %v2389_v16 = vpop.f32.mrb[110].mxu1 }
 0x4c0   : > { %v11173_v31 = vpop.f32.mrb[111].mxu1 }
 0x4d9   : > { %v13579_v50 = vpop.f32.mrb[64].mxu0 }
 0x4da   : > { %15680 = vst [vmem:[#allocation21_spill] sm:$0xff] %v13579_v50  ;;  %v11166_v1 = vpop.f32.mrb[65].mxu0 }
 0x4db   : > { %v2341_v4 = vpop.f32.mrb[66].mxu0 }
 0x4dc   : > { %v11167_v62 = vpop.f32.mrb[67].mxu0 }
 0x4de   : > { %v13581_v48 = vpop.f32.mrb[112].mxu1 }
 0x4df   : > { %15681 = vst [vmem:[#allocation22_spill] sm:$0xff] %v13581_v48  ;;  %v11184_v26 = vpop.f32.mrb[113].mxu1 }
 0x4e0   : > { %v2485_v22 = vpop.f32.mrb[114].mxu1 }
 0x4e1   : > { %v13583_v15 = vpop.f32.mrb[68].mxu0  ;;  %v11185_v58 = vpop.f32.mrb[115].mxu1 }
 0x4e2   : > { %15682 = vst [vmem:[#allocation23_spill] sm:$0xff] %v13583_v15  ;;  %v11178_v12 = vpop.f32.mrb[69].mxu0 }
 0x4e3   : > { %v2437_v55 = vpop.f32.mrb[70].mxu0 }
 0x4e4   : > { %v11179_v32 = vpop.f32.mrb[71].mxu0 }
 0x4e6   : > { %v13585_v8 = vpop.f32.mrb[116].mxu1 }
 0x4e7   : > { %15683 = vst [vmem:[#allocation24_spill] sm:$0xff] %v13585_v8  ;;  %v11196_v21 = vpop.f32.mrb[117].mxu1 }
 0x4e8   : > { %v2581_v63 = vpop.f32.mrb[118].mxu1 }
 0x4e9   : > { %v13587_v37 = vpop.f32.mrb[72].mxu0  ;;  %v11197_v14 = vpop.f32.mrb[119].mxu1 }
 0x4ea   : > { %15684 = vst [vmem:[#allocation25_spill] sm:$0xff] %v13587_v37  ;;  %v11190_v39 = vpop.f32.mrb[73].mxu0 }
 0x4eb   : > { %v2533_v46 = vpop.f32.mrb[74].mxu0 }
 0x4ec   : > { %v11191_v18 = vpop.f32.mrb[75].mxu0 }
 0x4ee   : > { %v13589_v9 = vpop.f32.mrb[120].mxu1 }
 0x4ef   : > { %15685 = vst [vmem:[#allocation26_spill] sm:$0xff] %v13589_v9  ;;  %v11208_v10 = vpop.f32.mrb[121].mxu1 }
 0x4f0   : > { %v2677_v6 = vpop.f32.mrb[122].mxu1 }
 0x4f1   : > { %v13591_v3 = vpop.f32.mrb[76].mxu0  ;;  %v11209_v5 = vpop.f32.mrb[123].mxu1 }
 0x4f2   : > { %15686 = vst [vmem:[#allocation27_spill] sm:$0xff] %v13591_v3  ;;  %v11202_v24 = vpop.f32.mrb[77].mxu0 }
 0x4f3   : > { %v2629_v2 = vpop.f32.mrb[78].mxu0 }
 0x4f4   : > { %v11203_v54 = vpop.f32.mrb[79].mxu0 }
 0x4f6   : > { %v13593_v16 = vpop.f32.mrb[124].mxu1 }
 0x4f7   : > { %15687 = vst [vmem:[#allocation28_spill] sm:$0xff] %v13593_v16  ;;  %v11220_v31 = vpop.f32.mrb[125].mxu1 }
 0x4f8   : > { %v2773_v1 = vpop.f32.mrb[126].mxu1 }
 0x4f9   : > { %v11221_v4 = vpop.f32.mrb[127].mxu1 }
 0x4ff   : > { %v13595_v62 = vpop.f32.mrb[128].mxu1 }
 0x500   : > { %v11232_v26 = vpop.f32.mrb[129].mxu1  ;;  %v3829_v22 = vsel %vm508_vm2, %v13595_v62, -inf }
 0x501   : > { %3830 = vmax.xlane.f32.xlu1 %v3829_v22  ;;  %v2873_v58 = vpop.f32.mrb[130].mxu1 }
 0x502   : > { %v11233_v12 = vpop.f32.mrb[131].mxu1 }
 0x507   : > { %v13599_v55 = vpop.f32.mrb[132].mxu1 }
 0x508   : > { %v11244_v32 = vpop.f32.mrb[133].mxu1 }
 0x509   : > { %v2973_v21 = vpop.f32.mrb[134].mxu1 }
 0x50a   : > { %v11245_v63 = vpop.f32.mrb[135].mxu1 }
 0x50f   : > { %v13601_v14 = vpop.f32.mrb[136].mxu1 }
 0x510   : > { %v11256_v39 = vpop.f32.mrb[137].mxu1 }
 0x511   : > { %v3073_v46 = vpop.f32.mrb[138].mxu1 }
 0x512   : > { %v11257_v18 = vpop.f32.mrb[139].mxu1 }
 0x517   : > { %v13603_v10 = vpop.f32.mrb[140].mxu1 }
 0x518   : > { %v11268_v6 = vpop.f32.mrb[141].mxu1 }
 0x519   : > { %v3173_v5 = vpop.f32.mrb[142].mxu1 }
 0x51a   : > { %v11269_v24 = vpop.f32.mrb[143].mxu1  ;;  %v13605_v2 = vpop.f32.mrb[80].mxu0 }
 0x51b   : > { %15688 = vst [vmem:[#allocation29_spill] sm:$0xff] %v13605_v2  ;;  %v11214_v54 = vpop.f32.mrb[81].mxu0 }
 0x51c   : > { %v2725_v31 = vpop.f32.mrb[82].mxu0 }
 0x51d   : > { %v11215_v1 = vpop.f32.mrb[83].mxu0 }
 0x51f   : > { %v13607_v4 = vpop.f32.mrb[144].mxu1 }
 0x520   : > { %v11280_v26 = vpop.f32.mrb[145].mxu1  ;;  %v3853_v16 = vsel %vm508_vm2, %v13607_v4, -inf }
 0x521   : > { %v3273_v22 = vpop.f32.mrb[146].mxu1 }
 0x522   : > { %v11281_v58 = vpop.f32.mrb[147].mxu1  ;;  %v13609_v12 = vpop.f32.mrb[84].mxu0 }
 0x523   : > { %v11226_v32 = vpop.f32.mrb[85].mxu0  ;;  %v3826_v21 = vsel %vm508_vm2, %v13609_v12, -inf  ;;  %v3835_v58 = vsel %vm508_vm2, %v13599_v55, -inf }
 0x524   : > { %3827 = vmax.xlane.f32.xlu0 %v3826_v21  ;;  %v2823_v63 = vpop.f32.mrb[86].mxu0 }
 0x525   : > { %v11227_v39 = vpop.f32.mrb[87].mxu0 }
 0x527   : > { %v13613_v46 = vpop.f32.mrb[148].mxu1 }
 0x528   : > { %v11292_v18 = vpop.f32.mrb[149].mxu1 }
 0x529   : > { %v3373_v6 = vpop.f32.mrb[150].mxu1 }
 0x52a   : > { %v11293_v5 = vpop.f32.mrb[151].mxu1  ;;  %v13615_v24 = vpop.f32.mrb[88].mxu0  ;;  %v3841_v6 = vsel %vm508_vm2, %v13601_v14, -inf }
 0x52b   : > { %v11238_v54 = vpop.f32.mrb[89].mxu0  ;;  %v3832_v31 = vsel %vm508_vm2, %v13615_v24, -inf }
 0x52c   : > { %3833 = vmax.xlane.f32.xlu0 %v3832_v31  ;;  %v2923_v1 = vpop.f32.mrb[90].mxu0 }
 0x52d   : > { %v11239_v26 = vpop.f32.mrb[91].mxu0 }
 0x52e   : > { %v3847_v26 = vsel %vm508_vm2, %v13603_v10, -inf }
 0x52f   : > { %v13619_v22 = vpop.f32.mrb[152].mxu1 }
 0x530   : > { %v11304_v32 = vpop.f32.mrb[153].mxu1  ;;  %3836 = vmax.xlane.f32.xlu0 %v3835_v58 }
 0x531   : > { %v3473_v21 = vpop.f32.mrb[154].mxu1 }
 0x532   : > { %v11305_v63 = vpop.f32.mrb[155].mxu1  ;;  %v13623_v39 = vpop.f32.mrb[92].mxu0 }
 0x533   : > { %v11250_v18 = vpop.f32.mrb[93].mxu0  ;;  %v3838_v5 = vsel %vm508_vm2, %v13623_v39, -inf }
 0x534   : > { %3842 = vmax.xlane.f32.xlu0 %v3841_v6  ;;  %3839 = vmax.xlane.f32.xlu1 %v3838_v5  ;;  %v3023_v54 = vpop.f32.mrb[94].mxu0 }
 0x535   : > { %v11251_v31 = vpop.f32.mrb[95].mxu0 }
 0x537   : > { %v13629_v1 = vpop.f32.mrb[156].mxu1 }
 0x538   : > { %v11316_v58 = vpop.f32.mrb[157].mxu1  ;;  %3848 = vmax.xlane.f32.xlu0 %v3847_v26  ;;  %v3859_v26 = vsel %vm508_vm2, %v13613_v46, -inf }
 0x539   : > { %v3573_v32 = vpop.f32.mrb[158].mxu1 }
 0x53a   : > { %v11317_v21 = vpop.f32.mrb[159].mxu1  ;;  %v13633_v63 = vpop.f32.mrb[96].mxu0 }
 0x53b   : > { %v11262_v18 = vpop.f32.mrb[97].mxu0  ;;  %v3844_v6 = vsel %vm508_vm2, %v13633_v63, -inf }
 0x53c   : > { %3854 = vmax.xlane.f32.xlu0 %v3853_v16  ;;  %3845 = vmax.xlane.f32.xlu1 %v3844_v6  ;;  %v3123_v5 = vpop.f32.mrb[98].mxu0 }
 0x53d   : > { %v11263_v54 = vpop.f32.mrb[99].mxu0 }
 0x53f   : > { %v13639_v31 = vpop.f32.mrb[160].mxu1 }
 0x540   : > { %v11328_v58 = vpop.f32.mrb[161].mxu1  ;;  %3860 = vmax.xlane.f32.xlu0 %v3859_v26 }
 0x541   : > { %v3673_v32 = vpop.f32.mrb[162].mxu1 }
 0x542   : > { %v11329_v21 = vpop.f32.mrb[163].mxu1  ;;  %v13643_v18 = vpop.f32.mrb[100].mxu0 }
 0x543   : > { %v11274_v9 = vpop.f32.mrb[101].mxu0  ;;  %v3850_v2 = vsel %vm508_vm2, %v13643_v18, -inf }
 0x544   : > { %3851 = vmax.xlane.f32.xlu1 %v3850_v2  ;;  %v3223_v16 = vpop.f32.mrb[102].mxu0 }
 0x545   : > { %v11275_v6 = vpop.f32.mrb[103].mxu0 }
 0x547   : > { %v13647_v5 = vpop.f32.mrb[164].mxu1 }
 0x548   : > { %v11340_v54 = vpop.f32.mrb[165].mxu1 }
 0x549   : > { %v3773_v8 = vpop.f32.mrb[166].mxu1 }
 0x54a   : > { %v11341_v3 = vpop.f32.mrb[167].mxu1  ;;  %v13649_v48 = vpop.f32.mrb[104].mxu0 }
 0x54b   : > { %v11286_v58 = vpop.f32.mrb[105].mxu0  ;;  %v3856_v26 = vsel %vm508_vm2, %v13649_v48, -inf }
 0x54c   : > { %3857 = vmax.xlane.f32.xlu1 %v3856_v26  ;;  %v3323_v32 = vpop.f32.mrb[106].mxu0 }
 0x54d   : > { %v11287_v9 = vpop.f32.mrb[107].mxu0 }
 0x552   : > { %v13653_v21 = vpop.f32.mrb[108].mxu0 }
 0x553   : > { %v11298_v37 = vpop.f32.mrb[109].mxu0  ;;  %v3862_v2 = vsel %vm508_vm2, %v13653_v21, -inf }
 0x554   : > { %3863 = vmax.xlane.f32.xlu1 %v3862_v2  ;;  %v3423_v16 = vpop.f32.mrb[110].mxu0 }
 0x555   : > { %v11299_v6 = vpop.f32.mrb[111].mxu0 }
 0x556   : > { %4654 = vrot.lane.b32.xlu0 %v12764_v29, %s12576_s6 }
 0x55a   : > { %v13659_v8 = vpop.f32.mrb[112].mxu0 }
 0x55b   : > { %v11310_v3 = vpop.f32.mrb[113].mxu0 }
 0x55c   : > { %v3523_v54 = vpop.f32.mrb[114].mxu0  ;;  %v3865_v3 = vsel %vm508_vm2, %v13619_v22, -inf }
 0x55d   : > { %v11311_v58 = vpop.f32.mrb[115].mxu0 }
 0x55e   : > { %v13671_v58 = vpop.permute.xlu1 %4222 }
 0x562   : > { %v13661_v26 = vpop.f32.mrb[116].mxu0 }
 0x563   : > { %v11322_v32 = vpop.f32.mrb[117].mxu0 }
 0x564   : > { %v3623_v9 = vpop.f32.mrb[118].mxu0  ;;  %v3871_v32 = vsel %vm508_vm2, %v13629_v1, -inf }
 0x565   : > { %4606 = vrot.lane.b32.xlu1 %v12762_v27, %s12576_s6  ;;  %v11323_v37 = vpop.f32.mrb[119].mxu0  ;;  %v3877_v9 = vsel %vm508_vm2, %v13639_v31, -inf }
 0x566   : > { %v13677_v37 = vpop.permute.xlu1 %4318 }
 0x56a   : > { %v13665_v49 = vpop.f32.mrb[120].mxu0 }
 0x56b   : > { %v11334_v2 = vpop.f32.mrb[121].mxu0 }
 0x56c   : > { %v3723_v16 = vpop.f32.mrb[122].mxu0  ;;  %v3868_v2 = vsel %vm508_vm2, %v13659_v8, -inf }
 0x56d   : > { %v11335_v6 = vpop.f32.mrb[123].mxu0 }
 0x56e   : > { %v3874_v6 = vsel %vm508_vm2, %v13661_v26, -inf }
 0x572   : > { %v13667_v15 = vpop.f32.mrb[124].mxu0 }
 0x573   : > { %v11346_v7 = vpop.f32.mrb[125].mxu0 }
 0x574   : > { %v3823_v50 = vpop.f32.mrb[126].mxu0  ;;  %v3883_v7 = vsel %vm508_vm2, %v13647_v5, -inf }
 0x575   : > { %3866 = vmax.xlane.f32.xlu0 %v3865_v3  ;;  %v11347_v54 = vpop.f32.mrb[127].mxu0  ;;  %v13681_v50 = vpop.permute.xlu1 %4414 }
 0x579   : > { %3872 = vmax.xlane.f32.xlu0 %v3871_v32  ;;  %v13685_v16 = vpop.permute.xlu1 %4510  ;;  %v3880_v32 = vsel %vm508_vm2, %v13665_v49, -inf }
 0x57d   : > { %3878 = vmax.xlane.f32.xlu0 %v3877_v9 }
 0x581   : > { %3884 = vmax.xlane.f32.xlu0 %v3883_v7  ;;  %v3886_v7 = vsel %vm508_vm2, %v13667_v15, -inf }
 0x589   : > { %3869 = vmax.xlane.f32.xlu1 %v3868_v2  ;;  %v13696_v2 = vpop.permute.xlu0 %4270 }
 0x58d   : > { %3875 = vmax.xlane.f32.xlu1 %v3874_v6 }
 0x58e   : > { %v3831_v3 = vpop.xlane.xlu1 %3830 }
 0x58f   : > { %v3890_v54 = vsub.f32 %v13595_v62, %v3831_v3  ;;  %v13702_v62 = vpop.permute.xlu0 %4366 }
 0x591   : > { %v3912_v9 = vmul.f32 1.442695, %v3890_v54  ;;  %3881 = vmax.xlane.f32.xlu1 %v3880_v32 }
 0x593   : > { %12310 = vpow2.f32 %v3912_v9  ;;  %v13704_v3 = vpop.permute.xlu0 %4462 }
 0x595   : > { %3887 = vmax.xlane.f32.xlu1 %v3886_v7 }
 0x597   : > { %v13706_v54 = vpop.permute.xlu0 %4558 }
 0x59d   : > { %v13698_v51 = vpop.eup %12310 }
 0x59e   : > { %v3955_v6 = vsel %vm508_vm2, %v13698_v51, 0.0 }
 0x59f   : > { %3956 = vadd.xlane.f32.xlu1 %v3955_v6 }
 0x5b1   : > { %v3828_v32 = vpop.xlane.xlu0 %3827 }
 0x5b2   : > { %v3889_v9 = vsub.f32 %v13609_v12, %v3828_v32 }
 0x5b4   : > { %v3910_v57 = vmul.f32 1.442695, %v3889_v9 }
 0x5b6   : > { %12312 = vpow2.f32 %v3910_v57 }
 0x5b9   : > { %v3834_v7 = vpop.xlane.xlu0 %3833 }
 0x5ba   : > { %v3891_v42 = vsub.f32 %v13615_v24, %v3834_v7 }
 0x5bc   : > { %v3914_v53 = vmul.f32 1.442695, %v3891_v42 }
 0x5bd   : > { %v3837_v11 = vpop.xlane.xlu0 %3836 }
 0x5be   : > { %12314 = vpow2.f32 %v3914_v53  ;;  %v3892_v17 = vsub.f32 %v13599_v55, %v3837_v11 }
 0x5c0   : > { %v13711_v6 = vpop.eup %12312  ;;  %v3916_v56 = vmul.f32 1.442695, %v3892_v17 }
 0x5c1   : > { %v3843_v60 = vpop.xlane.xlu0 %3842  ;;  %v3840_v19 = vpop.xlane.xlu1 %3839  ;;  %v3952_v27 = vsel %vm508_vm2, %v13711_v6, 0.0 }
 0x5c2   : > { %12316 = vpow2.f32 %v3916_v56  ;;  %v3894_v12 = vsub.f32 %v13601_v14, %v3843_v60  ;;  %v3893_v57 = vsub.f32 %v13623_v39, %v3840_v19  ;;  %3953 = vadd.xlane.f32.xlu0 %v3952_v27 }
 0x5c4   : > { %v3920_v24 = vmul.f32 1.442695, %v3894_v12  ;;  %v3918_v42 = vmul.f32 1.442695, %v3893_v57 }
 0x5c5   : > { %v3849_v32 = vpop.xlane.xlu0 %3848 }
 0x5c6   : > { %12318 = vpow2.f32 %v3920_v24  ;;  %v3896_v11 = vsub.f32 %v13603_v10, %v3849_v32 }
 0x5c7   : > { %12320 = vpow2.f32 %v3918_v42 }
 0x5c8   : > { %v13718_v53 = vpop.eup %12314  ;;  %v3924_v17 = vmul.f32 1.442695, %v3896_v11 }
 0x5c9   : > { %v3855_v55 = vpop.xlane.xlu0 %3854  ;;  %v3846_v9 = vpop.xlane.xlu1 %3845  ;;  %v3958_v56 = vsel %vm508_vm2, %v13718_v53, 0.0 }
 0x5ca   : > { %12322 = vpow2.f32 %v3924_v17  ;;  %v3898_v60 = vsub.f32 %v13607_v4, %v3855_v55  ;;  %v3895_v27 = vsub.f32 %v13633_v63, %v3846_v9  ;;  %3959 = vadd.xlane.f32.xlu0 %v3958_v56 }
 0x5cc   : > { %v13724_v19 = vpop.eup %12316  ;;  %v3922_v14 = vmul.f32 1.442695, %v3895_v27  ;;  %v3928_v39 = vmul.f32 1.442695, %v3898_v60 }
 0x5cd   : > { %v3861_v10 = vpop.xlane.xlu0 %3860  ;;  %v3961_v7 = vsel %vm508_vm2, %v13724_v19, 0.0 }
 0x5ce   : > { %v3900_v12 = vsub.f32 %v13613_v46, %v3861_v10  ;;  %3962 = vadd.xlane.f32.xlu1 %v3961_v7  ;;  %12324 = vpow2.f32 %v3922_v14 }
 0x5cf   : > { %12326 = vpow2.f32 %v3928_v39 }
 0x5d0   : > { %v13729_v57 = vpop.eup %12318  ;;  %v3932_v4 = vmul.f32 1.442695, %v3900_v12 }
 0x5d1   : > { %v13731_v24 = vpop.eup %12320  ;;  %v3852_v63 = vpop.xlane.xlu1 %3851  ;;  %v3967_v42 = vsel %vm508_vm2, %v13729_v57, 0.0 }
 0x5d2   : > { %v3897_v32 = vsub.f32 %v13643_v18, %v3852_v63  ;;  %v3964_v11 = vsel %vm508_vm2, %v13731_v24, 0.0  ;;  %3968 = vadd.xlane.f32.xlu1 %v3967_v42  ;;  %12328 = vpow2.f32 %v3932_v4 }
 0x5d3   : > { %3965 = vadd.xlane.f32.xlu0 %v3964_v11 }
 0x5d4   : > { %v13738_v46 = vpop.eup %12322  ;;  %v3926_v17 = vmul.f32 1.442695, %v3897_v32 }
 0x5d5   : > { %v3973_v55 = vsel %vm508_vm2, %v13738_v46, 0.0 }
 0x5d6   : > { %12330 = vpow2.f32 %v3926_v17  ;;  %3974 = vadd.xlane.f32.xlu1 %v3973_v55 }
 0x5d8   : > { %v13742_v9 = vpop.eup %12324 }
 0x5d9   : > { %v3858_v56 = vpop.xlane.xlu1 %3857  ;;  %v3970_v18 = vsel %vm508_vm2, %v13742_v9, 0.0  ;;  %v13747_v27 = vpop.eup %12326 }
 0x5da   : > { %v3899_v60 = vsub.f32 %v13649_v48, %v3858_v56  ;;  %3971 = vadd.xlane.f32.xlu0 %v3970_v18  ;;  %v3979_v39 = vsel %vm508_vm2, %v13747_v27, 0.0 }
 0x5dc   : > { %v3930_v14 = vmul.f32 1.442695, %v3899_v60  ;;  %v13751_v10 = vpop.eup %12328 }
 0x5dd   : > { %v3985_v63 = vsel %vm508_vm2, %v13751_v10, 0.0 }
 0x5de   : > { %12332 = vpow2.f32 %v3930_v14  ;;  %3980 = vadd.xlane.f32.xlu0 %v3979_v39 }
 0x5e0   : > { %v13753_v7 = vpop.eup %12330 }
 0x5e1   : > { %v3864_v12 = vpop.xlane.xlu1 %3863  ;;  %v3976_v48 = vsel %vm508_vm2, %v13753_v7, 0.0 }
 0x5e2   : > { %v3901_v4 = vsub.f32 %v13653_v21, %v3864_v12  ;;  %3977 = vadd.xlane.f32.xlu1 %v3976_v48  ;;  %3986 = vadd.xlane.f32.xlu0 %v3985_v63  ;;  %v13768_v21 = vpop.permute.xlu0 %4654 }
 0x5e4   : > { %v3934_v42 = vmul.f32 1.442695, %v3901_v4 }
 0x5e5   : > { %v13774_v4 = vpop.permute.xlu1 %4606 }
 0x5e6   : > { %12334 = vpow2.f32 %v3934_v42 }
 0x5e8   : > { %v13760_v32 = vpop.eup %12332 }
 0x5e9   : > { %v3982_v11 = vsel %vm508_vm2, %v13760_v32, 0.0 }
 0x5ea   : > { %3983 = vadd.xlane.f32.xlu1 %v3982_v11 }
 0x5f0   : > { %v13764_v17 = vpop.eup %12334 }
 0x5f1   : > { %v3988_v55 = vsel %vm508_vm2, %v13764_v17, 0.0 }
 0x5f2   : > { %3989 = vadd.xlane.f32.xlu1 %v3988_v55 }
 0x602   : > { %v3867_v56 = vpop.xlane.xlu0 %3866 }
 0x603   : > { %v3902_v60 = vsub.f32 %v13619_v22, %v3867_v56 }
 0x605   : > { %v3936_v18 = vmul.f32 1.442695, %v3902_v60 }
 0x606   : > { %v3873_v14 = vpop.xlane.xlu0 %3872 }
 0x607   : > { %12336 = vpow2.f32 %v3936_v18  ;;  %v3904_v39 = vsub.f32 %v13629_v1, %v3873_v14 }
 0x609   : > { %v3940_v12 = vmul.f32 1.442695, %v3904_v39 }
 0x60b   : > { %12338 = vpow2.f32 %v3940_v12 }
 0x611   : > { %v13772_v48 = vpop.eup %12336 }
 0x612   : > { %v3991_v63 = vsel %vm508_vm2, %v13772_v48, 0.0 }
 0x613   : > { %3992 = vadd.xlane.f32.xlu0 %v3991_v63 }
 0x615   : > { %v13778_v42 = vpop.eup %12338 }
 0x616   : > { %v3870_v11 = vpop.xlane.xlu1 %3869  ;;  %v3997_v22 = vsel %vm508_vm2, %v13778_v42, 0.0 }
 0x617   : > { %v3903_v55 = vsub.f32 %v13659_v8, %v3870_v11  ;;  %3998 = vadd.xlane.f32.xlu0 %v3997_v22 }
 0x619   : > { %v3938_v1 = vmul.f32 1.442695, %v3903_v55 }
 0x61a   : > { %v3876_v56 = vpop.xlane.xlu1 %3875 }
 0x61b   : > { %12340 = vpow2.f32 %v3938_v1  ;;  %v3905_v60 = vsub.f32 %v13661_v26, %v3876_v56  ;;  %v4228_v1 = vsel %vm1772_vm3, %v13671_v58, 0 }
 0x61d   : > { %v3942_v18 = vmul.f32 1.442695, %v3905_v60 }
 0x61e   : > { %v3882_v14 = vpop.xlane.xlu1 %3881 }
 0x61f   : > { %12342 = vpow2.f32 %v3942_v18  ;;  %v3907_v58 = vsub.f32 %v13665_v49, %v3882_v14 }
 0x621   : > { %v3946_v18 = vmul.f32 1.442695, %v3907_v58 }
 0x622   : > { %v3888_v63 = vpop.xlane.xlu1 %3887 }
 0x625   : > { %v13784_v39 = vpop.eup %12340 }
 0x626   : > { %v3994_v12 = vsel %vm508_vm2, %v13784_v39, 0.0 }
 0x627   : > { %3995 = vadd.xlane.f32.xlu1 %v3994_v12  ;;  %v3909_v12 = vsub.f32 %v13667_v15, %v3888_v63  ;;  %v4180_v15 = vsel %vm1772_vm3, %v13694_v61, 0 }
 0x629   : > { %v13788_v13 = vpop.eup %12342 }
 0x62a   : > { %v4000_v8 = vsel %vm508_vm2, %v13788_v13, 0.0 }
 0x62b   : > { %4001 = vadd.xlane.f32.xlu1 %v4000_v8 }
 0x62c   : > { %v3957_v11 = vpop.xlane.xlu1 %3956 }
 0x62d   : > { %12344 = vrcp.f32 %v3957_v11  ;;  %4750 = vrot.lane.b32.xlu0 %v12775_v33, %s12576_s6 }
 0x631   : > { %4798 = vrot.lane.b32.xlu0 %v12780_v34, %s12576_s6 }
 0x635   : > { %4894 = vrot.lane.b32.xlu0 %v12790_v38, %s12576_s6 }
 0x637   : > { %v12345_v26 = vpop.eup %12344 }
 0x638   : > { %v4037_v22 = vmul.f32 %v12345_v26, %v13698_v51  ;;  %v3879_v51 = vpop.xlane.xlu0 %3878  ;;  %v3950_v26 = vmul.f32 1.442695, %v3909_v12 }
 0x639   : > { %4846 = vrot.lane.b32.xlu0 %v12785_v36, %s12576_s6  ;;  %v3906_v60 = vsub.f32 %v13639_v31, %v3879_v51 }
 0x63a   : > { %v4058_v55 = vpack.c.bf16 %v4037_v22, %v4037_v22 }
 0x63b   : > { %v3944_v11 = vmul.f32 1.442695, %v3906_v60 }
 0x63c   : > { %11357 = vmatmul.mubr.msk.bf16.vlgmr.msra.gmra.mrb[128].mxu0 %vm508_vm2, %v4058_v55  ;;  %4702 = vrot.lane.b32.xlu1 %v12770_v20, %s12576_s6  ;;  %v13816_v56 = vpop.xlane.xlu0 %3884 }
 0x63d   : > { %11367 = vmatpush3.bf16.msra.mxu0 %v4228_v1  ;;  %4990 = vrot.lane.b32.xlu0 %v12800_v43, %s12576_s6 }
 0x63e   : > { %11368 = vmatprep.mubr.msk.bf16.mxu0 %vm12571_vm0, %v15664_v45  ;;  %11378 = vmatprep.subr.bf16.mxu0 %v15664_v45 }
 0x641   : > { %4942 = vrot.lane.b32.xlu0 %v12795_v41, %s12576_s6 }
 0x645   : > { %5038 = vrot.lane.b32.xlu0 %v12804_v44, %s12576_s6 }
 0x64f   : > { %v3954_v8 = vpop.xlane.xlu0 %3953 }
 0x650   : > { %12346 = vrcp.f32 %v3954_v8 }
 0x651   : > { %12348 = vpow2.f32 %v3946_v18 }
 0x652   : > { %12350 = vpow2.f32 %v3944_v11 }
 0x653   : > { %12352 = vpow2.f32 %v3950_v26 }
 0x657   : > { %v3960_v22 = vpop.xlane.xlu0 %3959 }
 0x658   : > { %12354 = vrcp.f32 %v3960_v22 }
 0x65a   : > { %v12347_v55 = vpop.eup %12346 }
 0x65b   : > { %v3963_v1 = vpop.xlane.xlu1 %3962  ;;  %v4036_v49 = vmul.f32 %v12347_v55, %v13711_v6  ;;  %v13821_v14 = vpop.eup %12348  ;;  %v4276_v55 = vsel %vm1772_vm3, %v13696_v2, 0 }
 0x65c   : > { %12356 = vrcp.f32 %v3963_v1  ;;  %v13823_v51 = vpop.eup %12350  ;;  %v4006_v58 = vsel %vm508_vm2, %v13821_v14, 0.0 }
 0x65d   : > { %v4057_v31 = vpack.c.bf16 %v4036_v49, %v4036_v49  ;;  %v13830_v60 = vpop.eup %12352  ;;  %v4003_v61 = vsel %vm508_vm2, %v13823_v51, 0.0 }
 0x65e   : > { %v4012_v12 = vsel %vm508_vm2, %v13830_v60, 0.0 }
 0x65f   : > { %11351 = vmatmul.mubr.msk.bf16.vlgmr.msra.gmra.mrb[168].mxu1 %vm508_vm2, %v4057_v31  ;;  %v3969_v63 = vpop.xlane.xlu1 %3968 }
 0x660   : > { %11361 = vmatpush3.bf16.msra.mxu1 %v4180_v15  ;;  %v3966_v18 = vpop.xlane.xlu0 %3965  ;;  %12358 = vrcp.f32 %v3969_v63  ;;  %4007 = vadd.xlane.f32.xlu1 %v4006_v58  ;;  %v4324_v63 = vsel %vm1772_vm3, %v13677_v37, 0 }
 0x661   : > { %12360 = vrcp.f32 %v3966_v18  ;;  %11362 = vmatprep.mubr.msk.bf16.mxu1 %vm12571_vm0, %v15664_v45  ;;  %11372 = vmatprep.subr.bf16.mxu1 %v15664_v45 }
 0x662   : > { %v12355_v6 = vpop.eup %12354 }
 0x663   : > { %v4038_v8 = vmul.f32 %v12355_v6, %v13718_v53  ;;  %v3975_v11 = vpop.xlane.xlu1 %3974 }
 0x664   : > { %4004 = vadd.xlane.f32.xlu0 %v4003_v61  ;;  %4013 = vadd.xlane.f32.xlu1 %v4012_v12  ;;  %12362 = vrcp.f32 %v3975_v11  ;;  %v4372_v61 = vsel %vm1772_vm3, %v13702_v62, 0 }
 0x665   : > { %v4059_v26 = vpack.c.bf16 %v4038_v8, %v4038_v8 }
 0x666   : > { %v12357_v22 = vpop.eup %12356 }
 0x667   : > { %11363 = vmatmul.mubr.msk.bf16.vlgmr.msra.gmra.mrb[172].mxu1 %vm508_vm2, %v4059_v26  ;;  %v4039_v1 = vmul.f32 %v12357_v22, %v13724_v19  ;;  %v3972_v49 = vpop.xlane.xlu0 %3971  ;;  %v4468_v22 = vsel %vm1772_vm3, %v13704_v3, 0 }
 0x668   : > { %11373 = vmatpush3.bf16.msra.mxu1 %v4276_v55  ;;  %11374 = vmatprep.mubr.msk.bf16.mxu1 %vm12571_vm0, %v15664_v45  ;;  %12364 = vrcp.f32 %v3972_v49 }
 0x669   : > { %v4060_v53 = vpack.c.bf16 %v4039_v1, %v4039_v1  ;;  %11384 = vmatprep.subr.bf16.mxu1 %v15664_v45 }
 0x66a   : > { %v12359_v31 = vpop.eup %12358 }
 0x66b   : > { %v12361_v15 = vpop.eup %12360  ;;  %11369 = vmatmul.mubr.msk.bf16.vlgmr.msra.gmra.mrb[132].mxu0 %vm508_vm2, %v4060_v53  ;;  %v3981_v2 = vpop.xlane.xlu0 %3980  ;;  %v4041_v58 = vmul.f32 %v12359_v31, %v13729_v57  ;;  %v4420_v57 = vsel %vm1772_vm3, %v13681_v50, 0  ;;  %v4564_v31 = vsel %vm1772_vm3, %v13706_v54, 0  ;;  %v3908_v54 = vsub.f32 %v13647_v5, %v13816_v56 }
 0x66c   : > { %11379 = vmatpush3.bf16.msra.mxu0 %v4324_v63  ;;  %v4040_v19 = vmul.f32 %v12361_v15, %v13731_v24  ;;  %11380 = vmatprep.mubr.msk.bf16.mxu0 %vm12571_vm0, %v15664_v45  ;;  %12366 = vrcp.f32 %v3981_v2  ;;  %v4660_v5 = vsel %vm1772_vm3, %v13768_v21, 0 }
 0x66d   : > { %11390 = vmatprep.subr.bf16.mxu0 %v15664_v45  ;;  %v4062_v37 = vpack.c.bf16 %v4041_v58, %v4041_v58 }
 0x66e   : > { %v4061_v18 = vpack.c.bf16 %v4040_v19, %v4040_v19  ;;  %v12363_v24 = vpop.eup %12362 }
 0x66f   : > { %v3978_v6 = vpop.xlane.xlu1 %3977  ;;  %v3987_v8 = vpop.xlane.xlu0 %3986  ;;  %v4043_v11 = vmul.f32 %v12363_v24, %v13738_v46  ;;  %v4516_v46 = vsel %vm1772_vm3, %v13685_v16, 0 }
 0x670   : > { %11375 = vmatmul.mubr.msk.bf16.vlgmr.msra.gmra.mrb[176].mxu1 %vm508_vm2, %v4061_v18  ;;  %12368 = vrcp.f32 %v3978_v6 }
 0x671   : > { %11385 = vmatpush3.bf16.msra.mxu1 %v4372_v61  ;;  %11386 = vmatprep.mubr.msk.bf16.mxu1 %vm12571_vm0, %v15664_v45  ;;  %12370 = vrcp.f32 %v3987_v8  ;;  %v4064_v55 = vpack.c.bf16 %v4043_v11, %v4043_v11 }
 0x672   : > { %11396 = vmatprep.subr.bf16.mxu1 %v15664_v45  ;;  %v12365_v12 = vpop.eup %12364 }
 0x673   : > { %11381 = vmatmul.mubr.msk.bf16.vlgmr.msra.gmra.mrb[136].mxu0 %vm508_vm2, %v4062_v37  ;;  %v4042_v62 = vmul.f32 %v12365_v12, %v13742_v9 }
 0x674   : > { %11391 = vmatpush3.bf16.msra.mxu0 %v4420_v57  ;;  %11392 = vmatprep.mubr.msk.bf16.mxu0 %vm12571_vm0, %v15664_v45 }
 0x675   : > { %5138 = vrot.lane.b32.xlu1 %v12708_v28, %s12577_s7  ;;  %11402 = vmatprep.subr.bf16.mxu0 %v15664_v45  ;;  %v4063_v26 = vpack.c.bf16 %v4042_v62, %v4042_v62 }
 0x676   : > { %v12367_v9 = vpop.eup %12366 }
 0x677   : > { %v3984_v50 = vpop.xlane.xlu1 %3983  ;;  %v4045_v53 = vmul.f32 %v12367_v9, %v13747_v27  ;;  %v4612_v27 = vsel %vm1772_vm3, %v13774_v4, 0  ;;  %v3948_v4 = vmul.f32 1.442695, %v3908_v54  ;;  %v15689_v54 = vld [vmem:[#allocation3_spill] sm:$0xff] }
 0x678   : > { %11387 = vmatmul.mubr.msk.bf16.vlgmr.msra.gmra.mrb[180].mxu1 %vm508_vm2, %v4063_v26  ;;  %12372 = vrcp.f32 %v3984_v50 }
 0x679   : > { %11397 = vmatpush3.bf16.msra.mxu1 %v4468_v22  ;;  %5288 = vrot.lane.b32.xlu1 %v12725_v47, %s12577_s7  ;;  %v4066_v15 = vpack.c.bf16 %v4045_v53, %v4045_v53 }
 0x67a   : > { %v12369_v1 = vpop.eup %12368  ;;  %5088 = vrot.lane.b32.xlu0 %v12701_v23, %s12577_s7  ;;  %11398 = vmatprep.mubr.msk.bf16.mxu1 %vm12571_vm0, %v15664_v45 }
 0x67b   : > { %11393 = vmatmul.mubr.msk.bf16.vlgmr.msra.gmra.mrb[140].mxu0 %vm508_vm2, %v4064_v55  ;;  %11408 = vmatprep.subr.bf16.mxu1 %v15664_v45  ;;  %v4044_v3 = vmul.f32 %v12369_v1, %v13753_v7  ;;  %v12371_v7 = vpop.eup %12370 }
 0x67c   : > { %11403 = vmatpush3.bf16.msra.mxu0 %v4516_v46  ;;  %11404 = vmatprep.mubr.msk.bf16.mxu0 %vm12571_vm0, %v15664_v45  ;;  %v4047_v58 = vmul.f32 %v12371_v7, %v13751_v10 }
 0x67d   : > { %5286 = vrot.lane.b32.xlu1 %v12725_v47, %s12578_s8  ;;  %v4065_v49 = vpack.c.bf16 %v4044_v3, %v4044_v3  ;;  %11414 = vmatprep.subr.bf16.mxu0 %v15664_v45 }
 0x67f   : > { %v3990_v16 = vpop.xlane.xlu1 %3989 }
 0x680   : > { %11399 = vmatmul.mubr.msk.bf16.vlgmr.msra.gmra.mrb[184].mxu1 %vm508_vm2, %v4065_v49  ;;  %12374 = vrcp.f32 %v3990_v16 }
 0x681   : > { %11409 = vmatpush3.bf16.msra.mxu1 %v4564_v31  ;;  %5388 = vrot.lane.b32.xlu1 %v12735_v59, %s12577_s7  ;;  %12376 = vpow2.f32 %v3948_v4 }
 0x682   : > { %v12373_v63 = vpop.eup %12372  ;;  %11410 = vmatprep.mubr.msk.bf16.mxu1 %vm12571_vm0, %v15664_v45  ;;  %11420 = vmatprep.subr.bf16.mxu1 %v15664_v45 }
 0x683   : > { %11405 = vmatmul.mubr.msk.bf16.vlgmr.msra.gmra.mrb[144].mxu0 %vm508_vm2, %v4066_v15  ;;  %v4046_v2 = vmul.f32 %v12373_v63, %v13760_v32  ;;  %v4068_v32 = vpack.c.bf16 %v4047_v58, %v4047_v58 }
 0x684   : > { %11415 = vmatpush3.bf16.msra.mxu0 %v4612_v27  ;;  %11416 = vmatprep.mubr.msk.bf16.mxu0 %vm12571_vm0, %v15664_v45 }
 0x685   : > { %5386 = vrot.lane.b32.xlu1 %v12735_v59, %s12578_s8  ;;  %v4067_v19 = vpack.c.bf16 %v4046_v2, %v4046_v2  ;;  %11426 = vmatprep.subr.bf16.mxu0 %v15664_v45  ;;  %v15690_v2 = vld [vmem:[#allocation5_spill] sm:$0xff] }
 0x688   : > { %11411 = vmatmul.mubr.msk.bf16.vlgmr.msra.gmra.mrb[188].mxu1 %vm508_vm2, %v4067_v19 }
 0x689   : > { %11421 = vmatpush3.bf16.msra.mxu1 %v4660_v5  ;;  %5488 = vrot.lane.b32.xlu1 %v15666_v25, %s12577_s7 }
 0x68a   : > { %v12375_v56 = vpop.eup %12374  ;;  %11422 = vmatprep.mubr.msk.bf16.mxu1 %vm12571_vm0, %v15664_v45  ;;  %11432 = vmatprep.subr.bf16.mxu1 %v15664_v45 }
 0x68b   : > { %11417 = vmatmul.mubr.msk.bf16.vlgmr.msra.gmra.mrb[148].mxu0 %vm508_vm2, %v4068_v32  ;;  %v4048_v10 = vmul.f32 %v12375_v56, %v13764_v17  ;;  %v13930_v18 = vpop.eup %12376 }
 0x68c   : > { %11428 = vmatprep.mubr.msk.bf16.mxu0 %vm12571_vm0, %v15664_v45  ;;  %v4009_v17 = vsel %vm508_vm2, %v13930_v18, 0.0 }
 0x68d   : > { %5486 = vrot.lane.b32.xlu1 %v15666_v25, %s12578_s8  ;;  %v4069_v21 = vpack.c.bf16 %v4048_v10, %v4048_v10 }
 0x690   : > { %11423 = vmatmul.mubr.msk.bf16.vlgmr.msra.gmra.mrb[192].mxu1 %vm508_vm2, %v4069_v21 }
 0x691   : > { %5588 = vrot.lane.b32.xlu1 %v15667_v30, %s12577_s7  ;;  %11434 = vmatprep.mubr.msk.bf16.mxu1 %vm12571_vm0, %v15664_v45 }
 0x695   : > { %5586 = vrot.lane.b32.xlu1 %v15667_v30, %s12578_s8 }
 0x699   : > { %4010 = vadd.xlane.f32.xlu0 %v4009_v17  ;;  %5688 = vrot.lane.b32.xlu1 %v12764_v29, %s12577_s7 }
 0x69d   : > { %5686 = vrot.lane.b32.xlu1 %v12764_v29, %s12578_s8 }
 0x6a0   : > { %v3993_v6 = vpop.xlane.xlu0 %3992 }
 0x6a1   : > { %5788 = vrot.lane.b32.xlu1 %v12775_v33, %s12577_s7  ;;  %12378 = vrcp.f32 %v3993_v6 }
 0x6a4   : > { %v3999_v61 = vpop.xlane.xlu0 %3998 }
 0x6a5   : > { %5786 = vrot.lane.b32.xlu1 %v12775_v33, %s12578_s8 }
 0x6a8   : > { %v4751_v37 = vpop.permute.xlu0 %4750 }
 0x6a9   : > { %v4756_v24 = vsel %vm1772_vm3, %v4751_v37, 0  ;;  %5888 = vrot.lane.b32.xlu1 %v12785_v36, %s12577_s7 }
 0x6aa   : > { %11433 = vmatpush3.bf16.msra.mxu1 %v4756_v24 }
 0x6ab   : > { %11444 = vmatprep.subr.bf16.mxu1 %v15664_v45  ;;  %v12379_v62 = vpop.eup %12378 }
 0x6ac   : > { %v4799_v12 = vpop.permute.xlu0 %4798  ;;  %v4049_v26 = vmul.f32 %v12379_v62, %v13772_v48 }
 0x6ad   : > { %5886 = vrot.lane.b32.xlu1 %v12785_v36, %s12578_s8  ;;  %v4804_v48 = vsel %vm1772_vm3, %v4799_v12, 0 }
 0x6ae   : > { %v4070_v1 = vpack.c.bf16 %v4049_v26, %v4049_v26 }
 0x6af   : > { %5086 = vrot.lane.b32.xlu0 %v12701_v23, %s12578_s8 }
 0x6b0   : > { %v4895_v8 = vpop.permute.xlu0 %4894 }
 0x6b1   : > { %5988 = vrot.lane.b32.xlu1 %v12795_v41, %s12577_s7 }
 0x6b3   : > { %5188 = vrot.lane.b32.xlu0 %v12715_v35, %s12577_s7 }
 0x6b4   : > { %v3996_v57 = vpop.xlane.xlu1 %3995  ;;  %v4847_v22 = vpop.permute.xlu0 %4846 }
 0x6b5   : > { %12380 = vrcp.f32 %v3996_v57  ;;  %5986 = vrot.lane.b32.xlu1 %v12795_v41, %s12578_s8  ;;  %v4852_v31 = vsel %vm1772_vm3, %v4847_v22, 0 }
 0x6b6   : > { %12382 = vrcp.f32 %v3999_v61 }
 0x6b7   : > { %5136 = vrot.lane.b32.xlu0 %v12708_v28, %s12578_s8 }
 0x6b8   : > { %v4002_v11 = vpop.xlane.xlu1 %4001  ;;  %v13978_v16 = vpop.permute.xlu0 %4990 }
 0x6b9   : > { %12384 = vrcp.f32 %v4002_v11  ;;  %6088 = vrot.lane.b32.xlu1 %v12804_v44, %s12577_s7  ;;  %v4996_v24 = vsel %vm1772_vm3, %v13978_v16, 0 }
 0x6bb   : > { %5186 = vrot.lane.b32.xlu0 %v12715_v35, %s12578_s8 }
 0x6bc   : > { %v4703_v50 = vpop.permute.xlu1 %4702  ;;  %v4943_v63 = vpop.permute.xlu0 %4942 }
 0x6bd   : > { %v4708_v9 = vsel %vm1772_vm3, %v4703_v50, 0  ;;  %6086 = vrot.lane.b32.xlu1 %v12804_v44, %s12578_s8 }
 0x6be   : > { %11427 = vmatpush3.bf16.msra.mxu0 %v4708_v9 }
 0x6bf   : > { %v12381_v55 = vpop.eup %12380  ;;  %5238 = vrot.lane.b32.xlu0 %v12718_v40, %s12577_s7  ;;  %11438 = vmatprep.subr.bf16.mxu0 %v15664_v45 }
 0x6c0   : > { %v12383_v46 = vpop.eup %12382  ;;  %v4050_v3 = vmul.f32 %v12381_v55, %v13784_v39  ;;  %v5039_v19 = vpop.permute.xlu0 %5038 }
 0x6c1   : > { %6388 = vrot.lane.b32.xlu1 %v12701_v23, %s12579_s9  ;;  %11429 = vmatmul.mubr.msk.bf16.vlgmr.msra.gmra.mrb[152].mxu0 %vm508_vm2, %v4070_v1  ;;  %v4051_v39 = vmul.f32 %v12383_v46, %v13778_v42  ;;  %v4900_v42 = vsel %vm1772_vm3, %v4895_v8, 0  ;;  %v5044_v6 = vsel %vm1772_vm3, %v5039_v19, 0 }
 0x6c2   : > { %11439 = vmatpush3.bf16.msra.mxu0 %v4804_v48  ;;  %v4071_v49 = vpack.c.bf16 %v4050_v3, %v4050_v3  ;;  %11440 = vmatprep.mubr.msk.bf16.mxu0 %vm12571_vm0, %v15664_v45 }
 0x6c3   : > { %v12385_v53 = vpop.eup %12384  ;;  %5236 = vrot.lane.b32.xlu0 %v12718_v40, %s12578_s8  ;;  %11450 = vmatprep.subr.bf16.mxu0 %v15664_v45  ;;  %v4072_v15 = vpack.c.bf16 %v4051_v39, %v4051_v39 }
 0x6c4   : > { %11435 = vmatmul.mubr.msk.bf16.vlgmr.msra.gmra.mrb[196].mxu1 %vm508_vm2, %v4071_v49  ;;  %v4052_v7 = vmul.f32 %v12385_v53, %v13788_v13  ;;  %v4948_v13 = vsel %vm1772_vm3, %v4943_v63, 0 }
 0x6c5   : > { %11445 = vmatpush3.bf16.msra.mxu1 %v4852_v31  ;;  %6484 = vrot.lane.b32.xlu1 %v12715_v35, %s12579_s9 }
 0x6c6   : > { %11446 = vmatprep.mubr.msk.bf16.mxu1 %vm12571_vm0, %v15664_v45  ;;  %11456 = vmatprep.subr.bf16.mxu1 %v15664_v45  ;;  %v4073_v27 = vpack.c.bf16 %v4052_v7, %v4052_v7 }
 0x6c7   : > { %5338 = vrot.lane.b32.xlu0 %v12728_v52, %s12577_s7 }
 0x6c9   : > { %6532 = vrot.lane.b32.xlu1 %v12718_v40, %s12579_s9  ;;  %11441 = vmatmul.mubr.msk.bf16.vlgmr.msra.gmra.mrb[156].mxu0 %vm508_vm2, %v4072_v15 }
 0x6ca   : > { %11451 = vmatpush3.bf16.msra.mxu0 %v4900_v42  ;;  %11452 = vmatprep.mubr.msk.bf16.mxu0 %vm12571_vm0, %v15664_v45 }
 0x6cb   : > { %5336 = vrot.lane.b32.xlu0 %v12728_v52, %s12578_s8  ;;  %11462 = vmatprep.subr.bf16.mxu0 %v15664_v45 }
 0x6cc   : > { %11447 = vmatmul.mubr.msk.bf16.vlgmr.msra.gmra.mrb[200].mxu1 %vm508_vm2, %v4073_v27 }
 0x6cd   : > { %11457 = vmatpush3.bf16.msra.mxu1 %v4948_v13  ;;  %6628 = vrot.lane.b32.xlu1 %v12728_v52, %s12579_s9 }
 0x6ce   : > { %11458 = vmatprep.mubr.msk.bf16.mxu1 %vm12571_vm0, %v15664_v45  ;;  %11468 = vmatprep.subr.bf16.mxu1 %v15664_v45 }
 0x6cf   : > { %5438 = vrot.lane.b32.xlu0 %v12738_v0, %s12577_s7 }
 0x6d1   : > { %6724 = vrot.lane.b32.xlu1 %v12738_v0, %s12579_s9 }
 0x6d3   : > { %5436 = vrot.lane.b32.xlu0 %v12738_v0, %s12578_s8 }
 0x6d5   : > { %6820 = vrot.lane.b32.xlu1 %v15689_v54, %s12579_s9 }
 0x6d7   : > { %5538 = vrot.lane.b32.xlu0 %v15689_v54, %s12577_s7 }
 0x6d9   : > { %6916 = vrot.lane.b32.xlu1 %v15690_v2, %s12579_s9 }
 0x6db   : > { %5536 = vrot.lane.b32.xlu0 %v15689_v54, %s12578_s8 }
 0x6dd   : > { %7012 = vrot.lane.b32.xlu1 %v12770_v20, %s12579_s9 }
 0x6df   : > { %5638 = vrot.lane.b32.xlu0 %v15690_v2, %s12577_s7 }
 0x6e1   : > { %7108 = vrot.lane.b32.xlu1 %v12780_v34, %s12579_s9 }
 0x6e3   : > { %5636 = vrot.lane.b32.xlu0 %v15690_v2, %s12578_s8 }
 0x6e5   : > { %7156 = vrot.lane.b32.xlu1 %v12785_v36, %s12579_s9 }
 0x6e7   : > { %5738 = vrot.lane.b32.xlu0 %v12770_v20, %s12577_s7 }
 0x6e9   : > { %7204 = vrot.lane.b32.xlu1 %v12790_v38, %s12579_s9 }
 0x6eb   : > { %5736 = vrot.lane.b32.xlu0 %v12770_v20, %s12578_s8 }
 0x6ed   : > { %v4008_v58 = vpop.xlane.xlu1 %4007 }
 0x6ee   : > { %12386 = vrcp.f32 %v4008_v58 }
 0x6ef   : > { %5838 = vrot.lane.b32.xlu0 %v12780_v34, %s12577_s7 }
 0x6f1   : > { %v4005_v4 = vpop.xlane.xlu0 %4004  ;;  %v4014_v5 = vpop.xlane.xlu1 %4013 }
 0x6f2   : > { %12388 = vrcp.f32 %v4005_v4 }
 0x6f3   : > { %12390 = vrcp.f32 %v4014_v5  ;;  %5836 = vrot.lane.b32.xlu0 %v12780_v34, %s12578_s8 }
 0x6f5   : > { %v5089_v9 = vpop.permute.xlu0 %5088 }
 0x6f6   : > { %v5094_v13 = vsel %vm508_vm2, %v5089_v9, 0 }
 0x6f7   : > { %5938 = vrot.lane.b32.xlu0 %v12790_v38, %s12577_s7 }
 0x6f8   : > { %v12387_v32 = vpop.eup %12386 }
 0x6f9   : > { %v4054_v56 = vmul.f32 %v12387_v32, %v13821_v14 }
 0x6fb   : > { %5936 = vrot.lane.b32.xlu0 %v12790_v38, %s12578_s8  ;;  %v4075_v10 = vpack.c.bf16 %v4054_v56, %v4054_v56 }
 0x6fc   : > { %v12389_v21 = vpop.eup %12388 }
 0x6fd   : > { %v12391_v17 = vpop.eup %12390  ;;  %11459 = vmatmul.mubr.msk.bf16.vlgmr.msra.gmra.mrb[204].mxu1 %vm508_vm2, %v4075_v10  ;;  %v4053_v61 = vmul.f32 %v12389_v21, %v13823_v51  ;;  %v5139_v51 = vpop.permute.xlu1 %5138 }
 0x6fe   : > { %11469 = vmatpush3.bf16.msra.mxu1 %v5044_v6  ;;  %11470 = vmatprep.mubr.msk.bf16.mxu1 %vm12571_vm0, %v15664_v45  ;;  %v4056_v37 = vmul.f32 %v12391_v17, %v13830_v60  ;;  %v5144_v60 = vsel %vm508_vm2, %v5139_v51, 0 }
 0x6ff   : > { %6038 = vrot.lane.b32.xlu0 %v12800_v43, %s12577_s7  ;;  %v4074_v14 = vpack.c.bf16 %v4053_v61, %v4053_v61  ;;  %11480 = vmatprep.subr.bf16.mxu1 %v15664_v45 }
 0x700   : > { %v4077_v12 = vpack.c.bf16 %v4056_v37, %v4056_v37 }
 0x701   : > { %11453 = vmatmul.mubr.msk.bf16.vlgmr.msra.gmra.mrb[160].mxu0 %vm508_vm2, %v4074_v14  ;;  %v14079_v26 = vpop.permute.xlu1 %5288 }
 0x702   : > { %11463 = vmatpush3.bf16.msra.mxu0 %v4996_v24  ;;  %11464 = vmatprep.mubr.msk.bf16.mxu0 %vm12571_vm0, %v15664_v45 }
 0x703   : > { %6036 = vrot.lane.b32.xlu0 %v12800_v43, %s12578_s8  ;;  %11474 = vmatprep.subr.bf16.mxu0 %v15664_v45 }
 0x705   : > { %11471 = vmatmul.mubr.msk.bf16.vlgmr.msra.gmra.mrb[208].mxu1 %vm508_vm2, %v4077_v12  ;;  %v14085_v50 = vpop.permute.xlu1 %5286 }
 0x706   : > { %11482 = vmatprep.mubr.msk.bf16.mxu1 %vm12571_vm0, %v15664_v45 }
 0x707   : > { %11481 = vmatpush3.bf16.xpose.msra.mxu1 %v5144_v60  ;;  %6436 = vrot.lane.b32.xlu0 %v12708_v28, %s12579_s9 }
 0x708   : > { %11492 = vmatprep.subr.bf16.mxu1 %v15664_v45 }
 0x709   : > { %v14089_v22 = vpop.permute.xlu1 %5388 }
 0x70b   : > { %6580 = vrot.lane.b32.xlu0 %v12725_v47, %s12579_s9 }
 0x70d   : > { %v14093_v55 = vpop.permute.xlu1 %5386 }
 0x70f   : > { %v14075_v57 = vpop.f32.mrb[128].mxu0  ;;  %6676 = vrot.lane.b32.xlu0 %v12735_v59, %s12579_s9 }
 0x710   : > { %15691 = vst [vmem:[#allocation3_spill] sm:$0xff] %v14075_v57  ;;  %v11358_v8 = vpop.f32.mrb[129].mxu0 }
 0x711   : > { %v4171_v62 = vpop.f32.mrb[130].mxu0  ;;  %v14095_v3 = vpop.permute.xlu1 %5488 }
 0x712   : > { %v11359_v11 = vpop.f32.mrb[131].mxu0 }
 0x713   : > { %6772 = vrot.lane.b32.xlu0 %v15666_v25, %s12579_s9 }
 0x715   : > { %v14097_v53 = vpop.permute.xlu1 %5486 }
 0x717   : > { %6868 = vrot.lane.b32.xlu0 %v15667_v30, %s12579_s9 }
 0x719   : > { %v14109_v58 = vpop.permute.xlu1 %5588 }
 0x71b   : > { %6964 = vrot.lane.b32.xlu0 %v12764_v29, %s12579_s9 }
 0x71d   : > { %v14117_v10 = vpop.permute.xlu1 %5586 }
 0x71f   : > { %7060 = vrot.lane.b32.xlu0 %v12775_v33, %s12579_s9 }
 0x721   : > { %v14129_v60 = vpop.permute.xlu1 %5688 }
 0x726   : > { %v4011_v1 = vpop.xlane.xlu0 %4010 }
 0x727   : > { %12392 = vrcp.f32 %v4011_v1  ;;  %v5294_v1 = vsel %vm508_vm2, %v14079_v26, 0 }
 0x72a   : > { %v5087_v46 = vpop.permute.xlu0 %5086 }
 0x72e   : > { %v5189_v48 = vpop.permute.xlu0 %5188 }
 0x72f   : > { %v5194_v17 = vsel %vm508_vm2, %v5189_v48, 0 }
 0x731   : > { %v12393_v49 = vpop.eup %12392 }
 0x732   : > { %v14099_v16 = vpop.f32.mrb[168].mxu1  ;;  %v5137_v39 = vpop.permute.xlu0 %5136  ;;  %v4055_v31 = vmul.f32 %v12393_v49, %v13930_v18 }
 0x733   : > { %15692 = vst [vmem:[#allocation5_spill] sm:$0xff] %v14099_v16  ;;  %v11352_v15 = vpop.f32.mrb[169].mxu1  ;;  %11483 = vmatmul.mubr.msk.bf16.vlgmr.msra.gmra.mrb[212].mxu1 %vm508_vm2, %v5137_v39 }
 0x734   : > { %v4123_v42 = vpop.f32.mrb[170].mxu1  ;;  %v4076_v63 = vpack.c.bf16 %v4055_v31, %v4055_v31  ;;  %11494 = vmatprep.mubr.msk.bf16.mxu1 %vm12571_vm0, %v15664_v45  ;;  %v14148_v15 = vpop.permute.xlu1 %5686 }
 0x735   : > { %v11353_v27 = vpop.f32.mrb[171].mxu1 }
 0x736   : > { %v5187_v19 = vpop.permute.xlu0 %5186  ;;  %11465 = vmatmul.mubr.msk.bf16.vlgmr.msra.gmra.mrb[164].mxu0 %vm508_vm2, %v4076_v63 }
 0x737   : > { %11475 = vmatpush3.bf16.xpose.msra.mxu0 %v5094_v13  ;;  %11476 = vmatprep.mubr.msk.bf16.mxu0 %vm12571_vm0, %v15664_v45 }
 0x738   : > { %11486 = vmatprep.subr.bf16.mxu0 %v15664_v45 }
 0x73a   : > { %v14114_v18 = vpop.f32.mrb[172].mxu1  ;;  %v5239_v4 = vpop.permute.xlu0 %5238 }
 0x73b   : > { %15693 = vst [vmem:[#allocation30_spill] sm:$0xff] %v14114_v18  ;;  %v5244_v5 = vsel %vm508_vm2, %v5239_v4, 0  ;;  %v11364_v32 = vpop.f32.mrb[173].mxu1 }
 0x73c   : > { %v4219_v56 = vpop.f32.mrb[174].mxu1  ;;  %11493 = vmatpush3.bf16.xpose.msra.mxu1 %v5244_v5  ;;  %v5394_v5 = vsel %vm508_vm2, %v14089_v22, 0 }
 0x73d   : > { %v11365_v21 = vpop.f32.mrb[175].mxu1  ;;  %11504 = vmatprep.subr.bf16.mxu1 %v15664_v45 }
 0x73e   : > { %v5237_v6 = vpop.permute.xlu0 %5236  ;;  %v14121_v61 = vpop.f32.mrb[132].mxu0  ;;  %11477 = vmatmul.mubr.msk.bf16.vlgmr.msra.gmra.mrb[168].mxu0 %vm508_vm2, %v5087_v46 }
 0x73f   : > { %15694 = vst [vmem:[#allocation31_spill] sm:$0xff] %v14121_v61  ;;  %11487 = vmatpush3.bf16.xpose.msra.mxu0 %v5194_v17  ;;  %v11370_v37 = vpop.f32.mrb[133].mxu0  ;;  %11488 = vmatprep.mubr.msk.bf16.mxu0 %vm12571_vm0, %v15664_v45  ;;  %v14161_v21 = vpop.permute.xlu1 %5788 }
 0x740   : > { %v4267_v24 = vpop.f32.mrb[134].mxu0  ;;  %11498 = vmatprep.subr.bf16.mxu0 %v15664_v45 }
 0x741   : > { %v11371_v51 = vpop.f32.mrb[135].mxu0 }
 0x742   : > { %v5339_v12 = vpop.permute.xlu0 %5338 }
 0x743   : > { %v14131_v8 = vpop.f32.mrb[176].mxu1  ;;  %v5344_v62 = vsel %vm508_vm2, %v5339_v12, 0  ;;  %11495 = vmatmul.mubr.msk.bf16.vlgmr.msra.gmra.mrb[216].mxu1 %vm508_vm2, %v5237_v6 }
 0x744   : > { %15695 = vst [vmem:[#allocation32_spill] sm:$0xff] %v14131_v8  ;;  %v11376_v11 = vpop.f32.mrb[177].mxu1  ;;  %11505 = vmatpush3.bf16.xpose.msra.mxu1 %v5344_v62  ;;  %11506 = vmatprep.mubr.msk.bf16.mxu1 %vm12571_vm0, %v15664_v45 }
 0x745   : > { %v4315_v9 = vpop.f32.mrb[178].mxu1  ;;  %11516 = vmatprep.subr.bf16.mxu1 %v15664_v45  ;;  %v14176_v11 = vpop.permute.xlu1 %5786 }
 0x746   : > { %v11377_v46 = vpop.f32.mrb[179].mxu1  ;;  %v5337_v48 = vpop.permute.xlu0 %5336  ;;  %11489 = vmatmul.mubr.msk.bf16.vlgmr.msra.gmra.mrb[172].mxu0 %vm508_vm2, %v5187_v19 }
 0x747   : > { %v14141_v49 = vpop.f32.mrb[136].mxu0  ;;  %11499 = vmatpush3.bf16.xpose.msra.mxu0 %v5294_v1  ;;  %11500 = vmatprep.mubr.msk.bf16.mxu0 %vm12571_vm0, %v15664_v45  ;;  %v5494_v1 = vsel %vm508_vm2, %v14095_v3, 0 }
 0x748   : > { %15696 = vst [vmem:[#allocation33_spill] sm:$0xff] %v14141_v49  ;;  %v11382_v31 = vpop.f32.mrb[137].mxu0  ;;  %11510 = vmatprep.subr.bf16.mxu0 %v15664_v45 }
 0x749   : > { %v4363_v42 = vpop.f32.mrb[138].mxu0 }
 0x74a   : > { %v11383_v26 = vpop.f32.mrb[139].mxu0  ;;  %v5439_v63 = vpop.permute.xlu0 %5438 }
 0x74b   : > { %v14150_v27 = vpop.f32.mrb[180].mxu1  ;;  %v5444_v13 = vsel %vm508_vm2, %v5439_v63, 0  ;;  %11507 = vmatmul.mubr.msk.bf16.vlgmr.msra.gmra.mrb[220].mxu1 %vm508_vm2, %v5337_v48 }
 0x74c   : > { %15697 = vst [vmem:[#allocation34_spill] sm:$0xff] %v14150_v27  ;;  %v11388_v19 = vpop.f32.mrb[181].mxu1  ;;  %11517 = vmatpush3.bf16.xpose.msra.mxu1 %v5444_v13  ;;  %11518 = vmatprep.mubr.msk.bf16.mxu1 %vm12571_vm0, %v15664_v45 }
 0x74d   : > { %v4411_v4 = vpop.f32.mrb[182].mxu1  ;;  %11528 = vmatprep.subr.bf16.mxu1 %v15664_v45  ;;  %v5889_v19 = vpop.permute.xlu1 %5888 }
 0x74e   : > { %v11389_v32 = vpop.f32.mrb[183].mxu1  ;;  %v5437_v56 = vpop.permute.xlu0 %5436  ;;  %11501 = vmatmul.mubr.msk.bf16.vlgmr.msra.gmra.mrb[176].mxu0 %vm508_vm2, %v14085_v50 }
 0x74f   : > { %v14163_v17 = vpop.f32.mrb[140].mxu0  ;;  %11511 = vmatpush3.bf16.xpose.msra.mxu0 %v5394_v5  ;;  %11512 = vmatprep.mubr.msk.bf16.mxu0 %vm12571_vm0, %v15664_v45 }
 0x750   : > { %15698 = vst [vmem:[#allocation35_spill] sm:$0xff] %v14163_v17  ;;  %v11394_v37 = vpop.f32.mrb[141].mxu0  ;;  %11522 = vmatprep.subr.bf16.mxu0 %v15664_v45 }
 0x751   : > { %v4459_v22 = vpop.f32.mrb[142].mxu0 }
 0x752   : > { %v11395_v24 = vpop.f32.mrb[143].mxu0  ;;  %v5539_v51 = vpop.permute.xlu0 %5538 }
 0x753   : > { %v5544_v12 = vsel %vm508_vm2, %v5539_v51, 0  ;;  %v14171_v50 = vpop.f32.mrb[184].mxu1  ;;  %11519 = vmatmul.mubr.msk.bf16.vlgmr.msra.gmra.mrb[224].mxu1 %vm508_vm2, %v5437_v56  ;;  %v5594_v56 = vsel %vm508_vm2, %v14109_v58, 0 }
 0x754   : > { %15699 = vst [vmem:[#allocation36_spill] sm:$0xff] %v14171_v50  ;;  %v11400_v62 = vpop.f32.mrb[185].mxu1  ;;  %11529 = vmatpush3.bf16.xpose.msra.mxu1 %v5544_v12  ;;  %11530 = vmatprep.mubr.msk.bf16.mxu1 %vm12571_vm0, %v15664_v45 }
 0x755   : > { %v4507_v9 = vpop.f32.mrb[186].mxu1  ;;  %11540 = vmatprep.subr.bf16.mxu1 %v15664_v45  ;;  %v5887_v62 = vpop.permute.xlu1 %5886 }
 0x756   : > { %v11401_v46 = vpop.f32.mrb[187].mxu1  ;;  %v5537_v48 = vpop.permute.xlu0 %5536  ;;  %11513 = vmatmul.mubr.msk.bf16.vlgmr.msra.gmra.mrb[180].mxu0 %vm508_vm2, %v14093_v55 }
 0x757   : > { %v14183_v31 = vpop.f32.mrb[144].mxu0  ;;  %11523 = vmatpush3.bf16.xpose.msra.mxu0 %v5494_v1  ;;  %11524 = vmatprep.mubr.msk.bf16.mxu0 %vm12571_vm0, %v15664_v45 }
 0x758   : > { %15700 = vst [vmem:[#allocation37_spill] sm:$0xff] %v14183_v31  ;;  %v11406_v26 = vpop.f32.mrb[145].mxu0  ;;  %11534 = vmatprep.subr.bf16.mxu0 %v15664_v45 }
 0x759   : > { %v4555_v63 = vpop.f32.mrb[146].mxu0 }
 0x75a   : > { %v11407_v13 = vpop.f32.mrb[147].mxu0  ;;  %v5639_v3 = vpop.permute.xlu0 %5638  ;;  %v5694_v63 = vsel %vm508_vm2, %v14129_v60, 0 }
 0x75b   : > { %v5644_v4 = vsel %vm508_vm2, %v5639_v3, 0  ;;  %v14191_v5 = vpop.f32.mrb[188].mxu1  ;;  %11531 = vmatmul.mubr.msk.bf16.vlgmr.msra.gmra.mrb[228].mxu1 %vm508_vm2, %v5537_v48 }
 0x75c   : > { %15701 = vst [vmem:[#allocation38_spill] sm:$0xff] %v14191_v5  ;;  %v11412_v55 = vpop.f32.mrb[189].mxu1  ;;  %11541 = vmatpush3.bf16.xpose.msra.mxu1 %v5644_v4  ;;  %11542 = vmatprep.mubr.msk.bf16.mxu1 %vm12571_vm0, %v15664_v45  ;;  %v5989_v4 = vpop.permute.xlu1 %5988 }
 0x75d   : > { %v4603_v32 = vpop.f32.mrb[190].mxu1  ;;  %11552 = vmatprep.subr.bf16.mxu1 %v15664_v45 }
 0x75e   : > { %v11413_v37 = vpop.f32.mrb[191].mxu1  ;;  %v5637_v22 = vpop.permute.xlu0 %5636  ;;  %11525 = vmatmul.mubr.msk.bf16.vlgmr.msra.gmra.mrb[184].mxu0 %vm508_vm2, %v14097_v53 }
 0x75f   : > { %v14201_v24 = vpop.f32.mrb[148].mxu0  ;;  %11535 = vmatpush3.bf16.xpose.msra.mxu0 %v5594_v56  ;;  %11536 = vmatprep.mubr.msk.bf16.mxu0 %vm12571_vm0, %v15664_v45 }
 0x760   : > { %15702 = vst [vmem:[#allocation39_spill] sm:$0xff] %v14201_v24  ;;  %v11418_v12 = vpop.f32.mrb[149].mxu0  ;;  %11546 = vmatprep.subr.bf16.mxu0 %v15664_v45  ;;  %v5987_v60 = vpop.permute.xlu1 %5986 }
 0x761   : > { %v4651_v9 = vpop.f32.mrb[150].mxu0 }
 0x762   : > { %v11419_v58 = vpop.f32.mrb[151].mxu0  ;;  %v5739_v1 = vpop.permute.xlu0 %5738 }
 0x763   : > { %v5744_v46 = vsel %vm508_vm2, %v5739_v1, 0  ;;  %v14209_v48 = vpop.f32.mrb[192].mxu1  ;;  %11543 = vmatmul.mubr.msk.bf16.vlgmr.msra.gmra.mrb[232].mxu1 %vm508_vm2, %v5637_v22 }
 0x764   : > { %15703 = vst [vmem:[#allocation40_spill] sm:$0xff] %v14209_v48  ;;  %v11424_v53 = vpop.f32.mrb[193].mxu1  ;;  %11553 = vmatpush3.bf16.xpose.msra.mxu1 %v5744_v46  ;;  %11554 = vmatprep.mubr.msk.bf16.mxu1 %vm12571_vm0, %v15664_v45  ;;  %v6089_v12 = vpop.permute.xlu1 %6088 }
 0x765   : > { %v4699_v26 = vpop.f32.mrb[194].mxu1  ;;  %11564 = vmatprep.subr.bf16.mxu1 %v15664_v45 }
 0x766   : > { %v11425_v13 = vpop.f32.mrb[195].mxu1  ;;  %v5737_v3 = vpop.permute.xlu0 %5736  ;;  %11537 = vmatmul.mubr.msk.bf16.vlgmr.msra.gmra.mrb[188].mxu0 %vm508_vm2, %v14117_v10  ;;  %v5794_v10 = vsel %vm508_vm2, %v14161_v21, 0 }
 0x767   : > { %11547 = vmatpush3.bf16.xpose.msra.mxu0 %v5694_v63  ;;  %11548 = vmatprep.mubr.msk.bf16.mxu0 %vm12571_vm0, %v15664_v45 }
 0x768   : > { %11558 = vmatprep.subr.bf16.mxu0 %v15664_v45  ;;  %v6087_v9 = vpop.permute.xlu1 %6086 }
 0x76a   : > { %v5839_v55 = vpop.permute.xlu0 %5838 }
 0x76b   : > { %v5844_v32 = vsel %vm508_vm2, %v5839_v55, 0  ;;  %11555 = vmatmul.mubr.msk.bf16.vlgmr.msra.gmra.mrb[236].mxu1 %vm508_vm2, %v5737_v3 }
 0x76c   : > { %11565 = vmatpush3.bf16.xpose.msra.mxu1 %v5844_v32  ;;  %11566 = vmatprep.mubr.msk.bf16.mxu1 %vm12571_vm0, %v15664_v45 }
 0x76d   : > { %11576 = vmatprep.subr.bf16.mxu1 %v15664_v45 }
 0x76e   : > { %v5837_v56 = vpop.permute.xlu0 %5836  ;;  %11549 = vmatmul.mubr.msk.bf16.vlgmr.msra.gmra.mrb[192].mxu0 %vm508_vm2, %v14148_v15  ;;  %v5894_v15 = vsel %vm508_vm2, %v5889_v19, 0  ;;  %v6389_v19 = vpop.permute.xlu1 %6388 }
 0x76f   : > { %11559 = vmatpush3.bf16.xpose.msra.mxu0 %v5794_v10  ;;  %11560 = vmatprep.mubr.msk.bf16.mxu0 %vm12571_vm0, %v15664_v45  ;;  %v6394_v53 = vsel %vm1772_vm3, %v6389_v19, 0 }
 0x770   : > { %11570 = vmatprep.subr.bf16.mxu0 %v15664_v45 }
 0x772   : > { %v5939_v37 = vpop.permute.xlu0 %5938 }
 0x773   : > { %v5944_v22 = vsel %vm508_vm2, %v5939_v37, 0  ;;  %11567 = vmatmul.mubr.msk.bf16.vlgmr.msra.gmra.mrb[240].mxu1 %vm508_vm2, %v5837_v56 }
 0x774   : > { %11577 = vmatpush3.bf16.xpose.msra.mxu1 %v5944_v22  ;;  %11578 = vmatprep.mubr.msk.bf16.mxu1 %vm12571_vm0, %v15664_v45 }
 0x775   : > { %11588 = vmatprep.subr.bf16.mxu1 %v15664_v45 }
 0x776   : > { %v5937_v21 = vpop.permute.xlu0 %5936  ;;  %11561 = vmatmul.mubr.msk.bf16.vlgmr.msra.gmra.mrb[196].mxu0 %vm508_vm2, %v14176_v11  ;;  %v5994_v11 = vsel %vm508_vm2, %v5989_v4, 0 }
 0x777   : > { %11571 = vmatpush3.bf16.xpose.msra.mxu0 %v5894_v15  ;;  %11572 = vmatprep.mubr.msk.bf16.mxu0 %vm12571_vm0, %v15664_v45 }
 0x778   : > { %11582 = vmatprep.subr.bf16.mxu0 %v15664_v45 }
 0x77a   : > { %v6039_v58 = vpop.permute.xlu0 %6038 }
 0x77b   : > { %v6044_v1 = vsel %vm508_vm2, %v6039_v58, 0  ;;  %11579 = vmatmul.mubr.msk.bf16.vlgmr.msra.gmra.mrb[244].mxu1 %vm508_vm2, %v5937_v21 }
 0x77c   : > { %11589 = vmatpush3.bf16.xpose.msra.mxu1 %v6044_v1  ;;  %11590 = vmatprep.mubr.msk.bf16.mxu1 %vm12571_vm0, %v15664_v45 }
 0x77d   : > { %11600 = vmatprep.subr.bf16.mxu1 %v15664_v45 }
 0x77e   : > { %11573 = vmatmul.mubr.msk.bf16.vlgmr.msra.gmra.mrb[200].mxu0 %vm508_vm2, %v5887_v62  ;;  %v6037_v46 = vpop.permute.xlu0 %6036  ;;  %v6094_v62 = vsel %vm508_vm2, %v6089_v12, 0 }
 0x77f   : > { %11583 = vmatpush3.bf16.xpose.msra.mxu0 %v5994_v11  ;;  %11584 = vmatprep.mubr.msk.bf16.mxu0 %vm12571_vm0, %v15664_v45 }
 0x780   : > { %11594 = vmatprep.subr.bf16.mxu0 %v15664_v45 }
 0x782   : > { %v6437_v26 = vpop.permute.xlu0 %6436 }
 0x783   : > { %11591 = vmatmul.mubr.msk.bf16.vlgmr.msra.gmra.mrb[248].mxu1 %vm508_vm2, %v6037_v46  ;;  %v6442_v63 = vsel %vm1772_vm3, %v6437_v26, 0 }
 0x784   : > { %11601 = vmatpush3.bf16.msra.mxu1 %v6394_v53  ;;  %11602 = vmatprep.mubr.msk.bf16.mxu1 %vm12571_vm0, %v15664_v45 }
 0x785   : > { %11612 = vmatprep.subr.bf16.mxu1 %v15664_v45 }
 0x786   : > { %11585 = vmatmul.mubr.msk.bf16.vlgmr.msra.gmra.mrb[204].mxu0 %vm508_vm2, %v5987_v60 }
 0x787   : > { %11595 = vmatpush3.bf16.xpose.msra.mxu0 %v6094_v62  ;;  %11596 = vmatprep.mubr.msk.bf16.mxu0 %vm12571_vm0, %v15664_v45 }
 0x788   : > { %11606 = vmatprep.subr.bf16.mxu0 %v15664_v45 }
 0x78e   : > { %11597 = vmatmul.mubr.msk.bf16.vlgmr.msra.gmra.mrb[208].mxu0 %vm508_vm2, %v6087_v9 }
 0x78f   : > { %11607 = vmatpush3.bf16.msra.mxu0 %v6442_v63  ;;  %11608 = vmatprep.mubr.msk.bf16.mxu0 %vm12571_vm0, %v15664_v45 }
 0x790   : > { %11618 = vmatprep.subr.bf16.mxu0 %v15664_v45 }
 0x794   : > { %v14270_v13 = vpop.f32.mrb[152].mxu0 }
 0x795   : > { %15704 = vst [vmem:[#allocation41_spill] sm:$0xff] %v14270_v13  ;;  %v11430_v4 = vpop.f32.mrb[153].mxu0 }
 0x796   : > { %v4747_v55 = vpop.f32.mrb[154].mxu0 }
 0x797   : > { %v11431_v32 = vpop.f32.mrb[155].mxu0  ;;  %v14274_v10 = vpop.f32.mrb[196].mxu1 }
 0x798   : > { %15705 = vst [vmem:[#allocation42_spill] sm:$0xff] %v14274_v10  ;;  %v11436_v60 = vpop.f32.mrb[197].mxu1 }
 0x799   : > { %v4795_v56 = vpop.f32.mrb[198].mxu1 }
 0x79a   : > { %v11437_v37 = vpop.f32.mrb[199].mxu1 }
 0x79c   : > { %v14276_v22 = vpop.f32.mrb[156].mxu0 }
 0x79d   : > { %15706 = vst [vmem:[#allocation43_spill] sm:$0xff] %v14276_v22  ;;  %v11442_v15 = vpop.f32.mrb[157].mxu0 }
 0x79e   : > { %v4843_v21 = vpop.f32.mrb[158].mxu0 }
 0x79f   : > { %v11443_v9 = vpop.f32.mrb[159].mxu0  ;;  %v14280_v58 = vpop.f32.mrb[200].mxu1 }
 0x7a0   : > { %15707 = vst [vmem:[#allocation44_spill] sm:$0xff] %v14280_v58  ;;  %v11448_v1 = vpop.f32.mrb[201].mxu1 }
 0x7a1   : > { %v4891_v11 = vpop.f32.mrb[202].mxu1 }
 0x7a2   : > { %v11449_v19 = vpop.f32.mrb[203].mxu1 }
 0x7d0   : > { %v14282_v46 = vpop.f32.mrb[204].mxu1 }
 0x7d1   : > { %15708 = vst [vmem:[#allocation45_spill] sm:$0xff] %v14282_v46  ;;  %v11460_v53 = vpop.f32.mrb[205].mxu1 }
 0x7d2   : > { %v4987_v62 = vpop.f32.mrb[206].mxu1 }
 0x7d3   : > { %v11461_v26 = vpop.f32.mrb[207].mxu1 }
 0x7d4   : > { %v14284_v63 = vpop.f32.mrb[160].mxu0 }
 0x7d5   : > { %15709 = vst [vmem:[#allocation46_spill] sm:$0xff] %v14284_v63  ;;  %v11454_v55 = vpop.f32.mrb[161].mxu0 }
 0x7d6   : > { %v4939_v32 = vpop.f32.mrb[162].mxu0 }
 0x7d7   : > { %v11455_v60 = vpop.f32.mrb[163].mxu0 }
 0x7d8   : > { %v14288_v56 = vpop.f32.mrb[208].mxu1 }
 0x7d9   : > { %15710 = vst [vmem:[#allocation47_spill] sm:$0xff] %v14288_v56  ;;  %v11472_v37 = vpop.f32.mrb[209].mxu1 }
 0x7da   : > { %v5083_v15 = vpop.f32.mrb[210].mxu1 }
 0x7db   : > { %v11473_v21 = vpop.f32.mrb[211].mxu1 }
 0x806   : > { %v14290_v9 = vpop.f32.mrb[212].mxu1 }
 0x807   : > { %v11484_v1 = vpop.f32.mrb[213].mxu1  ;;  %v6139_v11 = vsel %vm508_vm2, %v14290_v9, -inf }
 0x808   : > { %6140 = vmax.xlane.f32.xlu1 %v6139_v11  ;;  %v5183_v19 = vpop.f32.mrb[214].mxu1 }
 0x809   : > { %v14294_v53 = vpop.f32.mrb[164].mxu0  ;;  %v11485_v62 = vpop.f32.mrb[215].mxu1 }
 0x80a   : > { %15711 = vst [vmem:[#allocation48_spill] sm:$0xff] %v14294_v53  ;;  %v11466_v55 = vpop.f32.mrb[165].mxu0 }
 0x80b   : > { %v5035_v32 = vpop.f32.mrb[166].mxu0 }
 0x80c   : > { %v11467_v60 = vpop.f32.mrb[167].mxu0 }
 0x811   : > { %v14298_v37 = vpop.f32.mrb[168].mxu0 }
 0x812   : > { %v11478_v15 = vpop.f32.mrb[169].mxu0  ;;  %v6136_v21 = vsel %vm508_vm2, %v14298_v37, -inf }
 0x813   : > { %6137 = vmax.xlane.f32.xlu0 %v6136_v21  ;;  %v5133_v1 = vpop.f32.mrb[170].mxu0 }
 0x814   : > { %v11479_v4 = vpop.f32.mrb[171].mxu0 }
 0x816   : > { %v14302_v11 = vpop.f32.mrb[216].mxu1 }
 0x817   : > { %v11496_v19 = vpop.f32.mrb[217].mxu1  ;;  %v6145_v21 = vsel %vm508_vm2, %v14302_v11, -inf }
 0x818   : > { %v5283_v12 = vpop.f32.mrb[218].mxu1 }
 0x819   : > { %v14304_v62 = vpop.f32.mrb[172].mxu0  ;;  %v11497_v3 = vpop.f32.mrb[219].mxu1 }
 0x81a   : > { %v11490_v26 = vpop.f32.mrb[173].mxu0  ;;  %v6142_v55 = vsel %vm508_vm2, %v14304_v62, -inf }
 0x81b   : > { %6143 = vmax.xlane.f32.xlu0 %v6142_v55  ;;  %v5233_v32 = vpop.f32.mrb[174].mxu0 }
 0x81c   : > { %v11491_v60 = vpop.f32.mrb[175].mxu0 }
 0x81e   : > { %v14308_v15 = vpop.f32.mrb[220].mxu1 }
 0x81f   : > { %v11508_v4 = vpop.f32.mrb[221].mxu1  ;;  %6146 = vmax.xlane.f32.xlu0 %v6145_v21  ;;  %v6151_v3 = vsel %vm508_vm2, %v14308_v15, -inf }
 0x820   : > { %v5383_v1 = vpop.f32.mrb[222].mxu1 }
 0x821   : > { %v14312_v19 = vpop.f32.mrb[176].mxu0  ;;  %v11509_v12 = vpop.f32.mrb[223].mxu1 }
 0x822   : > { %v11502_v51 = vpop.f32.mrb[177].mxu0  ;;  %v6148_v26 = vsel %vm508_vm2, %v14312_v19, -inf }
 0x823   : > { %6152 = vmax.xlane.f32.xlu0 %v6151_v3  ;;  %6149 = vmax.xlane.f32.xlu1 %v6148_v26  ;;  %v5333_v55 = vpop.f32.mrb[178].mxu0 }
 0x824   : > { %v11503_v32 = vpop.f32.mrb[179].mxu0 }
 0x826   : > { %v14318_v60 = vpop.f32.mrb[224].mxu1 }
 0x827   : > { %v11520_v42 = vpop.f32.mrb[225].mxu1  ;;  %v6157_v21 = vsel %vm508_vm2, %v14318_v60, -inf }
 0x828   : > { %v5483_v4 = vpop.f32.mrb[226].mxu1  ;;  %6158 = vmax.xlane.f32.xlu0 %v6157_v21 }
 0x829   : > { %v14322_v1 = vpop.f32.mrb[180].mxu0  ;;  %v11521_v51 = vpop.f32.mrb[227].mxu1 }
 0x82a   : > { %v11514_v12 = vpop.f32.mrb[181].mxu0  ;;  %v6154_v6 = vsel %vm508_vm2, %v14322_v1, -inf }
 0x82b   : > { %6155 = vmax.xlane.f32.xlu1 %v6154_v6  ;;  %v5433_v3 = vpop.f32.mrb[182].mxu0 }
 0x82c   : > { %v11515_v26 = vpop.f32.mrb[183].mxu0 }
 0x82e   : > { %v14326_v55 = vpop.f32.mrb[228].mxu1 }
 0x82f   : > { %v11532_v32 = vpop.f32.mrb[229].mxu1  ;;  %v6163_v42 = vsel %vm508_vm2, %v14326_v55, -inf }
 0x830   : > { %v5583_v14 = vpop.f32.mrb[230].mxu1  ;;  %6164 = vmax.xlane.f32.xlu0 %v6163_v42 }
 0x831   : > { %v14330_v4 = vpop.f32.mrb[184].mxu0  ;;  %v11533_v21 = vpop.f32.mrb[231].mxu1 }
 0x832   : > { %v11526_v39 = vpop.f32.mrb[185].mxu0  ;;  %v6160_v51 = vsel %vm508_vm2, %v14330_v4, -inf }
 0x833   : > { %6161 = vmax.xlane.f32.xlu1 %v6160_v51  ;;  %v5533_v12 = vpop.f32.mrb[186].mxu0 }
 0x834   : > { %v11527_v6 = vpop.f32.mrb[187].mxu0 }
 0x836   : > { %v14334_v3 = vpop.f32.mrb[232].mxu1 }
 0x837   : > { %v11544_v26 = vpop.f32.mrb[233].mxu1  ;;  %v6169_v32 = vsel %vm508_vm2, %v14334_v3, -inf }
 0x838   : > { %v5683_v7 = vpop.f32.mrb[234].mxu1  ;;  %6170 = vmax.xlane.f32.xlu0 %v6169_v32 }
 0x839   : > { %v14338_v14 = vpop.f32.mrb[188].mxu0  ;;  %v11545_v42 = vpop.f32.mrb[235].mxu1 }
 0x83a   : > { %v11538_v56 = vpop.f32.mrb[189].mxu0  ;;  %v6166_v39 = vsel %vm508_vm2, %v14338_v14, -inf }
 0x83b   : > { %6167 = vmax.xlane.f32.xlu1 %v6166_v39  ;;  %v5633_v21 = vpop.f32.mrb[190].mxu0 }
 0x83c   : > { %v11539_v51 = vpop.f32.mrb[191].mxu0 }
 0x83e   : > { %v14342_v12 = vpop.f32.mrb[236].mxu1 }
 0x83f   : > { %v11556_v6 = vpop.f32.mrb[237].mxu1  ;;  %v6175_v26 = vsel %vm508_vm2, %v14342_v12, -inf }
 0x840   : > { %v5783_v46 = vpop.f32.mrb[238].mxu1  ;;  %6176 = vmax.xlane.f32.xlu0 %v6175_v26 }
 0x841   : > { %v14346_v7 = vpop.f32.mrb[192].mxu0  ;;  %v11557_v32 = vpop.f32.mrb[239].mxu1 }
 0x842   : > { %v11550_v53 = vpop.f32.mrb[193].mxu0  ;;  %v6172_v56 = vsel %vm508_vm2, %v14346_v7, -inf }
 0x843   : > { %6173 = vmax.xlane.f32.xlu1 %v6172_v56  ;;  %v5733_v42 = vpop.f32.mrb[194].mxu0 }
 0x844   : > { %v11551_v39 = vpop.f32.mrb[195].mxu0 }
 0x846   : > { %v14350_v21 = vpop.f32.mrb[240].mxu1 }
 0x847   : > { %v11568_v51 = vpop.f32.mrb[241].mxu1 }
 0x848   : > { %v5883_v58 = vpop.f32.mrb[242].mxu1 }
 0x849   : > { %v14352_v6 = vpop.f32.mrb[196].mxu0  ;;  %v11569_v63 = vpop.f32.mrb[243].mxu1 }
 0x84a   : > { %v11562_v10 = vpop.f32.mrb[197].mxu0  ;;  %v6178_v46 = vsel %vm508_vm2, %v14352_v6, -inf }
 0x84b   : > { %6179 = vmax.xlane.f32.xlu1 %v6178_v46  ;;  %v5833_v26 = vpop.f32.mrb[198].mxu0 }
 0x84c   : > { %v11563_v53 = vpop.f32.mrb[199].mxu0 }
 0x84e   : > { %v14356_v32 = vpop.f32.mrb[244].mxu1 }
 0x84f   : > { %v11580_v22 = vpop.f32.mrb[245].mxu1 }
 0x850   : > { %v5983_v56 = vpop.f32.mrb[246].mxu1 }
 0x851   : > { %v14358_v42 = vpop.f32.mrb[200].mxu0  ;;  %v11581_v39 = vpop.f32.mrb[247].mxu1 }
 0x852   : > { %v11574_v48 = vpop.f32.mrb[201].mxu0  ;;  %v6184_v58 = vsel %vm508_vm2, %v14358_v42, -inf  ;;  %v14370_v39 = vpop.permute.xlu1 %6484 }
 0x853   : > { %6185 = vmax.xlane.f32.xlu1 %v6184_v58  ;;  %v5933_v63 = vpop.f32.mrb[202].mxu0 }
 0x854   : > { %v11575_v10 = vpop.f32.mrb[203].mxu0 }
 0x856   : > { %v14362_v51 = vpop.f32.mrb[248].mxu1  ;;  %7252 = vrot.lane.b32.xlu0 %v12795_v41, %s12579_s9  ;;  %v14372_v10 = vpop.permute.xlu1 %6532 }
 0x857   : > { %v11592_v46 = vpop.f32.mrb[249].mxu1 }
 0x858   : > { %v6083_v26 = vpop.f32.mrb[250].mxu1 }
 0x859   : > { %v14366_v53 = vpop.f32.mrb[204].mxu0  ;;  %v11593_v22 = vpop.f32.mrb[251].mxu1 }
 0x85a   : > { %v11586_v56 = vpop.f32.mrb[205].mxu0  ;;  %v6190_v48 = vsel %vm508_vm2, %v14366_v53, -inf  ;;  %v14376_v26 = vpop.permute.xlu1 %6628 }
 0x85b   : > { %6191 = vmax.xlane.f32.xlu1 %v6190_v48  ;;  %v6033_v58 = vpop.f32.mrb[206].mxu0  ;;  %v6181_v48 = vsel %vm508_vm2, %v14350_v21, -inf }
 0x85c   : > { %v11587_v63 = vpop.f32.mrb[207].mxu0  ;;  %v6187_v58 = vsel %vm508_vm2, %v14356_v32, -inf }
 0x85e   : > { %v14380_v22 = vpop.permute.xlu1 %6724 }
 0x861   : > { %v14374_v13 = vpop.f32.mrb[208].mxu0 }
 0x862   : > { %v11598_v5 = vpop.f32.mrb[209].mxu0  ;;  %v14382_v56 = vpop.permute.xlu1 %6820  ;;  %v6196_v17 = vsel %vm508_vm2, %v14374_v13, -inf }
 0x863   : > { %v6133_v24 = vpop.f32.mrb[210].mxu0  ;;  %v6193_v5 = vsel %vm508_vm2, %v14362_v51, -inf }
 0x864   : > { %v11599_v46 = vpop.f32.mrb[211].mxu0  ;;  %v14392_v24 = vpop.permute.xlu0 %6580 }
 0x866   : > { %v14388_v63 = vpop.permute.xlu1 %6916 }
 0x868   : > { %v14396_v50 = vpop.permute.xlu0 %6676 }
 0x86a   : > { %v14394_v46 = vpop.permute.xlu1 %7012 }
 0x86c   : > { %7300 = vrot.lane.b32.xlu1 %v12800_v43, %s12579_s9  ;;  %v14400_v27 = vpop.permute.xlu0 %6772 }
 0x86e   : > { %v14398_v31 = vpop.permute.xlu1 %7108 }
 0x875   : > { %6182 = vmax.xlane.f32.xlu0 %v6181_v48  ;;  %v14402_v48 = vpop.permute.xlu1 %7156 }
 0x879   : > { %6188 = vmax.xlane.f32.xlu0 %v6187_v58  ;;  %v14406_v58 = vpop.permute.xlu0 %6868  ;;  %v14408_v18 = vpop.permute.xlu1 %7204 }
 0x87a   : > { %15712 = vst [vmem:[#allocation49_spill] sm:$0xff] %v14408_v18 }
 0x87d   : > { %6194 = vmax.xlane.f32.xlu0 %v6193_v5  ;;  %v14410_v61 = vpop.permute.xlu0 %6964 }
 0x881   : > { %v14413_v16 = vpop.permute.xlu0 %7060 }
 0x890   : > { %6197 = vmax.xlane.f32.xlu1 %v6196_v17 }
 0x895   : > { %v6141_v5 = vpop.xlane.xlu1 %6140 }
 0x896   : > { %v6200_v8 = vsub.f32 %v14290_v9, %v6141_v5 }
 0x898   : > { %v6222_v49 = vmul.f32 1.442695, %v6200_v8 }
 0x89a   : > { %12394 = vpow2.f32 %v6222_v49 }
 0x8a0   : > { %v6138_v57 = vpop.xlane.xlu0 %6137 }
 0x8a1   : > { %v6199_v41 = vsub.f32 %v14298_v37, %v6138_v57 }
 0x8a3   : > { %v6220_v36 = vmul.f32 1.442695, %v6199_v41 }
 0x8a4   : > { %v14416_v33 = vpop.eup %12394 }
 0x8a5   : > { %12396 = vpow2.f32 %v6220_v36  ;;  %v6265_v17 = vsel %vm508_vm2, %v14416_v33, 0.0 }
 0x8a6   : > { %6266 = vadd.xlane.f32.xlu1 %v6265_v17 }
 0x8a8   : > { %v6144_v18 = vpop.xlane.xlu0 %6143 }
 0x8a9   : > { %v6201_v43 = vsub.f32 %v14304_v62, %v6144_v18 }
 0x8ab   : > { %v6224_v29 = vmul.f32 1.442695, %v6201_v43 }
 0x8ac   : > { %v6147_v9 = vpop.xlane.xlu0 %6146 }
 0x8ad   : > { %12398 = vpow2.f32 %v6224_v29  ;;  %v6202_v8 = vsub.f32 %v14302_v11, %v6147_v9 }
 0x8af   : > { %v14422_v49 = vpop.eup %12396  ;;  %v6226_v5 = vmul.f32 1.442695, %v6202_v8 }
 0x8b0   : > { %v6153_v57 = vpop.xlane.xlu0 %6152  ;;  %v6150_v41 = vpop.xlane.xlu1 %6149  ;;  %v6262_v36 = vsel %vm508_vm2, %v14422_v49, 0.0 }
 0x8b1   : > { %12400 = vpow2.f32 %v6226_v5  ;;  %v6204_v37 = vsub.f32 %v14308_v15, %v6153_v57  ;;  %v6203_v17 = vsub.f32 %v14312_v19, %v6150_v41  ;;  %6263 = vadd.xlane.f32.xlu0 %v6262_v36 }
 0x8b3   : > { %v6230_v18 = vmul.f32 1.442695, %v6204_v37  ;;  %v6228_v43 = vmul.f32 1.442695, %v6203_v17 }
 0x8b5   : > { %12402 = vpow2.f32 %v6230_v18  ;;  %v6159_v29 = vpop.xlane.xlu0 %6158 }
 0x8b6   : > { %12404 = vpow2.f32 %v6228_v43  ;;  %v6206_v62 = vsub.f32 %v14318_v60, %v6159_v29 }
 0x8b7   : > { %v14428_v11 = vpop.eup %12398 }
 0x8b8   : > { %v6156_v9 = vpop.xlane.xlu1 %6155  ;;  %v6268_v8 = vsel %vm508_vm2, %v14428_v11, 0.0  ;;  %v6234_v19 = vmul.f32 1.442695, %v6206_v62 }
 0x8b9   : > { %v6205_v5 = vsub.f32 %v14322_v1, %v6156_v9  ;;  %6269 = vadd.xlane.f32.xlu0 %v6268_v8 }
 0x8bb   : > { %v14434_v15 = vpop.eup %12400  ;;  %v6232_v57 = vmul.f32 1.442695, %v6205_v5 }
 0x8bc   : > { %v6271_v41 = vsel %vm508_vm2, %v14434_v15, 0.0 }
 0x8bd   : > { %12406 = vpow2.f32 %v6232_v57  ;;  %v6165_v36 = vpop.xlane.xlu0 %6164  ;;  %6272 = vadd.xlane.f32.xlu1 %v6271_v41 }
 0x8be   : > { %v6208_v37 = vsub.f32 %v14326_v55, %v6165_v36  ;;  %12408 = vpow2.f32 %v6234_v19 }
 0x8bf   : > { %v14439_v60 = vpop.eup %12402 }
 0x8c0   : > { %v14441_v17 = vpop.eup %12404  ;;  %v6238_v18 = vmul.f32 1.442695, %v6208_v37  ;;  %v6162_v1 = vpop.xlane.xlu1 %6161  ;;  %v6277_v43 = vsel %vm508_vm2, %v14439_v60, 0.0 }
 0x8c1   : > { %v6207_v29 = vsub.f32 %v14330_v4, %v6162_v1  ;;  %v6274_v62 = vsel %vm508_vm2, %v14441_v17, 0.0  ;;  %6278 = vadd.xlane.f32.xlu1 %v6277_v43 }
 0x8c2   : > { %12410 = vpow2.f32 %v6238_v18  ;;  %6275 = vadd.xlane.f32.xlu0 %v6274_v62 }
 0x8c3   : > { %v6236_v9 = vmul.f32 1.442695, %v6207_v29 }
 0x8c5   : > { %12412 = vpow2.f32 %v6236_v9  ;;  %v6171_v55 = vpop.xlane.xlu0 %6170 }
 0x8c6   : > { %v6210_v8 = vsub.f32 %v14334_v3, %v6171_v55 }
 0x8c7   : > { %v14449_v5 = vpop.eup %12406 }
 0x8c8   : > { %v6242_v19 = vmul.f32 1.442695, %v6210_v8  ;;  %v6168_v57 = vpop.xlane.xlu1 %6167  ;;  %v6280_v41 = vsel %vm508_vm2, %v14449_v5, 0.0  ;;  %v14453_v36 = vpop.eup %12408 }
 0x8c9   : > { %v6209_v4 = vsub.f32 %v14338_v14, %v6168_v57  ;;  %6281 = vadd.xlane.f32.xlu0 %v6280_v41  ;;  %v6283_v1 = vsel %vm508_vm2, %v14453_v36, 0.0 }
 0x8ca   : > { %12414 = vpow2.f32 %v6242_v19 }
 0x8cb   : > { %v6240_v37 = vmul.f32 1.442695, %v6209_v4 }
 0x8cc   : > { %v14456_v18 = vpop.eup %12410 }
 0x8cd   : > { %12416 = vpow2.f32 %v6240_v37  ;;  %v6177_v3 = vpop.xlane.xlu0 %6176  ;;  %6284 = vadd.xlane.f32.xlu0 %v6283_v1  ;;  %v6289_v43 = vsel %vm508_vm2, %v14456_v18, 0.0 }
 0x8ce   : > { %v6212_v29 = vsub.f32 %v14342_v12, %v6177_v3  ;;  %6290 = vadd.xlane.f32.xlu1 %v6289_v43 }
 0x8cf   : > { %v14463_v62 = vpop.eup %12412 }
 0x8d0   : > { %v6246_v14 = vmul.f32 1.442695, %v6212_v29  ;;  %v6174_v9 = vpop.xlane.xlu1 %6173  ;;  %v6286_v55 = vsel %vm508_vm2, %v14463_v62, 0.0 }
 0x8d1   : > { %v6211_v8 = vsub.f32 %v14346_v7, %v6174_v9  ;;  %6287 = vadd.xlane.f32.xlu0 %v6286_v55 }
 0x8d2   : > { %12418 = vpow2.f32 %v6246_v14 }
 0x8d3   : > { %v6244_v19 = vmul.f32 1.442695, %v6211_v8 }
 0x8d4   : > { %v14468_v57 = vpop.eup %12414 }
 0x8d5   : > { %12420 = vpow2.f32 %v6244_v19  ;;  %v6295_v41 = vsel %vm508_vm2, %v14468_v57, 0.0 }
 0x8d6   : > { %6296 = vadd.xlane.f32.xlu1 %v6295_v41 }
 0x8d7   : > { %v14472_v12 = vpop.eup %12416 }
 0x8d8   : > { %v6180_v4 = vpop.xlane.xlu1 %6179  ;;  %v6292_v37 = vsel %vm508_vm2, %v14472_v12, 0.0 }
 0x8d9   : > { %v6213_v1 = vsub.f32 %v14352_v6, %v6180_v4  ;;  %6293 = vadd.xlane.f32.xlu0 %v6292_v37 }
 0x8db   : > { %v6248_v7 = vmul.f32 1.442695, %v6213_v1 }
 0x8dc   : > { %v14477_v3 = vpop.eup %12418 }
 0x8dd   : > { %12422 = vpow2.f32 %v6248_v7  ;;  %v6301_v43 = vsel %vm508_vm2, %v14477_v3, 0.0 }
 0x8de   : > { %6302 = vadd.xlane.f32.xlu1 %v6301_v43 }
 0x8df   : > { %v14481_v29 = vpop.eup %12420 }
 0x8e0   : > { %v6186_v14 = vpop.xlane.xlu1 %6185  ;;  %v6298_v9 = vsel %vm508_vm2, %v14481_v29, 0.0 }
 0x8e1   : > { %v6215_v55 = vsub.f32 %v14358_v42, %v6186_v14  ;;  %6299 = vadd.xlane.f32.xlu0 %v6298_v9  ;;  %v14499_v14 = vpop.permute.xlu0 %7252 }
 0x8e3   : > { %v6252_v8 = vmul.f32 1.442695, %v6215_v55 }
 0x8e5   : > { %12424 = vpow2.f32 %v6252_v8 }
 0x8e7   : > { %v14486_v6 = vpop.eup %12422 }
 0x8e8   : > { %v6192_v19 = vpop.xlane.xlu1 %6191  ;;  %v6304_v41 = vsel %vm508_vm2, %v14486_v6, 0.0 }
 0x8e9   : > { %v6217_v4 = vsub.f32 %v14366_v53, %v6192_v19  ;;  %6305 = vadd.xlane.f32.xlu0 %v6304_v41 }
 0x8eb   : > { %v6256_v37 = vmul.f32 1.442695, %v6217_v4 }
 0x8ed   : > { %12426 = vpow2.f32 %v6256_v37 }
 0x8ef   : > { %v14491_v1 = vpop.eup %12424 }
 0x8f0   : > { %v6310_v7 = vsel %vm508_vm2, %v14491_v1, 0.0 }
 0x8f1   : > { %6311 = vadd.xlane.f32.xlu0 %v6310_v7 }
 0x8f7   : > { %v14495_v42 = vpop.eup %12426 }
 0x8f8   : > { %v6316_v43 = vsel %vm508_vm2, %v14495_v42, 0.0 }
 0x8f9   : > { %6317 = vadd.xlane.f32.xlu0 %v6316_v43  ;;  %v14513_v43 = vpop.permute.xlu1 %7300 }
 0x8fa   : > { %15713 = vst [vmem:[#allocation50_spill] sm:$0xff] %v14513_v43 }
 0x902   : > { %v6183_v9 = vpop.xlane.xlu0 %6182 }
 0x903   : > { %v6214_v53 = vsub.f32 %v14350_v21, %v6183_v9 }
 0x905   : > { %v6250_v55 = vmul.f32 1.442695, %v6214_v53 }
 0x906   : > { %v6189_v8 = vpop.xlane.xlu0 %6188 }
 0x907   : > { %12428 = vpow2.f32 %v6250_v55  ;;  %v6216_v19 = vsub.f32 %v14356_v32, %v6189_v8 }
 0x909   : > { %v6254_v41 = vmul.f32 1.442695, %v6216_v19 }
 0x90a   : > { %v6195_v19 = vpop.xlane.xlu0 %6194 }
 0x90b   : > { %12430 = vpow2.f32 %v6254_v41 }
 0x90f   : > { %7348 = vrot.lane.b32.xlu0 %v12804_v44, %s12579_s9 }
 0x911   : > { %v14505_v4 = vpop.eup %12428 }
 0x912   : > { %v6307_v37 = vsel %vm508_vm2, %v14505_v4, 0.0 }
 0x913   : > { %6308 = vadd.xlane.f32.xlu1 %v6307_v37  ;;  %v6218_v37 = vsub.f32 %v14362_v51, %v6195_v19 }
 0x915   : > { %v14509_v7 = vpop.eup %12430 }
 0x916   : > { %v6313_v21 = vsel %vm508_vm2, %v14509_v7, 0.0 }
 0x917   : > { %6314 = vadd.xlane.f32.xlu1 %v6313_v21  ;;  %v6258_v21 = vmul.f32 1.442695, %v6218_v37  ;;  %v6490_v37 = vsel %vm1772_vm3, %v14370_v39, 0 }
 0x91d   : > { %v6198_v32 = vpop.xlane.xlu1 %6197 }
 0x91e   : > { %v6219_v9 = vsub.f32 %v14374_v13, %v6198_v32 }
 0x920   : > { %v6260_v53 = vmul.f32 1.442695, %v6219_v9 }
 0x922   : > { %12432 = vpow2.f32 %v6260_v53  ;;  %v6538_v53 = vsel %vm1772_vm3, %v14372_v10, 0 }
 0x928   : > { %7398 = vrot.lane.b32.xlu1 %v12701_v23, %s12580_s10 }
 0x92c   : > { %v14518_v55 = vpop.eup %12432 }
 0x92d   : > { %v6322_v8 = vsel %vm508_vm2, %v14518_v55, 0.0 }
 0x92e   : > { %6323 = vadd.xlane.f32.xlu0 %v6322_v8 }
 0x933   : > { %v6267_v41 = vpop.xlane.xlu1 %6266 }
 0x934   : > { %12434 = vrcp.f32 %v6267_v41 }
 0x935   : > { %12436 = vpow2.f32 %v6258_v21 }
 0x93e   : > { %v12435_v43 = vpop.eup %12434  ;;  %v6264_v13 = vpop.xlane.xlu0 %6263 }
 0x93f   : > { %12438 = vrcp.f32 %v6264_v13  ;;  %v6347_v32 = vmul.f32 %v12435_v43, %v14416_v33  ;;  %v14532_v8 = vpop.eup %12436 }
 0x940   : > { %v6319_v19 = vsel %vm508_vm2, %v14532_v8, 0.0 }
 0x941   : > { %v6368_v9 = vpack.c.bf16 %v6347_v32, %v6347_v32 }
 0x943   : > { %11609 = vmatmul.mubr.msk.bf16.vlgmr.msra.gmra.mrb[212].mxu0 %vm508_vm2, %v6368_v9 }
 0x944   : > { %11619 = vmatpush3.bf16.msra.mxu0 %v6538_v53  ;;  %7448 = vrot.lane.b32.xlu0 %v12708_v28, %s12580_s10  ;;  %v6586_v53 = vsel %vm1772_vm3, %v14392_v24, 0  ;;  %v6634_v24 = vsel %vm1772_vm3, %v14376_v26, 0 }
 0x945   : > { %11620 = vmatprep.mubr.msk.bf16.mxu0 %vm12571_vm0, %v15664_v45  ;;  %11630 = vmatprep.subr.bf16.mxu0 %v15664_v45 }
 0x946   : > { %v6270_v51 = vpop.xlane.xlu0 %6269 }
 0x947   : > { %12440 = vrcp.f32 %v6270_v51 }
 0x948   : > { %7446 = vrot.lane.b32.xlu0 %v12708_v28, %s12581_s11 }
 0x949   : > { %v12439_v33 = vpop.eup %12438 }
 0x94a   : > { %v6273_v10 = vpop.xlane.xlu1 %6272  ;;  %v6346_v43 = vmul.f32 %v12439_v33, %v14422_v49 }
 0x94b   : > { %12442 = vrcp.f32 %v6273_v10 }
 0x94c   : > { %6320 = vadd.xlane.f32.xlu1 %v6319_v19  ;;  %7548 = vrot.lane.b32.xlu0 %v12718_v40, %s12580_s10  ;;  %v6367_v41 = vpack.c.bf16 %v6346_v43, %v6346_v43 }
 0x94e   : > { %11603 = vmatmul.mubr.msk.bf16.vlgmr.msra.gmra.mrb[252].mxu1 %vm508_vm2, %v6367_v41  ;;  %v6279_v21 = vpop.xlane.xlu1 %6278 }
 0x94f   : > { %11613 = vmatpush3.bf16.msra.mxu1 %v6490_v37  ;;  %v6276_v13 = vpop.xlane.xlu0 %6275  ;;  %12444 = vrcp.f32 %v6279_v21  ;;  %11614 = vmatprep.mubr.msk.bf16.mxu1 %vm12571_vm0, %v15664_v45 }
 0x950   : > { %12446 = vrcp.f32 %v6276_v13  ;;  %7546 = vrot.lane.b32.xlu0 %v12718_v40, %s12581_s11  ;;  %11624 = vmatprep.subr.bf16.mxu1 %v15664_v45 }
 0x951   : > { %v12441_v49 = vpop.eup %12440 }
 0x952   : > { %v6348_v32 = vmul.f32 %v12441_v49, %v14428_v11 }
 0x954   : > { %v6369_v9 = vpack.c.bf16 %v6348_v32, %v6348_v32  ;;  %7648 = vrot.lane.b32.xlu0 %v12728_v52, %s12580_s10 }
 0x955   : > { %v12443_v39 = vpop.eup %12442 }
 0x956   : > { %11615 = vmatmul.mubr.msk.bf16.vlgmr.msra.gmra.mrb[0].mxu1 %vm508_vm2, %v6369_v9  ;;  %v6282_v51 = vpop.xlane.xlu0 %6281  ;;  %v6349_v33 = vmul.f32 %v12443_v39, %v14434_v15 }
 0x957   : > { %11625 = vmatpush3.bf16.msra.mxu1 %v6586_v53  ;;  %12448 = vrcp.f32 %v6282_v51  ;;  %11626 = vmatprep.mubr.msk.bf16.mxu1 %vm12571_vm0, %v15664_v45  ;;  %v6778_v53 = vsel %vm1772_vm3, %v14400_v27, 0 }
 0x958   : > { %7646 = vrot.lane.b32.xlu0 %v12728_v52, %s12581_s11  ;;  %v6370_v11 = vpack.c.bf16 %v6349_v33, %v6349_v33  ;;  %11636 = vmatprep.subr.bf16.mxu1 %v15664_v45 }
 0x959   : > { %v12445_v10 = vpop.eup %12444 }
 0x95a   : > { %v12447_v43 = vpop.eup %12446  ;;  %v6285_v19 = vpop.xlane.xlu0 %6284  ;;  %11621 = vmatmul.mubr.msk.bf16.vlgmr.msra.gmra.mrb[216].mxu0 %vm508_vm2, %v6370_v11  ;;  %v6351_v37 = vmul.f32 %v12445_v10, %v14439_v60  ;;  %v6730_v60 = vsel %vm1772_vm3, %v14380_v22, 0 }
 0x95b   : > { %v6350_v15 = vmul.f32 %v12447_v43, %v14441_v17  ;;  %12450 = vrcp.f32 %v6285_v19  ;;  %11631 = vmatpush3.bf16.msra.mxu0 %v6634_v24  ;;  %v6291_v41 = vpop.xlane.xlu1 %6290  ;;  %11632 = vmatprep.mubr.msk.bf16.mxu0 %vm12571_vm0, %v15664_v45  ;;  %v6682_v17 = vsel %vm1772_vm3, %v14396_v50, 0 }
 0x95c   : > { %7748 = vrot.lane.b32.xlu0 %v12738_v0, %s12580_s10  ;;  %11642 = vmatprep.subr.bf16.mxu0 %v15664_v45  ;;  %12452 = vrcp.f32 %v6291_v41  ;;  %v6372_v13 = vpack.c.bf16 %v6351_v37, %v6351_v37 }
 0x95d   : > { %v6371_v21 = vpack.c.bf16 %v6350_v15, %v6350_v15  ;;  %7396 = vrot.lane.b32.xlu1 %v12701_v23, %s12581_s11 }
 0x95e   : > { %v6288_v26 = vpop.xlane.xlu0 %6287 }
 0x95f   : > { %11627 = vmatmul.mubr.msk.bf16.vlgmr.msra.gmra.mrb[4].mxu1 %vm508_vm2, %v6371_v21  ;;  %12454 = vrcp.f32 %v6288_v26 }
 0x960   : > { %11637 = vmatpush3.bf16.msra.mxu1 %v6682_v17  ;;  %7746 = vrot.lane.b32.xlu0 %v12738_v0, %s12581_s11 }
 0x961   : > { %v12449_v49 = vpop.eup %12448  ;;  %7498 = vrot.lane.b32.xlu1 %v12715_v35, %s12580_s10  ;;  %11638 = vmatprep.mubr.msk.bf16.mxu1 %vm12571_vm0, %v15664_v45 }
 0x962   : > { %v6352_v50 = vmul.f32 %v12449_v49, %v14449_v5  ;;  %11633 = vmatmul.mubr.msk.bf16.vlgmr.msra.gmra.mrb[220].mxu0 %vm508_vm2, %v6372_v13  ;;  %11648 = vmatprep.subr.bf16.mxu1 %v15664_v45 }
 0x963   : > { %11643 = vmatpush3.bf16.msra.mxu0 %v6730_v60  ;;  %v6297_v32 = vpop.xlane.xlu1 %6296  ;;  %11644 = vmatprep.mubr.msk.bf16.mxu0 %vm12571_vm0, %v15664_v45 }
 0x964   : > { %v6373_v9 = vpack.c.bf16 %v6352_v50, %v6352_v50  ;;  %7848 = vrot.lane.b32.xlu0 %v15689_v54, %s12580_s10  ;;  %11654 = vmatprep.subr.bf16.mxu0 %v15664_v45  ;;  %12456 = vrcp.f32 %v6297_v32 }
 0x965   : > { %v12451_v39 = vpop.eup %12450  ;;  %7496 = vrot.lane.b32.xlu1 %v12715_v35, %s12581_s11 }
 0x966   : > { %v6294_v22 = vpop.xlane.xlu0 %6293  ;;  %v6353_v5 = vmul.f32 %v12451_v39, %v14453_v36  ;;  %v12453_v51 = vpop.eup %12452  ;;  %v6826_v36 = vsel %vm1772_vm3, %v14382_v56, 0 }
 0x967   : > { %11639 = vmatmul.mubr.msk.bf16.vlgmr.msra.gmra.mrb[8].mxu1 %vm508_vm2, %v6373_v9  ;;  %12458 = vrcp.f32 %v6294_v22  ;;  %v6355_v24 = vmul.f32 %v12453_v51, %v14456_v18  ;;  %v6922_v18 = vsel %vm1772_vm3, %v14388_v63, 0  ;;  %v15714_v22 = vld [vmem:[#allocation6_spill] sm:$0xff]  ;;  %v7258_v51 = vsel %vm1772_vm3, %v14499_v14, 0 }
 0x968   : > { %11649 = vmatpush3.bf16.msra.mxu1 %v6778_v53  ;;  %7846 = vrot.lane.b32.xlu0 %v15689_v54, %s12581_s11  ;;  %v6374_v33 = vpack.c.bf16 %v6353_v5, %v6353_v5 }
 0x969   : > { %v12455_v11 = vpop.eup %12454  ;;  %7598 = vrot.lane.b32.xlu1 %v12725_v47, %s12580_s10  ;;  %11650 = vmatprep.mubr.msk.bf16.mxu1 %vm12571_vm0, %v15664_v45  ;;  %v6376_v15 = vpack.c.bf16 %v6355_v24, %v6355_v24 }
 0x96a   : > { %v6354_v27 = vmul.f32 %v12455_v11, %v14463_v62  ;;  %11645 = vmatmul.mubr.msk.bf16.vlgmr.msra.gmra.mrb[224].mxu0 %vm508_vm2, %v6374_v33  ;;  %11660 = vmatprep.subr.bf16.mxu1 %v15664_v45  ;;  %v6874_v62 = vsel %vm1772_vm3, %v14406_v58, 0 }
 0x96b   : > { %11655 = vmatpush3.bf16.msra.mxu0 %v6826_v36  ;;  %v6303_v10 = vpop.xlane.xlu1 %6302  ;;  %11656 = vmatprep.mubr.msk.bf16.mxu0 %vm12571_vm0, %v15664_v45 }
 0x96c   : > { %v6375_v43 = vpack.c.bf16 %v6354_v27, %v6354_v27  ;;  %7948 = vrot.lane.b32.xlu0 %v15690_v2, %s12580_s10  ;;  %11666 = vmatprep.subr.bf16.mxu0 %v15664_v45  ;;  %12460 = vrcp.f32 %v6303_v10 }
 0x96d   : > { %7596 = vrot.lane.b32.xlu1 %v12725_v47, %s12581_s11 }
 0x96e   : > { %v6300_v56 = vpop.xlane.xlu0 %6299  ;;  %v12457_v19 = vpop.eup %12456 }
 0x96f   : > { %11651 = vmatmul.mubr.msk.bf16.vlgmr.msra.gmra.mrb[12].mxu1 %vm508_vm2, %v6375_v43  ;;  %12462 = vrcp.f32 %v6300_v56  ;;  %v6357_v21 = vmul.f32 %v12457_v19, %v14468_v57  ;;  %v7018_v57 = vsel %vm1772_vm3, %v14394_v46, 0 }
 0x970   : > { %11661 = vmatpush3.bf16.msra.mxu1 %v6874_v62  ;;  %7946 = vrot.lane.b32.xlu0 %v15690_v2, %s12581_s11 }
 0x971   : > { %v12459_v41 = vpop.eup %12458  ;;  %7698 = vrot.lane.b32.xlu1 %v12735_v59, %s12580_s10  ;;  %11662 = vmatprep.mubr.msk.bf16.mxu1 %vm12571_vm0, %v15664_v45  ;;  %v6378_v17 = vpack.c.bf16 %v6357_v21, %v6357_v21 }
 0x972   : > { %v6356_v58 = vmul.f32 %v12459_v41, %v14472_v12  ;;  %11657 = vmatmul.mubr.msk.bf16.vlgmr.msra.gmra.mrb[228].mxu0 %vm508_vm2, %v6376_v15  ;;  %11672 = vmatprep.subr.bf16.mxu1 %v15664_v45  ;;  %v6970_v12 = vsel %vm1772_vm3, %v14410_v61, 0 }
 0x973   : > { %11667 = vmatpush3.bf16.msra.mxu0 %v6922_v18  ;;  %11668 = vmatprep.mubr.msk.bf16.mxu0 %vm12571_vm0, %v15664_v45 }
 0x974   : > { %v6377_v37 = vpack.c.bf16 %v6356_v58, %v6356_v58  ;;  %8048 = vrot.lane.b32.xlu0 %v12770_v20, %s12580_s10  ;;  %11678 = vmatprep.subr.bf16.mxu0 %v15664_v45 }
 0x975   : > { %7696 = vrot.lane.b32.xlu1 %v12735_v59, %s12581_s11 }
 0x976   : > { %v6306_v63 = vpop.xlane.xlu0 %6305  ;;  %v12461_v26 = vpop.eup %12460 }
 0x977   : > { %11663 = vmatmul.mubr.msk.bf16.vlgmr.msra.gmra.mrb[16].mxu1 %vm508_vm2, %v6377_v37  ;;  %12464 = vrcp.f32 %v6306_v63  ;;  %v6359_v60 = vmul.f32 %v12461_v26, %v14477_v3  ;;  %v7114_v3 = vsel %vm1772_vm3, %v14398_v31, 0 }
 0x978   : > { %11673 = vmatpush3.bf16.msra.mxu1 %v6970_v12  ;;  %8046 = vrot.lane.b32.xlu0 %v12770_v20, %s12581_s11 }
 0x979   : > { %v12463_v13 = vpop.eup %12462  ;;  %7798 = vrot.lane.b32.xlu1 %v15666_v25, %s12580_s10  ;;  %11674 = vmatprep.mubr.msk.bf16.mxu1 %vm12571_vm0, %v15664_v45  ;;  %v6380_v50 = vpack.c.bf16 %v6359_v60, %v6359_v60 }
 0x97a   : > { %v6358_v61 = vmul.f32 %v12463_v13, %v14481_v29  ;;  %11669 = vmatmul.mubr.msk.bf16.vlgmr.msra.gmra.mrb[232].mxu0 %vm508_vm2, %v6378_v17  ;;  %11684 = vmatprep.subr.bf16.mxu1 %v15664_v45  ;;  %v7066_v29 = vsel %vm1772_vm3, %v14413_v16, 0 }
 0x97b   : > { %11679 = vmatpush3.bf16.msra.mxu0 %v7018_v57  ;;  %11680 = vmatprep.mubr.msk.bf16.mxu0 %vm12571_vm0, %v15664_v45 }
 0x97c   : > { %v6379_v49 = vpack.c.bf16 %v6358_v61, %v6358_v61  ;;  %8148 = vrot.lane.b32.xlu0 %v12780_v34, %s12580_s10  ;;  %11690 = vmatprep.subr.bf16.mxu0 %v15664_v45 }
 0x97d   : > { %7796 = vrot.lane.b32.xlu1 %v15666_v25, %s12581_s11 }
 0x97e   : > { %v6312_v46 = vpop.xlane.xlu0 %6311 }
 0x97f   : > { %11675 = vmatmul.mubr.msk.bf16.vlgmr.msra.gmra.mrb[20].mxu1 %vm508_vm2, %v6379_v49  ;;  %12466 = vrcp.f32 %v6312_v46 }
 0x980   : > { %11685 = vmatpush3.bf16.msra.mxu1 %v7066_v29  ;;  %8146 = vrot.lane.b32.xlu0 %v12780_v34, %s12581_s11 }
 0x981   : > { %v12465_v32 = vpop.eup %12464  ;;  %7898 = vrot.lane.b32.xlu1 %v15667_v30, %s12580_s10  ;;  %11686 = vmatprep.mubr.msk.bf16.mxu1 %vm12571_vm0, %v15664_v45 }
 0x982   : > { %v6360_v16 = vmul.f32 %v12465_v32, %v14486_v6  ;;  %11681 = vmatmul.mubr.msk.bf16.vlgmr.msra.gmra.mrb[236].mxu0 %vm508_vm2, %v6380_v50  ;;  %11696 = vmatprep.subr.bf16.mxu1 %v15664_v45  ;;  %v7162_v6 = vsel %vm1772_vm3, %v14402_v48, 0  ;;  %v15715_v48 = vld [vmem:[#allocation10_spill] sm:$0xff] }
 0x983   : > { %11691 = vmatpush3.bf16.msra.mxu0 %v7114_v3  ;;  %11692 = vmatprep.mubr.msk.bf16.mxu0 %vm12571_vm0, %v15664_v45 }
 0x984   : > { %v6381_v9 = vpack.c.bf16 %v6360_v16, %v6360_v16  ;;  %8248 = vrot.lane.b32.xlu0 %v12790_v38, %s12580_s10  ;;  %11702 = vmatprep.subr.bf16.mxu0 %v15664_v45 }
 0x985   : > { %7896 = vrot.lane.b32.xlu1 %v15667_v30, %s12581_s11 }
 0x986   : > { %v6318_v31 = vpop.xlane.xlu0 %6317 }
 0x987   : > { %11687 = vmatmul.mubr.msk.bf16.vlgmr.msra.gmra.mrb[24].mxu1 %vm508_vm2, %v6381_v9  ;;  %12468 = vrcp.f32 %v6318_v31 }
 0x988   : > { %11697 = vmatpush3.bf16.msra.mxu1 %v7162_v6  ;;  %8246 = vrot.lane.b32.xlu0 %v12790_v38, %s12581_s11 }
 0x989   : > { %v12467_v39 = vpop.eup %12466  ;;  %7998 = vrot.lane.b32.xlu1 %v15714_v22, %s12580_s10  ;;  %11698 = vmatprep.mubr.msk.bf16.mxu1 %vm12571_vm0, %v15664_v45 }
 0x98a   : > { %v6362_v5 = vmul.f32 %v12467_v39, %v14491_v1  ;;  %11708 = vmatprep.subr.bf16.mxu1 %v15664_v45  ;;  %v15716_v1 = vld [vmem:[#allocation7_spill] sm:$0xff]  ;;  %v7349_v27 = vpop.permute.xlu0 %7348 }
 0x98b   : > { %v7354_v14 = vsel %vm1772_vm3, %v7349_v27, 0 }
 0x98c   : > { %v6383_v53 = vpack.c.bf16 %v6362_v5, %v6362_v5  ;;  %8348 = vrot.lane.b32.xlu0 %v15715_v48, %s12580_s10 }
 0x98d   : > { %7996 = vrot.lane.b32.xlu1 %v15714_v22, %s12581_s11 }
 0x98f   : > { %11699 = vmatmul.mubr.msk.bf16.vlgmr.msra.gmra.mrb[28].mxu1 %vm508_vm2, %v6383_v53 }
 0x990   : > { %11709 = vmatpush3.bf16.msra.mxu1 %v7258_v51  ;;  %8346 = vrot.lane.b32.xlu0 %v15715_v48, %s12581_s11 }
 0x991   : > { %v12469_v33 = vpop.eup %12468  ;;  %8098 = vrot.lane.b32.xlu1 %v15716_v1, %s12580_s10  ;;  %11710 = vmatprep.mubr.msk.bf16.mxu1 %vm12571_vm0, %v15664_v45 }
 0x992   : > { %v6364_v11 = vmul.f32 %v12469_v33, %v14495_v42  ;;  %11720 = vmatprep.subr.bf16.mxu1 %v15664_v45  ;;  %v15717_v42 = vld [vmem:[#allocation8_spill] sm:$0xff] }
 0x994   : > { %v6385_v36 = vpack.c.bf16 %v6364_v11, %v6364_v11  ;;  %8396 = vrot.lane.b32.xlu0 %v12804_v44, %s12581_s11 }
 0x995   : > { %8096 = vrot.lane.b32.xlu1 %v15716_v1, %s12581_s11 }
 0x997   : > { %11711 = vmatmul.mubr.msk.bf16.vlgmr.msra.gmra.mrb[32].mxu1 %vm508_vm2, %v6385_v36 }
 0x998   : > { %11721 = vmatpush3.bf16.msra.mxu1 %v7354_v14  ;;  %8746 = vrot.lane.b32.xlu0 %v12708_v28, %s12582_s13  ;;  %v15718_v28 = vld [vmem:[#allocation9_spill] sm:$0xff] }
 0x999   : > { %8198 = vrot.lane.b32.xlu1 %v15717_v42, %s12580_s10  ;;  %11722 = vmatprep.mubr.msk.bf16.mxu1 %vm12571_vm0, %v15664_v45 }
 0x99a   : > { %11732 = vmatprep.subr.bf16.mxu1 %v15664_v45 }
 0x99c   : > { %8842 = vrot.lane.b32.xlu0 %v12718_v40, %s12582_s13 }
 0x99d   : > { %8196 = vrot.lane.b32.xlu1 %v15717_v42, %s12581_s11 }
 0x9a0   : > { %8938 = vrot.lane.b32.xlu0 %v12728_v52, %s12582_s13  ;;  %v6309_v10 = vpop.xlane.xlu1 %6308 }
 0x9a1   : > { %12470 = vrcp.f32 %v6309_v10  ;;  %8298 = vrot.lane.b32.xlu1 %v15718_v28, %s12580_s10 }
 0x9a4   : > { %9034 = vrot.lane.b32.xlu0 %v12738_v0, %s12582_s13  ;;  %v6315_v43 = vpop.xlane.xlu1 %6314  ;;  %v15719_v0 = vld [vmem:[#allocation49_spill] sm:$0xff] }
 0x9a5   : > { %12472 = vrcp.f32 %v6315_v43  ;;  %8296 = vrot.lane.b32.xlu1 %v15718_v28, %s12581_s11  ;;  %v7210_v62 = vsel %vm1772_vm3, %v15719_v0, 0 }
 0x9a8   : > { %9130 = vrot.lane.b32.xlu0 %v15689_v54, %s12582_s13 }
 0x9a9   : > { %8398 = vrot.lane.b32.xlu1 %v12804_v44, %s12580_s10 }
 0x9ab   : > { %v12471_v40 = vpop.eup %12470 }
 0x9ac   : > { %v6361_v52 = vmul.f32 %v12471_v40, %v14505_v4  ;;  %v15720_v4 = vld [vmem:[#allocation50_spill] sm:$0xff] }
 0x9ad   : > { %8698 = vrot.lane.b32.xlu1 %v12701_v23, %s12582_s13  ;;  %v7306_v19 = vsel %vm1772_vm3, %v15720_v4, 0 }
 0x9ae   : > { %v6382_v24 = vpack.c.bf16 %v6361_v52, %v6361_v52 }
 0x9af   : > { %v12473_v56 = vpop.eup %12472 }
 0x9b0   : > { %11693 = vmatmul.mubr.msk.bf16.vlgmr.msra.gmra.mrb[240].mxu0 %vm508_vm2, %v6382_v24  ;;  %v6363_v54 = vmul.f32 %v12473_v56, %v14509_v7 }
 0x9b1   : > { %11703 = vmatpush3.bf16.msra.mxu0 %v7210_v62  ;;  %8794 = vrot.lane.b32.xlu1 %v12715_v35, %s12582_s13 }
 0x9b2   : > { %11704 = vmatprep.mubr.msk.bf16.mxu0 %vm12571_vm0, %v15664_v45  ;;  %11714 = vmatprep.subr.bf16.mxu0 %v15664_v45  ;;  %v6384_v23 = vpack.c.bf16 %v6363_v54, %v6363_v54 }
 0x9b5   : > { %8890 = vrot.lane.b32.xlu1 %v12725_v47, %s12582_s13 }
 0x9b8   : > { %11705 = vmatmul.mubr.msk.bf16.vlgmr.msra.gmra.mrb[244].mxu0 %vm508_vm2, %v6384_v23 }
 0x9b9   : > { %11715 = vmatpush3.bf16.msra.mxu0 %v7306_v19  ;;  %8986 = vrot.lane.b32.xlu1 %v12735_v59, %s12582_s13 }
 0x9ba   : > { %11716 = vmatprep.mubr.msk.bf16.mxu0 %vm12571_vm0, %v15664_v45  ;;  %11726 = vmatprep.subr.bf16.mxu0 %v15664_v45 }
 0x9bb   : > { %v6324_v35 = vpop.xlane.xlu0 %6323 }
 0x9bc   : > { %12474 = vrcp.f32 %v6324_v35 }
 0x9bd   : > { %9082 = vrot.lane.b32.xlu1 %v15666_v25, %s12582_s13 }
 0x9bf   : > { %v7449_v47 = vpop.permute.xlu0 %7448 }
 0x9c0   : > { %v7454_v37 = vsel %vm508_vm2, %v7449_v47, 0 }
 0x9c3   : > { %v7447_v7 = vpop.permute.xlu0 %7446 }
 0x9c6   : > { %v12475_v15 = vpop.eup %12474 }
 0x9c7   : > { %v6366_v41 = vmul.f32 %v12475_v15, %v14518_v55  ;;  %v7549_v18 = vpop.permute.xlu0 %7548  ;;  %v7399_v55 = vpop.permute.xlu1 %7398 }
 0x9c8   : > { %v7554_v25 = vsel %vm508_vm2, %v7549_v18, 0  ;;  %v7404_v9 = vsel %vm508_vm2, %v7399_v55, 0 }
 0x9c9   : > { %v6387_v58 = vpack.c.bf16 %v6366_v41, %v6366_v41 }
 0x9cb   : > { %11723 = vmatmul.mubr.msk.bf16.vlgmr.msra.gmra.mrb[36].mxu1 %vm508_vm2, %v6387_v58  ;;  %v7547_v59 = vpop.permute.xlu0 %7546 }
 0x9cc   : > { %11733 = vmatpush3.bf16.xpose.msra.mxu1 %v7454_v37  ;;  %11734 = vmatprep.mubr.msk.bf16.mxu1 %vm12571_vm0, %v15664_v45 }
 0x9cd   : > { %11744 = vmatprep.subr.bf16.mxu1 %v15664_v45 }
 0x9cf   : > { %v7649_v21 = vpop.permute.xlu0 %7648 }
 0x9d0   : > { %v7654_v17 = vsel %vm508_vm2, %v7649_v21, 0 }
 0x9d3   : > { %11735 = vmatmul.mubr.msk.bf16.vlgmr.msra.gmra.mrb[40].mxu1 %vm508_vm2, %v7447_v7  ;;  %v7647_v63 = vpop.permute.xlu0 %7646 }
 0x9d4   : > { %11745 = vmatpush3.bf16.xpose.msra.mxu1 %v7554_v25  ;;  %11746 = vmatprep.mubr.msk.bf16.mxu1 %vm12571_vm0, %v15664_v45 }
 0x9d5   : > { %11756 = vmatprep.subr.bf16.mxu1 %v15664_v45 }
 0x9d7   : > { %v7749_v12 = vpop.permute.xlu0 %7748 }
 0x9d8   : > { %v7754_v60 = vsel %vm508_vm2, %v7749_v12, 0 }
 0x9d9   : > { %v6321_v26 = vpop.xlane.xlu1 %6320 }
 0x9da   : > { %12476 = vrcp.f32 %v6321_v26 }
 0x9db   : > { %11747 = vmatmul.mubr.msk.bf16.vlgmr.msra.gmra.mrb[44].mxu1 %vm508_vm2, %v7547_v59  ;;  %v7747_v13 = vpop.permute.xlu0 %7746 }
 0x9dc   : > { %11757 = vmatpush3.bf16.xpose.msra.mxu1 %v7654_v17  ;;  %11758 = vmatprep.mubr.msk.bf16.mxu1 %vm12571_vm0, %v15664_v45 }
 0x9dd   : > { %v7397_v57 = vpop.permute.xlu1 %7396  ;;  %11768 = vmatprep.subr.bf16.mxu1 %v15664_v45 }
 0x9df   : > { %v7849_v61 = vpop.permute.xlu0 %7848 }
 0x9e0   : > { %v7854_v6 = vsel %vm508_vm2, %v7849_v61, 0 }
 0x9e1   : > { %v7499_v49 = vpop.permute.xlu1 %7498 }
 0x9e2   : > { %v7504_v53 = vsel %vm508_vm2, %v7499_v49, 0 }
 0x9e3   : > { %11759 = vmatmul.mubr.msk.bf16.vlgmr.msra.gmra.mrb[48].mxu1 %vm508_vm2, %v7647_v63  ;;  %v7847_v46 = vpop.permute.xlu0 %7846 }
 0x9e4   : > { %v12477_v29 = vpop.eup %12476  ;;  %11769 = vmatpush3.bf16.xpose.msra.mxu1 %v7754_v60  ;;  %11770 = vmatprep.mubr.msk.bf16.mxu1 %vm12571_vm0, %v15664_v45 }
 0x9e5   : > { %v7497_v50 = vpop.permute.xlu1 %7496  ;;  %v6365_v32 = vmul.f32 %v12477_v29, %v14532_v8  ;;  %11780 = vmatprep.subr.bf16.mxu1 %v15664_v45 }
 0x9e7   : > { %v7949_v3 = vpop.permute.xlu0 %7948  ;;  %v6386_v16 = vpack.c.bf16 %v6365_v32, %v6365_v32 }
 0x9e8   : > { %v7954_v33 = vsel %vm508_vm2, %v7949_v3, 0 }
 0x9e9   : > { %11717 = vmatmul.mubr.msk.bf16.vlgmr.msra.gmra.mrb[248].mxu0 %vm508_vm2, %v6386_v16  ;;  %v7599_v31 = vpop.permute.xlu1 %7598 }
 0x9ea   : > { %11727 = vmatpush3.bf16.xpose.msra.mxu0 %v7404_v9  ;;  %11728 = vmatprep.mubr.msk.bf16.mxu0 %vm12571_vm0, %v15664_v45  ;;  %v7604_v14 = vsel %vm508_vm2, %v7599_v31, 0 }
 0x9eb   : > { %11771 = vmatmul.mubr.msk.bf16.vlgmr.msra.gmra.mrb[52].mxu1 %vm508_vm2, %v7747_v13  ;;  %v7947_v39 = vpop.permute.xlu0 %7946  ;;  %11738 = vmatprep.subr.bf16.mxu0 %v15664_v45 }
 0x9ec   : > { %11781 = vmatpush3.bf16.xpose.msra.mxu1 %v7854_v6  ;;  %11782 = vmatprep.mubr.msk.bf16.mxu1 %vm12571_vm0, %v15664_v45 }
 0x9ed   : > { %v7597_v8 = vpop.permute.xlu1 %7596  ;;  %11792 = vmatprep.subr.bf16.mxu1 %v15664_v45 }
 0x9ef   : > { %v8049_v5 = vpop.permute.xlu0 %8048 }
 0x9f0   : > { %v8054_v43 = vsel %vm508_vm2, %v8049_v5, 0 }
 0x9f1   : > { %11729 = vmatmul.mubr.msk.bf16.vlgmr.msra.gmra.mrb[252].mxu0 %vm508_vm2, %v7397_v57  ;;  %v7699_v51 = vpop.permute.xlu1 %7698 }
 0x9f2   : > { %11739 = vmatpush3.bf16.xpose.msra.mxu0 %v7504_v53  ;;  %11740 = vmatprep.mubr.msk.bf16.mxu0 %vm12571_vm0, %v15664_v45  ;;  %v7704_v24 = vsel %vm508_vm2, %v7699_v51, 0 }
 0x9f3   : > { %11783 = vmatmul.mubr.msk.bf16.vlgmr.msra.gmra.mrb[56].mxu1 %vm508_vm2, %v7847_v46  ;;  %v8047_v11 = vpop.permute.xlu0 %8046  ;;  %11750 = vmatprep.subr.bf16.mxu0 %v15664_v45 }
 0x9f4   : > { %11793 = vmatpush3.bf16.xpose.msra.mxu1 %v7954_v33  ;;  %11794 = vmatprep.mubr.msk.bf16.mxu1 %vm12571_vm0, %v15664_v45 }
 0x9f5   : > { %v7697_v36 = vpop.permute.xlu1 %7696  ;;  %11804 = vmatprep.subr.bf16.mxu1 %v15664_v45 }
 0x9f7   : > { %v8149_v27 = vpop.permute.xlu0 %8148 }
 0x9f8   : > { %v8154_v0 = vsel %vm508_vm2, %v8149_v27, 0 }
 0x9f9   : > { %11741 = vmatmul.mubr.msk.bf16.vlgmr.msra.gmra.mrb[0].mxu0 %vm508_vm2, %v7497_v50  ;;  %v7799_v10 = vpop.permute.xlu1 %7798 }
 0x9fa   : > { %11751 = vmatpush3.bf16.xpose.msra.mxu0 %v7604_v14  ;;  %11752 = vmatprep.mubr.msk.bf16.mxu0 %vm12571_vm0, %v15664_v45  ;;  %v7804_v23 = vsel %vm508_vm2, %v7799_v10, 0 }
 0x9fb   : > { %11795 = vmatmul.mubr.msk.bf16.vlgmr.msra.gmra.mrb[60].mxu1 %vm508_vm2, %v7947_v39  ;;  %11762 = vmatprep.subr.bf16.mxu0 %v15664_v45  ;;  %v8147_v52 = vpop.permute.xlu0 %8146 }
 0x9fc   : > { %11805 = vmatpush3.bf16.xpose.msra.mxu1 %v8054_v43  ;;  %11806 = vmatprep.mubr.msk.bf16.mxu1 %vm12571_vm0, %v15664_v45 }
 0x9fd   : > { %v7797_v40 = vpop.permute.xlu1 %7796  ;;  %11816 = vmatprep.subr.bf16.mxu1 %v15664_v45 }
 0x9ff   : > { %v8249_v62 = vpop.permute.xlu0 %8248 }
 0xa00   : > { %v8254_v35 = vsel %vm508_vm2, %v8249_v62, 0 }
 0xa01   : > { %11753 = vmatmul.mubr.msk.bf16.vlgmr.msra.gmra.mrb[4].mxu0 %vm508_vm2, %v7597_v8  ;;  %v7899_v56 = vpop.permute.xlu1 %7898 }
 0xa02   : > { %11763 = vmatpush3.bf16.xpose.msra.mxu0 %v7704_v24  ;;  %11764 = vmatprep.mubr.msk.bf16.mxu0 %vm12571_vm0, %v15664_v45  ;;  %v7904_v15 = vsel %vm508_vm2, %v7899_v56, 0 }
 0xa03   : > { %11807 = vmatmul.mubr.msk.bf16.vlgmr.msra.gmra.mrb[64].mxu1 %vm508_vm2, %v8047_v11  ;;  %11774 = vmatprep.subr.bf16.mxu0 %v15664_v45  ;;  %v8247_v19 = vpop.permute.xlu0 %8246 }
 0xa04   : > { %11817 = vmatpush3.bf16.xpose.msra.mxu1 %v8154_v0  ;;  %11818 = vmatprep.mubr.msk.bf16.mxu1 %vm12571_vm0, %v15664_v45 }
 0xa05   : > { %v7897_v54 = vpop.permute.xlu1 %7896  ;;  %11828 = vmatprep.subr.bf16.mxu1 %v15664_v45 }
 0xa07   : > { %v8349_v7 = vpop.permute.xlu0 %8348 }
 0xa08   : > { %v8354_v18 = vsel %vm508_vm2, %v8349_v7, 0 }
 0xa09   : > { %11765 = vmatmul.mubr.msk.bf16.vlgmr.msra.gmra.mrb[8].mxu0 %vm508_vm2, %v7697_v36  ;;  %v7999_v4 = vpop.permute.xlu1 %7998 }
 0xa0a   : > { %11775 = vmatpush3.bf16.xpose.msra.mxu0 %v7804_v23  ;;  %11776 = vmatprep.mubr.msk.bf16.mxu0 %vm12571_vm0, %v15664_v45  ;;  %v8004_v25 = vsel %vm508_vm2, %v7999_v4, 0 }
 0xa0b   : > { %11819 = vmatmul.mubr.msk.bf16.vlgmr.msra.gmra.mrb[68].mxu1 %vm508_vm2, %v8147_v52  ;;  %11786 = vmatprep.subr.bf16.mxu0 %v15664_v45  ;;  %v8347_v12 = vpop.permute.xlu0 %8346 }
 0xa0c   : > { %11829 = vmatpush3.bf16.xpose.msra.mxu1 %v8254_v35  ;;  %11830 = vmatprep.mubr.msk.bf16.mxu1 %vm12571_vm0, %v15664_v45 }
 0xa0d   : > { %v7997_v47 = vpop.permute.xlu1 %7996  ;;  %11840 = vmatprep.subr.bf16.mxu1 %v15664_v45 }
 0xa0f   : > { %v8397_v24 = vpop.permute.xlu0 %8396 }
 0xa11   : > { %11777 = vmatmul.mubr.msk.bf16.vlgmr.msra.gmra.mrb[12].mxu0 %vm508_vm2, %v7797_v40  ;;  %v8099_v41 = vpop.permute.xlu1 %8098 }
 0xa12   : > { %11787 = vmatpush3.bf16.xpose.msra.mxu0 %v7904_v15  ;;  %11788 = vmatprep.mubr.msk.bf16.mxu0 %vm12571_vm0, %v15664_v45  ;;  %v8104_v17 = vsel %vm508_vm2, %v8099_v41, 0 }
 0xa13   : > { %11831 = vmatmul.mubr.msk.bf16.vlgmr.msra.gmra.mrb[72].mxu1 %vm508_vm2, %v8247_v19  ;;  %11798 = vmatprep.subr.bf16.mxu0 %v15664_v45  ;;  %v8747_v35 = vpop.permute.xlu0 %8746 }
 0xa14   : > { %11841 = vmatpush3.bf16.xpose.msra.mxu1 %v8354_v18  ;;  %11842 = vmatprep.mubr.msk.bf16.mxu1 %vm12571_vm0, %v15664_v45  ;;  %v8752_v18 = vsel %vm1772_vm3, %v8747_v35, 0 }
 0xa15   : > { %v8097_v58 = vpop.permute.xlu1 %8096  ;;  %11852 = vmatprep.subr.bf16.mxu1 %v15664_v45 }
 0xa16   : > { %v14843_v37 = vpop.f32.mrb[212].mxu0 }
 0xa17   : > { %v11610_v59 = vpop.f32.mrb[213].mxu0  ;;  %v15024_v61 = vpop.permute.xlu0 %8842 }
 0xa18   : > { %v6481_v21 = vpop.f32.mrb[214].mxu0 }
 0xa19   : > { %11789 = vmatmul.mubr.msk.bf16.vlgmr.msra.gmra.mrb[16].mxu0 %vm508_vm2, %v7897_v54  ;;  %v8199_v63 = vpop.permute.xlu1 %8198  ;;  %v11611_v55 = vpop.f32.mrb[215].mxu0 }
 0xa1a   : > { %11799 = vmatpush3.bf16.xpose.msra.mxu0 %v8004_v25  ;;  %11800 = vmatprep.mubr.msk.bf16.mxu0 %vm12571_vm0, %v15664_v45  ;;  %v8204_v50 = vsel %vm508_vm2, %v8199_v63, 0 }
 0xa1b   : > { %11843 = vmatmul.mubr.msk.bf16.vlgmr.msra.gmra.mrb[76].mxu1 %vm508_vm2, %v8347_v12  ;;  %11810 = vmatprep.subr.bf16.mxu0 %v15664_v45 }
 0xa1c   : > { %11854 = vmatprep.mubr.msk.bf16.mxu1 %vm12571_vm0, %v15664_v45 }
 0xa1d   : > { %v8197_v26 = vpop.permute.xlu1 %8196 }
 0xa21   : > { %v14854_v13 = vpop.f32.mrb[252].mxu1  ;;  %11801 = vmatmul.mubr.msk.bf16.vlgmr.msra.gmra.mrb[20].mxu0 %vm508_vm2, %v7997_v47  ;;  %v8299_v57 = vpop.permute.xlu1 %8298 }
 0xa22   : > { %11811 = vmatpush3.bf16.xpose.msra.mxu0 %v8104_v17  ;;  %v11604_v49 = vpop.f32.mrb[253].mxu1  ;;  %11812 = vmatprep.mubr.msk.bf16.mxu0 %vm12571_vm0, %v15664_v45  ;;  %v8304_v11 = vsel %vm508_vm2, %v8299_v57, 0 }
 0xa23   : > { %v6433_v60 = vpop.f32.mrb[254].mxu1  ;;  %11822 = vmatprep.subr.bf16.mxu0 %v15664_v45 }
 0xa24   : > { %v11605_v46 = vpop.f32.mrb[255].mxu1 }
 0xa25   : > { %v8297_v29 = vpop.permute.xlu1 %8296 }
 0xa29   : > { %v14863_v32 = vpop.f32.mrb[0].mxu1  ;;  %11813 = vmatmul.mubr.msk.bf16.vlgmr.msra.gmra.mrb[24].mxu0 %vm508_vm2, %v8097_v58  ;;  %v8399_v3 = vpop.permute.xlu1 %8398 }
 0xa2a   : > { %11823 = vmatpush3.bf16.xpose.msra.mxu0 %v8204_v50  ;;  %v11616_v16 = vpop.f32.mrb[1].mxu1  ;;  %11824 = vmatprep.mubr.msk.bf16.mxu0 %vm12571_vm0, %v15664_v45  ;;  %v8404_v0 = vsel %vm508_vm2, %v8399_v3, 0 }
 0xa2b   : > { %v6529_v9 = vpop.f32.mrb[2].mxu1  ;;  %11834 = vmatprep.subr.bf16.mxu0 %v15664_v45 }
 0xa2c   : > { %v11617_v31 = vpop.f32.mrb[3].mxu1 }
 0xa2d   : > { %v8699_v6 = vpop.permute.xlu1 %8698  ;;  %v14869_v39 = vpop.f32.mrb[216].mxu0 }
 0xa2e   : > { %v8704_v8 = vsel %vm1772_vm3, %v8699_v6, 0  ;;  %v11622_v53 = vpop.f32.mrb[217].mxu0 }
 0xa2f   : > { %v6577_v51 = vpop.f32.mrb[218].mxu0  ;;  %11853 = vmatpush3.bf16.msra.mxu1 %v8704_v8 }
 0xa30   : > { %v11623_v33 = vpop.f32.mrb[219].mxu0  ;;  %11864 = vmatprep.subr.bf16.mxu1 %v15664_v45 }
 0xa31   : > { %11825 = vmatmul.mubr.msk.bf16.vlgmr.msra.gmra.mrb[28].mxu0 %vm508_vm2, %v8197_v26 }
 0xa32   : > { %v14877_v36 = vpop.f32.mrb[4].mxu1  ;;  %11835 = vmatpush3.bf16.xpose.msra.mxu0 %v8304_v11  ;;  %11836 = vmatprep.mubr.msk.bf16.mxu0 %vm12571_vm0, %v15664_v45 }
 0xa33   : > { %v11628_v27 = vpop.f32.mrb[5].mxu1  ;;  %11846 = vmatprep.subr.bf16.mxu0 %v15664_v45 }
 0xa34   : > { %v6625_v14 = vpop.f32.mrb[6].mxu1 }
 0xa35   : > { %v11629_v10 = vpop.f32.mrb[7].mxu1  ;;  %v14882_v43 = vpop.f32.mrb[220].mxu0 }
 0xa36   : > { %v11634_v52 = vpop.f32.mrb[221].mxu0 }
 0xa37   : > { %v6673_v56 = vpop.f32.mrb[222].mxu0 }
 0xa38   : > { %v11635_v62 = vpop.f32.mrb[223].mxu0 }
 0xa39   : > { %11837 = vmatmul.mubr.msk.bf16.vlgmr.msra.gmra.mrb[32].mxu0 %vm508_vm2, %v8297_v29 }
 0xa3a   : > { %v14888_v54 = vpop.f32.mrb[8].mxu1  ;;  %11847 = vmatpush3.bf16.xpose.msra.mxu0 %v8404_v0  ;;  %11848 = vmatprep.mubr.msk.bf16.mxu0 %vm12571_vm0, %v15664_v45 }
 0xa3b   : > { %v11640_v23 = vpop.f32.mrb[9].mxu1  ;;  %11858 = vmatprep.subr.bf16.mxu0 %v15664_v45 }
 0xa3c   : > { %v6721_v4 = vpop.f32.mrb[10].mxu1 }
 0xa3d   : > { %v11641_v19 = vpop.f32.mrb[11].mxu1  ;;  %v14893_v47 = vpop.f32.mrb[224].mxu0 }
 0xa3e   : > { %v11646_v15 = vpop.f32.mrb[225].mxu0 }
 0xa3f   : > { %v6769_v41 = vpop.f32.mrb[226].mxu0 }
 0xa40   : > { %v11647_v58 = vpop.f32.mrb[227].mxu0 }
 0xa41   : > { %11849 = vmatmul.mubr.msk.bf16.vlgmr.msra.gmra.mrb[36].mxu0 %vm508_vm2, %v8397_v24 }
 0xa42   : > { %v14899_v59 = vpop.f32.mrb[12].mxu1  ;;  %11859 = vmatpush3.bf16.msra.mxu0 %v8752_v18  ;;  %11860 = vmatprep.mubr.msk.bf16.mxu0 %vm12571_vm0, %v15664_v45 }
 0xa43   : > { %v11652_v21 = vpop.f32.mrb[13].mxu1  ;;  %11870 = vmatprep.subr.bf16.mxu0 %v15664_v45 }
 0xa44   : > { %v6817_v25 = vpop.f32.mrb[14].mxu1 }
 0xa45   : > { %v11653_v63 = vpop.f32.mrb[15].mxu1  ;;  %v14904_v55 = vpop.f32.mrb[228].mxu0 }
 0xa46   : > { %v11658_v26 = vpop.f32.mrb[229].mxu0 }
 0xa47   : > { %v6865_v17 = vpop.f32.mrb[230].mxu0 }
 0xa48   : > { %v11659_v57 = vpop.f32.mrb[231].mxu0 }
 0xa4a   : > { %v14908_v49 = vpop.f32.mrb[16].mxu1 }
 0xa4b   : > { %15721 = vst [vmem:[#allocation6_spill] sm:$0xff] %v14908_v49  ;;  %v11664_v60 = vpop.f32.mrb[17].mxu1 }
 0xa4c   : > { %v6913_v46 = vpop.f32.mrb[18].mxu1 }
 0xa4d   : > { %v11665_v29 = vpop.f32.mrb[19].mxu1  ;;  %v14910_v50 = vpop.f32.mrb[232].mxu0 }
 0xa4e   : > { %v11670_v16 = vpop.f32.mrb[233].mxu0 }
 0xa4f   : > { %v6961_v9 = vpop.f32.mrb[234].mxu0 }
 0xa50   : > { %v11671_v31 = vpop.f32.mrb[235].mxu0 }
 0xa52   : > { %v14914_v6 = vpop.f32.mrb[20].mxu1 }
 0xa53   : > { %15722 = vst [vmem:[#allocation10_spill] sm:$0xff] %v14914_v6  ;;  %v11676_v8 = vpop.f32.mrb[21].mxu1 }
 0xa54   : > { %v7009_v53 = vpop.f32.mrb[22].mxu1 }
 0xa55   : > { %v11677_v51 = vpop.f32.mrb[23].mxu1  ;;  %v14916_v33 = vpop.f32.mrb[236].mxu0 }
 0xa56   : > { %15723 = vst [vmem:[#allocation7_spill] sm:$0xff] %v14916_v33  ;;  %v11682_v27 = vpop.f32.mrb[237].mxu0 }
 0xa57   : > { %v7057_v14 = vpop.f32.mrb[238].mxu0 }
 0xa58   : > { %v11683_v10 = vpop.f32.mrb[239].mxu0 }
 0xa5a   : > { %v14920_v52 = vpop.f32.mrb[24].mxu1 }
 0xa5b   : > { %15724 = vst [vmem:[#allocation8_spill] sm:$0xff] %v14920_v52  ;;  %v11688_v24 = vpop.f32.mrb[25].mxu1 }
 0xa5c   : > { %v7105_v56 = vpop.f32.mrb[26].mxu1 }
 0xa5d   : > { %v11689_v0 = vpop.f32.mrb[27].mxu1 }
 0xa62   : > { %v14922_v62 = vpop.f32.mrb[28].mxu1 }
 0xa63   : > { %15725 = vst [vmem:[#allocation9_spill] sm:$0xff] %v14922_v62  ;;  %v11700_v23 = vpop.f32.mrb[29].mxu1 }
 0xa64   : > { %v7201_v4 = vpop.f32.mrb[30].mxu1 }
 0xa65   : > { %v11701_v19 = vpop.f32.mrb[31].mxu1 }
 0xa6a   : > { %v14924_v35 = vpop.f32.mrb[32].mxu1 }
 0xa6b   : > { %15726 = vst [vmem:[#allocation49_spill] sm:$0xff] %v14924_v35  ;;  %v11712_v15 = vpop.f32.mrb[33].mxu1 }
 0xa6c   : > { %v7297_v41 = vpop.f32.mrb[34].mxu1 }
 0xa6d   : > { %v11713_v18 = vpop.f32.mrb[35].mxu1 }
 0xa83   : > { %v14926_v58 = vpop.f32.mrb[240].mxu0 }
 0xa84   : > { %15727 = vst [vmem:[#allocation50_spill] sm:$0xff] %v14926_v58  ;;  %v11694_v25 = vpop.f32.mrb[241].mxu0 }
 0xa85   : > { %v7153_v63 = vpop.f32.mrb[242].mxu0 }
 0xa86   : > { %v11695_v26 = vpop.f32.mrb[243].mxu0 }
 0xa8b   : > { %v14930_v17 = vpop.f32.mrb[244].mxu0 }
 0xa8c   : > { %15728 = vst [vmem:[#allocation51_spill] sm:$0xff] %v14930_v17  ;;  %v11706_v60 = vpop.f32.mrb[245].mxu0 }
 0xa8d   : > { %v7249_v46 = vpop.f32.mrb[246].mxu0 }
 0xa8e   : > { %v11707_v29 = vpop.f32.mrb[247].mxu0 }
 0xa9e   : > { %v14934_v16 = vpop.f32.mrb[36].mxu1 }
 0xa9f   : > { %15729 = vst [vmem:[#allocation52_spill] sm:$0xff] %v14934_v16  ;;  %v11724_v9 = vpop.f32.mrb[37].mxu1 }
 0xaa0   : > { %v7393_v31 = vpop.f32.mrb[38].mxu1 }
 0xaa1   : > { %v11725_v8 = vpop.f32.mrb[39].mxu1 }
 0xaa6   : > { %v14936_v53 = vpop.f32.mrb[40].mxu1 }
 0xaa7   : > { %v11736_v51 = vpop.f32.mrb[41].mxu1  ;;  %v8449_v27 = vsel %vm508_vm2, %v14936_v53, -inf }
 0xaa8   : > { %8450 = vmax.xlane.f32.xlu0 %v8449_v27  ;;  %v7493_v14 = vpop.f32.mrb[42].mxu1 }
 0xaa9   : > { %v11737_v10 = vpop.f32.mrb[43].mxu1 }
 0xaae   : > { %v14940_v24 = vpop.f32.mrb[44].mxu1 }
 0xaaf   : > { %v11748_v56 = vpop.f32.mrb[45].mxu1 }
 0xab0   : > { %v7593_v0 = vpop.f32.mrb[46].mxu1 }
 0xab1   : > { %v11749_v23 = vpop.f32.mrb[47].mxu1 }
 0xab6   : > { %v14942_v4 = vpop.f32.mrb[48].mxu1 }
 0xab7   : > { %v11760_v19 = vpop.f32.mrb[49].mxu1 }
 0xab8   : > { %v7693_v15 = vpop.f32.mrb[50].mxu1 }
 0xab9   : > { %v11761_v41 = vpop.f32.mrb[51].mxu1  ;;  %v8455_v15 = vsel %vm508_vm2, %v14940_v24, -inf }
 0xabc   : > { %v14944_v18 = vpop.f32.mrb[248].mxu0 }
 0xabd   : > { %15730 = vst [vmem:[#allocation53_spill] sm:$0xff] %v14944_v18  ;;  %v11718_v63 = vpop.f32.mrb[249].mxu0 }
 0xabe   : > { %v7345_v26 = vpop.f32.mrb[250].mxu0  ;;  %v14948_v60 = vpop.f32.mrb[52].mxu1 }
 0xabf   : > { %v11719_v46 = vpop.f32.mrb[251].mxu0  ;;  %v11772_v29 = vpop.f32.mrb[53].mxu1  ;;  %v8461_v26 = vsel %vm508_vm2, %v14942_v4, -inf }
 0xac0   : > { %v7793_v9 = vpop.f32.mrb[54].mxu1 }
 0xac1   : > { %v11773_v31 = vpop.f32.mrb[55].mxu1 }
 0xac4   : > { %v14950_v8 = vpop.f32.mrb[252].mxu0 }
 0xac5   : > { %v11730_v51 = vpop.f32.mrb[253].mxu0  ;;  %v8446_v27 = vsel %vm508_vm2, %v14950_v8, -inf }
 0xac6   : > { %v14954_v14 = vpop.f32.mrb[56].mxu1  ;;  %8447 = vmax.xlane.f32.xlu1 %v8446_v27  ;;  %v7443_v10 = vpop.f32.mrb[254].mxu0 }
 0xac7   : > { %v11731_v56 = vpop.f32.mrb[255].mxu0  ;;  %v11784_v0 = vpop.f32.mrb[57].mxu1 }
 0xac8   : > { %v7893_v23 = vpop.f32.mrb[58].mxu1  ;;  %v8467_v56 = vsel %vm508_vm2, %v14948_v60, -inf }
 0xac9   : > { %v11785_v19 = vpop.f32.mrb[59].mxu1 }
 0xaca   : > { %8456 = vmax.xlane.f32.xlu1 %v8455_v15  ;;  %v8473_v19 = vsel %vm508_vm2, %v14954_v14, -inf }
 0xacc   : > { %v14958_v41 = vpop.f32.mrb[0].mxu0 }
 0xacd   : > { %v11742_v63 = vpop.f32.mrb[1].mxu0  ;;  %v8452_v46 = vsel %vm508_vm2, %v14958_v41, -inf }
 0xace   : > { %v14964_v29 = vpop.f32.mrb[60].mxu1  ;;  %8462 = vmax.xlane.f32.xlu1 %v8461_v26  ;;  %8453 = vmax.xlane.f32.xlu0 %v8452_v46  ;;  %v7543_v9 = vpop.f32.mrb[2].mxu0 }
 0xacf   : > { %v11743_v31 = vpop.f32.mrb[3].mxu0  ;;  %v11796_v51 = vpop.f32.mrb[61].mxu1 }
 0xad0   : > { %v7993_v27 = vpop.f32.mrb[62].mxu1 }
 0xad1   : > { %v11797_v10 = vpop.f32.mrb[63].mxu1  ;;  %v8479_v27 = vsel %vm508_vm2, %v14964_v29, -inf }
 0xad2   : > { %8468 = vmax.xlane.f32.xlu1 %v8467_v56 }
 0xad4   : > { %v14968_v0 = vpop.f32.mrb[4].mxu0 }
 0xad5   : > { %v11754_v23 = vpop.f32.mrb[5].mxu0  ;;  %v8458_v15 = vsel %vm508_vm2, %v14968_v0, -inf }
 0xad6   : > { %v14974_v63 = vpop.f32.mrb[64].mxu1  ;;  %8474 = vmax.xlane.f32.xlu1 %v8473_v19  ;;  %8459 = vmax.xlane.f32.xlu0 %v8458_v15  ;;  %v7643_v26 = vpop.f32.mrb[6].mxu0 }
 0xad7   : > { %v11755_v46 = vpop.f32.mrb[7].mxu0  ;;  %v11808_v9 = vpop.f32.mrb[65].mxu1  ;;  %v8485_v23 = vsel %vm508_vm2, %v14974_v63, -inf }
 0xad8   : > { %v8093_v31 = vpop.f32.mrb[66].mxu1 }
 0xad9   : > { %v11809_v51 = vpop.f32.mrb[67].mxu1 }
 0xada   : > { %8480 = vmax.xlane.f32.xlu1 %v8479_v27 }
 0xadc   : > { %v14978_v10 = vpop.f32.mrb[8].mxu0 }
 0xadd   : > { %v11766_v56 = vpop.f32.mrb[9].mxu0  ;;  %v8464_v25 = vsel %vm508_vm2, %v14978_v10, -inf }
 0xade   : > { %v14984_v19 = vpop.f32.mrb[68].mxu1  ;;  %8486 = vmax.xlane.f32.xlu1 %v8485_v23  ;;  %8465 = vmax.xlane.f32.xlu0 %v8464_v25  ;;  %v7743_v15 = vpop.f32.mrb[10].mxu0 }
 0xadf   : > { %v11767_v26 = vpop.f32.mrb[11].mxu0  ;;  %v11820_v46 = vpop.f32.mrb[69].mxu1  ;;  %v8491_v51 = vsel %vm508_vm2, %v14984_v19, -inf }
 0xae0   : > { %v8193_v9 = vpop.f32.mrb[70].mxu1 }
 0xae1   : > { %v11821_v31 = vpop.f32.mrb[71].mxu1 }
 0xae2   : > { %8492 = vmax.xlane.f32.xlu1 %v8491_v51 }
 0xae4   : > { %v14988_v27 = vpop.f32.mrb[12].mxu0 }
 0xae5   : > { %v11778_v56 = vpop.f32.mrb[13].mxu0  ;;  %v8470_v57 = vsel %vm508_vm2, %v14988_v27, -inf }
 0xae6   : > { %v14992_v21 = vpop.f32.mrb[72].mxu1  ;;  %8471 = vmax.xlane.f32.xlu0 %v8470_v57  ;;  %v7843_v23 = vpop.f32.mrb[14].mxu0 }
 0xae7   : > { %v11779_v25 = vpop.f32.mrb[15].mxu0  ;;  %v11832_v15 = vpop.f32.mrb[73].mxu1  ;;  %v8497_v26 = vsel %vm508_vm2, %v14992_v21, -inf }
 0xae8   : > { %v8293_v46 = vpop.f32.mrb[74].mxu1  ;;  %8498 = vmax.xlane.f32.xlu1 %v8497_v26 }
 0xae9   : > { %v11833_v9 = vpop.f32.mrb[75].mxu1 }
 0xaec   : > { %v14996_v31 = vpop.f32.mrb[16].mxu0 }
 0xaed   : > { %v11790_v51 = vpop.f32.mrb[17].mxu0  ;;  %v8476_v56 = vsel %vm508_vm2, %v14996_v31, -inf }
 0xaee   : > { %v15000_v11 = vpop.f32.mrb[76].mxu1  ;;  %8477 = vmax.xlane.f32.xlu0 %v8476_v56  ;;  %v7943_v3 = vpop.f32.mrb[18].mxu0 }
 0xaef   : > { %v11791_v57 = vpop.f32.mrb[19].mxu0  ;;  %v11844_v23 = vpop.f32.mrb[77].mxu1  ;;  %v8503_v25 = vsel %vm508_vm2, %v15000_v11, -inf }
 0xaf0   : > { %v8393_v15 = vpop.f32.mrb[78].mxu1  ;;  %8504 = vmax.xlane.f32.xlu1 %v8503_v25 }
 0xaf1   : > { %v11845_v46 = vpop.f32.mrb[79].mxu1 }
 0xaf4   : > { %v15004_v26 = vpop.f32.mrb[20].mxu0 }
 0xaf5   : > { %v11802_v9 = vpop.f32.mrb[21].mxu0  ;;  %v8482_v51 = vsel %vm508_vm2, %v15004_v26, -inf }
 0xaf6   : > { %8483 = vmax.xlane.f32.xlu0 %v8482_v51  ;;  %v8043_v12 = vpop.f32.mrb[22].mxu0 }
 0xaf7   : > { %v11803_v7 = vpop.f32.mrb[23].mxu0 }
 0xafc   : > { %v15008_v40 = vpop.f32.mrb[24].mxu0 }
 0xafd   : > { %v11814_v3 = vpop.f32.mrb[25].mxu0  ;;  %v8488_v56 = vsel %vm508_vm2, %v15008_v40, -inf }
 0xafe   : > { %8489 = vmax.xlane.f32.xlu0 %v8488_v56  ;;  %v8143_v57 = vpop.f32.mrb[26].mxu0 }
 0xaff   : > { %v11815_v23 = vpop.f32.mrb[27].mxu0 }
 0xb01   : > { %9178 = vrot.lane.b32.xlu1 %v15667_v30, %s12582_s13 }
 0xb04   : > { %v15014_v25 = vpop.f32.mrb[28].mxu0 }
 0xb05   : > { %v11826_v15 = vpop.f32.mrb[29].mxu0  ;;  %v8494_v46 = vsel %vm508_vm2, %v15014_v25, -inf }
 0xb06   : > { %8495 = vmax.xlane.f32.xlu0 %v8494_v46  ;;  %v8243_v7 = vpop.f32.mrb[30].mxu0  ;;  %v15028_v46 = vpop.permute.xlu0 %8938 }
 0xb07   : > { %v11827_v12 = vpop.f32.mrb[31].mxu0 }
 0xb0a   : > { %v15030_v7 = vpop.permute.xlu0 %9034 }
 0xb0c   : > { %v15018_v9 = vpop.f32.mrb[32].mxu0 }
 0xb0d   : > { %v11838_v51 = vpop.f32.mrb[33].mxu0  ;;  %v8500_v3 = vsel %vm508_vm2, %v15018_v9, -inf }
 0xb0e   : > { %8501 = vmax.xlane.f32.xlu0 %v8500_v3  ;;  %v8343_v56 = vpop.f32.mrb[34].mxu0  ;;  %v15032_v12 = vpop.permute.xlu0 %9130 }
 0xb0f   : > { %v11839_v57 = vpop.f32.mrb[35].mxu0 }
 0xb10   : > { %v15035_v57 = vpop.permute.xlu1 %8794 }
 0xb14   : > { %v15022_v23 = vpop.f32.mrb[36].mxu0 }
 0xb15   : > { %v11850_v30 = vpop.f32.mrb[37].mxu0 }
 0xb16   : > { %v8443_v5 = vpop.f32.mrb[38].mxu0  ;;  %v15039_v30 = vpop.permute.xlu1 %8890 }
 0xb17   : > { %v11851_v15 = vpop.f32.mrb[39].mxu0  ;;  %v8506_v5 = vsel %vm508_vm2, %v15022_v23, -inf }
 0xb1a   : > { %v15045_v16 = vpop.permute.xlu1 %8986 }
 0xb1e   : > { %v15047_v35 = vpop.permute.xlu1 %9082 }
 0xb24   : > { %9226 = vrot.lane.b32.xlu0 %v15690_v2, %s12582_s13 }
 0xb35   : > { %v8451_v51 = vpop.xlane.xlu0 %8450 }
 0xb36   : > { %v8510_v3 = vsub.f32 %v14936_v53, %v8451_v51 }
 0xb38   : > { %v8532_v56 = vmul.f32 1.442695, %v8510_v3 }
 0xb3a   : > { %12478 = vpow2.f32 %v8532_v56 }
 0xb43   : > { %8507 = vmax.xlane.f32.xlu0 %v8506_v5 }
 0xb44   : > { %v15041_v2 = vpop.eup %12478 }
 0xb45   : > { %v8575_v15 = vsel %vm508_vm2, %v15041_v2, 0.0 }
 0xb47   : > { %8576 = vadd.xlane.f32.xlu0 %v8575_v15 }
 0xb53   : > { %v8448_v53 = vpop.xlane.xlu1 %8447 }
 0xb54   : > { %v8509_v51 = vsub.f32 %v14950_v8, %v8448_v53 }
 0xb56   : > { %v8530_v3 = vmul.f32 1.442695, %v8509_v51 }
 0xb57   : > { %v8457_v56 = vpop.xlane.xlu1 %8456 }
 0xb58   : > { %12480 = vpow2.f32 %v8530_v3  ;;  %v8512_v18 = vsub.f32 %v14940_v24, %v8457_v56 }
 0xb5a   : > { %v8536_v62 = vmul.f32 1.442695, %v8512_v18 }
 0xb5b   : > { %v8463_v5 = vpop.xlane.xlu1 %8462  ;;  %v8454_v17 = vpop.xlane.xlu0 %8453 }
 0xb5c   : > { %12482 = vpow2.f32 %v8536_v62  ;;  %v8514_v52 = vsub.f32 %v14942_v4, %v8463_v5  ;;  %v8511_v15 = vsub.f32 %v14958_v41, %v8454_v17 }
 0xb5e   : > { %v8540_v58 = vmul.f32 1.442695, %v8514_v52  ;;  %v8534_v6 = vmul.f32 1.442695, %v8511_v15 }
 0xb5f   : > { %v8469_v33 = vpop.xlane.xlu1 %8468 }
 0xb60   : > { %12484 = vpow2.f32 %v8540_v58  ;;  %v8516_v49 = vsub.f32 %v14948_v60, %v8469_v33 }
 0xb61   : > { %12486 = vpow2.f32 %v8534_v6 }
 0xb62   : > { %v15054_v8 = vpop.eup %12480  ;;  %v8544_v53 = vmul.f32 1.442695, %v8516_v49 }
 0xb63   : > { %v8475_v51 = vpop.xlane.xlu1 %8474  ;;  %v8460_v24 = vpop.xlane.xlu0 %8459  ;;  %v8572_v18 = vsel %vm508_vm2, %v15054_v8, 0.0 }
 0xb64   : > { %12488 = vpow2.f32 %v8544_v53  ;;  %v8518_v62 = vsub.f32 %v14954_v14, %v8475_v51  ;;  %v8513_v17 = vsub.f32 %v14968_v0, %v8460_v24  ;;  %8573 = vadd.xlane.f32.xlu1 %v8572_v18 }
 0xb66   : > { %v15060_v52 = vpop.eup %12482  ;;  %v8548_v58 = vmul.f32 1.442695, %v8518_v62  ;;  %v8538_v4 = vmul.f32 1.442695, %v8513_v17 }
 0xb67   : > { %v8481_v33 = vpop.xlane.xlu1 %8480  ;;  %v8581_v6 = vsel %vm508_vm2, %v15060_v52, 0.0 }
 0xb68   : > { %12490 = vpow2.f32 %v8548_v58  ;;  %v8520_v49 = vsub.f32 %v14964_v29, %v8481_v33  ;;  %8582 = vadd.xlane.f32.xlu0 %v8581_v6 }
 0xb69   : > { %12492 = vpow2.f32 %v8538_v4 }
 0xb6a   : > { %v15065_v60 = vpop.eup %12484  ;;  %v8552_v41 = vmul.f32 1.442695, %v8520_v49 }
 0xb6b   : > { %v15067_v14 = vpop.eup %12486  ;;  %v8487_v0 = vpop.xlane.xlu1 %8486  ;;  %v8587_v56 = vsel %vm508_vm2, %v15065_v60, 0.0 }
 0xb6c   : > { %v8466_v3 = vpop.xlane.xlu0 %8465  ;;  %12494 = vpow2.f32 %v8552_v41  ;;  %v8522_v5 = vsub.f32 %v14974_v63, %v8487_v0  ;;  %v8578_v29 = vsel %vm508_vm2, %v15067_v14, 0.0  ;;  %8588 = vadd.xlane.f32.xlu0 %v8587_v56 }
 0xb6d   : > { %v8515_v15 = vsub.f32 %v14978_v10, %v8466_v3  ;;  %8579 = vadd.xlane.f32.xlu1 %v8578_v29 }
 0xb6e   : > { %v15075_v53 = vpop.eup %12488  ;;  %v8556_v51 = vmul.f32 1.442695, %v8522_v5 }
 0xb6f   : > { %v8542_v24 = vmul.f32 1.442695, %v8515_v15  ;;  %v8493_v18 = vpop.xlane.xlu1 %8492  ;;  %v8593_v62 = vsel %vm508_vm2, %v15075_v53, 0.0 }
 0xb70   : > { %12496 = vpow2.f32 %v8556_v51  ;;  %v8524_v17 = vsub.f32 %v14984_v19, %v8493_v18  ;;  %8594 = vadd.xlane.f32.xlu0 %v8593_v62 }
 0xb71   : > { %12498 = vpow2.f32 %v8542_v24 }
 0xb72   : > { %v15080_v63 = vpop.eup %12490  ;;  %v8560_v10 = vmul.f32 1.442695, %v8524_v17 }
 0xb73   : > { %v15082_v58 = vpop.eup %12492  ;;  %v8472_v4 = vpop.xlane.xlu0 %8471  ;;  %v8599_v33 = vsel %vm508_vm2, %v15080_v63, 0.0 }
 0xb74   : > { %12500 = vpow2.f32 %v8560_v10  ;;  %v8517_v6 = vsub.f32 %v14988_v27, %v8472_v4  ;;  %v8584_v49 = vsel %vm508_vm2, %v15082_v58, 0.0  ;;  %8600 = vadd.xlane.f32.xlu0 %v8599_v33 }
 0xb75   : > { %8585 = vadd.xlane.f32.xlu1 %v8584_v49  ;;  %v8499_v19 = vpop.xlane.xlu1 %8498 }
 0xb76   : > { %v15089_v41 = vpop.eup %12494  ;;  %v8546_v0 = vmul.f32 1.442695, %v8517_v6  ;;  %v8526_v3 = vsub.f32 %v14992_v21, %v8499_v19 }
 0xb77   : > { %v8605_v56 = vsel %vm508_vm2, %v15089_v41, 0.0 }
 0xb78   : > { %12502 = vpow2.f32 %v8546_v0  ;;  %v8564_v5 = vmul.f32 1.442695, %v8526_v3  ;;  %8606 = vadd.xlane.f32.xlu0 %v8605_v56 }
 0xb7a   : > { %v15094_v15 = vpop.eup %12496  ;;  %12504 = vpow2.f32 %v8564_v5 }
 0xb7b   : > { %v15096_v27 = vpop.eup %12498  ;;  %v8478_v29 = vpop.xlane.xlu0 %8477  ;;  %v8611_v51 = vsel %vm508_vm2, %v15094_v15, 0.0 }
 0xb7c   : > { %v8519_v24 = vsub.f32 %v14996_v31, %v8478_v29  ;;  %v8590_v21 = vsel %vm508_vm2, %v15096_v27, 0.0  ;;  %8612 = vadd.xlane.f32.xlu0 %v8611_v51 }
 0xb7d   : > { %8591 = vadd.xlane.f32.xlu1 %v8590_v21 }
 0xb7e   : > { %v15103_v18 = vpop.eup %12500  ;;  %v8550_v62 = vmul.f32 1.442695, %v8519_v24 }
 0xb7f   : > { %v8617_v17 = vsel %vm508_vm2, %v15103_v18, 0.0 }
 0xb80   : > { %12506 = vpow2.f32 %v8550_v62  ;;  %8618 = vadd.xlane.f32.xlu0 %v8617_v17 }
 0xb82   : > { %v15107_v10 = vpop.eup %12502 }
 0xb83   : > { %v8484_v4 = vpop.xlane.xlu0 %8483  ;;  %v8596_v33 = vsel %vm508_vm2, %v15107_v10, 0.0 }
 0xb84   : > { %v15111_v31 = vpop.eup %12504  ;;  %v8521_v6 = vsub.f32 %v15004_v26, %v8484_v4  ;;  %8597 = vadd.xlane.f32.xlu1 %v8596_v33 }
 0xb85   : > { %v8623_v49 = vsel %vm508_vm2, %v15111_v31, 0.0 }
 0xb86   : > { %v8554_v19 = vmul.f32 1.442695, %v8521_v6  ;;  %8624 = vadd.xlane.f32.xlu0 %v8623_v49 }
 0xb88   : > { %12508 = vpow2.f32 %v8554_v19 }
 0xb8a   : > { %v15116_v0 = vpop.eup %12506 }
 0xb8b   : > { %v8490_v3 = vpop.xlane.xlu0 %8489  ;;  %v8602_v56 = vsel %vm508_vm2, %v15116_v0, 0.0 }
 0xb8c   : > { %v8523_v5 = vsub.f32 %v15008_v40, %v8490_v3  ;;  %8603 = vadd.xlane.f32.xlu1 %v8602_v56 }
 0xb8e   : > { %v8558_v29 = vmul.f32 1.442695, %v8523_v5 }
 0xb90   : > { %12510 = vpow2.f32 %v8558_v29 }
 0xb92   : > { %v15121_v51 = vpop.eup %12508 }
 0xb93   : > { %v8496_v26 = vpop.xlane.xlu0 %8495  ;;  %v8608_v24 = vsel %vm508_vm2, %v15121_v51, 0.0 }
 0xb94   : > { %v8525_v21 = vsub.f32 %v15014_v25, %v8496_v26  ;;  %8609 = vadd.xlane.f32.xlu1 %v8608_v24  ;;  %v8505_v25 = vpop.xlane.xlu1 %8504 }
 0xb95   : > { %v8528_v3 = vsub.f32 %v15000_v11, %v8505_v25 }
 0xb96   : > { %v8562_v62 = vmul.f32 1.442695, %v8525_v21 }
 0xb97   : > { %v8568_v56 = vmul.f32 1.442695, %v8528_v3 }
 0xb98   : > { %12512 = vpow2.f32 %v8562_v62 }
 0xb9a   : > { %v15126_v17 = vpop.eup %12510 }
 0xb9b   : > { %v8502_v4 = vpop.xlane.xlu0 %8501  ;;  %v8614_v40 = vsel %vm508_vm2, %v15126_v17, 0.0 }
 0xb9c   : > { %v8527_v33 = vsub.f32 %v15018_v9, %v8502_v4  ;;  %8615 = vadd.xlane.f32.xlu1 %v8614_v40  ;;  %9322 = vrot.lane.b32.xlu0 %v12770_v20, %s12582_s13  ;;  %v8848_v40 = vsel %vm1772_vm3, %v15024_v61, 0  ;;  %v15733_v61 = vld [vmem:[#allocation5_spill] sm:$0xff] }
 0xb9e   : > { %v8566_v6 = vmul.f32 1.442695, %v8527_v33 }
 0xb9f   : > { %v15148_v26 = vpop.permute.xlu0 %9226 }
 0xba0   : > { %12514 = vpow2.f32 %v8566_v6  ;;  %v15735_v6 = vpack.i.bf16 %v14869_v39, %v14863_v32 }
 0xba1   : > { %12516 = vpow2.f32 %v8568_v56 }
 0xba2   : > { %v15133_v49 = vpop.eup %12512 }
 0xba3   : > { %v8620_v19 = vsel %vm508_vm2, %v15133_v49, 0.0 }
 0xba4   : > { %8621 = vadd.xlane.f32.xlu1 %v8620_v19 }
 0xbaa   : > { %v15138_v5 = vpop.eup %12514 }
 0xbab   : > { %v8626_v9 = vsel %vm508_vm2, %v15138_v5, 0.0  ;;  %v15142_v20 = vpop.eup %12516 }
 0xbac   : > { %8627 = vadd.xlane.f32.xlu1 %v8626_v9  ;;  %v8629_v29 = vsel %vm508_vm2, %v15142_v20, 0.0 }
 0xbbb   : > { %8630 = vadd.xlane.f32.xlu0 %v8629_v29 }
 0xbbd   : > { %9274 = vrot.lane.b32.xlu1 %v15714_v22, %s12582_s13 }
 0xbd0   : > { %v8508_v11 = vpop.xlane.xlu0 %8507 }
 0xbd1   : > { %v8529_v24 = vsub.f32 %v15022_v23, %v8508_v11  ;;  %9370 = vrot.lane.b32.xlu0 %v15716_v1, %s12582_s13 }
 0xbd3   : > { %v8570_v21 = vmul.f32 1.442695, %v8529_v24 }
 0xbd4   : > { %v8577_v62 = vpop.xlane.xlu0 %8576 }
 0xbd5   : > { %12518 = vpow2.f32 %v8570_v21  ;;  %9418 = vrot.lane.b32.xlu0 %v12780_v34, %s12582_s13  ;;  %v8800_v21 = vsel %vm1772_vm3, %v15035_v57, 0 }
 0xbd6   : > { %12520 = vrcp.f32 %v8577_v62 }
 0xbd9   : > { %9466 = vrot.lane.b32.xlu0 %v15717_v42, %s12582_s13  ;;  %v15179_v42 = vpop.permute.xlu1 %9178 }
 0xbdd   : > { %9514 = vrot.lane.b32.xlu0 %v12790_v38, %s12582_s13  ;;  %v12224_v38 = vld [vmem:[%s15602_s1] sm:$0xff]  }
 0xbdf   : > { %v15159_v22 = vpop.eup %12518 }
 0xbe0   : > { %v12521_v4 = vpop.eup %12520  ;;  %v8632_v23 = vsel %vm508_vm2, %v15159_v22, 0.0 }
 0xbe1   : > { %v8657_v1 = vmul.f32 %v12521_v4, %v15041_v2  ;;  %9562 = vrot.lane.b32.xlu0 %v15718_v28, %s12582_s13  ;;  %8633 = vadd.xlane.f32.xlu1 %v8632_v23  ;;  %v8944_v23 = vsel %vm1772_vm3, %v15028_v46, 0 }
 0xbe3   : > { %v8678_v34 = vpack.c.bf16 %v8657_v1, %v8657_v1 }
 0xbe5   : > { %11861 = vmatmul.mubr.msk.bf16.vlgmr.msra.gmra.mrb[40].mxu0 %vm508_vm2, %v8678_v34  ;;  %9610 = vrot.lane.b32.xlu0 %v15715_v48, %s12582_s13  ;;  %v15731_v48 = vpack.i.bf16 %v14843_v37, %v14854_v13  ;;  %v15736_v37 = vld [vmem:[#allocation33_spill] sm:$0xff]  ;;  %v15737_v13 = vld [vmem:[#allocation32_spill] sm:$0xff] }
 0xbe6   : > { %11871 = vmatpush3.bf16.msra.mxu0 %v8848_v40  ;;  %11872 = vmatprep.mubr.msk.bf16.mxu0 %vm12571_vm0, %v15664_v45  ;;  %v15738_v3 = vpack.i.bf16 %v15736_v37, %v15737_v13  ;;  %v8896_v40 = vsel %vm1772_vm3, %v15039_v30, 0 }
 0xbe7   : > { %11882 = vmatprep.subr.bf16.mxu0 %v15664_v45 }
 0xbe9   : > { %9658 = vrot.lane.b32.xlu0 %v12804_v44, %s12582_s13  ;;  %v15732_v44 = vld [vmem:[#allocation3_spill] sm:$0xff] }
 0xbea   : > { %v15734_v2 = vpack.i.bf16 %v15732_v44, %v15733_v61 }
 0xbed   : > { %10054 = vrot.lane.b32.xlu0 %v12224_v38, %s12583_s16 }
 0xbf1   : > { %v8574_v28 = vpop.xlane.xlu1 %8573  ;;  %12065 = vrot.lane.b32.xlu0 %v15731_v48, %s12584_s17  ;;  %v9040_v48 = vsel %vm1772_vm3, %v15030_v7, 0 }
 0xbf2   : > { %12522 = vrcp.f32 %v8574_v28  ;;  %12060 = vrot.lane.b32.xlu1 %v15734_v2, %s12585_s19 }
 0xbf5   : > { %v8583_v33 = vpop.xlane.xlu0 %8582 }
 0xbf6   : > { %12524 = vrcp.f32 %v8583_v33  ;;  %12080 = vrot.lane.b32.xlu1 %v15735_v6, %s12584_s17  ;;  %v8992_v33 = vsel %vm1772_vm3, %v15045_v16, 0 }
 0xbf9   : > { %v8589_v25 = vpop.xlane.xlu0 %8588 }
 0xbfa   : > { %v8580_v19 = vpop.xlane.xlu1 %8579  ;;  %12526 = vrcp.f32 %v8589_v25  ;;  %12090 = vrot.lane.b32.xlu1 %v15738_v3, %s12585_s19  ;;  %v9136_v25 = vsel %vm1772_vm3, %v15032_v12, 0 }
 0xbfb   : > { %12528 = vrcp.f32 %v8580_v19 }
 0xbfc   : > { %v12523_v56 = vpop.eup %12522 }
 0xbfd   : > { %v8656_v9 = vmul.f32 %v12523_v56, %v15054_v8  ;;  %v8595_v11 = vpop.xlane.xlu0 %8594  ;;  %v9088_v56 = vsel %vm1772_vm3, %v15047_v35, 0 }
 0xbfe   : > { %12530 = vrcp.f32 %v8595_v11 }
 0xbff   : > { %v8677_v29 = vpack.c.bf16 %v8656_v9, %v8656_v9 }
 0xc00   : > { %v12525_v24 = vpop.eup %12524 }
 0xc01   : > { %v8659_v32 = vmul.f32 %v12525_v24, %v15060_v52  ;;  %11855 = vmatmul.mubr.msk.bf16.vlgmr.msra.gmra.mrb[80].mxu1 %vm508_vm2, %v8677_v29  ;;  %v8601_v52 = vpop.xlane.xlu0 %8600  ;;  %v9232_v29 = vsel %vm1772_vm3, %v15148_v26, 0 }
 0xc02   : > { %11865 = vmatpush3.bf16.msra.mxu1 %v8800_v21  ;;  %v8586_v39 = vpop.xlane.xlu1 %8585  ;;  %11866 = vmatprep.mubr.msk.bf16.mxu1 %vm12571_vm0, %v15664_v45  ;;  %v9184_v21 = vsel %vm1772_vm3, %v15179_v42, 0 }
 0xc03   : > { %v8680_v62 = vpack.c.bf16 %v8659_v32, %v8659_v32  ;;  %12532 = vrcp.f32 %v8586_v39  ;;  %11876 = vmatprep.subr.bf16.mxu1 %v15664_v45 }
 0xc04   : > { %v12527_v8 = vpop.eup %12526  ;;  %12534 = vrcp.f32 %v8601_v52 }
 0xc05   : > { %v12529_v4 = vpop.eup %12528  ;;  %11873 = vmatmul.mubr.msk.bf16.vlgmr.msra.gmra.mrb[44].mxu0 %vm508_vm2, %v8680_v62  ;;  %v8661_v1 = vmul.f32 %v12527_v8, %v15065_v60  ;;  %v8607_v28 = vpop.xlane.xlu0 %8606 }
 0xc06   : > { %v8658_v57 = vmul.f32 %v12529_v4, %v15067_v14  ;;  %11883 = vmatpush3.bf16.msra.mxu0 %v8944_v23  ;;  %11884 = vmatprep.mubr.msk.bf16.mxu0 %vm12571_vm0, %v15664_v45 }
 0xc07   : > { %11894 = vmatprep.subr.bf16.mxu0 %v15664_v45  ;;  %v8682_v38 = vpack.c.bf16 %v8661_v1, %v8661_v1  ;;  %v12225_v1 = vld [vmem:[%s15602_s1 + $0x8] sm:$0xff]  }
 0xc08   : > { %v8679_v34 = vpack.c.bf16 %v8658_v57, %v8658_v57  ;;  %v12531_v14 = vpop.eup %12530  ;;  %10056 = vrot.lane.b32.xlu0 %v12225_v1, %s12583_s16 }
 0xc09   : > { %v8663_v44 = vmul.f32 %v12531_v14, %v15075_v53  ;;  %v8613_v6 = vpop.xlane.xlu0 %8612 }
 0xc0a   : > { %11867 = vmatmul.mubr.msk.bf16.vlgmr.msra.gmra.mrb[84].mxu1 %vm508_vm2, %v8679_v34  ;;  %v8592_v46 = vpop.xlane.xlu1 %8591 }
 0xc0b   : > { %11877 = vmatpush3.bf16.msra.mxu1 %v8896_v40  ;;  %12536 = vrcp.f32 %v8592_v46  ;;  %11878 = vmatprep.mubr.msk.bf16.mxu1 %vm12571_vm0, %v15664_v45  ;;  %v8684_v7 = vpack.c.bf16 %v8663_v44, %v8663_v44 }
 0xc0c   : > { %11888 = vmatprep.subr.bf16.mxu1 %v15664_v45  ;;  %12538 = vrcp.f32 %v8607_v28 }
 0xc0d   : > { %v12533_v60 = vpop.eup %12532  ;;  %11885 = vmatmul.mubr.msk.bf16.vlgmr.msra.gmra.mrb[48].mxu0 %vm508_vm2, %v8682_v38  ;;  %v8619_v13 = vpop.xlane.xlu0 %8618 }
 0xc0e   : > { %v8660_v30 = vmul.f32 %v12533_v60, %v15082_v58  ;;  %11895 = vmatpush3.bf16.msra.mxu0 %v9040_v48  ;;  %11896 = vmatprep.mubr.msk.bf16.mxu0 %vm12571_vm0, %v15664_v45  ;;  %v12535_v58 = vpop.eup %12534 }
 0xc0f   : > { %11906 = vmatprep.subr.bf16.mxu0 %v15664_v45  ;;  %v8665_v19 = vmul.f32 %v12535_v58, %v15080_v63 }
 0xc10   : > { %v8681_v61 = vpack.c.bf16 %v8660_v30, %v8660_v30 }
 0xc11   : > { %v8598_v2 = vpop.xlane.xlu1 %8597 }
 0xc12   : > { %11879 = vmatmul.mubr.msk.bf16.vlgmr.msra.gmra.mrb[88].mxu1 %vm508_vm2, %v8681_v61  ;;  %12540 = vrcp.f32 %v8598_v2 }
 0xc13   : > { %11889 = vmatpush3.bf16.msra.mxu1 %v8992_v33  ;;  %11890 = vmatprep.mubr.msk.bf16.mxu1 %vm12571_vm0, %v15664_v45  ;;  %12542 = vrcp.f32 %v8613_v6  ;;  %v8625_v63 = vpop.xlane.xlu0 %8624 }
 0xc14   : > { %11900 = vmatprep.subr.bf16.mxu1 %v15664_v45 }
 0xc15   : > { %v12537_v53 = vpop.eup %12536  ;;  %11897 = vmatmul.mubr.msk.bf16.vlgmr.msra.gmra.mrb[52].mxu0 %vm508_vm2, %v8684_v7 }
 0xc16   : > { %v8662_v16 = vmul.f32 %v12537_v53, %v15096_v27  ;;  %11907 = vmatpush3.bf16.msra.mxu0 %v9136_v25  ;;  %11908 = vmatprep.mubr.msk.bf16.mxu0 %vm12571_vm0, %v15664_v45  ;;  %v12539_v12 = vpop.eup %12538  ;;  %v8686_v27 = vpack.c.bf16 %v8665_v19, %v8665_v19 }
 0xc17   : > { %11918 = vmatprep.subr.bf16.mxu0 %v15664_v45  ;;  %v8667_v35 = vmul.f32 %v12539_v12, %v15089_v41  ;;  %v9323_v32 = vpop.permute.xlu0 %9322 }
 0xc18   : > { %v8683_v37 = vpack.c.bf16 %v8662_v16, %v8662_v16  ;;  %v9328_v41 = vsel %vm1772_vm3, %v9323_v32, 0 }
 0xc19   : > { %v8604_v3 = vpop.xlane.xlu1 %8603  ;;  %v8688_v39 = vpack.c.bf16 %v8667_v35, %v8667_v35 }
 0xc1a   : > { %11891 = vmatmul.mubr.msk.bf16.vlgmr.msra.gmra.mrb[92].mxu1 %vm508_vm2, %v8683_v37  ;;  %12544 = vrcp.f32 %v8604_v3 }
 0xc1b   : > { %11901 = vmatpush3.bf16.msra.mxu1 %v9088_v56  ;;  %11902 = vmatprep.mubr.msk.bf16.mxu1 %vm12571_vm0, %v15664_v45 }
 0xc1c   : > { %v12541_v9 = vpop.eup %12540  ;;  %11912 = vmatprep.subr.bf16.mxu1 %v15664_v45 }
 0xc1d   : > { %v8664_v11 = vmul.f32 %v12541_v9, %v15107_v10  ;;  %11909 = vmatmul.mubr.msk.bf16.vlgmr.msra.gmra.mrb[56].mxu0 %vm508_vm2, %v8686_v27  ;;  %v12543_v26 = vpop.eup %12542 }
 0xc1e   : > { %11919 = vmatpush3.bf16.msra.mxu0 %v9232_v29  ;;  %11920 = vmatprep.mubr.msk.bf16.mxu0 %vm12571_vm0, %v15664_v45  ;;  %v8669_v42 = vmul.f32 %v12543_v26, %v15094_v15 }
 0xc1f   : > { %v8685_v24 = vpack.c.bf16 %v8664_v11, %v8664_v11  ;;  %11930 = vmatprep.subr.bf16.mxu0 %v15664_v45 }
 0xc20   : > { %v8690_v4 = vpack.c.bf16 %v8669_v42, %v8669_v42 }
 0xc21   : > { %v8610_v23 = vpop.xlane.xlu1 %8609 }
 0xc22   : > { %11903 = vmatmul.mubr.msk.bf16.vlgmr.msra.gmra.mrb[96].mxu1 %vm508_vm2, %v8685_v24  ;;  %12546 = vrcp.f32 %v8610_v23 }
 0xc23   : > { %11913 = vmatpush3.bf16.msra.mxu1 %v9184_v21  ;;  %11914 = vmatprep.mubr.msk.bf16.mxu1 %vm12571_vm0, %v15664_v45 }
 0xc24   : > { %v12545_v10 = vpop.eup %12544  ;;  %11924 = vmatprep.subr.bf16.mxu1 %v15664_v45 }
 0xc25   : > { %v8666_v62 = vmul.f32 %v12545_v10, %v15116_v0  ;;  %11921 = vmatmul.mubr.msk.bf16.vlgmr.msra.gmra.mrb[60].mxu0 %vm508_vm2, %v8688_v39 }
 0xc26   : > { %11931 = vmatpush3.bf16.msra.mxu0 %v9328_v41  ;;  %11932 = vmatprep.mubr.msk.bf16.mxu0 %vm12571_vm0, %v15664_v45 }
 0xc27   : > { %v8687_v8 = vpack.c.bf16 %v8666_v62, %v8666_v62  ;;  %11942 = vmatprep.subr.bf16.mxu0 %v15664_v45 }
 0xc29   : > { %v8616_v0 = vpop.xlane.xlu1 %8615 }
 0xc2a   : > { %11915 = vmatmul.mubr.msk.bf16.vlgmr.msra.gmra.mrb[100].mxu1 %vm508_vm2, %v8687_v8  ;;  %12548 = vrcp.f32 %v8616_v0 }
 0xc2b   : > { %11926 = vmatprep.mubr.msk.bf16.mxu1 %vm12571_vm0, %v15664_v45  ;;  %12550 = vrcp.f32 %v8619_v13 }
 0xc2c   : > { %v12547_v52 = vpop.eup %12546 }
 0xc2d   : > { %11933 = vmatmul.mubr.msk.bf16.vlgmr.msra.gmra.mrb[64].mxu0 %vm508_vm2, %v8690_v4  ;;  %v8668_v34 = vmul.f32 %v12547_v52, %v15121_v51 }
 0xc2e   : > { %11944 = vmatprep.mubr.msk.bf16.mxu0 %vm12571_vm0, %v15664_v45 }
 0xc2f   : > { %v8689_v38 = vpack.c.bf16 %v8668_v34, %v8668_v34  ;;  %v15739_v34 = vld [vmem:[#allocation31_spill] sm:$0xff] }
 0xc31   : > { %v8622_v57 = vpop.xlane.xlu1 %8621 }
 0xc32   : > { %12552 = vrcp.f32 %v8622_v57 }
 0xc33   : > { %12554 = vrcp.f32 %v8625_v63 }
 0xc34   : > { %v12549_v14 = vpop.eup %12548 }
 0xc35   : > { %v8670_v51 = vmul.f32 %v12549_v14, %v15126_v17  ;;  %v12551_v60 = vpop.eup %12550 }
 0xc36   : > { %v8671_v44 = vmul.f32 %v12551_v60, %v15103_v18 }
 0xc37   : > { %v8691_v61 = vpack.c.bf16 %v8670_v51, %v8670_v51 }
 0xc38   : > { %v8692_v17 = vpack.c.bf16 %v8671_v44, %v8671_v44 }
 0xc39   : > { %v8628_v15 = vpop.xlane.xlu1 %8627 }
 0xc3a   : > { %12556 = vrcp.f32 %v8628_v15 }
 0xc3c   : > { %v12553_v2 = vpop.eup %12552 }
 0xc3d   : > { %v9275_v40 = vpop.permute.xlu1 %9274  ;;  %v8672_v7 = vmul.f32 %v12553_v2, %v15133_v49  ;;  %v12555_v18 = vpop.eup %12554 }
 0xc3e   : > { %v9280_v46 = vsel %vm1772_vm3, %v9275_v40, 0  ;;  %v8673_v25 = vmul.f32 %v12555_v18, %v15111_v31  ;;  %v15740_v40 = vld [vmem:[#allocation30_spill] sm:$0xff] }
 0xc3f   : > { %11925 = vmatpush3.bf16.msra.mxu1 %v9280_v46  ;;  %v8693_v16 = vpack.c.bf16 %v8672_v7, %v8672_v7  ;;  %v15741_v46 = vpack.i.bf16 %v15739_v34, %v15740_v40 }
 0xc40   : > { %11936 = vmatprep.subr.bf16.mxu1 %v15664_v45  ;;  %v8694_v13 = vpack.c.bf16 %v8673_v25, %v8673_v25  ;;  %v15744_v25 = vld [vmem:[#allocation34_spill] sm:$0xff] }
 0xc42   : > { %11927 = vmatmul.mubr.msk.bf16.vlgmr.msra.gmra.mrb[104].mxu1 %vm508_vm2, %v8689_v38 }
 0xc43   : > { %11938 = vmatprep.mubr.msk.bf16.mxu1 %vm12571_vm0, %v15664_v45 }
 0xc44   : > { %v12557_v19 = vpop.eup %12556 }
 0xc45   : > { %v8674_v3 = vmul.f32 %v12557_v19, %v15138_v5 }
 0xc47   : > { %v8695_v27 = vpack.c.bf16 %v8674_v3, %v8674_v3 }
 0xc48   : > { %v8631_v28 = vpop.xlane.xlu0 %8630 }
 0xc49   : > { %12558 = vrcp.f32 %v8631_v28 }
 0xc4c   : > { %v9371_v48 = vpop.permute.xlu0 %9370 }
 0xc4d   : > { %v9376_v30 = vsel %vm1772_vm3, %v9371_v48, 0 }
 0xc4e   : > { %11937 = vmatpush3.bf16.msra.mxu1 %v9376_v30 }
 0xc4f   : > { %11948 = vmatprep.subr.bf16.mxu1 %v15664_v45 }
 0xc50   : > { %v9419_v33 = vpop.permute.xlu0 %9418 }
 0xc51   : > { %v9424_v6 = vsel %vm1772_vm3, %v9419_v33, 0  ;;  %11939 = vmatmul.mubr.msk.bf16.vlgmr.msra.gmra.mrb[108].mxu1 %vm508_vm2, %v8691_v61  ;;  %v15742_v33 = vpack.i.bf16 %v14882_v43, %v14877_v36  ;;  %v15746_v36 = vpack.i.bf16 %v14893_v47, %v14888_v54  ;;  %v15750_v54 = vpack.i.bf16 %v14904_v55, %v14899_v59  ;;  %v15754_v59 = vld [vmem:[#allocation6_spill] sm:$0xff] }
 0xc52   : > { %11943 = vmatpush3.bf16.msra.mxu0 %v9424_v6  ;;  %11950 = vmatprep.mubr.msk.bf16.mxu1 %vm12571_vm0, %v15664_v45  ;;  %v15755_v55 = vpack.i.bf16 %v14910_v50, %v15754_v59  ;;  %v15760_v50 = vld [vmem:[#allocation10_spill] sm:$0xff] }
 0xc53   : > { %11954 = vmatprep.subr.bf16.mxu0 %v15664_v45  ;;  %v12559_v56 = vpop.eup %12558 }
 0xc54   : > { %v9467_v58 = vpop.permute.xlu0 %9466  ;;  %v8675_v9 = vmul.f32 %v12559_v56, %v15142_v20 }
 0xc55   : > { %v9472_v53 = vsel %vm1772_vm3, %v9467_v58, 0  ;;  %11945 = vmatmul.mubr.msk.bf16.vlgmr.msra.gmra.mrb[68].mxu0 %vm508_vm2, %v8692_v17 }
 0xc56   : > { %11949 = vmatpush3.bf16.msra.mxu1 %v9472_v53  ;;  %11956 = vmatprep.mubr.msk.bf16.mxu0 %vm12571_vm0, %v15664_v45  ;;  %v8696_v29 = vpack.c.bf16 %v8675_v9, %v8675_v9  ;;  %v15743_v53 = vld [vmem:[#allocation35_spill] sm:$0xff]  ;;  %v15748_v9 = vld [vmem:[#allocation36_spill] sm:$0xff] }
 0xc57   : > { %11960 = vmatprep.subr.bf16.mxu1 %v15664_v45 }
 0xc58   : > { %v9515_v37 = vpop.permute.xlu0 %9514 }
 0xc59   : > { %v9520_v49 = vsel %vm1772_vm3, %v9515_v37, 0  ;;  %11951 = vmatmul.mubr.msk.bf16.vlgmr.msra.gmra.mrb[112].mxu1 %vm508_vm2, %v8693_v16  ;;  %v15745_v16 = vpack.i.bf16 %v15743_v53, %v15744_v25  ;;  %v15769_v53 = vld [vmem:[#allocation44_spill] sm:$0xff] }
 0xc5a   : > { %11955 = vmatpush3.bf16.msra.mxu0 %v9520_v49  ;;  %11962 = vmatprep.mubr.msk.bf16.mxu1 %vm12571_vm0, %v15664_v45 }
 0xc5b   : > { %11966 = vmatprep.subr.bf16.mxu0 %v15664_v45 }
 0xc5c   : > { %v9563_v31 = vpop.permute.xlu0 %9562 }
 0xc5d   : > { %v9568_v12 = vsel %vm1772_vm3, %v9563_v31, 0  ;;  %11957 = vmatmul.mubr.msk.bf16.vlgmr.msra.gmra.mrb[72].mxu0 %vm508_vm2, %v8694_v13 }
 0xc5e   : > { %11961 = vmatpush3.bf16.msra.mxu1 %v9568_v12  ;;  %11968 = vmatprep.mubr.msk.bf16.mxu0 %vm12571_vm0, %v15664_v45 }
 0xc5f   : > { %11972 = vmatprep.subr.bf16.mxu1 %v15664_v45 }
 0xc60   : > { %v9611_v63 = vpop.permute.xlu0 %9610 }
 0xc61   : > { %v9616_v5 = vsel %vm1772_vm3, %v9611_v63, 0  ;;  %11963 = vmatmul.mubr.msk.bf16.vlgmr.msra.gmra.mrb[116].mxu1 %vm508_vm2, %v8695_v27  ;;  %v15747_v27 = vld [vmem:[#allocation37_spill] sm:$0xff] }
 0xc62   : > { %11967 = vmatpush3.bf16.msra.mxu0 %v9616_v5  ;;  %11974 = vmatprep.mubr.msk.bf16.mxu1 %vm12571_vm0, %v15664_v45  ;;  %v15749_v63 = vpack.i.bf16 %v15747_v27, %v15748_v9 }
 0xc63   : > { %11978 = vmatprep.subr.bf16.mxu0 %v15664_v45 }
 0xc64   : > { %v9659_v11 = vpop.permute.xlu0 %9658 }
 0xc65   : > { %v9664_v35 = vsel %vm1772_vm3, %v9659_v11, 0  ;;  %11969 = vmatmul.mubr.msk.bf16.vlgmr.msra.gmra.mrb[76].mxu0 %vm508_vm2, %v8696_v29 }
 0xc66   : > { %11973 = vmatpush3.bf16.msra.mxu1 %v9664_v35  ;;  %11982 = vmatprep.mubr.msk.bf16.mxu0 %vm12571_vm0, %v15664_v45 }
 0xc68   : > { %v10055_v20 = vpop.permute.xlu0 %10054 }
 0xc69   : > { %11979 = vmatpush3.bf16.msra.mxu0 %v10055_v20 }
 0xc6a   : > { %11980 = vmatprep.subr.bf16.mxu0 %v15664_v45 }
 0xc6c   : > { %v15325_v62 = vpop.permute.xlu0 %12065 }
 0xc6e   : > { %v8634_v24 = vpop.xlane.xlu1 %8633 }
 0xc6f   : > { %12560 = vrcp.f32 %v8634_v24 }
 0xc79   : > { %v12561_v21 = vpop.eup %12560 }
 0xc7a   : > { %v8676_v32 = vmul.f32 %v12561_v21, %v15159_v22  ;;  %v10057_v8 = vpop.permute.xlu0 %10056 }
 0xc7b   : > { %11981 = vmatpush3.bf16.msra.mxu0 %v10057_v8 }
 0xc7c   : > { %v8697_v26 = vpack.c.bf16 %v8676_v32, %v8676_v32 }
 0xc7e   : > { %11975 = vmatmul.mubr.msk.bf16.vlgmr.msra.gmra.mrb[120].mxu1 %vm508_vm2, %v8697_v26  ;;  %v15751_v26 = vld [vmem:[#allocation39_spill] sm:$0xff] }
 0xcb8   : > { %v8788_v39 = vpop.f32.mrb[40].mxu0 }
 0xcb9   : > { %v11862_v10 = vpop.f32.mrb[41].mxu0 }
 0xcba   : > { %v8791_v41 = vpop.f32.mrb[42].mxu0 }
 0xcbb   : > { %v11863_v42 = vpop.f32.mrb[43].mxu0 }
 0xcd4   : > { %v8740_v4 = vpop.f32.mrb[80].mxu1 }
 0xcd5   : > { %v12069_v23 = vpack.i.bf16 %v8788_v39, %v8740_v4  ;;  %v11856_v0 = vpop.f32.mrb[81].mxu1  ;;  %v15752_v39 = vld [vmem:[#allocation38_spill] sm:$0xff] }
 0xcd6   : > { %v8743_v57 = vpop.f32.mrb[82].mxu1  ;;  %v15753_v10 = vpack.i.bf16 %v15751_v26, %v15752_v39 }
 0xcd7   : > { %v11857_v52 = vpop.f32.mrb[83].mxu1  ;;  %12070 = vrot.lane.b32.xlu0 %v12069_v23, %s12586_s22 }
 0xcd8   : > { %v8884_v22 = vpop.f32.mrb[44].mxu0 }
 0xcd9   : > { %v11874_v15 = vpop.f32.mrb[45].mxu0 }
 0xcda   : > { %v8887_v1 = vpop.f32.mrb[46].mxu0  ;;  %v15756_v15 = vld [vmem:[#allocation41_spill] sm:$0xff] }
 0xcdb   : > { %12075 = vrot.lane.b32.xlu0 %v15741_v46, %s12585_s19  ;;  %v11875_v38 = vpop.f32.mrb[47].mxu0  ;;  %v15757_v1 = vld [vmem:[#allocation40_spill] sm:$0xff] }
 0xcdc   : > { %v15758_v34 = vpack.i.bf16 %v15756_v15, %v15757_v1  ;;  %v10517_v15 = vld [vmem:[%s15603_s2] ss:$0 sm:$0xff]  ;;  %v12061_v1 = vpop.permute.xlu1 %12060 }
 0xcdd   : > { %v8836_v14 = vpop.f32.mrb[84].mxu1 }
 0xcde   : > { %v12084_v28 = vpack.i.bf16 %v8884_v22, %v8836_v14  ;;  %v11868_v51 = vpop.f32.mrb[85].mxu1 }
 0xcdf   : > { %v8839_v60 = vpop.f32.mrb[86].mxu1 }
 0xce0   : > { %v11869_v48 = vpop.f32.mrb[87].mxu1  ;;  %12085 = vrot.lane.b32.xlu0 %v12084_v28, %s12586_s22  ;;  %v8980_v30 = vpop.f32.mrb[48].mxu0  ;;  %v15759_v28 = vld [vmem:[#allocation7_spill] sm:$0xff] }
 0xce1   : > { %v11886_v44 = vpop.f32.mrb[49].mxu0  ;;  %v15761_v51 = vpack.i.bf16 %v15759_v28, %v15760_v50  ;;  %v15762_v60 = vld [vmem:[#allocation43_spill] sm:$0xff]  ;;  %v15763_v48 = vld [vmem:[#allocation42_spill] sm:$0xff]  ;;  %v12068_v50 = vunpack.i.h.bf16 %v15325_v62 }
 0xce2   : > { %v8983_v61 = vpop.f32.mrb[50].mxu0 }
 0xce3   : > { %v11887_v2 = vpop.f32.mrb[51].mxu0 }
 0xce4   : > { %12095 = vrot.lane.b32.xlu0 %v15742_v33, %s12584_s17 }
 0xce5   : > { %v8932_v6 = vpop.f32.mrb[88].mxu1 }
 0xce6   : > { %v12099_v17 = vpack.i.bf16 %v8980_v30, %v8932_v6  ;;  %v11880_v7 = vpop.f32.mrb[89].mxu1  ;;  %v15764_v30 = vpack.i.bf16 %v15762_v60, %v15763_v48 }
 0xce7   : > { %v8935_v18 = vpop.f32.mrb[90].mxu1  ;;  %v15766_v7 = vld [vmem:[#allocation8_spill] sm:$0xff] }
 0xce8   : > { %v11881_v58 = vpop.f32.mrb[91].mxu1  ;;  %12105 = vrot.lane.b32.xlu0 %v15745_v16, %s12585_s19  ;;  %12100 = vrot.lane.b32.xlu1 %v12099_v17, %s12586_s22  ;;  %v9076_v19 = vpop.f32.mrb[52].mxu0  ;;  %v15765_v17 = vld [vmem:[#allocation50_spill] sm:$0xff] }
 0xce9   : > { %v11898_v37 = vpop.f32.mrb[53].mxu0  ;;  %v15767_v18 = vpack.i.bf16 %v15765_v17, %v15766_v7  ;;  %v15768_v58 = vld [vmem:[#allocation46_spill] sm:$0xff]  ;;  %v12081_v7 = vpop.permute.xlu1 %12080 }
 0xcea   : > { %v9079_v49 = vpop.f32.mrb[54].mxu0  ;;  %v15770_v25 = vpack.i.bf16 %v15768_v58, %v15769_v53 }
 0xceb   : > { %v11899_v13 = vpop.f32.mrb[55].mxu0 }
 0xcec   : > { %12110 = vrot.lane.b32.xlu1 %v15746_v36, %s12584_s17 }
 0xced   : > { %v9028_v43 = vpop.f32.mrb[92].mxu1 }
 0xcee   : > { %v12114_v3 = vpack.i.bf16 %v9076_v19, %v9028_v43  ;;  %v11892_v56 = vpop.f32.mrb[93].mxu1 }
 0xcef   : > { %v9031_v31 = vpop.f32.mrb[94].mxu1 }
 0xcf0   : > { %v11893_v12 = vpop.f32.mrb[95].mxu1  ;;  %12120 = vrot.lane.b32.xlu1 %v15749_v63, %s12585_s19  ;;  %12115 = vrot.lane.b32.xlu0 %v12114_v3, %s12586_s22  ;;  %v9172_v5 = vpop.f32.mrb[56].mxu0  ;;  %v15771_v63 = vld [vmem:[#allocation51_spill] sm:$0xff] }
 0xcf1   : > { %v11910_v29 = vpop.f32.mrb[57].mxu0 }
 0xcf2   : > { %v9175_v11 = vpop.f32.mrb[58].mxu0 }
 0xcf3   : > { %v11911_v35 = vpop.f32.mrb[59].mxu0 }
 0xcf4   : > { %12125 = vrot.lane.b32.xlu0 %v15750_v54, %s12584_s17 }
 0xcf5   : > { %v9124_v47 = vpop.f32.mrb[96].mxu1 }
 0xcf6   : > { %v12129_v20 = vpack.i.bf16 %v9172_v5, %v9124_v47  ;;  %v11904_v24 = vpop.f32.mrb[97].mxu1  ;;  %v15772_v5 = vld [vmem:[#allocation9_spill] sm:$0xff] }
 0xcf7   : > { %v9127_v21 = vpop.f32.mrb[98].mxu1  ;;  %v15773_v29 = vpack.i.bf16 %v15771_v63, %v15772_v5  ;;  %v15775_v24 = vld [vmem:[#allocation45_spill] sm:$0xff] }
 0xcf8   : > { %v11905_v32 = vpop.f32.mrb[99].mxu1  ;;  %12135 = vrot.lane.b32.xlu0 %v15753_v10, %s12585_s19  ;;  %12130 = vrot.lane.b32.xlu1 %v12129_v20, %s12586_s22  ;;  %v9268_v41 = vpop.f32.mrb[60].mxu0  ;;  %v15774_v20 = vld [vmem:[#allocation48_spill] sm:$0xff] }
 0xcf9   : > { %v11922_v42 = vpop.f32.mrb[61].mxu0  ;;  %v15776_v21 = vpack.i.bf16 %v15774_v20, %v15775_v24 }
 0xcfa   : > { %v9271_v8 = vpop.f32.mrb[62].mxu0  ;;  %v15777_v42 = vld [vmem:[#allocation53_spill] sm:$0xff] }
 0xcfb   : > { %v11923_v4 = vpop.f32.mrb[63].mxu0  ;;  %v15778_v8 = vld [vmem:[#allocation49_spill] sm:$0xff] }
 0xcfc   : > { %12140 = vrot.lane.b32.xlu1 %v15755_v55, %s12584_s17  ;;  %v15779_v4 = vpack.i.bf16 %v15777_v42, %v15778_v8 }
 0xcfd   : > { %v9220_v23 = vpop.f32.mrb[100].mxu1 }
 0xcfe   : > { %v12144_v0 = vpack.i.bf16 %v9268_v41, %v9220_v23  ;;  %v11916_v57 = vpop.f32.mrb[101].mxu1 }
 0xcff   : > { %v9223_v52 = vpop.f32.mrb[102].mxu1  ;;  %v15780_v57 = vld [vmem:[#allocation47_spill] sm:$0xff] }
 0xd00   : > { %v11917_v22 = vpop.f32.mrb[103].mxu1  ;;  %12150 = vrot.lane.b32.xlu1 %v15758_v34, %s12585_s19  ;;  %12145 = vrot.lane.b32.xlu0 %v12144_v0, %s12586_s22  ;;  %v9364_v40 = vpop.f32.mrb[64].mxu0  ;;  %v12063_v34 = vunpack.i.h.bf16 %v12061_v1 }
 0xd01   : > { %v11934_v46 = vpop.f32.mrb[65].mxu0  ;;  %v15781_v22 = vld [vmem:[#allocation52_spill] sm:$0xff] }
 0xd02   : > { %v9367_v38 = vpop.f32.mrb[66].mxu0  ;;  %v15782_v46 = vld [vmem:[#allocation2_spill] sm:$0xff] }
 0xd03   : > { %v11935_v14 = vpop.f32.mrb[67].mxu0  ;;  %v9959_v38 = vsel %vm508_vm2, %v15782_v46, %v12063_v34  ;;  %v15788_v34 = vld [vmem:[#allocation16_spill] sm:$0xff]  ;;  %v15789_v46 = vld [vmem:[#allocation15_spill] sm:$0xff] }
 0xd04   : > { %12155 = vrot.lane.b32.xlu0 %v15761_v51, %s12584_s17  ;;  %v15783_v14 = vld [vmem:[#allocation11_spill] sm:$0xff]  ;;  %v12067_v51 = vunpack.i.l.bf16 %v15325_v62  ;;  %v15784_v62 = vld [vmem:[#allocation4_spill] sm:$0xff] }
 0xd08   : > { %12165 = vrot.lane.b32.xlu0 %v15764_v30, %s12585_s19 }
 0xd15   : > { %v9316_v44 = vpop.f32.mrb[104].mxu1 }
 0xd16   : > { %v12159_v61 = vpack.i.bf16 %v9364_v40, %v9316_v44  ;;  %v11928_v2 = vpop.f32.mrb[105].mxu1  ;;  %v12062_v40 = vunpack.i.l.bf16 %v12061_v1 }
 0xd17   : > { %v9319_v33 = vpop.f32.mrb[106].mxu1 }
 0xd18   : > { %v11929_v6 = vpop.f32.mrb[107].mxu1  ;;  %12160 = vrot.lane.b32.xlu1 %v12159_v61, %s12586_s22  ;;  %v9958_v28 = vsel %vm508_vm2, %v15783_v14, %v12062_v40  ;;  %v9981_v61 = vsel %vm9979_vm4, %v9959_v38, %v12068_v50 }
 0xd19   : > { %v9980_v44 = vsel %vm9979_vm4, %v9958_v28, %v12067_v51 }
 0xd1c   : > { %12170 = vrot.lane.b32.xlu1 %v15767_v18, %s12584_s17 }
 0xd20   : > { %12180 = vrot.lane.b32.xlu1 %v15770_v25, %s12585_s19  ;;  %v15785_v25 = vld [vmem:[#allocation12_spill] sm:$0xff] }
 0xd24   : > { %v9412_v16 = vpop.f32.mrb[108].mxu1 }
 0xd25   : > { %v11940_v19 = vpop.f32.mrb[109].mxu1 }
 0xd26   : > { %v9415_v37 = vpop.f32.mrb[110].mxu1 }
 0xd27   : > { %v11941_v49 = vpop.f32.mrb[111].mxu1  ;;  %v12083_v37 = vunpack.i.h.bf16 %v12081_v7 }
 0xd28   : > { %v9460_v13 = vpop.f32.mrb[68].mxu0  ;;  %v12082_v49 = vunpack.i.l.bf16 %v12081_v7 }
 0xd29   : > { %v12174_v36 = vpack.i.bf16 %v9460_v13, %v9412_v16  ;;  %v11946_v43 = vpop.f32.mrb[69].mxu0 }
 0xd2a   : > { %v9463_v3 = vpop.f32.mrb[70].mxu0 }
 0xd2b   : > { %12175 = vrot.lane.b32.xlu0 %v12174_v36, %s12586_s22  ;;  %v11947_v56 = vpop.f32.mrb[71].mxu0 }
 0xd2c   : > { %v9508_v31 = vpop.f32.mrb[112].mxu1 }
 0xd2d   : > { %v11952_v12 = vpop.f32.mrb[113].mxu1 }
 0xd2e   : > { %v9511_v27 = vpop.f32.mrb[114].mxu1 }
 0xd2f   : > { %v11953_v9 = vpop.f32.mrb[115].mxu1  ;;  %12185 = vrot.lane.b32.xlu0 %v15773_v29, %s12584_s17 }
 0xd30   : > { %v9556_v11 = vpop.f32.mrb[72].mxu0 }
 0xd31   : > { %v12189_v35 = vpack.i.bf16 %v9556_v11, %v9508_v31  ;;  %v11958_v54 = vpop.f32.mrb[73].mxu0  ;;  %v12091_v31 = vpop.permute.xlu1 %12090 }
 0xd32   : > { %v9559_v47 = vpop.f32.mrb[74].mxu0  ;;  %v12092_v54 = vunpack.i.l.bf16 %v12091_v31 }
 0xd33   : > { %12195 = vrot.lane.b32.xlu0 %v15776_v21, %s12585_s19  ;;  %12190 = vrot.lane.b32.xlu1 %v12189_v35, %s12586_s22  ;;  %v11959_v32 = vpop.f32.mrb[75].mxu0  ;;  %v12093_v35 = vunpack.i.h.bf16 %v12091_v31  ;;  %v15786_v21 = vld [vmem:[#allocation13_spill] sm:$0xff] }
 0xd34   : > { %v9604_v26 = vpop.f32.mrb[116].mxu1 }
 0xd35   : > { %v11964_v39 = vpop.f32.mrb[117].mxu1  ;;  %v9963_v32 = vsel %vm508_vm2, %v15786_v21, %v12093_v35 }
 0xd36   : > { %v9607_v10 = vpop.f32.mrb[118].mxu1 }
 0xd37   : > { %v11965_v41 = vpop.f32.mrb[119].mxu1  ;;  %12200 = vrot.lane.b32.xlu1 %v15779_v4, %s12584_s17 }
 0xd38   : > { %v9652_v59 = vpop.f32.mrb[76].mxu0 }
 0xd39   : > { %v12204_v55 = vpack.i.bf16 %v9652_v59, %v9604_v26  ;;  %v11970_v23 = vpop.f32.mrb[77].mxu0  ;;  %v15787_v26 = vld [vmem:[#allocation14_spill] sm:$0xff] }
 0xd3a   : > { %v9655_v0 = vpop.f32.mrb[78].mxu0  ;;  %v9962_v39 = vsel %vm508_vm2, %v15787_v26, %v12092_v54 }
 0xd3b   : > { %9767 = vrot.lane.b32.xlu1 %v15780_v57, %s12585_s19  ;;  %12205 = vrot.lane.b32.xlu0 %v12204_v55, %s12586_s22  ;;  %v11971_v52 = vpop.f32.mrb[79].mxu0 }
 0xd3f   : > { %9851 = vrot.lane.b32.xlu0 %v15781_v22, %s12584_s17 }
 0xd43   : > { %10060 = vrot.lane.b32.xlu0 %v10517_v15, %s12583_s16 }
 0xd49   : > { %v12071_v60 = vpop.permute.xlu0 %12070 }
 0xd4a   : > { %v12073_v48 = vunpack.i.h.bf16 %v12071_v60  ;;  %v12072_v30 = vunpack.i.l.bf16 %v12071_v60 }
 0xd4c   : > { %v10003_v2 = vsel %vm10001_vm5, %v9981_v61, %v12073_v48  ;;  %v10002_v33 = vsel %vm10001_vm5, %v9980_v44, %v12072_v30 }
 0xd4d   : > { %v10023_v6 = vpack.c.bf16 %v10003_v2, %v10002_v33  ;;  %v12076_v17 = vpop.permute.xlu0 %12075 }
 0xd4e   : > { %v12078_v18 = vunpack.i.h.bf16 %v12076_v17  ;;  %v12077_v58 = vunpack.i.l.bf16 %v12076_v17 }
 0xd4f   : > { %11983 = vmatmul.mubr.msk.bf16.vlgmr.msra.gmra.mrb[80].mxu0 %vm10063_vm6, %v10023_v6 }
 0xd50   : > { %11986 = vmatprep.mubr.msk.bf16.mxu0 %vm12571_vm0, %v15664_v45  ;;  %v9961_v53 = vsel %vm508_vm2, %v15784_v62, %v12078_v18  ;;  %v9960_v16 = vsel %vm508_vm2, %v15785_v25, %v12077_v58  ;;  %v15790_v18 = vld [vmem:[#allocation18_spill] sm:$0xff]  ;;  %v15791_v62 = vld [vmem:[#allocation17_spill] sm:$0xff] }
 0xd51   : > { %v9700_v19 = vpop.f32.mrb[120].mxu1  ;;  %v9982_v12 = vsel %vm9979_vm4, %v9960_v16, %v12082_v49  ;;  %v9983_v27 = vsel %vm9979_vm4, %v9961_v53, %v12083_v37 }
 0xd52   : > { %v12086_v13 = vpop.permute.xlu0 %12085  ;;  %v11976_v36 = vpop.f32.mrb[121].mxu1  ;;  %9935 = vrot.lane.b32.xlu1 %v9700_v19, %s12586_s22 }
 0xd53   : > { %v12088_v43 = vunpack.i.h.bf16 %v12086_v13  ;;  %v12087_v3 = vunpack.i.l.bf16 %v12086_v13  ;;  %v9703_v56 = vpop.f32.mrb[122].mxu1 }
 0xd54   : > { %v11977_v9 = vpop.f32.mrb[123].mxu1 }
 0xd55   : > { %v10005_v63 = vsel %vm10001_vm5, %v9983_v27, %v12088_v43  ;;  %v10004_v5 = vsel %vm10001_vm5, %v9982_v12, %v12087_v3 }
 0xd56   : > { %v10024_v29 = vpack.c.bf16 %v10005_v63, %v10004_v5  ;;  %v12096_v11 = vpop.permute.xlu0 %12095  ;;  %v15792_v63 = vld [vmem:[#allocation21_spill] sm:$0xff] }
 0xd57   : > { %v12098_v47 = vunpack.i.h.bf16 %v12096_v11  ;;  %v12097_v20 = vunpack.i.l.bf16 %v12096_v11 }
 0xd58   : > { %11987 = vmatmul.mubr.msk.bf16.gmra.mrb[84].mxu0 %vm10063_vm6, %v10024_v29  ;;  %v15793_v29 = vld [vmem:[#allocation19_spill] sm:$0xff] }
 0xd59   : > { %11990 = vmatprep.mubr.msk.bf16.mxu0 %vm12571_vm0, %v15664_v45  ;;  %v9985_v42 = vsel %vm9979_vm4, %v9963_v32, %v12098_v47  ;;  %v9984_v8 = vsel %vm9979_vm4, %v9962_v39, %v12097_v20 }
 0xd5a   : > { %v12101_v24 = vpop.permute.xlu1 %12100  ;;  %v12106_v4 = vpop.permute.xlu0 %12105 }
 0xd5b   : > { %v12103_v10 = vunpack.i.h.bf16 %v12101_v24  ;;  %v12102_v41 = vunpack.i.l.bf16 %v12101_v24  ;;  %v12108_v57 = vunpack.i.h.bf16 %v12106_v4  ;;  %v12107_v52 = vunpack.i.l.bf16 %v12106_v4 }
 0xd5d   : > { %v10007_v59 = vsel %vm10001_vm5, %v9985_v42, %v12103_v10  ;;  %v10006_v55 = vsel %vm10001_vm5, %v9984_v8, %v12102_v41  ;;  %v9965_v40 = vsel %vm508_vm2, %v15788_v34, %v12108_v57  ;;  %v9964_v38 = vsel %vm508_vm2, %v15789_v46, %v12107_v52 }
 0xd5e   : > { %v10025_v23 = vpack.c.bf16 %v10007_v59, %v10006_v55  ;;  %v12111_v0 = vpop.permute.xlu1 %12110  ;;  %v15794_v59 = vld [vmem:[#allocation23_spill] sm:$0xff] }
 0xd5f   : > { %v12113_v22 = vunpack.i.h.bf16 %v12111_v0  ;;  %v12112_v15 = vunpack.i.l.bf16 %v12111_v0 }
 0xd60   : > { %11991 = vmatmul.mubr.msk.bf16.gmra.mrb[88].mxu0 %vm10063_vm6, %v10025_v23  ;;  %v15795_v23 = vld [vmem:[#allocation20_spill] sm:$0xff] }
 0xd61   : > { %11994 = vmatprep.mubr.msk.bf16.mxu0 %vm12571_vm0, %v15664_v45  ;;  %v9987_v50 = vsel %vm9979_vm4, %v9965_v40, %v12113_v22  ;;  %v9986_v51 = vsel %vm9979_vm4, %v9964_v38, %v12112_v15 }
 0xd62   : > { %v12116_v1 = vpop.permute.xlu0 %12115  ;;  %v12121_v60 = vpop.permute.xlu1 %12120 }
 0xd63   : > { %v12118_v14 = vunpack.i.h.bf16 %v12116_v1  ;;  %v12117_v28 = vunpack.i.l.bf16 %v12116_v1  ;;  %v12123_v2 = vunpack.i.h.bf16 %v12121_v60  ;;  %v12122_v33 = vunpack.i.l.bf16 %v12121_v60 }
 0xd65   : > { %v10009_v48 = vsel %vm10001_vm5, %v9987_v50, %v12118_v14  ;;  %v10008_v30 = vsel %vm10001_vm5, %v9986_v51, %v12117_v28  ;;  %v9967_v58 = vsel %vm508_vm2, %v15790_v18, %v12123_v2  ;;  %v9966_v53 = vsel %vm508_vm2, %v15791_v62, %v12122_v33 }
 0xd66   : > { %v10026_v44 = vpack.c.bf16 %v10009_v48, %v10008_v30  ;;  %v12126_v61 = vpop.permute.xlu0 %12125  ;;  %v15796_v48 = vld [vmem:[#allocation25_spill] sm:$0xff] }
 0xd67   : > { %v12128_v6 = vunpack.i.h.bf16 %v12126_v61  ;;  %v12127_v17 = vunpack.i.l.bf16 %v12126_v61 }
 0xd68   : > { %11995 = vmatmul.mubr.msk.bf16.gmra.mrb[92].mxu0 %vm10063_vm6, %v10026_v44  ;;  %v15797_v44 = vld [vmem:[#allocation22_spill] sm:$0xff] }
 0xd69   : > { %11998 = vmatprep.mubr.msk.bf16.mxu0 %vm12571_vm0, %v15664_v45  ;;  %v9989_v19 = vsel %vm9979_vm4, %v9967_v58, %v12128_v6  ;;  %v9988_v37 = vsel %vm9979_vm4, %v9966_v53, %v12127_v17 }
 0xd6a   : > { %v12131_v7 = vpop.permute.xlu1 %12130  ;;  %v12136_v49 = vpop.permute.xlu0 %12135 }
 0xd6b   : > { %v12133_v25 = vunpack.i.h.bf16 %v12131_v7  ;;  %v12132_v16 = vunpack.i.l.bf16 %v12131_v7  ;;  %v12138_v56 = vunpack.i.h.bf16 %v12136_v49  ;;  %v12137_v31 = vunpack.i.l.bf16 %v12136_v49 }
 0xd6d   : > { %v10011_v13 = vsel %vm10001_vm5, %v9989_v19, %v12133_v25  ;;  %v10010_v36 = vsel %vm10001_vm5, %v9988_v37, %v12132_v16  ;;  %v9969_v5 = vsel %vm508_vm2, %v15792_v63, %v12138_v56  ;;  %v9968_v11 = vsel %vm508_vm2, %v15793_v29, %v12137_v31 }
 0xd6e   : > { %v10027_v43 = vpack.c.bf16 %v10011_v13, %v10010_v36  ;;  %v12141_v3 = vpop.permute.xlu1 %12140  ;;  %v15798_v13 = vld [vmem:[#allocation27_spill] sm:$0xff] }
 0xd6f   : > { %v12143_v12 = vunpack.i.h.bf16 %v12141_v3  ;;  %v12142_v27 = vunpack.i.l.bf16 %v12141_v3 }
 0xd70   : > { %11999 = vmatmul.mubr.msk.bf16.gmra.mrb[96].mxu0 %vm10063_vm6, %v10027_v43  ;;  %v15799_v43 = vld [vmem:[#allocation24_spill] sm:$0xff] }
 0xd71   : > { %12002 = vmatprep.mubr.msk.bf16.mxu0 %vm12571_vm0, %v15664_v45  ;;  %v9991_v47 = vsel %vm9979_vm4, %v9969_v5, %v12143_v12  ;;  %v9990_v20 = vsel %vm9979_vm4, %v9968_v11, %v12142_v27 }
 0xd72   : > { %v12146_v9 = vpop.permute.xlu0 %12145  ;;  %v12151_v26 = vpop.permute.xlu1 %12150 }
 0xd73   : > { %v12148_v35 = vunpack.i.h.bf16 %v12146_v9  ;;  %v12147_v54 = vunpack.i.l.bf16 %v12146_v9  ;;  %v12153_v10 = vunpack.i.h.bf16 %v12151_v26  ;;  %v12152_v41 = vunpack.i.l.bf16 %v12151_v26  ;;  %v15801_v26 = vld [vmem:[#allocation26_spill] sm:$0xff] }
 0xd75   : > { %v10013_v24 = vsel %vm10001_vm5, %v9991_v47, %v12148_v35  ;;  %v10012_v21 = vsel %vm10001_vm5, %v9990_v20, %v12147_v54  ;;  %v9971_v55 = vsel %vm508_vm2, %v15794_v59, %v12153_v10  ;;  %v9970_v0 = vsel %vm508_vm2, %v15795_v23, %v12152_v41 }
 0xd76   : > { %v10028_v32 = vpack.c.bf16 %v10013_v24, %v10012_v21  ;;  %v12156_v39 = vpop.permute.xlu0 %12155  ;;  %v15800_v21 = vld [vmem:[#allocation29_spill] sm:$0xff] }
 0xd77   : > { %v12158_v42 = vunpack.i.h.bf16 %v12156_v39  ;;  %v12157_v8 = vunpack.i.l.bf16 %v12156_v39 }
 0xd78   : > { %12003 = vmatmul.mubr.msk.bf16.gmra.mrb[100].mxu0 %vm10063_vm6, %v10028_v32 }
 0xd79   : > { %12006 = vmatprep.mubr.msk.bf16.mxu0 %vm12571_vm0, %v15664_v45  ;;  %v9993_v22 = vsel %vm9979_vm4, %v9971_v55, %v12158_v42  ;;  %v9992_v15 = vsel %vm9979_vm4, %v9970_v0, %v12157_v8 }
 0xd7a   : > { %v12166_v46 = vpop.permute.xlu0 %12165 }
 0xd7b   : > { %v12168_v14 = vunpack.i.h.bf16 %v12166_v46  ;;  %v12167_v28 = vunpack.i.l.bf16 %v12166_v46 }
 0xd7d   : > { %v9973_v30 = vsel %vm508_vm2, %v15796_v48, %v12168_v14  ;;  %v9972_v61 = vsel %vm508_vm2, %v15797_v44, %v12167_v28 }
 0xd8a   : > { %v12161_v4 = vpop.permute.xlu1 %12160 }
 0xd8b   : > { %v12163_v57 = vunpack.i.h.bf16 %v12161_v4  ;;  %v12162_v52 = vunpack.i.l.bf16 %v12161_v4 }
 0xd8d   : > { %v10015_v1 = vsel %vm10001_vm5, %v9993_v22, %v12163_v57  ;;  %v10014_v34 = vsel %vm10001_vm5, %v9992_v15, %v12162_v52  ;;  %v15802_v57 = vld [vmem:[#allocation28_spill] sm:$0xff] }
 0xd8e   : > { %v10029_v40 = vpack.c.bf16 %v10015_v1, %v10014_v34  ;;  %v12171_v38 = vpop.permute.xlu1 %12170 }
 0xd8f   : > { %v12173_v50 = vunpack.i.h.bf16 %v12171_v38  ;;  %v12172_v51 = vunpack.i.l.bf16 %v12171_v38 }
 0xd90   : > { %12007 = vmatmul.mubr.msk.bf16.gmra.mrb[104].mxu0 %vm10063_vm6, %v10029_v40 }
 0xd91   : > { %12010 = vmatprep.mubr.msk.bf16.mxu0 %vm12571_vm0, %v15664_v45  ;;  %v9995_v6 = vsel %vm9979_vm4, %v9973_v30, %v12173_v50  ;;  %v9994_v17 = vsel %vm9979_vm4, %v9972_v61, %v12172_v51 }
 0xd92   : > { %v12181_v7 = vpop.permute.xlu1 %12180 }
 0xd93   : > { %v12183_v25 = vunpack.i.h.bf16 %v12181_v7  ;;  %v12182_v16 = vunpack.i.l.bf16 %v12181_v7 }
 0xd95   : > { %v9975_v36 = vsel %vm508_vm2, %v15798_v13, %v12183_v25  ;;  %v9974_v3 = vsel %vm508_vm2, %v15799_v43, %v12182_v16 }
 0xd9d   : > { %v12176_v60 = vpop.permute.xlu0 %12175 }
 0xd9e   : > { %v12178_v2 = vunpack.i.h.bf16 %v12176_v60  ;;  %v12177_v33 = vunpack.i.l.bf16 %v12176_v60 }
 0xda0   : > { %v10017_v18 = vsel %vm10001_vm5, %v9995_v6, %v12178_v2  ;;  %v10016_v58 = vsel %vm10001_vm5, %v9994_v17, %v12177_v33 }
 0xda1   : > { %v10030_v62 = vpack.c.bf16 %v10017_v18, %v10016_v58  ;;  %v12186_v53 = vpop.permute.xlu0 %12185 }
 0xda2   : > { %v12188_v19 = vunpack.i.h.bf16 %v12186_v53  ;;  %v12187_v37 = vunpack.i.l.bf16 %v12186_v53 }
 0xda3   : > { %12011 = vmatmul.mubr.msk.bf16.gmra.mrb[108].mxu0 %vm10063_vm6, %v10030_v62 }
 0xda4   : > { %12014 = vmatprep.mubr.msk.bf16.mxu0 %vm12571_vm0, %v15664_v45  ;;  %v9997_v12 = vsel %vm9979_vm4, %v9975_v36, %v12188_v19  ;;  %v9996_v27 = vsel %vm9979_vm4, %v9974_v3, %v12187_v37 }
 0xda5   : > { %v12191_v49 = vpop.permute.xlu1 %12190  ;;  %v12196_v9 = vpop.permute.xlu0 %12195 }
 0xda6   : > { %v12193_v56 = vunpack.i.h.bf16 %v12191_v49  ;;  %v12192_v31 = vunpack.i.l.bf16 %v12191_v49  ;;  %v12198_v35 = vunpack.i.h.bf16 %v12196_v9  ;;  %v12197_v54 = vunpack.i.l.bf16 %v12196_v9 }
 0xda8   : > { %v10019_v63 = vsel %vm10001_vm5, %v9997_v12, %v12193_v56  ;;  %v10018_v5 = vsel %vm10001_vm5, %v9996_v27, %v12192_v31  ;;  %v9977_v32 = vsel %vm508_vm2, %v15800_v21, %v12198_v35  ;;  %v9976_v39 = vsel %vm508_vm2, %v15801_v26, %v12197_v54 }
 0xda9   : > { %v10031_v29 = vpack.c.bf16 %v10019_v63, %v10018_v5  ;;  %v12201_v11 = vpop.permute.xlu1 %12200 }
 0xdaa   : > { %v12203_v47 = vunpack.i.h.bf16 %v12201_v11  ;;  %v12202_v20 = vunpack.i.l.bf16 %v12201_v11 }
 0xdab   : > { %12015 = vmatmul.mubr.msk.bf16.gmra.mrb[112].mxu0 %vm10063_vm6, %v10031_v29 }
 0xdac   : > { %12018 = vmatprep.mubr.msk.bf16.mxu0 %vm12571_vm0, %v15664_v45  ;;  %v9999_v42 = vsel %vm9979_vm4, %v9977_v32, %v12203_v47  ;;  %v9998_v8 = vsel %vm9979_vm4, %v9976_v39, %v12202_v20 }
 0xdad   : > { %v12206_v24 = vpop.permute.xlu0 %12205  ;;  %v9768_v23 = vpop.permute.xlu1 %9767 }
 0xdae   : > { %v12208_v10 = vunpack.i.h.bf16 %v12206_v24  ;;  %v12207_v41 = vunpack.i.l.bf16 %v12206_v24  ;;  %v9978_v52 = vsel %vm508_vm2, %v15802_v57, %v9768_v23 }
 0xdb0   : > { %v10021_v4 = vsel %vm10001_vm5, %v9999_v42, %v12208_v10  ;;  %v10020_v59 = vsel %vm10001_vm5, %v9998_v8, %v12207_v41 }
 0xdb1   : > { %v10032_v55 = vpack.c.bf16 %v10021_v4, %v10020_v59  ;;  %v9852_v0 = vpop.permute.xlu0 %9851 }
 0xdb2   : > { %v10000_v22 = vsel %vm9979_vm4, %v9978_v52, %v9852_v0 }
 0xdb3   : > { %12019 = vmatmul.mubr.msk.bf16.gmra.mrb[116].mxu0 %vm10063_vm6, %v10032_v55 }
 0xdb4   : > { %12022 = vmatprep.mubr.msk.bf16.mxu0 %vm12571_vm0, %v15664_v45 }
 0xdb5   : > { %v15528_v40 = vpop.permute.xlu0 %10060 }
 0xdc4   : > { %v9936_v15 = vpop.permute.xlu1 %9935 }
 0xdc5   : > { %v10022_v1 = vsel %vm10001_vm5, %v10000_v22, %v9936_v15 }
 0xdc6   : > { %v10033_v34 = vpack.c.bf16 %v10022_v1, %v10022_v1 }
 0xdc8   : > { %12023 = vmatmul.mubr.msk.bf16.gmra.mrb[120].mxu0 %vm10063_vm6, %v10033_v34 }
 0xe22   : > { %v10131_v45 = vpop.f32.mrb[80].mxu0 }
 0xe23   : > { %v10132_v46 = vadd.f32 %v10131_v45, %v15528_v40  ;;  %v11984_v38 = vpop.f32.mrb[81].mxu0 }
 0xe24   : > { %v10134_v14 = vpop.f32.mrb[82].mxu0 }
 0xe25   : > { %10217 = vst.msk [vmem:[%s15533_s28] sm:$0xff] %vm10063_vm6, %v10132_v46  ;;  %v10135_v28 = vadd.f32 %v10134_v14, %v15528_v40  ;;  %v11985_v50 = vpop.f32.mrb[83].mxu0 }
 0xe27   : > { %10218 = vst.msk [vmem:[%s15533_s28 + $0x8] sm:$0xff] %vm10063_vm6, %v10135_v28 }
 0xe2b   : > { %v10139_v51 = vpop.f32.mrb[84].mxu0 }
 0xe2c   : > { %v10140_v60 = vadd.f32 %v10139_v51, %v15528_v40  ;;  %v11988_v48 = vpop.f32.mrb[85].mxu0 }
 0xe2d   : > { %v10142_v30 = vpop.f32.mrb[86].mxu0 }
 0xe2e   : > { %10219 = vst.msk [vmem:[%s15533_s28 + $0x10] sm:$0xff] %vm10063_vm6, %v10140_v60  ;;  %v10143_v44 = vadd.f32 %v10142_v30, %v15528_v40  ;;  %v11989_v61 = vpop.f32.mrb[87].mxu0 }
 0xe30   : > { %10220 = vst.msk [vmem:[%s15533_s28 + $0x18] sm:$0xff] %vm10063_vm6, %v10143_v44 }
 0xe33   : > { %v10147_v2 = vpop.f32.mrb[88].mxu0 }
 0xe34   : > { %v10148_v33 = vadd.f32 %v10147_v2, %v15528_v40  ;;  %v11992_v6 = vpop.f32.mrb[89].mxu0 }
 0xe35   : > { %v10150_v17 = vpop.f32.mrb[90].mxu0 }
 0xe36   : > { %10221 = vst.msk [vmem:[%s15533_s28 + $0x20] sm:$0xff] %vm10063_vm6, %v10148_v33  ;;  %v10151_v7 = vadd.f32 %v10150_v17, %v15528_v40  ;;  %v11993_v18 = vpop.f32.mrb[91].mxu0 }
 0xe38   : > { %10222 = vst.msk [vmem:[%s15533_s28 + $0x28] sm:$0xff] %vm10063_vm6, %v10151_v7 }
 0xe3b   : > { %v10155_v58 = vpop.f32.mrb[92].mxu0 }
 0xe3c   : > { %v10156_v62 = vadd.f32 %v10155_v58, %v15528_v40  ;;  %v11996_v53 = vpop.f32.mrb[93].mxu0 }
 0xe3d   : > { %v10158_v25 = vpop.f32.mrb[94].mxu0 }
 0xe3e   : > { %10223 = vst.msk [vmem:[%s15533_s28 + $0x30] sm:$0xff] %vm10063_vm6, %v10156_v62  ;;  %v10159_v16 = vadd.f32 %v10158_v25, %v15528_v40  ;;  %v11997_v19 = vpop.f32.mrb[95].mxu0 }
 0xe40   : > { %10224 = vst.msk [vmem:[%s15533_s28 + $0x38] sm:$0xff] %vm10063_vm6, %v10159_v16 }
 0xe43   : > { %v10163_v37 = vpop.f32.mrb[96].mxu0 }
 0xe44   : > { %v10164_v49 = vadd.f32 %v10163_v37, %v15528_v40  ;;  %v12000_v13 = vpop.f32.mrb[97].mxu0 }
 0xe45   : > { %v10166_v36 = vpop.f32.mrb[98].mxu0 }
 0xe46   : > { %10225 = vst.msk [vmem:[%s15533_s28 + $0x40] sm:$0xff] %vm10063_vm6, %v10164_v49  ;;  %v10167_v43 = vadd.f32 %v10166_v36, %v15528_v40  ;;  %v12001_v3 = vpop.f32.mrb[99].mxu0 }
 0xe48   : > { %10226 = vst.msk [vmem:[%s15533_s28 + $0x48] sm:$0xff] %vm10063_vm6, %v10167_v43 }
 0xe4b   : > { %v10171_v56 = vpop.f32.mrb[100].mxu0 }
 0xe4c   : > { %v10172_v31 = vadd.f32 %v10171_v56, %v15528_v40  ;;  %v12004_v12 = vpop.f32.mrb[101].mxu0 }
 0xe4d   : > { %v10174_v27 = vpop.f32.mrb[102].mxu0 }
 0xe4e   : > { %10227 = vst.msk [vmem:[%s15533_s28 + $0x50] sm:$0xff] %vm10063_vm6, %v10172_v31  ;;  %v10175_v9 = vadd.f32 %v10174_v27, %v15528_v40  ;;  %v12005_v63 = vpop.f32.mrb[103].mxu0 }
 0xe50   : > { %10228 = vst.msk [vmem:[%s15533_s28 + $0x58] sm:$0xff] %vm10063_vm6, %v10175_v9 }
 0xe63   : > { %v10179_v5 = vpop.f32.mrb[104].mxu0 }
 0xe64   : > { %v10180_v29 = vadd.f32 %v10179_v5, %v15528_v40  ;;  %v12008_v11 = vpop.f32.mrb[105].mxu0 }
 0xe65   : > { %v10182_v35 = vpop.f32.mrb[106].mxu0 }
 0xe66   : > { %10229 = vst.msk [vmem:[%s15533_s28 + $0x60] sm:$0xff] %vm10063_vm6, %v10180_v29  ;;  %v10183_v54 = vadd.f32 %v10182_v35, %v15528_v40  ;;  %v12009_v47 = vpop.f32.mrb[107].mxu0 }
 0xe68   : > { %10230 = vst.msk [vmem:[%s15533_s28 + $0x68] sm:$0xff] %vm10063_vm6, %v10183_v54 }
 0xe76   : > { %v10187_v20 = vpop.f32.mrb[108].mxu0 }
 0xe77   : > { %v10188_v24 = vadd.f32 %v10187_v20, %v15528_v40  ;;  %v12012_v21 = vpop.f32.mrb[109].mxu0 }
 0xe78   : > { %v10190_v32 = vpop.f32.mrb[110].mxu0 }
 0xe79   : > { %10231 = vst.msk [vmem:[%s15533_s28 + $0x70] sm:$0xff] %vm10063_vm6, %v10188_v24  ;;  %v10191_v26 = vadd.f32 %v10190_v32, %v15528_v40  ;;  %v12013_v39 = vpop.f32.mrb[111].mxu0 }
 0xe7b   : > { %10232 = vst.msk [vmem:[%s15533_s28 + $0x78] sm:$0xff] %vm10063_vm6, %v10191_v26 }
 0xe7e   : > { %v10195_v10 = vpop.f32.mrb[112].mxu0 }
 0xe7f   : > { %v10196_v41 = vadd.f32 %v10195_v10, %v15528_v40  ;;  %v12016_v42 = vpop.f32.mrb[113].mxu0 }
 0xe80   : > { %v10198_v8 = vpop.f32.mrb[114].mxu0 }
 0xe81   : > { %10233 = vst.msk [vmem:[%s15533_s28 + $0x80] sm:$0xff] %vm10063_vm6, %v10196_v41  ;;  %v10199_v4 = vadd.f32 %v10198_v8, %v15528_v40  ;;  %v12017_v59 = vpop.f32.mrb[115].mxu0 }
 0xe83   : > { %10234 = vst.msk [vmem:[%s15533_s28 + $0x88] sm:$0xff] %vm10063_vm6, %v10199_v4 }
 0xe86   : > { %v10203_v55 = vpop.f32.mrb[116].mxu0 }
 0xe87   : > { %v10204_v23 = vadd.f32 %v10203_v55, %v15528_v40  ;;  %v12020_v0 = vpop.f32.mrb[117].mxu0 }
 0xe88   : > { %v10206_v57 = vpop.f32.mrb[118].mxu0 }
 0xe89   : > { %10235 = vst.msk [vmem:[%s15533_s28 + $0x90] sm:$0xff] %vm10063_vm6, %v10204_v23  ;;  %v10207_v52 = vadd.f32 %v10206_v57, %v15528_v40  ;;  %v12021_v22 = vpop.f32.mrb[119].mxu0 }
 0xe8b   : > { %10236 = vst.msk [vmem:[%s15533_s28 + $0x98] sm:$0xff] %vm10063_vm6, %v10207_v52 }
 0xe9b   : > { %v10211_v15 = vpop.f32.mrb[120].mxu0 }
 0xe9c   : > { %v10212_v1 = vadd.f32 %v10211_v15, %v15528_v40  ;;  %v12024_v34 = vpop.f32.mrb[121].mxu0 }
 0xe9d   : > { %v10214_v45 = vpop.f32.mrb[122].mxu0 }
 0xe9e   : > { %10237 = vst.msk [vmem:[%s15533_s28 + $0xa0] sm:$0xff] %vm10063_vm6, %v10212_v1  ;;  %v12025_v46 = vpop.f32.mrb[123].mxu0 }
 0xe9f PF: > { %s13_s12 = sadd.s32 1, %s12568_s12  }
 0xea0   : > { %p10_p4 = scmp.ge.s32.totalorder %s13_s12, 4  }
 0xea2   :  { %12 = sbr.rel (!%p10_p4) target bundleno = 1 (0x1), region = 62 }

</bundles_post_ra>
